<compile_context>
chip_gen: v7x
topology: tpu7x:2x2x1
jax: 0.10.0
libtpu: 0.0.40
codegen_flags: <defaults>
</compile_context>

<pallas_src>
import math
from functools import partial

import jax
import jax.numpy as jnp
import numpy as np
from jax import lax
from jax.experimental import pallas as pl
from jax.experimental.pallas import tpu as pltpu

ESM_DIM = 1280  # fixed by the module's parameter shapes (1280 x 1280)


def _cross_attention_kernel(x1_ref, x2_ref, wq_ref, wk_ref, wv_ref,
                            out_ref, attn_ref, *, B, Lq, Lk):
    # x1_ref: [B*Lq, D] bf16, x2_ref: [B*Lk, D] bf16, weights: [D, D] bf16.
    x1 = x1_ref[...]
    x2 = x2_ref[...]

    # Projections with B folded into M (one MXU weight pass per weight matrix
    # for the whole batch), f32 accumulation.
    q = jnp.dot(x1, wq_ref[...], preferred_element_type=jnp.float32)  # [B*Lq, D]
    k = jnp.dot(x2, wk_ref[...], preferred_element_type=jnp.float32)  # [B*Lk, D]
    v = jnp.dot(x2, wv_ref[...], preferred_element_type=jnp.float32)  # [B*Lk, D]

    inv_sqrt_d = 1.0 / math.sqrt(q.shape[-1])

    # Per-batch attention; B is tiny so a static unroll is cheapest.  For
    # large B this would become a batch-chunk grid axis (flash-style).
    for b in range(B):
        qb = q[b * Lq:(b + 1) * Lq, :]                                 # [Lq, D]
        kb = k[b * Lk:(b + 1) * Lk, :]                                 # [Lk, D]
        vb = v[b * Lk:(b + 1) * Lk, :]                                 # [Lk, D]

        # Contract the last dims directly; no explicit k.T.
        scores = lax.dot_general(
            qb, kb, (((1,), (1,)), ((), ())),
            preferred_element_type=jnp.float32) * inv_sqrt_d           # [Lq, Lk]

        # Numerically stable softmax in f32; reciprocal on the EUP.
        m = jnp.max(scores, axis=-1, keepdims=True)
        e = jnp.exp(scores - m)
        denom = jnp.sum(e, axis=-1, keepdims=True)
        w = e * pl.reciprocal(denom, approx=True)                      # [Lq, Lk]

        # NOTE: Lk=16 < 128 makes this a masked (lane-sparse) store; negligible
        # at this size, but pad/pack Lk to a multiple of 128 for realistic
        # cyclase lengths.
        attn_ref[b * Lq:(b + 1) * Lq, :] = w
        out_ref[b * Lq:(b + 1) * Lq, :] = jnp.dot(
            w, vb, preferred_element_type=jnp.float32)                 # [Lq, D]


def cross_attention(x1, x2, w_query, w_key, w_value):
    """x1: [B, Lq, D], x2: [B, Lk, D], weights: [D, D]. Returns (out, attn)."""
    B, Lq, D = x1.shape
    _, Lk, _ = x2.shape
    assert D == w_query.shape[0] == w_query.shape[1]

    # Fold batch into the matmul M dimension; cast MXU inputs to bf16.
    x1f = x1.reshape(B * Lq, D).astype(jnp.bfloat16)
    x2f = x2.reshape(B * Lk, D).astype(jnp.bfloat16)
    wq = w_query.astype(jnp.bfloat16)
    wk = w_key.astype(jnp.bfloat16)
    wv = w_value.astype(jnp.bfloat16)

    kernel = partial(_cross_attention_kernel, B=B, Lq=Lq, Lk=Lk)

    out_flat, attn_flat = pl.pallas_call(
        kernel,
        out_shape=(
            jax.ShapeDtypeStruct((B * Lq, D), jnp.float32),
            jax.ShapeDtypeStruct((B * Lq, Lk), jnp.float32),
        ),
        # No grid / no BlockSpecs: every operand is brought fully into VMEM
        # once (single step, no pipelining or double buffering needed).
        compiler_params=pltpu.CompilerParams(
            vmem_limit_bytes=32 << 20,  # demand ~11 MiB; fits v7x's 64 MiB VMEM
        ),
    )(x1f, x2f, wq, wk, wv)

    return out_flat.reshape(B, Lq, D), attn_flat.reshape(B, Lq, Lk)


def cross_attention_ref_f32(x1, x2, wq, wk, wv):
    """Pure f32 reference with the original module's semantics."""
    q = x1 @ wq
    k = x2 @ wk
    v = x2 @ wv
    scores = jnp.einsum("bqd,bkd->bqk", q, k) / math.sqrt(q.shape[-1])
    w = jax.nn.softmax(scores, axis=-1)
    return jnp.einsum("bqk,bkd->bqd", w, v), w


def cross_attention_ref_bf16(x1, x2, wq, wk, wv):
    """Reference with the kernel's numerics plan: bf16 MXU inputs, f32 acc."""
    x1b = x1.astype(jnp.bfloat16)
    x2b = x2.astype(jnp.bfloat16)
    wqb = wq.astype(jnp.bfloat16)
    wkb = wk.astype(jnp.bfloat16)
    wvb = wv.astype(jnp.bfloat16)
    q = jnp.einsum("bld,de->ble", x1b, wqb, preferred_element_type=jnp.float32)
    k = jnp.einsum("bld,de->ble", x2b, wkb, preferred_element_type=jnp.float32)
    v = jnp.einsum("bld,de->ble", x2b, wvb, preferred_element_type=jnp.float32)
    scores = jnp.einsum("bqd,bkd->bqk", q, k,
                        preferred_element_type=jnp.float32) / math.sqrt(q.shape[-1])
    w = jax.nn.softmax(scores, axis=-1)
    out = jnp.einsum("bqk,bkd->bqd", w, v, preferred_element_type=jnp.float32)
    return out, w


if __name__ == "__main__":
    key = jax.random.PRNGKey(0)
    k_x1, k_x2, k_wq, k_wk, k_wv = jax.random.split(key, 5)

    B, Lq, Lk, D = 2, 8, 16, ESM_DIM

    # Inputs: small-magnitude activations (ESM-style embeddings).
    x1 = (0.01 * jax.random.normal(k_x1, (B, Lq, D))).astype(jnp.float32)
    x2 = (0.01 * jax.random.normal(k_x2, (B, Lk, D))).astype(jnp.float32)

    # Parameters: uniform [0, 1) like torch.rand, deterministic from PRNGKey(0).
    w_query = jax.random.uniform(k_wq, (D, D), dtype=jnp.float32)
    w_key = jax.random.uniform(k_wk, (D, D), dtype=jnp.float32)
    w_value = jax.random.uniform(k_wv, (D, D), dtype=jnp.float32)

    out, attn = cross_attention(x1, x2, w_query, w_key, w_value)
    out = jax.block_until_ready(out)
    attn = jax.block_until_ready(attn)

    # Primary check: kernel matches its own numerics plan (bf16 MXU, f32 acc).
    out_b, attn_b = cross_attention_ref_bf16(x1, x2, w_query, w_key, w_value)
    np.testing.assert_allclose(np.asarray(attn), np.asarray(attn_b),
                               rtol=5e-3, atol=1e-4)
    np.testing.assert_allclose(np.asarray(out), np.asarray(out_b),
                               rtol=5e-3, atol=1e-3)

    # Sanity check against the pure-f32 module semantics (tolerances loosened
    # for the bf16 MXU inputs, per the perf review).
    out_f, attn_f = cross_attention_ref_f32(x1, x2, w_query, w_key, w_value)
    np.testing.assert_allclose(np.asarray(attn), np.asarray(attn_f),
                               rtol=1e-1, atol=5e-3)
    np.testing.assert_allclose(np.asarray(out), np.asarray(out_f),
                               rtol=1e-1, atol=3e-2)

    print("KERNEL_OK")
</pallas_src>

<mosaic_0001>
module attributes {stable_mosaic.version = 11 : i64} {
  func.func @_cross_attention_kernel(%arg0: memref<16x1280xbf16, #tpu.memory_space<vmem>>, %arg1: memref<32x1280xbf16, #tpu.memory_space<vmem>>, %arg2: memref<1280x1280xbf16, #tpu.memory_space<vmem>>, %arg3: memref<1280x1280xbf16, #tpu.memory_space<vmem>>, %arg4: memref<1280x1280xbf16, #tpu.memory_space<vmem>>, %arg5: memref<16x1280xf32, #tpu.memory_space<vmem>>, %arg6: memref<16x16xf32, #tpu.memory_space<vmem>>) attributes {dimension_semantics = [], scalar_prefetch = 0 : i64, scratch_operands = 0 : i64, tpu.core_type = #tpu.core_type<tc>} {
    %c0 = arith.constant 0 : index
    %c0_0 = arith.constant 0 : index
    %0 = vector.load %arg0[%c0, %c0_0] : memref<16x1280xbf16, #tpu.memory_space<vmem>>, vector<16x1280xbf16>
    %c0_1 = arith.constant 0 : index
    %c0_2 = arith.constant 0 : index
    %1 = vector.load %arg1[%c0_1, %c0_2] : memref<32x1280xbf16, #tpu.memory_space<vmem>>, vector<32x1280xbf16>
    %c0_3 = arith.constant 0 : index
    %c0_4 = arith.constant 0 : index
    %2 = vector.load %arg2[%c0_3, %c0_4] : memref<1280x1280xbf16, #tpu.memory_space<vmem>>, vector<1280x1280xbf16>
    %cst = arith.constant dense<0.000000e+00> : vector<16x1280xf32>
    %3 = tpu.matmul %0, %2, %cst {dimension_numbers = #tpu.dot_dimension_numbers<[1], [0], [0], [1], [0, 0, 1, 1], [], []>} : vector<16x1280xbf16>, vector<1280x1280xbf16>, vector<16x1280xf32> -> vector<16x1280xf32>
    %c0_5 = arith.constant 0 : index
    %c0_6 = arith.constant 0 : index
    %4 = vector.load %arg3[%c0_5, %c0_6] : memref<1280x1280xbf16, #tpu.memory_space<vmem>>, vector<1280x1280xbf16>
    %cst_7 = arith.constant dense<0.000000e+00> : vector<32x1280xf32>
    %5 = tpu.matmul %1, %4, %cst_7 {dimension_numbers = #tpu.dot_dimension_numbers<[1], [0], [0], [1], [0, 0, 1, 1], [], []>} : vector<32x1280xbf16>, vector<1280x1280xbf16>, vector<32x1280xf32> -> vector<32x1280xf32>
    %c0_8 = arith.constant 0 : index
    %c0_9 = arith.constant 0 : index
    %6 = vector.load %arg4[%c0_8, %c0_9] : memref<1280x1280xbf16, #tpu.memory_space<vmem>>, vector<1280x1280xbf16>
    %cst_10 = arith.constant dense<0.000000e+00> : vector<32x1280xf32>
    %7 = tpu.matmul %1, %6, %cst_10 {dimension_numbers = #tpu.dot_dimension_numbers<[1], [0], [0], [1], [0, 0, 1, 1], [], []>} : vector<32x1280xbf16>, vector<1280x1280xbf16>, vector<32x1280xf32> -> vector<32x1280xf32>
    %8 = vector.extract_strided_slice %3 {offsets = [0, 0], sizes = [8, 1280], strides = [1, 1]} : vector<16x1280xf32> to vector<8x1280xf32>
    %9 = vector.extract_strided_slice %5 {offsets = [0, 0], sizes = [16, 1280], strides = [1, 1]} : vector<32x1280xf32> to vector<16x1280xf32>
    %10 = vector.extract_strided_slice %7 {offsets = [0, 0], sizes = [16, 1280], strides = [1, 1]} : vector<32x1280xf32> to vector<16x1280xf32>
    %cst_11 = arith.constant dense<0.000000e+00> : vector<8x16xf32>
    %11 = tpu.matmul %8, %9, %cst_11 {dimension_numbers = #tpu.dot_dimension_numbers<[1], [1], [0], [0], [0, 0, 1, 0], [], []>} : vector<8x1280xf32>, vector<16x1280xf32>, vector<8x16xf32> -> vector<8x16xf32>
    %cst_12 = arith.constant 0.0279508494 : f32
    %12 = vector.broadcast %cst_12 : f32 to vector<8x16xf32>
    %13 = arith.mulf %11, %12 : vector<8x16xf32>
    %cst_13 = arith.constant dense<0xFF800000> : vector<8xf32>
    %14 = vector.multi_reduction <maximumf>, %13, %cst_13 [1] : vector<8x16xf32> to vector<8xf32>
    %15 = vector.shape_cast %14 : vector<8xf32> to vector<8x1xf32>
    %16 = vector.broadcast %15 : vector<8x1xf32> to vector<8x16xf32>
    %17 = arith.subf %13, %16 : vector<8x16xf32>
    %18 = math.exp %17 : vector<8x16xf32>
    %cst_14 = arith.constant dense<0.000000e+00> : vector<8xf32>
    %19 = vector.multi_reduction <add>, %18, %cst_14 [1] : vector<8x16xf32> to vector<8xf32>
    %20 = vector.shape_cast %19 : vector<8xf32> to vector<8x1xf32>
    %21 = tpu.reciprocal %20 {approx = true} : vector<8x1xf32> -> vector<8x1xf32>
    %22 = vector.broadcast %21 : vector<8x1xf32> to vector<8x16xf32>
    %23 = arith.mulf %18, %22 : vector<8x16xf32>
    %c0_15 = arith.constant 0 : index
    %c0_16 = arith.constant 0 : index
    %24 = vector.load %arg6[%c0_15, %c0_16] : memref<16x16xf32, #tpu.memory_space<vmem>>, vector<8x16xf32>
    tpu.vector_store %arg6[%c0_15, %c0_16], %23 {strides = array<i32>} : memref<16x16xf32, #tpu.memory_space<vmem>>, vector<8x16xf32>,
    %cst_17 = arith.constant dense<0.000000e+00> : vector<8x1280xf32>
    %25 = tpu.matmul %23, %10, %cst_17 {dimension_numbers = #tpu.dot_dimension_numbers<[1], [0], [0], [1], [0, 0, 1, 1], [], []>} : vector<8x16xf32>, vector<16x1280xf32>, vector<8x1280xf32> -> vector<8x1280xf32>
    %c0_18 = arith.constant 0 : index
    %c0_19 = arith.constant 0 : index
    %26 = vector.load %arg5[%c0_18, %c0_19] : memref<16x1280xf32, #tpu.memory_space<vmem>>, vector<8x1280xf32>
    tpu.vector_store %arg5[%c0_18, %c0_19], %25 {strides = array<i32>} : memref<16x1280xf32, #tpu.memory_space<vmem>>, vector<8x1280xf32>,
    %27 = vector.extract_strided_slice %3 {offsets = [8, 0], sizes = [8, 1280], strides = [1, 1]} : vector<16x1280xf32> to vector<8x1280xf32>
    %28 = vector.extract_strided_slice %5 {offsets = [16, 0], sizes = [16, 1280], strides = [1, 1]} : vector<32x1280xf32> to vector<16x1280xf32>
    %29 = vector.extract_strided_slice %7 {offsets = [16, 0], sizes = [16, 1280], strides = [1, 1]} : vector<32x1280xf32> to vector<16x1280xf32>
    %cst_20 = arith.constant dense<0.000000e+00> : vector<8x16xf32>
    %30 = tpu.matmul %27, %28, %cst_20 {dimension_numbers = #tpu.dot_dimension_numbers<[1], [1], [0], [0], [0, 0, 1, 0], [], []>} : vector<8x1280xf32>, vector<16x1280xf32>, vector<8x16xf32> -> vector<8x16xf32>
    %cst_21 = arith.constant 0.0279508494 : f32
    %31 = vector.broadcast %cst_21 : f32 to vector<8x16xf32>
    %32 = arith.mulf %30, %31 : vector<8x16xf32>
    %cst_22 = arith.constant dense<0xFF800000> : vector<8xf32>
    %33 = vector.multi_reduction <maximumf>, %32, %cst_22 [1] : vector<8x16xf32> to vector<8xf32>
    %34 = vector.shape_cast %33 : vector<8xf32> to vector<8x1xf32>
    %35 = vector.broadcast %34 : vector<8x1xf32> to vector<8x16xf32>
    %36 = arith.subf %32, %35 : vector<8x16xf32>
    %37 = math.exp %36 : vector<8x16xf32>
    %cst_23 = arith.constant dense<0.000000e+00> : vector<8xf32>
    %38 = vector.multi_reduction <add>, %37, %cst_23 [1] : vector<8x16xf32> to vector<8xf32>
    %39 = vector.shape_cast %38 : vector<8xf32> to vector<8x1xf32>
    %40 = tpu.reciprocal %39 {approx = true} : vector<8x1xf32> -> vector<8x1xf32>
    %41 = vector.broadcast %40 : vector<8x1xf32> to vector<8x16xf32>
    %42 = arith.mulf %37, %41 : vector<8x16xf32>
    %c8 = arith.constant 8 : index
    %c0_24 = arith.constant 0 : index
    %43 = vector.load %arg6[%c8, %c0_24] : memref<16x16xf32, #tpu.memory_space<vmem>>, vector<8x16xf32>
    tpu.vector_store %arg6[%c8, %c0_24], %42 {strides = array<i32>} : memref<16x16xf32, #tpu.memory_space<vmem>>, vector<8x16xf32>,
    %cst_25 = arith.constant dense<0.000000e+00> : vector<8x1280xf32>
    %44 = tpu.matmul %42, %29, %cst_25 {dimension_numbers = #tpu.dot_dimension_numbers<[1], [0], [0], [1], [0, 0, 1, 1], [], []>} : vector<8x16xf32>, vector<16x1280xf32>, vector<8x1280xf32> -> vector<8x1280xf32>
    %c8_26 = arith.constant 8 : index
    %c0_27 = arith.constant 0 : index
    %45 = vector.load %arg5[%c8_26, %c0_27] : memref<16x1280xf32, #tpu.memory_space<vmem>>, vector<8x1280xf32>
    tpu.vector_store %arg5[%c8_26, %c0_27], %44 {strides = array<i32>} : memref<16x1280xf32, #tpu.memory_space<vmem>>, vector<8x1280xf32>,
    return
  }
}

</mosaic_0001>

<bundles_post_ra>
// kernel: tpu_custom_call.1
= control target key start
LH: loop header
LB: loop body
LE: loop exit
PB: predicated region body
PF: predicated region fallthrough
CT: control target
= control target key end

     0   :  { %12 = vsyncpa [#allocation3], 0  ;;  %s27825_s0 = inlined_call_operand.hbm [shape: bf16[16,1280], index: 0, kind: input, shape index: {}]   ;;  %s27826_s1 = inlined_call_operand.hbm [shape: bf16[32,1280], index: 1, kind: input, shape index: {}]   ;;  %s27827_s2 = inlined_call_operand.hbm [shape: bf16[1280,1280], index: 2, kind: input, shape index: {}]   ;;  %s27828_s3 = inlined_call_operand.hbm [shape: bf16[1280,1280], index: 3, kind: input, shape index: {}]   ;;  %s27829_s4 = inlined_call_operand.hbm [shape: bf16[1280,1280], index: 4, kind: input, shape index: {}]   ;;  %s27830_s5 = inlined_call_operand.hbm [shape: f32[16,1280], index: 5, kind: output, shape index: {0}]   ;;  %s27831_s6 = inlined_call_operand.hbm [shape: f32[16,16], index: 6, kind: output, shape index: {1}]  }
   0x1   :  { %13 = vsyncpa [#allocation6], 0 }
   0x2   :  { %14 = vsyncpa [#allocation9], 0 }
   0x3   :  { %15 = vsyncpa [#allocation4], 0 }
   0x4   :  { %16 = vsyncpa [#allocation13], 0  ;;  %s26761_s21 = smov [#allocation5]   ;;  %s26762_s23 = smov [#allocation8]  }
   0x5   :  { %s34_s22 = sshll.u32 %s26761_s21, 4  ;;  %s58_s24 = sshll.u32 %s26762_s23, 4  ;;  %s35_s22 = int_to_ptr.vmem [resolvable:$true] %s34_s22  ;;  %s26810_s24 = int_to_ptr.vmem [resolvable:$true] %s58_s24 }
   0x6   :  { %s26597_s27 = scalar_lea.hbm %s27826_s1, 2560 }
   0x7   :  { %p26598_p0 = scmp.ne.s32.totalorder %s27826_s1, %s26597_s27  ;;  %p26601_p1 = scmp.lt.u32.totalorder %s26597_s27, %s27826_s1 }
   0x9   :  { %p26603_p2 = pnand %p26601_p1, %p26598_p0 }
   0xb   :  { %26606 = shalt.err (!%p26603_p2)
}
   0xc   :  { %s26607_s8 = scalar_lea.vmem %s35_s22, 2560  ;;  %p26612_p4 = scmp.lt.s32.totalorder %s35_s22, %s35_s22 }
   0xd   :  { %p26608_p3 = scmp.ne.s32.totalorder %s35_s22, %s26607_s8  ;;  %p26613_p5 = scmp.lt.s32.totalorder %s26607_s8, %s26607_s8 }
   0xf   :  { %p26614_p6 = por %p26613_p5, %p26612_p4 }
  0x11   :  { %p26615_p7 = pnand %p26614_p6, %p26608_p3 }
  0x13   :  { %26618 = shalt.err (!%p26615_p7)
}
  0x14   :  { %s26763_s9 = smov 640   ;;  %s26764_s10 = smov 40  }
  0x15   :  { %40 = dma.hbm_to_vmem [thread:$0]  %s27826_s1, 2560, %s35_s22, [#allocation6], %s26763_s9, %s26763_s9, %s26764_s10  }
  0x16   :  { %s26619_s15 = scalar_lea.hbm %s27828_s3, 102400 }
  0x17   :  { %p26620_p8 = scmp.ne.s32.totalorder %s27828_s3, %s26619_s15  ;;  %p26623_p9 = scmp.lt.u32.totalorder %s26619_s15, %s27828_s3 }
  0x19   :  { %p26625_p10 = pnand %p26623_p9, %p26620_p8 }
  0x1b   :  { %26628 = shalt.err (!%p26625_p10)
}
  0x1c   :  { %s26629_s20 = scalar_lea.vmem %s26810_s24, 102400  ;;  %p26634_p12 = scmp.lt.s32.totalorder %s26810_s24, %s26810_s24 }
  0x1d   :  { %p26630_p11 = scmp.ne.s32.totalorder %s26810_s24, %s26629_s20  ;;  %p26635_p13 = scmp.lt.s32.totalorder %s26629_s20, %s26629_s20 }
  0x1f   :  { %p26636_p0 = por %p26635_p13, %p26634_p12 }
  0x21   :  { %p26637_p1 = pnand %p26636_p0, %p26630_p11 }
  0x23   :  { %26640 = shalt.err (!%p26637_p1)
}
  0x24   :  { %64 = dma.hbm_to_vmem [thread:$0]  %s27828_s3, 102400, %s26810_s24, [#allocation9], %s26763_s9, %s26763_s9, %s26764_s10  }
  0x25   :  { %s26765_s22 = smov [#allocation2]   ;;  %s26766_s25 = smov [#allocation7]  }
  0x26   :  { %s22_s23 = sshll.u32 %s26765_s22, 4  ;;  %s46_s26 = sshll.u32 %s26766_s25, 4  ;;  %s23_s23 = int_to_ptr.vmem [resolvable:$true] %s22_s23  ;;  %s26847_s26 = int_to_ptr.vmem [resolvable:$true] %s46_s26 }
  0x27   :  { %s26641_s29 = scalar_lea.hbm %s27825_s0, 1280 }
  0x28   :  { %p26642_p2 = scmp.ne.s32.totalorder %s27825_s0, %s26641_s29  ;;  %p26645_p3 = scmp.lt.u32.totalorder %s26641_s29, %s27825_s0 }
  0x2a   :  { %p26647_p4 = pnand %p26645_p3, %p26642_p2 }
  0x2c   :  { %26650 = shalt.err (!%p26647_p4)
}
  0x2d   :  { %s26651_s3 = scalar_lea.vmem %s23_s23, 1280  ;;  %p26656_p6 = scmp.lt.s32.totalorder %s23_s23, %s23_s23 }
  0x2e   :  { %p26652_p5 = scmp.ne.s32.totalorder %s23_s23, %s26651_s3  ;;  %p26657_p7 = scmp.lt.s32.totalorder %s26651_s3, %s26651_s3 }
  0x30   :  { %p26658_p8 = por %p26657_p7, %p26656_p6 }
  0x32   :  { %p26659_p9 = pnand %p26658_p8, %p26652_p5 }
  0x34   :  { %26662 = shalt.err (!%p26659_p9)
}
  0x35   :  { %28 = dma.hbm_to_vmem [thread:$0]  %s27825_s0, 1280, %s23_s23, [#allocation3], %s26763_s9, %s26763_s9, %s26764_s10  }
  0x36   :  { %s26663_s15 = scalar_lea.hbm %s27827_s2, 102400 }
  0x37   :  { %p26664_p10 = scmp.ne.s32.totalorder %s27827_s2, %s26663_s15  ;;  %p26667_p11 = scmp.lt.u32.totalorder %s26663_s15, %s27827_s2 }
  0x39   :  { %p26669_p12 = pnand %p26667_p11, %p26664_p10 }
  0x3b   :  { %26672 = shalt.err (!%p26669_p12)
}
  0x3c   :  { %s26673_s20 = scalar_lea.vmem %s26847_s26, 102400  ;;  %p26678_p0 = scmp.lt.s32.totalorder %s26847_s26, %s26847_s26 }
  0x3d   :  { %p26674_p13 = scmp.ne.s32.totalorder %s26847_s26, %s26673_s20  ;;  %p26679_p1 = scmp.lt.s32.totalorder %s26673_s20, %s26673_s20 }
  0x3f   :  { %p26680_p2 = por %p26679_p1, %p26678_p0 }
  0x41   :  { %p26681_p3 = pnand %p26680_p2, %p26674_p13 }
  0x43   :  { %26684 = shalt.err (!%p26681_p3)
}
  0x44   :  { %52 = dma.hbm_to_vmem [thread:$0]  %s27827_s2, 102400, %s26847_s26, [#allocation6], %s26763_s9, %s26763_s9, %s26764_s10  }
  0x45   :  { %s26767_s21 = smov [#allocation10]   ;;  %s26685_s27 = scalar_lea.hbm %s27829_s4, 102400 }
  0x46   :  { %s70_s22 = sshll.u32 %s26767_s21, 4  ;;  %p26686_p4 = scmp.ne.s32.totalorder %s27829_s4, %s26685_s27  ;;  %s71_s22 = int_to_ptr.vmem [resolvable:$true] %s70_s22 }
  0x47   :  { %p26689_p5 = scmp.lt.u32.totalorder %s26685_s27, %s27829_s4 }
  0x49   :  { %p26691_p6 = pnand %p26689_p5, %p26686_p4 }
  0x4b   :  { %26694 = shalt.err (!%p26691_p6)
}
  0x4c   :  { %s26695_s8 = scalar_lea.vmem %s71_s22, 102400  ;;  %p26700_p8 = scmp.lt.s32.totalorder %s71_s22, %s71_s22 }
  0x4d   :  { %p26696_p7 = scmp.ne.s32.totalorder %s71_s22, %s26695_s8  ;;  %p26701_p9 = scmp.lt.s32.totalorder %s26695_s8, %s26695_s8 }
  0x4f   :  { %p26702_p10 = por %p26701_p9, %p26700_p8 }
  0x51   :  { %p26703_p11 = pnand %p26702_p10, %p26696_p7 }
  0x53   :  { %26706 = shalt.err (!%p26703_p11)
}
  0x54   :  { %76 = dma.hbm_to_vmem [thread:$0]  %s27829_s4, 102400, %s71_s22, [#allocation9], %s26763_s9, %s26763_s9, %s26764_s10  }
  0x55   :  { %26751 = dma.done.wait [#allocation3], 1280  }
  0x56   :  { %26752 = vsyncadd [#allocation3], 4294966016 }
  0x57   :  { %26753 = dma.done.wait [#allocation6], 104960  }
  0x58   :  { %26754 = vsyncadd [#allocation6], 4294862336 }
  0x59   :  { %26755 = dma.done.wait [#allocation9], 204800  }
  0x5a   :  { %26756 = vsyncadd [#allocation9], 4294762496  ;;  %v22844_v0 = vld [vmem:[#allocation7 + $0x4] ss:$40 sps:$4 sm:$0xff]   ;;  %v22848_v2 = vld [vmem:[#allocation7] ss:$40 sps:$4 sm:$0xff]  }
  0x5b   :  { %v22846_v1 = vld [vmem:[#allocation7 + $0xa04] ss:$40 sps:$4 sm:$0xff]   ;;  %4972 = vmatprep.subr.bf16.mxu1 %v22844_v0  ;;  %v22849_v3 = vld [vmem:[#allocation7 + $0xa00] ss:$40 sps:$4 sm:$0xff]   ;;  %v22850_v4 = vld [vmem:[#allocation7 + $0x54] ss:$40 sps:$4 sm:$0xff]  }
  0x5c   :  { %5058 = vmatprep.subr.bf16.mxu0 %v22846_v1  ;;  %4973 = vmatpush1.bf16.msra.mxu1 %v22848_v2  ;;  %v22852_v5 = vld [vmem:[#allocation7 + $0xa54] ss:$40 sps:$4 sm:$0xff]   ;;  %v22854_v6 = vld [vmem:[#allocation7 + $0x50] ss:$40 sps:$4 sm:$0xff]   ;;  %v22856_v8 = vld [vmem:[#allocation7 + $0xa4] ss:$40 sps:$4 sm:$0xff]  }
  0x5d   :  { %5059 = vmatpush1.bf16.msra.mxu0 %v22849_v3  ;;  %4974 = vmatprep.subr.bf16.mxu1 %v22850_v4  ;;  %v22855_v7 = vld [vmem:[#allocation7 + $0xa50] ss:$40 sps:$4 sm:$0xff]   ;;  %v22858_v9 = vld [vmem:[#allocation7 + $0xaa4] ss:$40 sps:$4 sm:$0xff]   ;;  %v22860_v10 = vld [vmem:[#allocation7 + $0xa0] ss:$40 sps:$4 sm:$0xff]  }
  0x5e   :  { %5060 = vmatprep.subr.bf16.mxu0 %v22852_v5  ;;  %v22861_v11 = vld [vmem:[#allocation7 + $0xaa0] ss:$40 sps:$4 sm:$0xff]   ;;  %v22862_v12 = vld [vmem:[#allocation7 + $0xf4] ss:$40 sps:$4 sm:$0xff]   ;;  %v22866_v14 = vld [vmem:[#allocation7 + $0xf0] ss:$40 sps:$4 sm:$0xff]  }
  0x5f   :  { %v22864_v13 = vld [vmem:[#allocation7 + $0xaf4] ss:$40 sps:$4 sm:$0xff]   ;;  %v22867_v15 = vld [vmem:[#allocation7 + $0xaf0] ss:$40 sps:$4 sm:$0xff]   ;;  %v22868_v16 = vld [vmem:[#allocation7 + $0x144] ss:$40 sps:$4 sm:$0xff]  }
  0x60   :  { %4975 = vmatpush1.bf16.msra.mxu1 %v22854_v6  ;;  %v22870_v17 = vld [vmem:[#allocation7 + $0xb44] ss:$40 sps:$4 sm:$0xff]   ;;  %v22872_v18 = vld [vmem:[#allocation7 + $0x140] ss:$40 sps:$4 sm:$0xff]   ;;  %v22874_v20 = vld [vmem:[#allocation7 + $0x194] ss:$40 sps:$4 sm:$0xff]  }
  0x61   :  { %5061 = vmatpush1.bf16.msra.mxu0 %v22855_v7  ;;  %4976 = vmatprep.subr.bf16.mxu1 %v22856_v8  ;;  %v22873_v19 = vld [vmem:[#allocation7 + $0xb40] ss:$40 sps:$4 sm:$0xff]   ;;  %v22876_v21 = vld [vmem:[#allocation7 + $0xb94] ss:$40 sps:$4 sm:$0xff]   ;;  %v22878_v22 = vld [vmem:[#allocation7 + $0x190] ss:$40 sps:$4 sm:$0xff]  }
  0x62   :  { %5062 = vmatprep.subr.bf16.mxu0 %v22858_v9  ;;  %v22879_v23 = vld [vmem:[#allocation7 + $0xb90] ss:$40 sps:$4 sm:$0xff]   ;;  %v22880_v24 = vld [vmem:[#allocation7 + $0x1e4] ss:$40 sps:$4 sm:$0xff]   ;;  %v22884_v26 = vld [vmem:[#allocation7 + $0x1e0] ss:$40 sps:$4 sm:$0xff]  }
  0x63   :  { %v22882_v25 = vld [vmem:[#allocation7 + $0xbe4] ss:$40 sps:$4 sm:$0xff]   ;;  %v22885_v27 = vld [vmem:[#allocation7 + $0xbe0] ss:$40 sps:$4 sm:$0xff]   ;;  %v22886_v28 = vld [vmem:[#allocation7 + $0x234] ss:$40 sps:$4 sm:$0xff]  }
  0x64   :  { %4977 = vmatpush1.bf16.msra.mxu1 %v22860_v10  ;;  %v22888_v29 = vld [vmem:[#allocation7 + $0xc34] ss:$40 sps:$4 sm:$0xff]   ;;  %v22890_v30 = vld [vmem:[#allocation7 + $0x230] ss:$40 sps:$4 sm:$0xff]   ;;  %v22892_v32 = vld [vmem:[#allocation7 + $0x284] ss:$40 sps:$4 sm:$0xff]  }
  0x65   :  { %5063 = vmatpush1.bf16.msra.mxu0 %v22861_v11  ;;  %4978 = vmatprep.subr.bf16.mxu1 %v22862_v12  ;;  %v22891_v31 = vld [vmem:[#allocation7 + $0xc30] ss:$40 sps:$4 sm:$0xff]   ;;  %v22894_v33 = vld [vmem:[#allocation7 + $0xc84] ss:$40 sps:$4 sm:$0xff]   ;;  %v22896_v34 = vld [vmem:[#allocation7 + $0x280] ss:$40 sps:$4 sm:$0xff]  }
  0x66   :  { %5064 = vmatprep.subr.bf16.mxu0 %v22864_v13  ;;  %v22897_v35 = vld [vmem:[#allocation7 + $0xc80] ss:$40 sps:$4 sm:$0xff]   ;;  %v22898_v36 = vld [vmem:[#allocation7 + $0x2d4] ss:$40 sps:$4 sm:$0xff]   ;;  %v22902_v38 = vld [vmem:[#allocation7 + $0x2d0] ss:$40 sps:$4 sm:$0xff]  }
  0x67   :  { %v22900_v37 = vld [vmem:[#allocation7 + $0xcd4] ss:$40 sps:$4 sm:$0xff]   ;;  %v22903_v39 = vld [vmem:[#allocation7 + $0xcd0] ss:$40 sps:$4 sm:$0xff]   ;;  %v22904_v40 = vld [vmem:[#allocation7 + $0x324] ss:$40 sps:$4 sm:$0xff]  }
  0x68   :  { %4979 = vmatpush1.bf16.msra.mxu1 %v22866_v14  ;;  %v22906_v41 = vld [vmem:[#allocation7 + $0xd24] ss:$40 sps:$4 sm:$0xff]   ;;  %v22908_v42 = vld [vmem:[#allocation7 + $0x320] ss:$40 sps:$4 sm:$0xff]   ;;  %v22910_v44 = vld [vmem:[#allocation7 + $0x374] ss:$40 sps:$4 sm:$0xff]  }
  0x69   :  { %5065 = vmatpush1.bf16.msra.mxu0 %v22867_v15  ;;  %4980 = vmatprep.subr.bf16.mxu1 %v22868_v16  ;;  %v22909_v43 = vld [vmem:[#allocation7 + $0xd20] ss:$40 sps:$4 sm:$0xff]   ;;  %v22912_v45 = vld [vmem:[#allocation7 + $0xd74] ss:$40 sps:$4 sm:$0xff]   ;;  %v22914_v46 = vld [vmem:[#allocation7 + $0x370] ss:$40 sps:$4 sm:$0xff]  }
  0x6a   :  { %5066 = vmatprep.subr.bf16.mxu0 %v22870_v17  ;;  %v22915_v47 = vld [vmem:[#allocation7 + $0xd70] ss:$40 sps:$4 sm:$0xff]   ;;  %v26899_v48 = vld [vmem:[#allocation2 + $0x4] ss:$40 sps:$4 sm:$0xff]   ;;  %v22916_v49 = vld [vmem:[#allocation7 + $0x3c4] ss:$40 sps:$4 sm:$0xff]  }
  0x6b   :  { %v22918_v50 = vld [vmem:[#allocation7 + $0xdc4] ss:$40 sps:$4 sm:$0xff]   ;;  %5004 = vmatprep.mubr.bf16.mxu1 %v26899_v48  ;;  %v22920_v52 = vld [vmem:[#allocation7 + $0x3c0] ss:$40 sps:$4 sm:$0xff]   ;;  %v22922_v54 = vld [vmem:[#allocation7 + $0x414] ss:$40 sps:$4 sm:$0xff]  }
  0x6c   :  { %4981 = vmatpush1.bf16.msra.mxu1 %v22872_v18  ;;  %v22945_v51 = vld [vmem:[#allocation2 + $0x14] ss:$40 sps:$4 sm:$0xff]   ;;  %v22921_v53 = vld [vmem:[#allocation7 + $0xdc0] ss:$40 sps:$4 sm:$0xff]   ;;  %v22924_v55 = vld [vmem:[#allocation7 + $0xe14] ss:$40 sps:$4 sm:$0xff]  }
  0x6d   :  { %5067 = vmatpush1.bf16.msra.mxu0 %v22873_v19  ;;  %4982 = vmatprep.subr.bf16.mxu1 %v22874_v20  ;;  %v22926_v56 = vld [vmem:[#allocation7 + $0x410] ss:$40 sps:$4 sm:$0xff]   ;;  %v22928_v58 = vld [vmem:[#allocation7 + $0x464] ss:$40 sps:$4 sm:$0xff]   ;;  %v22932_v60 = vld [vmem:[#allocation7 + $0x460] ss:$40 sps:$4 sm:$0xff]  }
  0x6e   :  { %5068 = vmatprep.subr.bf16.mxu0 %v22876_v21  ;;  %5090 = vmatprep.mubr.bf16.mxu0 %v22945_v51  ;;  %v22927_v57 = vld [vmem:[#allocation7 + $0xe10] ss:$40 sps:$4 sm:$0xff]   ;;  %v22930_v59 = vld [vmem:[#allocation7 + $0xe64] ss:$40 sps:$4 sm:$0xff]   ;;  %v22933_v61 = vld [vmem:[#allocation7 + $0xe60] ss:$40 sps:$4 sm:$0xff]  }
  0x6f   :  { %v22934_v62 = vld [vmem:[#allocation7 + $0x4b4] ss:$40 sps:$4 sm:$0xff]   ;;  %v22938_v0 = vld [vmem:[#allocation7 + $0x4b0] ss:$40 sps:$4 sm:$0xff]   ;;  %v22944_v2 = vld [vmem:[#allocation7 + $0x504] ss:$40 sps:$4 sm:$0xff]  }
  0x70   :  { %4983 = vmatpush1.bf16.msra.mxu1 %v22878_v22  ;;  %v22936_v63 = vld [vmem:[#allocation7 + $0xeb4] ss:$40 sps:$4 sm:$0xff]   ;;  %v22939_v1 = vld [vmem:[#allocation7 + $0xeb0] ss:$40 sps:$4 sm:$0xff]   ;;  %v22949_v3 = vld [vmem:[#allocation7 + $0xf04] ss:$40 sps:$4 sm:$0xff]  }
  0x71   :  { %5069 = vmatpush1.bf16.msra.mxu0 %v22879_v23  ;;  %4984 = vmatprep.subr.bf16.mxu1 %v22880_v24  ;;  %v22942_v4 = vld [vmem:[#allocation7 + $0x500] ss:$40 sps:$4 sm:$0xff]   ;;  %v26902_v6 = vld [vmem:[#allocation2] ss:$40 sps:$4 sm:$0xff]   ;;  %v22954_v8 = vld [vmem:[#allocation7 + $0x554] ss:$40 sps:$4 sm:$0xff]  }
  0x72   :  { %5070 = vmatprep.subr.bf16.mxu0 %v22882_v25  ;;  %v22947_v5 = vld [vmem:[#allocation7 + $0xf00] ss:$40 sps:$4 sm:$0xff]   ;;  %v22957_v9 = vld [vmem:[#allocation7 + $0xf54] ss:$40 sps:$4 sm:$0xff]   ;;  %v22952_v10 = vld [vmem:[#allocation7 + $0x550] ss:$40 sps:$4 sm:$0xff]  }
  0x73   :  { %v22951_v7 = vld [vmem:[#allocation2 + $0x10] ss:$40 sps:$4 sm:$0xff]   ;;  %v22955_v11 = vld [vmem:[#allocation7 + $0xf50] ss:$40 sps:$4 sm:$0xff]   ;;  %v22960_v12 = vld [vmem:[#allocation7 + $0x5a4] ss:$40 sps:$4 sm:$0xff]  }
  0x74   :  { %4985 = vmatpush1.bf16.msra.mxu1 %v22884_v26  ;;  %v22963_v13 = vld [vmem:[#allocation7 + $0xfa4] ss:$40 sps:$4 sm:$0xff]   ;;  %v22958_v14 = vld [vmem:[#allocation7 + $0x5a0] ss:$40 sps:$4 sm:$0xff]   ;;  %v22966_v16 = vld [vmem:[#allocation7 + $0x5f4] ss:$40 sps:$4 sm:$0xff]  }
  0x75   :  { %5071 = vmatpush1.bf16.msra.mxu0 %v22885_v27  ;;  %4986 = vmatprep.subr.bf16.mxu1 %v22886_v28  ;;  %v22961_v15 = vld [vmem:[#allocation7 + $0xfa0] ss:$40 sps:$4 sm:$0xff]   ;;  %v22969_v17 = vld [vmem:[#allocation7 + $0xff4] ss:$40 sps:$4 sm:$0xff]   ;;  %v22964_v18 = vld [vmem:[#allocation7 + $0x5f0] ss:$40 sps:$4 sm:$0xff]  }
  0x76   :  { %5072 = vmatprep.subr.bf16.mxu0 %v22888_v29  ;;  %v22967_v19 = vld [vmem:[#allocation7 + $0xff0] ss:$40 sps:$4 sm:$0xff]   ;;  %v22972_v20 = vld [vmem:[#allocation7 + $0x644] ss:$40 sps:$4 sm:$0xff]   ;;  %v22970_v22 = vld [vmem:[#allocation7 + $0x640] ss:$40 sps:$4 sm:$0xff]  }
  0x77   :  { %v22975_v21 = vld [vmem:[#allocation7 + $0x1044] ss:$40 sps:$4 sm:$0xff]   ;;  %v22973_v23 = vld [vmem:[#allocation7 + $0x1040] ss:$40 sps:$4 sm:$0xff]   ;;  %v22978_v24 = vld [vmem:[#allocation7 + $0x694] ss:$40 sps:$4 sm:$0xff]  }
  0x78   :  { %4987 = vmatpush1.bf16.msra.mxu1 %v22890_v30  ;;  %v22981_v25 = vld [vmem:[#allocation7 + $0x1094] ss:$40 sps:$4 sm:$0xff]   ;;  %v22976_v26 = vld [vmem:[#allocation7 + $0x690] ss:$40 sps:$4 sm:$0xff]   ;;  %v22984_v28 = vld [vmem:[#allocation7 + $0x6e4] ss:$40 sps:$4 sm:$0xff]  }
  0x79   :  { %5073 = vmatpush1.bf16.msra.mxu0 %v22891_v31  ;;  %4988 = vmatprep.subr.bf16.mxu1 %v22892_v32  ;;  %v22979_v27 = vld [vmem:[#allocation7 + $0x1090] ss:$40 sps:$4 sm:$0xff]   ;;  %v22987_v29 = vld [vmem:[#allocation7 + $0x10e4] ss:$40 sps:$4 sm:$0xff]   ;;  %v22982_v30 = vld [vmem:[#allocation7 + $0x6e0] ss:$40 sps:$4 sm:$0xff]  }
  0x7a   :  { %5074 = vmatprep.subr.bf16.mxu0 %v22894_v33  ;;  %v22985_v31 = vld [vmem:[#allocation7 + $0x10e0] ss:$40 sps:$4 sm:$0xff]   ;;  %v22990_v32 = vld [vmem:[#allocation7 + $0x734] ss:$40 sps:$4 sm:$0xff]   ;;  %vm18748_vm0 = vcmask 130048   ;;  %s26769_s4 = smov [#allocation12]  }
  0x7b   :  { %v22993_v33 = vld [vmem:[#allocation7 + $0x1134] ss:$40 sps:$4 sm:$0xff]   ;;  %s19877_s9 = sshll.u32 %s26769_s4, 4  ;;  %s19878_s9 = int_to_ptr.vmem [resolvable:$true] %s19877_s9 }
  0x7c   :  { %4989 = vmatpush1.bf16.msra.mxu1 %v22896_v34  ;;  %v26905_v34 = vld [vmem:[#allocation2 + $0xc] ss:$40 sps:$4 sm:$0xff]   ;;  %s26707_s10 = scalar_lea.vmem %s19878_s9, 256  ;;  %p26712_p13 = scmp.lt.s32.totalorder %s19878_s9, %s19878_s9 }
  0x7d   :  { %5075 = vmatpush1.bf16.msra.mxu0 %v22897_v35  ;;  %4990 = vmatprep.subr.bf16.mxu1 %v22898_v36  ;;  %v23044_v35 = vld [vmem:[#allocation2 + $0x1c] ss:$40 sps:$4 sm:$0xff]   ;;  %v22988_v36 = vld [vmem:[#allocation7 + $0x730] ss:$40 sps:$4 sm:$0xff]   ;;  %p26708_p12 = scmp.ne.s32.totalorder %s19878_s9, %s26707_s10  ;;  %p26713_p0 = scmp.lt.s32.totalorder %s26707_s10, %s26707_s10 }
  0x7e   :  { %5076 = vmatprep.subr.bf16.mxu0 %v22900_v37  ;;  %v22991_v37 = vld [vmem:[#allocation7 + $0x1130] ss:$40 sps:$4 sm:$0xff]   ;;  %v23014_v51 = vld [vmem:[#allocation7 + $0x874] ss:$40 sps:$4 sm:$0xff]  }
  0x7f   :  { %p26714_p1 = por %p26713_p0, %p26712_p13 }
  0x80   :  { %4991 = vmatpush1.bf16.msra.mxu1 %v22902_v38  ;;  %v22996_v38 = vld [vmem:[#allocation7 + $0x784] ss:$40 sps:$4 sm:$0xff]  }
  0x81   :  { %5077 = vmatpush1.bf16.msra.mxu0 %v22903_v39  ;;  %4992 = vmatprep.subr.bf16.mxu1 %v22904_v40  ;;  %v22999_v39 = vld [vmem:[#allocation7 + $0x1184] ss:$40 sps:$4 sm:$0xff]   ;;  %v22994_v40 = vld [vmem:[#allocation7 + $0x780] ss:$40 sps:$4 sm:$0xff]   ;;  %p26715_p2 = pnand %p26714_p1, %p26708_p12 }
  0x82   :  { %5078 = vmatprep.subr.bf16.mxu0 %v22906_v41  ;;  %v22997_v41 = vld [vmem:[#allocation7 + $0x1180] ss:$40 sps:$4 sm:$0xff]  }
  0x84   :  { %4993 = vmatpush1.bf16.msra.mxu1 %v22908_v42  ;;  %v23002_v42 = vld [vmem:[#allocation7 + $0x7d4] ss:$40 sps:$4 sm:$0xff]  }
  0x85   :  { %5079 = vmatpush1.bf16.msra.mxu0 %v22909_v43  ;;  %4994 = vmatprep.subr.bf16.mxu1 %v22910_v44  ;;  %v23005_v43 = vld [vmem:[#allocation7 + $0x11d4] ss:$40 sps:$4 sm:$0xff]   ;;  %v23000_v44 = vld [vmem:[#allocation7 + $0x7d0] ss:$40 sps:$4 sm:$0xff]  }
  0x86   :  { %5080 = vmatprep.subr.bf16.mxu0 %v22912_v45  ;;  %v23003_v45 = vld [vmem:[#allocation7 + $0x11d0] ss:$40 sps:$4 sm:$0xff]  }
  0x88   :  { %4995 = vmatpush1.bf16.msra.mxu1 %v22914_v46  ;;  %v23008_v46 = vld [vmem:[#allocation7 + $0x824] ss:$40 sps:$4 sm:$0xff]  }
  0x89   :  { %5081 = vmatpush1.bf16.msra.mxu0 %v22915_v47  ;;  %4996 = vmatprep.subr.bf16.mxu1 %v22916_v49  ;;  %v23011_v47 = vld [vmem:[#allocation7 + $0x1224] ss:$40 sps:$4 sm:$0xff]   ;;  %v23006_v49 = vld [vmem:[#allocation7 + $0x820] ss:$40 sps:$4 sm:$0xff]  }
  0x8a   :  { %5082 = vmatprep.subr.bf16.mxu0 %v22918_v50  ;;  %v23009_v50 = vld [vmem:[#allocation7 + $0x1220] ss:$40 sps:$4 sm:$0xff]  }
  0x8c   :  { %4997 = vmatpush1.bf16.msra.mxu1 %v22920_v52  ;;  %v23017_v52 = vld [vmem:[#allocation7 + $0x1274] ss:$40 sps:$4 sm:$0xff]  }
  0x8d   :  { %5083 = vmatpush1.bf16.msra.mxu0 %v22921_v53  ;;  %4998 = vmatprep.subr.bf16.mxu1 %v22922_v54  ;;  %v23012_v53 = vld [vmem:[#allocation7 + $0x870] ss:$40 sps:$4 sm:$0xff]  }
  0x8e   :  { %5084 = vmatprep.subr.bf16.mxu0 %v22924_v55  ;;  %v23015_v54 = vld [vmem:[#allocation7 + $0x1270] ss:$40 sps:$4 sm:$0xff]   ;;  %v23020_v55 = vld [vmem:[#allocation7 + $0x8c4] ss:$40 sps:$4 sm:$0xff]  }
  0x90   :  { %4999 = vmatpush1.bf16.msra.mxu1 %v22926_v56  ;;  %v23023_v56 = vld [vmem:[#allocation7 + $0x12c4] ss:$40 sps:$4 sm:$0xff]  }
  0x91   :  { %5085 = vmatpush1.bf16.msra.mxu0 %v22927_v57  ;;  %5000 = vmatprep.subr.bf16.mxu1 %v22928_v58  ;;  %v23018_v57 = vld [vmem:[#allocation7 + $0x8c0] ss:$40 sps:$4 sm:$0xff]  }
  0x92   :  { %5086 = vmatprep.subr.bf16.mxu0 %v22930_v59  ;;  %v23021_v58 = vld [vmem:[#allocation7 + $0x12c0] ss:$40 sps:$4 sm:$0xff]   ;;  %v23026_v59 = vld [vmem:[#allocation7 + $0x914] ss:$40 sps:$4 sm:$0xff]  }
  0x94   :  { %5001 = vmatpush1.bf16.msra.mxu1 %v22932_v60  ;;  %v23029_v60 = vld [vmem:[#allocation7 + $0x1314] ss:$40 sps:$4 sm:$0xff]  }
  0x95   :  { %5087 = vmatpush1.bf16.msra.mxu0 %v22933_v61  ;;  %5002 = vmatprep.subr.bf16.mxu1 %v22934_v62  ;;  %v23024_v61 = vld [vmem:[#allocation7 + $0x910] ss:$40 sps:$4 sm:$0xff]  }
  0x96   :  { %5088 = vmatprep.subr.bf16.mxu0 %v22936_v63  ;;  %v23027_v62 = vld [vmem:[#allocation7 + $0x1310] ss:$40 sps:$4 sm:$0xff]   ;;  %v23032_v63 = vld [vmem:[#allocation7 + $0x964] ss:$40 sps:$4 sm:$0xff]  }
  0x98   :  { %5003 = vmatpush1.bf16.msra.mxu1 %v22938_v0  ;;  %v23035_v0 = vld [vmem:[#allocation7 + $0x1364] ss:$40 sps:$4 sm:$0xff]  }
  0x99   :  { %5089 = vmatpush1.bf16.msra.mxu0 %v22939_v1  ;;  %5015 = vmatprep.subr.bf16.mxu1 %v22944_v2  ;;  %v23030_v1 = vld [vmem:[#allocation7 + $0x960] ss:$40 sps:$4 sm:$0xff]  }
  0x9a   :  { %5101 = vmatprep.subr.bf16.mxu0 %v22949_v3  ;;  %v23033_v2 = vld [vmem:[#allocation7 + $0x1360] ss:$40 sps:$4 sm:$0xff]   ;;  %v23038_v3 = vld [vmem:[#allocation7 + $0x9b4] ss:$40 sps:$4 sm:$0xff]  }
  0x9b   :  { %5005 = vmatmul.mubr.bf16.vlgmr.msra.gmra.mrb[0].mxu1 %v26902_v6 }
  0x9c   :  { %5091 = vmatmul.mubr.bf16.vlgmr.msra.gmra.mrb[0].mxu0 %v22951_v7  ;;  %5016 = vmatpush1.bf16.msra.mxu1 %v22942_v4  ;;  %v23041_v4 = vld [vmem:[#allocation7 + $0x13b4] ss:$40 sps:$4 sm:$0xff]   ;;  %v23039_v7 = vld [vmem:[#allocation7 + $0x13b0] ss:$40 sps:$4 sm:$0xff]  }
  0x9d   :  { %5102 = vmatpush1.bf16.msra.mxu0 %v22947_v5  ;;  %5017 = vmatprep.subr.bf16.mxu1 %v22954_v8  ;;  %v23036_v5 = vld [vmem:[#allocation7 + $0x9b0] ss:$40 sps:$4 sm:$0xff]   ;;  %v23048_v8 = vld [vmem:[#allocation7 + $0x1404] ss:$40 sps:$4 sm:$0xff]  }
  0x9e   :  { %5103 = vmatprep.subr.bf16.mxu0 %v22957_v9  ;;  %5047 = vmatprep.mubr.bf16.mxu1 %v26905_v34  ;;  %v23051_v9 = vld [vmem:[#allocation7 + $0xc] ss:$40 sps:$4 sm:$0xff]  }
  0x9f   :  { %5133 = vmatprep.mubr.bf16.mxu0 %v23044_v35  ;;  %v23086_v35 = vld [vmem:[#allocation7 + $0x15e4] ss:$40 sps:$4 sm:$0xff]  }
  0xa0   :  { %5018 = vmatpush1.bf16.msra.mxu1 %v22952_v10  ;;  %v23046_v10 = vld [vmem:[#allocation7 + $0x1400] ss:$40 sps:$4 sm:$0xff]  }
  0xa1   :  { %5104 = vmatpush1.bf16.msra.mxu0 %v22955_v11  ;;  %5019 = vmatprep.subr.bf16.mxu1 %v22960_v12  ;;  %v23049_v11 = vld [vmem:[#allocation7 + $0x8] ss:$40 sps:$4 sm:$0xff]   ;;  %v26908_v12 = vld [vmem:[#allocation2 + $0x8] ss:$40 sps:$4 sm:$0xff]  }
  0xa2   :  { %5105 = vmatprep.subr.bf16.mxu0 %v22963_v13  ;;  %v23053_v13 = vld [vmem:[#allocation2 + $0x18] ss:$40 sps:$4 sm:$0xff]  }
  0xa4   :  { %5020 = vmatpush1.bf16.msra.mxu1 %v22958_v14  ;;  %v23056_v14 = vld [vmem:[#allocation7 + $0x1454] ss:$40 sps:$4 sm:$0xff]  }
  0xa5   :  { %5106 = vmatpush1.bf16.msra.mxu0 %v22961_v15  ;;  %5021 = vmatprep.subr.bf16.mxu1 %v22966_v16  ;;  %v23059_v15 = vld [vmem:[#allocation7 + $0x5c] ss:$40 sps:$4 sm:$0xff]   ;;  %v23054_v16 = vld [vmem:[#allocation7 + $0x1450] ss:$40 sps:$4 sm:$0xff]  }
  0xa6   :  { %5107 = vmatprep.subr.bf16.mxu0 %v22969_v17  ;;  %v23057_v17 = vld [vmem:[#allocation7 + $0x58] ss:$40 sps:$4 sm:$0xff]  }
  0xa8   :  { %5022 = vmatpush1.bf16.msra.mxu1 %v22964_v18  ;;  %v23062_v18 = vld [vmem:[#allocation7 + $0x14a4] ss:$40 sps:$4 sm:$0xff]  }
  0xa9   :  { %5108 = vmatpush1.bf16.msra.mxu0 %v22967_v19  ;;  %5023 = vmatprep.subr.bf16.mxu1 %v22972_v20  ;;  %v23065_v19 = vld [vmem:[#allocation7 + $0xac] ss:$40 sps:$4 sm:$0xff]  }
  0xaa   :  { %5109 = vmatprep.subr.bf16.mxu0 %v22975_v21  ;;  %v23144_v20 = vld [vmem:[#allocation2 + $0x24] ss:$40 sps:$4 sm:$0xff]   ;;  %v23060_v21 = vld [vmem:[#allocation7 + $0x14a0] ss:$40 sps:$4 sm:$0xff]  }
  0xac   :  { %5024 = vmatpush1.bf16.msra.mxu1 %v22970_v22  ;;  %v23063_v22 = vld [vmem:[#allocation7 + $0xa8] ss:$40 sps:$4 sm:$0xff]  }
  0xad   :  { %5110 = vmatpush1.bf16.msra.mxu0 %v22973_v23  ;;  %5025 = vmatprep.subr.bf16.mxu1 %v22978_v24  ;;  %v23068_v23 = vld [vmem:[#allocation7 + $0x14f4] ss:$40 sps:$4 sm:$0xff]  }
  0xae   :  { %5111 = vmatprep.subr.bf16.mxu0 %v22981_v25  ;;  %v23071_v24 = vld [vmem:[#allocation7 + $0xfc] ss:$40 sps:$4 sm:$0xff]   ;;  %v23066_v25 = vld [vmem:[#allocation7 + $0x14f0] ss:$40 sps:$4 sm:$0xff]  }
  0xb0   :  { %5026 = vmatpush1.bf16.msra.mxu1 %v22976_v26  ;;  %v23069_v26 = vld [vmem:[#allocation7 + $0xf8] ss:$40 sps:$4 sm:$0xff]  }
  0xb1   :  { %5112 = vmatpush1.bf16.msra.mxu0 %v22979_v27  ;;  %5027 = vmatprep.subr.bf16.mxu1 %v22984_v28  ;;  %v23074_v27 = vld [vmem:[#allocation7 + $0x1544] ss:$40 sps:$4 sm:$0xff]  }
  0xb2   :  { %5113 = vmatprep.subr.bf16.mxu0 %v22987_v29  ;;  %v23077_v28 = vld [vmem:[#allocation7 + $0x14c] ss:$40 sps:$4 sm:$0xff]   ;;  %v23072_v29 = vld [vmem:[#allocation7 + $0x1540] ss:$40 sps:$4 sm:$0xff]  }
  0xb4   :  { %5028 = vmatpush1.bf16.msra.mxu1 %v22982_v30  ;;  %v23075_v30 = vld [vmem:[#allocation7 + $0x148] ss:$40 sps:$4 sm:$0xff]  }
  0xb5   :  { %5114 = vmatpush1.bf16.msra.mxu0 %v22985_v31  ;;  %5029 = vmatprep.subr.bf16.mxu1 %v22990_v32  ;;  %v23083_v31 = vld [vmem:[#allocation7 + $0x19c] ss:$40 sps:$4 sm:$0xff]   ;;  %v23078_v32 = vld [vmem:[#allocation7 + $0x1590] ss:$40 sps:$4 sm:$0xff]  }
  0xb6   :  { %5115 = vmatprep.subr.bf16.mxu0 %v22993_v33  ;;  %v23081_v33 = vld [vmem:[#allocation7 + $0x198] ss:$40 sps:$4 sm:$0xff]  }
  0xb8   :  { %5030 = vmatpush1.bf16.msra.mxu1 %v22988_v36  ;;  %v23089_v36 = vld [vmem:[#allocation7 + $0x1ec] ss:$40 sps:$4 sm:$0xff]  }
  0xb9   :  { %5116 = vmatpush1.bf16.msra.mxu0 %v22991_v37  ;;  %5031 = vmatprep.subr.bf16.mxu1 %v22996_v38  ;;  %v23084_v37 = vld [vmem:[#allocation7 + $0x15e0] ss:$40 sps:$4 sm:$0xff]  }
  0xba   :  { %5117 = vmatprep.subr.bf16.mxu0 %v22999_v39  ;;  %v23087_v38 = vld [vmem:[#allocation7 + $0x1e8] ss:$40 sps:$4 sm:$0xff]   ;;  %v23092_v39 = vld [vmem:[#allocation7 + $0x1634] ss:$40 sps:$4 sm:$0xff]  }
  0xbc   :  { %5032 = vmatpush1.bf16.msra.mxu1 %v22994_v40  ;;  %v23095_v40 = vld [vmem:[#allocation7 + $0x23c] ss:$40 sps:$4 sm:$0xff]  }
  0xbd   :  { %5118 = vmatpush1.bf16.msra.mxu0 %v22997_v41  ;;  %5033 = vmatprep.subr.bf16.mxu1 %v23002_v42  ;;  %v23090_v41 = vld [vmem:[#allocation7 + $0x1630] ss:$40 sps:$4 sm:$0xff]  }
  0xbe   :  { %5119 = vmatprep.subr.bf16.mxu0 %v23005_v43  ;;  %v23093_v42 = vld [vmem:[#allocation7 + $0x238] ss:$40 sps:$4 sm:$0xff]   ;;  %v23098_v43 = vld [vmem:[#allocation7 + $0x1684] ss:$40 sps:$4 sm:$0xff]  }
  0xc0   :  { %5034 = vmatpush1.bf16.msra.mxu1 %v23000_v44  ;;  %v23101_v44 = vld [vmem:[#allocation7 + $0x28c] ss:$40 sps:$4 sm:$0xff]  }
  0xc1   :  { %5120 = vmatpush1.bf16.msra.mxu0 %v23003_v45  ;;  %5035 = vmatprep.subr.bf16.mxu1 %v23008_v46  ;;  %v23096_v45 = vld [vmem:[#allocation7 + $0x1680] ss:$40 sps:$4 sm:$0xff]  }
  0xc2   :  { %5121 = vmatprep.subr.bf16.mxu0 %v23011_v47  ;;  %v23099_v46 = vld [vmem:[#allocation7 + $0x288] ss:$40 sps:$4 sm:$0xff]   ;;  %v23104_v47 = vld [vmem:[#allocation7 + $0x16d4] ss:$40 sps:$4 sm:$0xff]  }
  0xc4   :  { %5036 = vmatpush1.bf16.msra.mxu1 %v23006_v49  ;;  %v23107_v49 = vld [vmem:[#allocation7 + $0x2dc] ss:$40 sps:$4 sm:$0xff]  }
  0xc5   :  { %5122 = vmatpush1.bf16.msra.mxu0 %v23009_v50  ;;  %5037 = vmatprep.subr.bf16.mxu1 %v23014_v51  ;;  %v23102_v50 = vld [vmem:[#allocation7 + $0x16d0] ss:$40 sps:$4 sm:$0xff]  }
  0xc6   :  { %5123 = vmatprep.subr.bf16.mxu0 %v23017_v52  ;;  %v23105_v51 = vld [vmem:[#allocation7 + $0x2d8] ss:$40 sps:$4 sm:$0xff]   ;;  %v23110_v52 = vld [vmem:[#allocation7 + $0x1724] ss:$40 sps:$4 sm:$0xff]  }
  0xc8   :  { %5038 = vmatpush1.bf16.msra.mxu1 %v23012_v53  ;;  %v23113_v53 = vld [vmem:[#allocation7 + $0x32c] ss:$40 sps:$4 sm:$0xff]  }
  0xc9   :  { %5124 = vmatpush1.bf16.msra.mxu0 %v23015_v54  ;;  %5039 = vmatprep.subr.bf16.mxu1 %v23020_v55  ;;  %v23108_v54 = vld [vmem:[#allocation7 + $0x1720] ss:$40 sps:$4 sm:$0xff]  }
  0xca   :  { %5125 = vmatprep.subr.bf16.mxu0 %v23023_v56  ;;  %v23111_v55 = vld [vmem:[#allocation7 + $0x328] ss:$40 sps:$4 sm:$0xff]   ;;  %v23116_v56 = vld [vmem:[#allocation7 + $0x1774] ss:$40 sps:$4 sm:$0xff]  }
  0xcc   :  { %5040 = vmatpush1.bf16.msra.mxu1 %v23018_v57  ;;  %v23119_v57 = vld [vmem:[#allocation7 + $0x37c] ss:$40 sps:$4 sm:$0xff]  }
  0xcd   :  { %5126 = vmatpush1.bf16.msra.mxu0 %v23021_v58  ;;  %5041 = vmatprep.subr.bf16.mxu1 %v23026_v59  ;;  %v23114_v58 = vld [vmem:[#allocation7 + $0x1770] ss:$40 sps:$4 sm:$0xff]  }
  0xce   :  { %5127 = vmatprep.subr.bf16.mxu0 %v23029_v60  ;;  %v23117_v59 = vld [vmem:[#allocation7 + $0x378] ss:$40 sps:$4 sm:$0xff]   ;;  %v23122_v60 = vld [vmem:[#allocation7 + $0x17c4] ss:$40 sps:$4 sm:$0xff]  }
  0xd0   :  { %5042 = vmatpush1.bf16.msra.mxu1 %v23024_v61  ;;  %v23125_v61 = vld [vmem:[#allocation7 + $0x3cc] ss:$40 sps:$4 sm:$0xff]  }
  0xd1   :  { %5128 = vmatpush1.bf16.msra.mxu0 %v23027_v62  ;;  %5043 = vmatprep.subr.bf16.mxu1 %v23032_v63  ;;  %v23120_v62 = vld [vmem:[#allocation7 + $0x17c0] ss:$40 sps:$4 sm:$0xff]  }
  0xd2   :  { %5129 = vmatprep.subr.bf16.mxu0 %v23035_v0  ;;  %v23123_v63 = vld [vmem:[#allocation7 + $0x3c8] ss:$40 sps:$4 sm:$0xff]   ;;  %v23128_v0 = vld [vmem:[#allocation7 + $0x1814] ss:$40 sps:$4 sm:$0xff]  }
  0xd4   :  { %5044 = vmatpush1.bf16.msra.mxu1 %v23030_v1  ;;  %v23131_v1 = vld [vmem:[#allocation7 + $0x41c] ss:$40 sps:$4 sm:$0xff]  }
  0xd5   :  { %5130 = vmatpush1.bf16.msra.mxu0 %v23033_v2  ;;  %5045 = vmatprep.subr.bf16.mxu1 %v23038_v3  ;;  %v23126_v2 = vld [vmem:[#allocation7 + $0x1810] ss:$40 sps:$4 sm:$0xff]  }
  0xd6   :  { %5131 = vmatprep.subr.bf16.mxu0 %v23041_v4  ;;  %v23129_v3 = vld [vmem:[#allocation7 + $0x418] ss:$40 sps:$4 sm:$0xff]   ;;  %v23134_v4 = vld [vmem:[#allocation7 + $0x1864] ss:$40 sps:$4 sm:$0xff]  }
  0xd8   :  { %5046 = vmatpush1.bf16.msra.mxu1 %v23036_v5  ;;  %v23137_v5 = vld [vmem:[#allocation7 + $0x46c] ss:$40 sps:$4 sm:$0xff]  }
  0xd9   :  { %5132 = vmatpush1.bf16.msra.mxu0 %v23039_v7  ;;  %5187 = vmatprep.subr.bf16.mxu1 %v23051_v9  ;;  %v23132_v7 = vld [vmem:[#allocation7 + $0x1860] ss:$40 sps:$4 sm:$0xff]   ;;  %v23140_v9 = vld [vmem:[#allocation7 + $0x18b4] ss:$40 sps:$4 sm:$0xff]  }
  0xda   :  { %5144 = vmatprep.subr.bf16.mxu0 %v23048_v8  ;;  %v23135_v8 = vld [vmem:[#allocation7 + $0x468] ss:$40 sps:$4 sm:$0xff]  }
  0xdb   :  { %5048 = vmatmul.mubr.bf16.vlgmr.msra.gmra.mrb[0].mxu1 %v26908_v12 }
  0xdc   :  { %5134 = vmatmul.mubr.bf16.vlgmr.msra.gmra.mrb[0].mxu0 %v23053_v13  ;;  %5188 = vmatpush1.bf16.msra.mxu1 %v23049_v11  ;;  %v23138_v11 = vld [vmem:[#allocation7 + $0x18b0] ss:$40 sps:$4 sm:$0xff]  }
  0xdd   :  { %5145 = vmatpush1.bf16.msra.mxu0 %v23046_v10  ;;  %5189 = vmatprep.subr.bf16.mxu1 %v23059_v15  ;;  %v23143_v10 = vld [vmem:[#allocation7 + $0x4bc] ss:$40 sps:$4 sm:$0xff]   ;;  %v23141_v13 = vld [vmem:[#allocation7 + $0x4b8] ss:$40 sps:$4 sm:$0xff]  }
  0xde   :  { %5146 = vmatprep.subr.bf16.mxu0 %v23056_v14  ;;  %5219 = vmatprep.mubr.bf16.mxu1 %v26899_v48  ;;  %v23080_v48 = vld [vmem:[#allocation7 + $0x1594] ss:$40 sps:$4 sm:$0xff]  }
  0xdf   :  { %5176 = vmatprep.mubr.bf16.mxu0 %v23144_v20  ;;  %v23149_v14 = vld [vmem:[#allocation7 + $0x50c] ss:$40 sps:$4 sm:$0xff]  }
  0xe0   :  { %5190 = vmatpush1.bf16.msra.mxu1 %v23057_v17  ;;  %v23152_v15 = vld [vmem:[#allocation7 + $0x14] ss:$40 sps:$4 sm:$0xff]   ;;  %v23147_v17 = vld [vmem:[#allocation7 + $0x508] ss:$40 sps:$4 sm:$0xff]   ;;  %v23158_v20 = vld [vmem:[#allocation7 + $0x64] ss:$40 sps:$4 sm:$0xff]  }
  0xe1   :  { %5147 = vmatpush1.bf16.msra.mxu0 %v23054_v16  ;;  %5191 = vmatprep.subr.bf16.mxu1 %v23065_v19  ;;  %v23146_v16 = vld [vmem:[#allocation2 + $0x20] ss:$40 sps:$4 sm:$0xff]   ;;  %v23155_v19 = vld [vmem:[#allocation7 + $0x55c] ss:$40 sps:$4 sm:$0xff]  }
  0xe2   :  { %5148 = vmatprep.subr.bf16.mxu0 %v23062_v18  ;;  %v23150_v18 = vld [vmem:[#allocation7 + $0x10] ss:$40 sps:$4 sm:$0xff]  }
  0xe4   :  { %5192 = vmatpush1.bf16.msra.mxu1 %v23063_v22  ;;  %v23156_v22 = vld [vmem:[#allocation7 + $0x60] ss:$40 sps:$4 sm:$0xff]  }
  0xe5   :  { %5149 = vmatpush1.bf16.msra.mxu0 %v23060_v21  ;;  %5193 = vmatprep.subr.bf16.mxu1 %v23071_v24  ;;  %v23153_v21 = vld [vmem:[#allocation7 + $0x558] ss:$40 sps:$4 sm:$0xff]   ;;  %v23164_v24 = vld [vmem:[#allocation7 + $0xb4] ss:$40 sps:$4 sm:$0xff]  }
  0xe6   :  { %5150 = vmatprep.subr.bf16.mxu0 %v23068_v23  ;;  %v23161_v23 = vld [vmem:[#allocation7 + $0x5ac] ss:$40 sps:$4 sm:$0xff]  }
  0xe8   :  { %5194 = vmatpush1.bf16.msra.mxu1 %v23069_v26  ;;  %v23159_v26 = vld [vmem:[#allocation7 + $0x5a8] ss:$40 sps:$4 sm:$0xff]  }
  0xe9   :  { %5151 = vmatpush1.bf16.msra.mxu0 %v23066_v25  ;;  %5195 = vmatprep.subr.bf16.mxu1 %v23077_v28  ;;  %v26497_v25 = vld [vmem:[#allocation2 + $0x4] ss:$40 sps:$4 sm:$0xff]  }
  0xea   :  { %5152 = vmatprep.subr.bf16.mxu0 %v23074_v27  ;;  %v23162_v27 = vld [vmem:[#allocation7 + $0xb0] ss:$40 sps:$4 sm:$0xff]   ;;  %v23167_v28 = vld [vmem:[#allocation7 + $0x5fc] ss:$40 sps:$4 sm:$0xff]  }
  0xec   :  { %5196 = vmatpush1.bf16.msra.mxu1 %v23075_v30  ;;  %v23168_v30 = vld [vmem:[#allocation7 + $0x100] ss:$40 sps:$4 sm:$0xff]  }
  0xed   :  { %5153 = vmatpush1.bf16.msra.mxu0 %v23072_v29  ;;  %5197 = vmatprep.subr.bf16.mxu1 %v23083_v31  ;;  %v23165_v29 = vld [vmem:[#allocation7 + $0x5f8] ss:$40 sps:$4 sm:$0xff]   ;;  %v23176_v31 = vld [vmem:[#allocation7 + $0x154] ss:$40 sps:$4 sm:$0xff]  }
  0xee   :  { %5154 = vmatprep.subr.bf16.mxu0 %v23080_v48  ;;  %v23173_v48 = vld [vmem:[#allocation7 + $0x64c] ss:$40 sps:$4 sm:$0xff]  }
  0xf0   :  { %5198 = vmatpush1.bf16.msra.mxu1 %v23081_v33  ;;  %v23179_v33 = vld [vmem:[#allocation7 + $0x69c] ss:$40 sps:$4 sm:$0xff]  }
  0xf1   :  { %5155 = vmatpush1.bf16.msra.mxu0 %v23078_v32  ;;  %5199 = vmatprep.subr.bf16.mxu1 %v23089_v36  ;;  %v23171_v32 = vld [vmem:[#allocation7 + $0x648] ss:$40 sps:$4 sm:$0xff]   ;;  %v23177_v36 = vld [vmem:[#allocation7 + $0x698] ss:$40 sps:$4 sm:$0xff]  }
  0xf2   :  { %5156 = vmatprep.subr.bf16.mxu0 %v23086_v35  ;;  %v23182_v35 = vld [vmem:[#allocation7 + $0x1a4] ss:$40 sps:$4 sm:$0xff]  }
  0xf4   :  { %5200 = vmatpush1.bf16.msra.mxu1 %v23087_v38  ;;  %v23185_v38 = vld [vmem:[#allocation7 + $0x6ec] ss:$40 sps:$4 sm:$0xff]  }
  0xf5   :  { %5157 = vmatpush1.bf16.msra.mxu0 %v23084_v37  ;;  %5201 = vmatprep.subr.bf16.mxu1 %v23095_v40  ;;  %v23180_v37 = vld [vmem:[#allocation7 + $0x1a0] ss:$40 sps:$4 sm:$0xff]  }
  0xf6   :  { %5158 = vmatprep.subr.bf16.mxu0 %v23092_v39  ;;  %v23188_v39 = vld [vmem:[#allocation7 + $0x1f4] ss:$40 sps:$4 sm:$0xff]   ;;  %v23183_v40 = vld [vmem:[#allocation7 + $0x6e8] ss:$40 sps:$4 sm:$0xff]  }
  0xf8   :  { %5202 = vmatpush1.bf16.msra.mxu1 %v23093_v42  ;;  %v23191_v42 = vld [vmem:[#allocation7 + $0x73c] ss:$40 sps:$4 sm:$0xff]  }
  0xf9   :  { %5159 = vmatpush1.bf16.msra.mxu0 %v23090_v41  ;;  %5203 = vmatprep.subr.bf16.mxu1 %v23101_v44  ;;  %v23186_v41 = vld [vmem:[#allocation7 + $0x1f0] ss:$40 sps:$4 sm:$0xff]  }
  0xfa   :  { %5160 = vmatprep.subr.bf16.mxu0 %v23098_v43  ;;  %v23194_v43 = vld [vmem:[#allocation7 + $0x244] ss:$40 sps:$4 sm:$0xff]   ;;  %v23189_v44 = vld [vmem:[#allocation7 + $0x738] ss:$40 sps:$4 sm:$0xff]  }
  0xfc   :  { %5204 = vmatpush1.bf16.msra.mxu1 %v23099_v46  ;;  %v23197_v46 = vld [vmem:[#allocation7 + $0x78c] ss:$40 sps:$4 sm:$0xff]  }
  0xfd   :  { %5161 = vmatpush1.bf16.msra.mxu0 %v23096_v45  ;;  %5205 = vmatprep.subr.bf16.mxu1 %v23107_v49  ;;  %v23192_v45 = vld [vmem:[#allocation7 + $0x240] ss:$40 sps:$4 sm:$0xff]  }
  0xfe   :  { %5162 = vmatprep.subr.bf16.mxu0 %v23104_v47  ;;  %v23200_v47 = vld [vmem:[#allocation7 + $0x294] ss:$40 sps:$4 sm:$0xff]   ;;  %v23195_v49 = vld [vmem:[#allocation7 + $0x788] ss:$40 sps:$4 sm:$0xff]  }
 0x100   :  { %5206 = vmatpush1.bf16.msra.mxu1 %v23105_v51  ;;  %v23203_v51 = vld [vmem:[#allocation7 + $0x7dc] ss:$40 sps:$4 sm:$0xff]  }
 0x101   :  { %5163 = vmatpush1.bf16.msra.mxu0 %v23102_v50  ;;  %5207 = vmatprep.subr.bf16.mxu1 %v23113_v53  ;;  %v23198_v50 = vld [vmem:[#allocation7 + $0x290] ss:$40 sps:$4 sm:$0xff]  }
 0x102   :  { %5164 = vmatprep.subr.bf16.mxu0 %v23110_v52  ;;  %v23206_v52 = vld [vmem:[#allocation7 + $0x2e4] ss:$40 sps:$4 sm:$0xff]   ;;  %v23201_v53 = vld [vmem:[#allocation7 + $0x7d8] ss:$40 sps:$4 sm:$0xff]  }
 0x104   :  { %5208 = vmatpush1.bf16.msra.mxu1 %v23111_v55  ;;  %v23209_v55 = vld [vmem:[#allocation7 + $0x82c] ss:$40 sps:$4 sm:$0xff]  }
 0x105   :  { %5165 = vmatpush1.bf16.msra.mxu0 %v23108_v54  ;;  %5209 = vmatprep.subr.bf16.mxu1 %v23119_v57  ;;  %v23204_v54 = vld [vmem:[#allocation7 + $0x2e0] ss:$40 sps:$4 sm:$0xff]  }
 0x106   :  { %5166 = vmatprep.subr.bf16.mxu0 %v23116_v56  ;;  %v23212_v56 = vld [vmem:[#allocation7 + $0x334] ss:$40 sps:$4 sm:$0xff]   ;;  %v23207_v57 = vld [vmem:[#allocation7 + $0x828] ss:$40 sps:$4 sm:$0xff]  }
 0x108   :  { %5210 = vmatpush1.bf16.msra.mxu1 %v23117_v59  ;;  %v23215_v59 = vld [vmem:[#allocation7 + $0x87c] ss:$40 sps:$4 sm:$0xff]  }
 0x109   :  { %5167 = vmatpush1.bf16.msra.mxu0 %v23114_v58  ;;  %5211 = vmatprep.subr.bf16.mxu1 %v23125_v61  ;;  %v23210_v58 = vld [vmem:[#allocation7 + $0x330] ss:$40 sps:$4 sm:$0xff]  }
 0x10a   :  { %5168 = vmatprep.subr.bf16.mxu0 %v23122_v60  ;;  %v23218_v60 = vld [vmem:[#allocation7 + $0x384] ss:$40 sps:$4 sm:$0xff]   ;;  %v23213_v61 = vld [vmem:[#allocation7 + $0x878] ss:$40 sps:$4 sm:$0xff]  }
 0x10c   :  { %5212 = vmatpush1.bf16.msra.mxu1 %v23123_v63  ;;  %v23221_v63 = vld [vmem:[#allocation7 + $0x8cc] ss:$40 sps:$4 sm:$0xff]  }
 0x10d   :  { %5169 = vmatpush1.bf16.msra.mxu0 %v23120_v62  ;;  %5213 = vmatprep.subr.bf16.mxu1 %v23131_v1  ;;  %v23216_v62 = vld [vmem:[#allocation7 + $0x380] ss:$40 sps:$4 sm:$0xff]  }
 0x10e   :  { %5170 = vmatprep.subr.bf16.mxu0 %v23128_v0  ;;  %v23224_v0 = vld [vmem:[#allocation7 + $0x3d4] ss:$40 sps:$4 sm:$0xff]   ;;  %v23219_v1 = vld [vmem:[#allocation7 + $0x8c8] ss:$40 sps:$4 sm:$0xff]  }
 0x110   :  { %5214 = vmatpush1.bf16.msra.mxu1 %v23129_v3  ;;  %v23227_v3 = vld [vmem:[#allocation7 + $0x91c] ss:$40 sps:$4 sm:$0xff]  }
 0x111   :  { %5171 = vmatpush1.bf16.msra.mxu0 %v23126_v2  ;;  %5215 = vmatprep.subr.bf16.mxu1 %v23137_v5  ;;  %v23222_v2 = vld [vmem:[#allocation7 + $0x3d0] ss:$40 sps:$4 sm:$0xff]  }
 0x112   :  { %5172 = vmatprep.subr.bf16.mxu0 %v23134_v4  ;;  %v23230_v4 = vld [vmem:[#allocation7 + $0x424] ss:$40 sps:$4 sm:$0xff]   ;;  %v23225_v5 = vld [vmem:[#allocation7 + $0x918] ss:$40 sps:$4 sm:$0xff]  }
 0x114   :  { %5216 = vmatpush1.bf16.msra.mxu1 %v23135_v8  ;;  %v23233_v8 = vld [vmem:[#allocation7 + $0x96c] ss:$40 sps:$4 sm:$0xff]  }
 0x115   :  { %5173 = vmatpush1.bf16.msra.mxu0 %v23132_v7  ;;  %5217 = vmatprep.subr.bf16.mxu1 %v23143_v10  ;;  %v23228_v7 = vld [vmem:[#allocation7 + $0x420] ss:$40 sps:$4 sm:$0xff]  }
 0x116   :  { %5174 = vmatprep.subr.bf16.mxu0 %v23140_v9  ;;  %v23236_v9 = vld [vmem:[#allocation7 + $0x474] ss:$40 sps:$4 sm:$0xff]   ;;  %v23231_v10 = vld [vmem:[#allocation7 + $0x968] ss:$40 sps:$4 sm:$0xff]  }
 0x118   :  { %5218 = vmatpush1.bf16.msra.mxu1 %v23141_v13  ;;  %v23239_v13 = vld [vmem:[#allocation7 + $0x9bc] ss:$40 sps:$4 sm:$0xff]  }
 0x119   :  { %5175 = vmatpush1.bf16.msra.mxu0 %v23138_v11  ;;  %5230 = vmatprep.subr.bf16.mxu1 %v23149_v14  ;;  %v23234_v11 = vld [vmem:[#allocation7 + $0x470] ss:$40 sps:$4 sm:$0xff]   ;;  %v23242_v14 = vld [vmem:[#allocation7 + $0x4c4] ss:$40 sps:$4 sm:$0xff]  }
 0x11a   :  { %5402 = vmatprep.subr.bf16.mxu0 %v23152_v15  ;;  %v23237_v15 = vld [vmem:[#allocation7 + $0x9b8] ss:$40 sps:$4 sm:$0xff]  }
 0x11b   :  { %5220 = vmatmul.mubr.bf16.vlgmr.msra.gmra.mrb[4].mxu1 %v26902_v6  ;;  %v23170_v6 = vld [vmem:[#allocation7 + $0x104] ss:$40 sps:$4 sm:$0xff]  }
 0x11c   :  { %5177 = vmatmul.mubr.bf16.vlgmr.msra.gmra.mrb[0].mxu0 %v23146_v16  ;;  %5231 = vmatpush1.bf16.msra.mxu1 %v23147_v17  ;;  %v23240_v16 = vld [vmem:[#allocation7 + $0x4c0] ss:$40 sps:$4 sm:$0xff]   ;;  %v23245_v17 = vld [vmem:[#allocation7 + $0xa0c] ss:$40 sps:$4 sm:$0xff]  }
 0x11d   :  { %5403 = vmatpush1.bf16.msra.mxu0 %v23150_v18  ;;  %5232 = vmatprep.subr.bf16.mxu1 %v23155_v19  ;;  %v23248_v18 = vld [vmem:[#allocation7 + $0x514] ss:$40 sps:$4 sm:$0xff]   ;;  %v23243_v19 = vld [vmem:[#allocation7 + $0xa08] ss:$40 sps:$4 sm:$0xff]  }
 0x11e   :  { %5404 = vmatprep.subr.bf16.mxu0 %v23158_v20  ;;  %5262 = vmatprep.mubr.bf16.mxu1 %v26905_v34  ;;  %v23174_v34 = vld [vmem:[#allocation7 + $0x150] ss:$40 sps:$4 sm:$0xff]  }
 0x11f   :  { %5434 = vmatprep.mubr.bf16.mxu0 %v26497_v25  ;;  %v23246_v20 = vld [vmem:[#allocation7 + $0x510] ss:$40 sps:$4 sm:$0xff]   ;;  %v23252_v25 = vld [vmem:[#allocation7 + $0x560] ss:$40 sps:$4 sm:$0xff]  }
 0x120   :  { %5233 = vmatpush1.bf16.msra.mxu1 %v23153_v21  ;;  %v23251_v21 = vld [vmem:[#allocation7 + $0xa5c] ss:$40 sps:$4 sm:$0xff]  }
 0x121   :  { %5405 = vmatpush1.bf16.msra.mxu0 %v23156_v22  ;;  %5234 = vmatprep.subr.bf16.mxu1 %v23161_v23  ;;  %v23254_v22 = vld [vmem:[#allocation7 + $0x564] ss:$40 sps:$4 sm:$0xff]   ;;  %v26498_v23 = vld [vmem:[#allocation2] ss:$40 sps:$4 sm:$0xff]  }
 0x122   :  { %5406 = vmatprep.subr.bf16.mxu0 %v23164_v24  ;;  %v23249_v24 = vld [vmem:[#allocation7 + $0xa58] ss:$40 sps:$4 sm:$0xff]  }
 0x124   :  { %5235 = vmatpush1.bf16.msra.mxu1 %v23159_v26  ;;  %v23257_v26 = vld [vmem:[#allocation7 + $0xaac] ss:$40 sps:$4 sm:$0xff]  }
 0x125   :  { %5407 = vmatpush1.bf16.msra.mxu0 %v23162_v27  ;;  %5236 = vmatprep.subr.bf16.mxu1 %v23167_v28  ;;  %v23260_v27 = vld [vmem:[#allocation7 + $0x5b4] ss:$40 sps:$4 sm:$0xff]   ;;  %v26915_v28 = vld [vmem:[#allocation2 + $0x14] ss:$40 sps:$4 sm:$0xff]  }
 0x126   :  { %5408 = vmatprep.subr.bf16.mxu0 %v23170_v6  ;;  %v26500_v6 = vld [vmem:[#allocation2 + $0xc] ss:$40 sps:$4 sm:$0xff]  }
 0x128   :  { %5237 = vmatpush1.bf16.msra.mxu1 %v23165_v29  ;;  %v23255_v29 = vld [vmem:[#allocation7 + $0xaa8] ss:$40 sps:$4 sm:$0xff]  }
 0x129   :  { %5409 = vmatpush1.bf16.msra.mxu0 %v23168_v30  ;;  %5238 = vmatprep.subr.bf16.mxu1 %v23173_v48  ;;  %v23258_v30 = vld [vmem:[#allocation7 + $0x5b0] ss:$40 sps:$4 sm:$0xff]   ;;  %v23266_v48 = vld [vmem:[#allocation7 + $0x604] ss:$40 sps:$4 sm:$0xff]  }
 0x12a   :  { %5410 = vmatprep.subr.bf16.mxu0 %v23176_v31  ;;  %v23261_v31 = vld [vmem:[#allocation7 + $0xaf8] ss:$40 sps:$4 sm:$0xff]  }
 0x12c   :  { %5239 = vmatpush1.bf16.msra.mxu1 %v23171_v32  ;;  %v23264_v32 = vld [vmem:[#allocation7 + $0x600] ss:$40 sps:$4 sm:$0xff]  }
 0x12d   :  { %5411 = vmatpush1.bf16.msra.mxu0 %v23174_v34  ;;  %5240 = vmatprep.subr.bf16.mxu1 %v23179_v33  ;;  %v23269_v34 = vld [vmem:[#allocation7 + $0xb4c] ss:$40 sps:$4 sm:$0xff]  }
 0x12e   :  { %5412 = vmatprep.subr.bf16.mxu0 %v23182_v35  ;;  %v23272_v33 = vld [vmem:[#allocation7 + $0x654] ss:$40 sps:$4 sm:$0xff]   ;;  %v23267_v35 = vld [vmem:[#allocation7 + $0xb48] ss:$40 sps:$4 sm:$0xff]  }
 0x130   :  { %5241 = vmatpush1.bf16.msra.mxu1 %v23177_v36  ;;  %v23270_v36 = vld [vmem:[#allocation7 + $0x650] ss:$40 sps:$4 sm:$0xff]  }
 0x131   :  { %5413 = vmatpush1.bf16.msra.mxu0 %v23180_v37  ;;  %5242 = vmatprep.subr.bf16.mxu1 %v23185_v38  ;;  %v23275_v37 = vld [vmem:[#allocation7 + $0xb9c] ss:$40 sps:$4 sm:$0xff]  }
 0x132   :  { %5414 = vmatprep.subr.bf16.mxu0 %v23188_v39  ;;  %v23278_v38 = vld [vmem:[#allocation7 + $0x6a4] ss:$40 sps:$4 sm:$0xff]   ;;  %v23273_v39 = vld [vmem:[#allocation7 + $0xb98] ss:$40 sps:$4 sm:$0xff]  }
 0x134   :  { %5243 = vmatpush1.bf16.msra.mxu1 %v23183_v40  ;;  %v23276_v40 = vld [vmem:[#allocation7 + $0x6a0] ss:$40 sps:$4 sm:$0xff]  }
 0x135   :  { %5415 = vmatpush1.bf16.msra.mxu0 %v23186_v41  ;;  %5244 = vmatprep.subr.bf16.mxu1 %v23191_v42  ;;  %v23281_v41 = vld [vmem:[#allocation7 + $0xbec] ss:$40 sps:$4 sm:$0xff]  }
 0x136   :  { %5416 = vmatprep.subr.bf16.mxu0 %v23194_v43  ;;  %v23284_v42 = vld [vmem:[#allocation7 + $0x6f4] ss:$40 sps:$4 sm:$0xff]   ;;  %v23279_v43 = vld [vmem:[#allocation7 + $0xbe8] ss:$40 sps:$4 sm:$0xff]  }
 0x138   :  { %5245 = vmatpush1.bf16.msra.mxu1 %v23189_v44  ;;  %v23282_v44 = vld [vmem:[#allocation7 + $0x6f0] ss:$40 sps:$4 sm:$0xff]  }
 0x139   :  { %5417 = vmatpush1.bf16.msra.mxu0 %v23192_v45  ;;  %5246 = vmatprep.subr.bf16.mxu1 %v23197_v46  ;;  %v23287_v45 = vld [vmem:[#allocation7 + $0xc3c] ss:$40 sps:$4 sm:$0xff]  }
 0x13a   :  { %5418 = vmatprep.subr.bf16.mxu0 %v23200_v47  ;;  %v23290_v46 = vld [vmem:[#allocation7 + $0x744] ss:$40 sps:$4 sm:$0xff]   ;;  %v23285_v47 = vld [vmem:[#allocation7 + $0xc38] ss:$40 sps:$4 sm:$0xff]  }
 0x13c   :  { %5247 = vmatpush1.bf16.msra.mxu1 %v23195_v49  ;;  %v23288_v49 = vld [vmem:[#allocation7 + $0x740] ss:$40 sps:$4 sm:$0xff]  }
 0x13d   :  { %5419 = vmatpush1.bf16.msra.mxu0 %v23198_v50  ;;  %5248 = vmatprep.subr.bf16.mxu1 %v23203_v51  ;;  %v23293_v50 = vld [vmem:[#allocation7 + $0xc8c] ss:$40 sps:$4 sm:$0xff]  }
 0x13e   :  { %5420 = vmatprep.subr.bf16.mxu0 %v23206_v52  ;;  %v23296_v51 = vld [vmem:[#allocation7 + $0x794] ss:$40 sps:$4 sm:$0xff]   ;;  %v23291_v52 = vld [vmem:[#allocation7 + $0xc88] ss:$40 sps:$4 sm:$0xff]  }
 0x140   :  { %5249 = vmatpush1.bf16.msra.mxu1 %v23201_v53  ;;  %v23294_v53 = vld [vmem:[#allocation7 + $0x790] ss:$40 sps:$4 sm:$0xff]  }
 0x141   :  { %5421 = vmatpush1.bf16.msra.mxu0 %v23204_v54  ;;  %5250 = vmatprep.subr.bf16.mxu1 %v23209_v55  ;;  %v23299_v54 = vld [vmem:[#allocation7 + $0xcdc] ss:$40 sps:$4 sm:$0xff]  }
 0x142   :  { %5422 = vmatprep.subr.bf16.mxu0 %v23212_v56  ;;  %v23302_v55 = vld [vmem:[#allocation7 + $0x7e4] ss:$40 sps:$4 sm:$0xff]   ;;  %v23297_v56 = vld [vmem:[#allocation7 + $0xcd8] ss:$40 sps:$4 sm:$0xff]  }
 0x144   :  { %5251 = vmatpush1.bf16.msra.mxu1 %v23207_v57  ;;  %v23300_v57 = vld [vmem:[#allocation7 + $0x7e0] ss:$40 sps:$4 sm:$0xff]  }
 0x145   :  { %5423 = vmatpush1.bf16.msra.mxu0 %v23210_v58  ;;  %5252 = vmatprep.subr.bf16.mxu1 %v23215_v59  ;;  %v23305_v58 = vld [vmem:[#allocation7 + $0xd2c] ss:$40 sps:$4 sm:$0xff]  }
 0x146   :  { %5424 = vmatprep.subr.bf16.mxu0 %v23218_v60  ;;  %v23308_v59 = vld [vmem:[#allocation7 + $0x834] ss:$40 sps:$4 sm:$0xff]   ;;  %v23303_v60 = vld [vmem:[#allocation7 + $0xd28] ss:$40 sps:$4 sm:$0xff]  }
 0x148   :  { %5253 = vmatpush1.bf16.msra.mxu1 %v23213_v61  ;;  %v23306_v61 = vld [vmem:[#allocation7 + $0x830] ss:$40 sps:$4 sm:$0xff]  }
 0x149   :  { %5425 = vmatpush1.bf16.msra.mxu0 %v23216_v62  ;;  %5254 = vmatprep.subr.bf16.mxu1 %v23221_v63  ;;  %v23311_v62 = vld [vmem:[#allocation7 + $0xd7c] ss:$40 sps:$4 sm:$0xff]  }
 0x14a   :  { %5426 = vmatprep.subr.bf16.mxu0 %v23224_v0  ;;  %v23314_v63 = vld [vmem:[#allocation7 + $0x884] ss:$40 sps:$4 sm:$0xff]   ;;  %v23309_v0 = vld [vmem:[#allocation7 + $0xd78] ss:$40 sps:$4 sm:$0xff]  }
 0x14c   :  { %5255 = vmatpush1.bf16.msra.mxu1 %v23219_v1  ;;  %v23312_v1 = vld [vmem:[#allocation7 + $0x880] ss:$40 sps:$4 sm:$0xff]  }
 0x14d   :  { %5427 = vmatpush1.bf16.msra.mxu0 %v23222_v2  ;;  %5256 = vmatprep.subr.bf16.mxu1 %v23227_v3  ;;  %v23317_v2 = vld [vmem:[#allocation7 + $0xdcc] ss:$40 sps:$4 sm:$0xff]  }
 0x14e   :  { %5428 = vmatprep.subr.bf16.mxu0 %v23230_v4  ;;  %v23320_v3 = vld [vmem:[#allocation7 + $0x8d4] ss:$40 sps:$4 sm:$0xff]   ;;  %v23315_v4 = vld [vmem:[#allocation7 + $0xdc8] ss:$40 sps:$4 sm:$0xff]  }
 0x150   :  { %5257 = vmatpush1.bf16.msra.mxu1 %v23225_v5  ;;  %v23318_v5 = vld [vmem:[#allocation7 + $0x8d0] ss:$40 sps:$4 sm:$0xff]  }
 0x151   :  { %5429 = vmatpush1.bf16.msra.mxu0 %v23228_v7  ;;  %5258 = vmatprep.subr.bf16.mxu1 %v23233_v8  ;;  %v23323_v7 = vld [vmem:[#allocation7 + $0xe1c] ss:$40 sps:$4 sm:$0xff]  }
 0x152   :  { %5430 = vmatprep.subr.bf16.mxu0 %v23236_v9  ;;  %v23326_v8 = vld [vmem:[#allocation7 + $0x924] ss:$40 sps:$4 sm:$0xff]   ;;  %v23321_v9 = vld [vmem:[#allocation7 + $0xe18] ss:$40 sps:$4 sm:$0xff]  }
 0x154   :  { %5259 = vmatpush1.bf16.msra.mxu1 %v23231_v10  ;;  %v23324_v10 = vld [vmem:[#allocation7 + $0x920] ss:$40 sps:$4 sm:$0xff]  }
 0x155   :  { %5431 = vmatpush1.bf16.msra.mxu0 %v23234_v11  ;;  %5260 = vmatprep.subr.bf16.mxu1 %v23239_v13  ;;  %v23329_v11 = vld [vmem:[#allocation7 + $0xe6c] ss:$40 sps:$4 sm:$0xff]  }
 0x156   :  { %5432 = vmatprep.subr.bf16.mxu0 %v23242_v14  ;;  %v23332_v13 = vld [vmem:[#allocation7 + $0x974] ss:$40 sps:$4 sm:$0xff]   ;;  %v23327_v14 = vld [vmem:[#allocation7 + $0xe68] ss:$40 sps:$4 sm:$0xff]  }
 0x158   :  { %5261 = vmatpush1.bf16.msra.mxu1 %v23237_v15  ;;  %v23330_v15 = vld [vmem:[#allocation7 + $0x970] ss:$40 sps:$4 sm:$0xff]  }
 0x159   :  { %5433 = vmatpush1.bf16.msra.mxu0 %v23240_v16  ;;  %5273 = vmatprep.subr.bf16.mxu1 %v23245_v17  ;;  %v23335_v16 = vld [vmem:[#allocation7 + $0xebc] ss:$40 sps:$4 sm:$0xff]  }
 0x15a   :  { %5445 = vmatprep.subr.bf16.mxu0 %v23248_v18  ;;  %v23338_v17 = vld [vmem:[#allocation7 + $0x9c4] ss:$40 sps:$4 sm:$0xff]   ;;  %v23333_v18 = vld [vmem:[#allocation7 + $0xeb8] ss:$40 sps:$4 sm:$0xff]  }
 0x15b   :  { %5263 = vmatmul.mubr.bf16.vlgmr.msra.gmra.mrb[4].mxu1 %v26908_v12  ;;  %v23263_v12 = vld [vmem:[#allocation7 + $0xafc] ss:$40 sps:$4 sm:$0xff]  }
 0x15c   :  { %5435 = vmatmul.mubr.bf16.vlgmr.msra.gmra.mrb[4].mxu0 %v26498_v23  ;;  %5274 = vmatpush1.bf16.msra.mxu1 %v23243_v19  ;;  %v23336_v19 = vld [vmem:[#allocation7 + $0x9c0] ss:$40 sps:$4 sm:$0xff]   ;;  %v23342_v23 = vld [vmem:[#allocation7 + $0xa10] ss:$40 sps:$4 sm:$0xff]  }
 0x15d   :  { %5446 = vmatpush1.bf16.msra.mxu0 %v23246_v20  ;;  %5275 = vmatprep.subr.bf16.mxu1 %v23251_v21  ;;  %v23341_v20 = vld [vmem:[#allocation7 + $0xf0c] ss:$40 sps:$4 sm:$0xff]  }
 0x15e   :  { %5447 = vmatprep.subr.bf16.mxu0 %v23254_v22  ;;  %5305 = vmatprep.mubr.bf16.mxu1 %v26915_v28  ;;  %v23344_v21 = vld [vmem:[#allocation7 + $0xa14] ss:$40 sps:$4 sm:$0xff]   ;;  %v23339_v22 = vld [vmem:[#allocation7 + $0xf08] ss:$40 sps:$4 sm:$0xff]  }
 0x15f   :  { %5477 = vmatprep.mubr.bf16.mxu0 %v26500_v6  ;;  %v23345_v6 = vld [vmem:[#allocation7 + $0xf58] ss:$40 sps:$4 sm:$0xff]  }
 0x160   :  { %5276 = vmatpush1.bf16.msra.mxu1 %v23249_v24  ;;  %v23347_v24 = vld [vmem:[#allocation7 + $0xf5c] ss:$40 sps:$4 sm:$0xff]  }
 0x161   :  { %5448 = vmatpush1.bf16.msra.mxu0 %v23252_v25  ;;  %5277 = vmatprep.subr.bf16.mxu1 %v23257_v26  ;;  %v23350_v25 = vld [vmem:[#allocation7 + $0xa64] ss:$40 sps:$4 sm:$0xff]   ;;  %v26918_v26 = vld [vmem:[#allocation2 + $0x10] ss:$40 sps:$4 sm:$0xff]  }
 0x162   :  { %5449 = vmatprep.subr.bf16.mxu0 %v23260_v27  ;;  %v26502_v27 = vld [vmem:[#allocation2 + $0x8] ss:$40 sps:$4 sm:$0xff]  }
 0x164   :  { %5278 = vmatpush1.bf16.msra.mxu1 %v23255_v29  ;;  %v23348_v29 = vld [vmem:[#allocation7 + $0xa60] ss:$40 sps:$4 sm:$0xff]  }
 0x165   :  { %5450 = vmatpush1.bf16.msra.mxu0 %v23258_v30  ;;  %5279 = vmatprep.subr.bf16.mxu1 %v23263_v12  ;;  %v23353_v30 = vld [vmem:[#allocation7 + $0xfac] ss:$40 sps:$4 sm:$0xff]  }
 0x166   :  { %5451 = vmatprep.subr.bf16.mxu0 %v23266_v48  ;;  %v23356_v12 = vld [vmem:[#allocation7 + $0xab4] ss:$40 sps:$4 sm:$0xff]  }
 0x167   :  { %v26921_v48 = vld [vmem:[#allocation2 + $0x1c] ss:$40 sps:$4 sm:$0xff]  }
 0x168   :  { %5280 = vmatpush1.bf16.msra.mxu1 %v23261_v31  ;;  %v23351_v31 = vld [vmem:[#allocation7 + $0xfa8] ss:$40 sps:$4 sm:$0xff]  }
 0x169   :  { %5452 = vmatpush1.bf16.msra.mxu0 %v23264_v32  ;;  %5281 = vmatprep.subr.bf16.mxu1 %v23269_v34  ;;  %v23354_v32 = vld [vmem:[#allocation7 + $0xab0] ss:$40 sps:$4 sm:$0xff]   ;;  %v23359_v34 = vld [vmem:[#allocation7 + $0xffc] ss:$40 sps:$4 sm:$0xff]  }
 0x16a   :  { %5453 = vmatprep.subr.bf16.mxu0 %v23272_v33  ;;  %v23362_v33 = vld [vmem:[#allocation7 + $0xb04] ss:$40 sps:$4 sm:$0xff]  }
 0x16c   :  { %5282 = vmatpush1.bf16.msra.mxu1 %v23267_v35  ;;  %v23357_v35 = vld [vmem:[#allocation7 + $0xff8] ss:$40 sps:$4 sm:$0xff]  }
 0x16d   :  { %5454 = vmatpush1.bf16.msra.mxu0 %v23270_v36  ;;  %5283 = vmatprep.subr.bf16.mxu1 %v23275_v37  ;;  %v23360_v36 = vld [vmem:[#allocation7 + $0xb00] ss:$40 sps:$4 sm:$0xff]   ;;  %v23365_v37 = vld [vmem:[#allocation7 + $0x104c] ss:$40 sps:$4 sm:$0xff]  }
 0x16e   :  { %5455 = vmatprep.subr.bf16.mxu0 %v23278_v38  ;;  %v23368_v38 = vld [vmem:[#allocation7 + $0xb54] ss:$40 sps:$4 sm:$0xff]  }
 0x170   :  { %5284 = vmatpush1.bf16.msra.mxu1 %v23273_v39  ;;  %v23363_v39 = vld [vmem:[#allocation7 + $0x1048] ss:$40 sps:$4 sm:$0xff]  }
 0x171   :  { %5456 = vmatpush1.bf16.msra.mxu0 %v23276_v40  ;;  %5285 = vmatprep.subr.bf16.mxu1 %v23281_v41  ;;  %v23371_v40 = vld [vmem:[#allocation7 + $0x109c] ss:$40 sps:$4 sm:$0xff]  }
 0x172   :  { %5457 = vmatprep.subr.bf16.mxu0 %v23284_v42  ;;  %v23374_v41 = vld [vmem:[#allocation7 + $0xba4] ss:$40 sps:$4 sm:$0xff]   ;;  %v23369_v42 = vld [vmem:[#allocation7 + $0x1098] ss:$40 sps:$4 sm:$0xff]  }
 0x174   :  { %5286 = vmatpush1.bf16.msra.mxu1 %v23279_v43  ;;  %v23372_v43 = vld [vmem:[#allocation7 + $0xba0] ss:$40 sps:$4 sm:$0xff]  }
 0x175   :  { %5458 = vmatpush1.bf16.msra.mxu0 %v23282_v44  ;;  %5287 = vmatprep.subr.bf16.mxu1 %v23287_v45  ;;  %v23377_v44 = vld [vmem:[#allocation7 + $0x10ec] ss:$40 sps:$4 sm:$0xff]  }
 0x176   :  { %5459 = vmatprep.subr.bf16.mxu0 %v23290_v46  ;;  %v23380_v45 = vld [vmem:[#allocation7 + $0xbf4] ss:$40 sps:$4 sm:$0xff]  }
 0x178   :  { %5288 = vmatpush1.bf16.msra.mxu1 %v23285_v47 }
 0x179   :  { %5460 = vmatpush1.bf16.msra.mxu0 %v23288_v49  ;;  %5289 = vmatprep.subr.bf16.mxu1 %v23293_v50  ;;  %v23375_v49 = vld [vmem:[#allocation7 + $0x10e8] ss:$40 sps:$4 sm:$0xff]  }
 0x17a   :  { %5461 = vmatprep.subr.bf16.mxu0 %v23296_v51  ;;  %v23378_v50 = vld [vmem:[#allocation7 + $0xbf0] ss:$40 sps:$4 sm:$0xff]  }
 0x17c   :  { %5290 = vmatpush1.bf16.msra.mxu1 %v23291_v52 }
 0x17d   :  { %5462 = vmatpush1.bf16.msra.mxu0 %v23294_v53  ;;  %5291 = vmatprep.subr.bf16.mxu1 %v23299_v54  ;;  %v23383_v53 = vld [vmem:[#allocation7 + $0x113c] ss:$40 sps:$4 sm:$0xff]  }
 0x17e   :  { %5463 = vmatprep.subr.bf16.mxu0 %v23302_v55  ;;  %v23386_v54 = vld [vmem:[#allocation7 + $0xc44] ss:$40 sps:$4 sm:$0xff]   ;;  %v23381_v55 = vld [vmem:[#allocation7 + $0x1138] ss:$40 sps:$4 sm:$0xff]  }
 0x180   :  { %5292 = vmatpush1.bf16.msra.mxu1 %v23297_v56  ;;  %v23384_v56 = vld [vmem:[#allocation7 + $0xc40] ss:$40 sps:$4 sm:$0xff]  }
 0x181   :  { %5464 = vmatpush1.bf16.msra.mxu0 %v23300_v57  ;;  %5293 = vmatprep.subr.bf16.mxu1 %v23305_v58  ;;  %v23389_v57 = vld [vmem:[#allocation7 + $0x118c] ss:$40 sps:$4 sm:$0xff]  }
 0x182   :  { %5465 = vmatprep.subr.bf16.mxu0 %v23308_v59  ;;  %v23392_v58 = vld [vmem:[#allocation7 + $0xc94] ss:$40 sps:$4 sm:$0xff]   ;;  %v23387_v59 = vld [vmem:[#allocation7 + $0x1188] ss:$40 sps:$4 sm:$0xff]  }
 0x184   :  { %5294 = vmatpush1.bf16.msra.mxu1 %v23303_v60  ;;  %v23390_v60 = vld [vmem:[#allocation7 + $0xc90] ss:$40 sps:$4 sm:$0xff]  }
 0x185   :  { %5466 = vmatpush1.bf16.msra.mxu0 %v23306_v61  ;;  %5295 = vmatprep.subr.bf16.mxu1 %v23311_v62  ;;  %v23395_v61 = vld [vmem:[#allocation7 + $0x11dc] ss:$40 sps:$4 sm:$0xff]  }
 0x186   :  { %5467 = vmatprep.subr.bf16.mxu0 %v23314_v63  ;;  %v23398_v62 = vld [vmem:[#allocation7 + $0xce4] ss:$40 sps:$4 sm:$0xff]   ;;  %v23393_v63 = vld [vmem:[#allocation7 + $0x11d8] ss:$40 sps:$4 sm:$0xff]  }
 0x188   :  { %5296 = vmatpush1.bf16.msra.mxu1 %v23309_v0  ;;  %v23396_v0 = vld [vmem:[#allocation7 + $0xce0] ss:$40 sps:$4 sm:$0xff]  }
 0x189   :  { %5468 = vmatpush1.bf16.msra.mxu0 %v23312_v1  ;;  %5297 = vmatprep.subr.bf16.mxu1 %v23317_v2  ;;  %v23401_v1 = vld [vmem:[#allocation7 + $0x122c] ss:$40 sps:$4 sm:$0xff]  }
 0x18a   :  { %5469 = vmatprep.subr.bf16.mxu0 %v23320_v3  ;;  %v23404_v2 = vld [vmem:[#allocation7 + $0xd34] ss:$40 sps:$4 sm:$0xff]   ;;  %v23399_v3 = vld [vmem:[#allocation7 + $0x1228] ss:$40 sps:$4 sm:$0xff]  }
 0x18c   :  { %5298 = vmatpush1.bf16.msra.mxu1 %v23315_v4  ;;  %v23402_v4 = vld [vmem:[#allocation7 + $0xd30] ss:$40 sps:$4 sm:$0xff]  }
 0x18d   :  { %5470 = vmatpush1.bf16.msra.mxu0 %v23318_v5  ;;  %5299 = vmatprep.subr.bf16.mxu1 %v23323_v7  ;;  %v23407_v5 = vld [vmem:[#allocation7 + $0x127c] ss:$40 sps:$4 sm:$0xff]  }
 0x18e   :  { %5471 = vmatprep.subr.bf16.mxu0 %v23326_v8  ;;  %v23410_v7 = vld [vmem:[#allocation7 + $0xd84] ss:$40 sps:$4 sm:$0xff]   ;;  %v23405_v8 = vld [vmem:[#allocation7 + $0x1278] ss:$40 sps:$4 sm:$0xff]  }
 0x190   :  { %5300 = vmatpush1.bf16.msra.mxu1 %v23321_v9  ;;  %v23408_v9 = vld [vmem:[#allocation7 + $0xd80] ss:$40 sps:$4 sm:$0xff]  }
 0x191   :  { %5472 = vmatpush1.bf16.msra.mxu0 %v23324_v10  ;;  %5301 = vmatprep.subr.bf16.mxu1 %v23329_v11  ;;  %v23413_v10 = vld [vmem:[#allocation7 + $0x12cc] ss:$40 sps:$4 sm:$0xff]  }
 0x192   :  { %5473 = vmatprep.subr.bf16.mxu0 %v23332_v13  ;;  %v23416_v11 = vld [vmem:[#allocation7 + $0xdd4] ss:$40 sps:$4 sm:$0xff]   ;;  %v23411_v13 = vld [vmem:[#allocation7 + $0x12c8] ss:$40 sps:$4 sm:$0xff]  }
 0x194   :  { %5302 = vmatpush1.bf16.msra.mxu1 %v23327_v14  ;;  %v23414_v14 = vld [vmem:[#allocation7 + $0xdd0] ss:$40 sps:$4 sm:$0xff]  }
 0x195   :  { %5474 = vmatpush1.bf16.msra.mxu0 %v23330_v15  ;;  %5303 = vmatprep.subr.bf16.mxu1 %v23335_v16  ;;  %v23419_v15 = vld [vmem:[#allocation7 + $0x131c] ss:$40 sps:$4 sm:$0xff]  }
 0x196   :  { %5475 = vmatprep.subr.bf16.mxu0 %v23338_v17  ;;  %v23422_v16 = vld [vmem:[#allocation7 + $0xe24] ss:$40 sps:$4 sm:$0xff]   ;;  %v23417_v17 = vld [vmem:[#allocation7 + $0x1318] ss:$40 sps:$4 sm:$0xff]  }
 0x198   :  { %5304 = vmatpush1.bf16.msra.mxu1 %v23333_v18  ;;  %v23420_v18 = vld [vmem:[#allocation7 + $0xe20] ss:$40 sps:$4 sm:$0xff]  }
 0x199   :  { %5476 = vmatpush1.bf16.msra.mxu0 %v23336_v19  ;;  %5316 = vmatprep.subr.bf16.mxu1 %v23341_v20  ;;  %v23425_v19 = vld [vmem:[#allocation7 + $0x136c] ss:$40 sps:$4 sm:$0xff]  }
 0x19a   :  { %5488 = vmatprep.subr.bf16.mxu0 %v23344_v21  ;;  %v23428_v20 = vld [vmem:[#allocation7 + $0xe74] ss:$40 sps:$4 sm:$0xff]   ;;  %v23423_v21 = vld [vmem:[#allocation7 + $0x1368] ss:$40 sps:$4 sm:$0xff]  }
 0x19b   :  { %5306 = vmatmul.mubr.bf16.vlgmr.msra.gmra.mrb[4].mxu1 %v26918_v26 }
 0x19c   :  { %5478 = vmatmul.mubr.bf16.vlgmr.msra.gmra.mrb[4].mxu0 %v26502_v27  ;;  %5317 = vmatpush1.bf16.msra.mxu1 %v23339_v22  ;;  %v23426_v22 = vld [vmem:[#allocation7 + $0xe70] ss:$40 sps:$4 sm:$0xff]   ;;  %v23432_v27 = vld [vmem:[#allocation7 + $0xec0] ss:$40 sps:$4 sm:$0xff]  }
 0x19d   :  { %5489 = vmatpush1.bf16.msra.mxu0 %v23342_v23  ;;  %5318 = vmatprep.subr.bf16.mxu1 %v23347_v24  ;;  %v23431_v23 = vld [vmem:[#allocation7 + $0x13bc] ss:$40 sps:$4 sm:$0xff]  }
 0x19e   :  { %5490 = vmatprep.subr.bf16.mxu0 %v23350_v25  ;;  %5348 = vmatprep.mubr.bf16.mxu1 %v26921_v48  ;;  %v23434_v24 = vld [vmem:[#allocation7 + $0xec4] ss:$40 sps:$4 sm:$0xff]   ;;  %v23429_v25 = vld [vmem:[#allocation7 + $0x13b8] ss:$40 sps:$4 sm:$0xff]  }
 0x19f   :  { %5520 = vmatprep.mubr.bf16.mxu0 %v26915_v28  ;;  %v23366_v28 = vld [vmem:[#allocation7 + $0xb50] ss:$40 sps:$4 sm:$0xff]  }
 0x1a0   :  { %5319 = vmatpush1.bf16.msra.mxu1 %v23345_v6  ;;  %v23437_v6 = vld [vmem:[#allocation7 + $0x140c] ss:$40 sps:$4 sm:$0xff]  }
 0x1a1   :  { %5491 = vmatpush1.bf16.msra.mxu0 %v23348_v29  ;;  %5320 = vmatprep.subr.bf16.mxu1 %v23353_v30  ;;  %v23440_v29 = vld [vmem:[#allocation7 + $0xf14] ss:$40 sps:$4 sm:$0xff]   ;;  %v23435_v30 = vld [vmem:[#allocation7 + $0x1408] ss:$40 sps:$4 sm:$0xff]  }
 0x1a2   :  { %5492 = vmatprep.subr.bf16.mxu0 %v23356_v12  ;;  %v23438_v12 = vld [vmem:[#allocation7 + $0xf10] ss:$40 sps:$4 sm:$0xff]  }
 0x1a4   :  { %5321 = vmatpush1.bf16.msra.mxu1 %v23351_v31  ;;  %v23443_v31 = vld [vmem:[#allocation7 + $0x145c] ss:$40 sps:$4 sm:$0xff]  }
 0x1a5   :  { %5493 = vmatpush1.bf16.msra.mxu0 %v23354_v32  ;;  %5322 = vmatprep.subr.bf16.mxu1 %v23359_v34  ;;  %v23446_v32 = vld [vmem:[#allocation7 + $0xf64] ss:$40 sps:$4 sm:$0xff]   ;;  %v26933_v34 = vld [vmem:[#allocation2 + $0x18] ss:$40 sps:$4 sm:$0xff]  }
 0x1a6   :  { %5494 = vmatprep.subr.bf16.mxu0 %v23362_v33  ;;  %v23441_v33 = vld [vmem:[#allocation7 + $0x1458] ss:$40 sps:$4 sm:$0xff]  }
 0x1a8   :  { %5323 = vmatpush1.bf16.msra.mxu1 %v23357_v35  ;;  %v23444_v35 = vld [vmem:[#allocation7 + $0xf60] ss:$40 sps:$4 sm:$0xff]  }
 0x1a9   :  { %5495 = vmatpush1.bf16.msra.mxu0 %v23360_v36  ;;  %5324 = vmatprep.subr.bf16.mxu1 %v23365_v37  ;;  %v23449_v36 = vld [vmem:[#allocation7 + $0x14ac] ss:$40 sps:$4 sm:$0xff]  }
 0x1aa   :  { %5496 = vmatprep.subr.bf16.mxu0 %v23368_v38  ;;  %v23452_v37 = vld [vmem:[#allocation7 + $0xfb4] ss:$40 sps:$4 sm:$0xff]  }
 0x1ab   :  { %v26937_v38 = vld [vmem:[#allocation2 + $0x24] ss:$40 sps:$4 sm:$0xff]  }
 0x1ac   :  { %5325 = vmatpush1.bf16.msra.mxu1 %v23363_v39  ;;  %v23447_v39 = vld [vmem:[#allocation7 + $0x14a8] ss:$40 sps:$4 sm:$0xff]  }
 0x1ad   :  { %5497 = vmatpush1.bf16.msra.mxu0 %v23366_v28  ;;  %5326 = vmatprep.subr.bf16.mxu1 %v23371_v40  ;;  %v23450_v28 = vld [vmem:[#allocation7 + $0xfb0] ss:$40 sps:$4 sm:$0xff]   ;;  %v23458_v40 = vld [vmem:[#allocation7 + $0x1004] ss:$40 sps:$4 sm:$0xff]  }
 0x1ae   :  { %5498 = vmatprep.subr.bf16.mxu0 %v23374_v41  ;;  %v26925_v46 = vpop.f32.mrb[0].mxu1  ;;  %v23453_v41 = vld [vmem:[#allocation7 + $0x14f8] ss:$40 sps:$4 sm:$0xff]  }
 0x1af   :  { %v26927_v47 = vpop.f32.mrb[1].mxu1 }
 0x1b0   :  { %5327 = vmatpush1.bf16.msra.mxu1 %v23369_v42  ;;  %v26929_v51 = vpop.f32.mrb[2].mxu1  ;;  %v23456_v42 = vld [vmem:[#allocation7 + $0x1000] ss:$40 sps:$4 sm:$0xff]  }
 0x1b1   :  { %5499 = vmatpush1.bf16.msra.mxu0 %v23372_v43  ;;  %5328 = vmatprep.subr.bf16.mxu1 %v23377_v44  ;;  %v26931_v52 = vpop.f32.mrb[3].mxu1  ;;  %v23461_v43 = vld [vmem:[#allocation7 + $0x154c] ss:$40 sps:$4 sm:$0xff]  }
 0x1b2   :  { %5500 = vmatprep.subr.bf16.mxu0 %v23380_v45  ;;  %v23464_v44 = vld [vmem:[#allocation7 + $0x1054] ss:$40 sps:$4 sm:$0xff]   ;;  %v23459_v45 = vld [vmem:[#allocation7 + $0x1548] ss:$40 sps:$4 sm:$0xff]  }
 0x1b4   :  { %5329 = vmatpush1.bf16.msra.mxu1 %v23375_v49  ;;  %v23467_v49 = vld [vmem:[#allocation7 + $0x159c] ss:$40 sps:$4 sm:$0xff]  }
 0x1b5   :  { %5501 = vmatpush1.bf16.msra.mxu0 %v23378_v50  ;;  %5330 = vmatprep.subr.bf16.mxu1 %v23383_v53  ;;  %v23470_v50 = vld [vmem:[#allocation7 + $0x10a4] ss:$40 sps:$4 sm:$0xff]   ;;  %v23465_v53 = vld [vmem:[#allocation7 + $0x1598] ss:$40 sps:$4 sm:$0xff]  }
 0x1b6   :  { %5502 = vmatprep.subr.bf16.mxu0 %v23386_v54  ;;  %v23468_v54 = vld [vmem:[#allocation7 + $0x10a0] ss:$40 sps:$4 sm:$0xff]  }
 0x1b8   :  { %5331 = vmatpush1.bf16.msra.mxu1 %v23381_v55  ;;  %v23473_v55 = vld [vmem:[#allocation7 + $0x15ec] ss:$40 sps:$4 sm:$0xff]  }
 0x1b9   :  { %5503 = vmatpush1.bf16.msra.mxu0 %v23384_v56  ;;  %5332 = vmatprep.subr.bf16.mxu1 %v23389_v57  ;;  %v23476_v56 = vld [vmem:[#allocation7 + $0x10f4] ss:$40 sps:$4 sm:$0xff]  }
 0x1ba   :  { %5504 = vmatprep.subr.bf16.mxu0 %v23392_v58 }
 0x1bc   :  { %5333 = vmatpush1.bf16.msra.mxu1 %v23387_v59 }
 0x1bd   :  { %5505 = vmatpush1.bf16.msra.mxu0 %v23390_v60  ;;  %5334 = vmatprep.subr.bf16.mxu1 %v23395_v61 }
 0x1be   :  { %5506 = vmatprep.subr.bf16.mxu0 %v23398_v62  ;;  %v23471_v62 = vld [vmem:[#allocation7 + $0x15e8] ss:$40 sps:$4 sm:$0xff]  }
 0x1c0   :  { %5335 = vmatpush1.bf16.msra.mxu1 %v23393_v63  ;;  %v23474_v63 = vld [vmem:[#allocation7 + $0x10f0] ss:$40 sps:$4 sm:$0xff]  }
 0x1c1   :  { %5507 = vmatpush1.bf16.msra.mxu0 %v23396_v0  ;;  %5336 = vmatprep.subr.bf16.mxu1 %v23401_v1 }
 0x1c2   :  { %5508 = vmatprep.subr.bf16.mxu0 %v23404_v2  ;;  %v23479_v2 = vld [vmem:[#allocation7 + $0x163c] ss:$40 sps:$4 sm:$0xff]  }
 0x1c4   :  { %5337 = vmatpush1.bf16.msra.mxu1 %v23399_v3  ;;  %v23482_v3 = vld [vmem:[#allocation7 + $0x1144] ss:$40 sps:$4 sm:$0xff]  }
 0x1c5   :  { %5509 = vmatpush1.bf16.msra.mxu0 %v23402_v4  ;;  %5338 = vmatprep.subr.bf16.mxu1 %v23407_v5  ;;  %v23480_v4 = vld [vmem:[#allocation7 + $0x1140] ss:$40 sps:$4 sm:$0xff]   ;;  %v23485_v5 = vld [vmem:[#allocation7 + $0x168c] ss:$40 sps:$4 sm:$0xff]  }
 0x1c6   :  { %5510 = vmatprep.subr.bf16.mxu0 %v23410_v7  ;;  %v23488_v7 = vld [vmem:[#allocation7 + $0x1194] ss:$40 sps:$4 sm:$0xff]  }
 0x1c8   :  { %5339 = vmatpush1.bf16.msra.mxu1 %v23405_v8  ;;  %v23486_v8 = vld [vmem:[#allocation7 + $0x1190] ss:$40 sps:$4 sm:$0xff]  }
 0x1c9   :  { %5511 = vmatpush1.bf16.msra.mxu0 %v23408_v9  ;;  %5340 = vmatprep.subr.bf16.mxu1 %v23413_v10  ;;  %v23491_v9 = vld [vmem:[#allocation7 + $0x16dc] ss:$40 sps:$4 sm:$0xff]  }
 0x1ca   :  { %5512 = vmatprep.subr.bf16.mxu0 %v23416_v11  ;;  %v23494_v10 = vld [vmem:[#allocation7 + $0x11e4] ss:$40 sps:$4 sm:$0xff]   ;;  %v23492_v11 = vld [vmem:[#allocation7 + $0x11e0] ss:$40 sps:$4 sm:$0xff]  }
 0x1cc   :  { %5341 = vmatpush1.bf16.msra.mxu1 %v23411_v13  ;;  %v23497_v13 = vld [vmem:[#allocation7 + $0x172c] ss:$40 sps:$4 sm:$0xff]  }
 0x1cd   :  { %5513 = vmatpush1.bf16.msra.mxu0 %v23414_v14  ;;  %5342 = vmatprep.subr.bf16.mxu1 %v23419_v15  ;;  %v23500_v14 = vld [vmem:[#allocation7 + $0x1234] ss:$40 sps:$4 sm:$0xff]   ;;  %v23495_v15 = vld [vmem:[#allocation7 + $0x1728] ss:$40 sps:$4 sm:$0xff]  }
 0x1ce   :  { %5514 = vmatprep.subr.bf16.mxu0 %v23422_v16  ;;  %v23498_v16 = vld [vmem:[#allocation7 + $0x1230] ss:$40 sps:$4 sm:$0xff]  }
 0x1d0   :  { %5343 = vmatpush1.bf16.msra.mxu1 %v23417_v17  ;;  %v23503_v17 = vld [vmem:[#allocation7 + $0x177c] ss:$40 sps:$4 sm:$0xff]  }
 0x1d1   :  { %5515 = vmatpush1.bf16.msra.mxu0 %v23420_v18  ;;  %5344 = vmatprep.subr.bf16.mxu1 %v23425_v19  ;;  %v23506_v18 = vld [vmem:[#allocation7 + $0x1284] ss:$40 sps:$4 sm:$0xff]   ;;  %v23501_v19 = vld [vmem:[#allocation7 + $0x1778] ss:$40 sps:$4 sm:$0xff]  }
 0x1d2   :  { %5516 = vmatprep.subr.bf16.mxu0 %v23428_v20  ;;  %v23504_v20 = vld [vmem:[#allocation7 + $0x1280] ss:$40 sps:$4 sm:$0xff]  }
 0x1d4   :  { %5345 = vmatpush1.bf16.msra.mxu1 %v23423_v21  ;;  %v23509_v21 = vld [vmem:[#allocation7 + $0x17cc] ss:$40 sps:$4 sm:$0xff]  }
 0x1d5   :  { %5517 = vmatpush1.bf16.msra.mxu0 %v23426_v22  ;;  %5346 = vmatprep.subr.bf16.mxu1 %v23431_v23  ;;  %v23512_v22 = vld [vmem:[#allocation7 + $0x12d4] ss:$40 sps:$4 sm:$0xff]   ;;  %v23507_v23 = vld [vmem:[#allocation7 + $0x17c8] ss:$40 sps:$4 sm:$0xff]  }
 0x1d6   :  { %5518 = vmatprep.subr.bf16.mxu0 %v23434_v24  ;;  %v23510_v24 = vld [vmem:[#allocation7 + $0x12d0] ss:$40 sps:$4 sm:$0xff]  }
 0x1d8   :  { %5347 = vmatpush1.bf16.msra.mxu1 %v23429_v25  ;;  %v23515_v25 = vld [vmem:[#allocation7 + $0x181c] ss:$40 sps:$4 sm:$0xff]  }
 0x1d9   :  { %5519 = vmatpush1.bf16.msra.mxu0 %v23432_v27  ;;  %5359 = vmatprep.subr.bf16.mxu1 %v23437_v6  ;;  %v23518_v27 = vld [vmem:[#allocation7 + $0x1324] ss:$40 sps:$4 sm:$0xff]   ;;  %v23513_v6 = vld [vmem:[#allocation7 + $0x1818] ss:$40 sps:$4 sm:$0xff]  }
 0x1da   :  { %5531 = vmatprep.subr.bf16.mxu0 %v23440_v29  ;;  %v23516_v29 = vld [vmem:[#allocation7 + $0x1320] ss:$40 sps:$4 sm:$0xff]  }
 0x1db   :  { %5349 = vmatmul.mubr.bf16.vlgmr.msra.gmra.mrb[4].mxu1 %v26933_v34 }
 0x1dc   :  { %5521 = vmatmul.mubr.bf16.vlgmr.msra.gmra.mrb[4].mxu0 %v26918_v26  ;;  %5360 = vmatpush1.bf16.msra.mxu1 %v23435_v30  ;;  %v23455_v26 = vld [vmem:[#allocation7 + $0x14fc] ss:$40 sps:$4 sm:$0xff]   ;;  %v23521_v30 = vld [vmem:[#allocation7 + $0x186c] ss:$40 sps:$4 sm:$0xff]  }
 0x1dd   :  { %5532 = vmatpush1.bf16.msra.mxu0 %v23438_v12  ;;  %5361 = vmatprep.subr.bf16.mxu1 %v23443_v31  ;;  %v23524_v12 = vld [vmem:[#allocation7 + $0x1374] ss:$40 sps:$4 sm:$0xff]   ;;  %v23519_v31 = vld [vmem:[#allocation7 + $0x1868] ss:$40 sps:$4 sm:$0xff]  }
 0x1de   :  { %5533 = vmatprep.subr.bf16.mxu0 %v23446_v32  ;;  %5391 = vmatprep.mubr.bf16.mxu1 %v26937_v38  ;;  %v23522_v32 = vld [vmem:[#allocation7 + $0x1370] ss:$40 sps:$4 sm:$0xff]  }
 0x1df   :  { %5563 = vmatprep.mubr.bf16.mxu0 %v26921_v48  ;;  %v23462_v48 = vld [vmem:[#allocation7 + $0x1050] ss:$40 sps:$4 sm:$0xff]  }
 0x1e0   :  { %5362 = vmatpush1.bf16.msra.mxu1 %v23441_v33  ;;  %v23527_v33 = vld [vmem:[#allocation7 + $0x18bc] ss:$40 sps:$4 sm:$0xff]  }
 0x1e1   :  { %5534 = vmatpush1.bf16.msra.mxu0 %v23444_v35  ;;  %5363 = vmatprep.subr.bf16.mxu1 %v23449_v36  ;;  %v23530_v35 = vld [vmem:[#allocation7 + $0x13c4] ss:$40 sps:$4 sm:$0xff]   ;;  %v23525_v36 = vld [vmem:[#allocation7 + $0x18b8] ss:$40 sps:$4 sm:$0xff]  }
 0x1e2   :  { %5535 = vmatprep.subr.bf16.mxu0 %v23452_v37  ;;  %v23528_v37 = vld [vmem:[#allocation7 + $0x13c0] ss:$40 sps:$4 sm:$0xff]  }
 0x1e4   :  { %5364 = vmatpush1.bf16.msra.mxu1 %v23447_v39  ;;  %v23533_v39 = vld [vmem:[#allocation7 + $0x1414] ss:$40 sps:$4 sm:$0xff]  }
 0x1e5   :  { %5536 = vmatpush1.bf16.msra.mxu0 %v23450_v28  ;;  %5365 = vmatprep.subr.bf16.mxu1 %v23455_v26  ;;  %v23536_v28 = vld [vmem:[#allocation7 + $0x1c] ss:$40 sps:$4 sm:$0xff]   ;;  %v23531_v26 = vld [vmem:[#allocation7 + $0x1410] ss:$40 sps:$4 sm:$0xff]  }
 0x1e6   :  { %5537 = vmatprep.subr.bf16.mxu0 %v23458_v40  ;;  %v23534_v40 = vld [vmem:[#allocation7 + $0x18] ss:$40 sps:$4 sm:$0xff]  }
 0x1e8   :  { %5366 = vmatpush1.bf16.msra.mxu1 %v23453_v41  ;;  %v23539_v41 = vld [vmem:[#allocation7 + $0x1464] ss:$40 sps:$4 sm:$0xff]  }
 0x1e9   :  { %5538 = vmatpush1.bf16.msra.mxu0 %v23456_v42  ;;  %5367 = vmatprep.subr.bf16.mxu1 %v23461_v43  ;;  %v23542_v42 = vld [vmem:[#allocation7 + $0x6c] ss:$40 sps:$4 sm:$0xff]   ;;  %v26953_v43 = vld [vmem:[#allocation2 + $0x20] ss:$40 sps:$4 sm:$0xff]  }
 0x1ea   :  { %5539 = vmatprep.subr.bf16.mxu0 %v23464_v44  ;;  %v23537_v44 = vld [vmem:[#allocation7 + $0x1460] ss:$40 sps:$4 sm:$0xff]  }
 0x1ec   :  { %5368 = vmatpush1.bf16.msra.mxu1 %v23459_v45  ;;  %v23540_v45 = vld [vmem:[#allocation7 + $0x68] ss:$40 sps:$4 sm:$0xff]  }
 0x1ed   :  { %5540 = vmatpush1.bf16.msra.mxu0 %v23462_v48  ;;  %5369 = vmatprep.subr.bf16.mxu1 %v23467_v49  ;;  %v23545_v48 = vld [vmem:[#allocation7 + $0x14b4] ss:$40 sps:$4 sm:$0xff]  }
 0x1ee   :  { %5541 = vmatprep.subr.bf16.mxu0 %v23470_v50  ;;  %v23548_v49 = vld [vmem:[#allocation7 + $0xbc] ss:$40 sps:$4 sm:$0xff]  }
 0x1ef   :  { %v5178_v57 = vpop.f32.mrb[0].mxu0  ;;  %v26958_v50 = vld [vmem:[#allocation2 + $0x4] ss:$40 sps:$4 sm:$0xff]  }
 0x1f0   :  { %v26942_v58 = vadd.f32 %v5178_v57, %v26925_v46  ;;  %v5180_v59 = vpop.f32.mrb[1].mxu0  ;;  %5370 = vmatpush1.bf16.msra.mxu1 %v23465_v53  ;;  %v23543_v53 = vld [vmem:[#allocation7 + $0x14b0] ss:$40 sps:$4 sm:$0xff]  }
 0x1f1   :  { %v26945_v60 = vadd.f32 %v5180_v59, %v26927_v47  ;;  %v5182_v61 = vpop.f32.mrb[2].mxu0  ;;  %5542 = vmatpush1.bf16.msra.mxu0 %v23468_v54  ;;  %5371 = vmatprep.subr.bf16.mxu1 %v23473_v55  ;;  %v23477_v47 = vld [vmem:[#allocation7 + $0x1638] ss:$40 sps:$4 sm:$0xff]   ;;  %v23554_v55 = vld [vmem:[#allocation7 + $0x10c] ss:$40 sps:$4 sm:$0xff]  }
 0x1f2   :  { %v26948_v0 = vadd.f32 %v5182_v61, %v26929_v51  ;;  %v5184_v1 = vpop.f32.mrb[3].mxu0  ;;  %5543 = vmatprep.subr.bf16.mxu0 %v23476_v56  ;;  %v23483_v51 = vld [vmem:[#allocation7 + $0x1688] ss:$40 sps:$4 sm:$0xff]   ;;  %v23546_v54 = vld [vmem:[#allocation7 + $0xb8] ss:$40 sps:$4 sm:$0xff]  }
 0x1f3   :  { %v26951_v46 = vadd.f32 %v5184_v1, %v26931_v52  ;;  %v23489_v52 = vld [vmem:[#allocation7 + $0x16d8] ss:$40 sps:$4 sm:$0xff]   ;;  %v23552_v57 = vld [vmem:[#allocation7 + $0x108] ss:$40 sps:$4 sm:$0xff]   ;;  %v23557_v59 = vld [vmem:[#allocation7 + $0x1554] ss:$40 sps:$4 sm:$0xff]  }
 0x1f4   :  { %27860 = vst [vmem:[#allocation19_spill] sm:$0xff] %v26948_v0  ;;  %5372 = vmatpush1.bf16.msra.mxu1 %v23471_v62  ;;  %v23549_v56 = vld [vmem:[#allocation7 + $0x1500] ss:$40 sps:$4 sm:$0xff]   ;;  %v23555_v61 = vld [vmem:[#allocation7 + $0x1550] ss:$40 sps:$4 sm:$0xff]  }
 0x1f5   :  { %27861 = vst [vmem:[#allocation20_spill] sm:$0xff] %v26951_v46  ;;  %5544 = vmatpush1.bf16.msra.mxu0 %v23474_v63  ;;  %5373 = vmatprep.subr.bf16.mxu1 %v23479_v2  ;;  %v23558_v62 = vld [vmem:[#allocation7 + $0x158] ss:$40 sps:$4 sm:$0xff]   ;;  %v23563_v63 = vld [vmem:[#allocation7 + $0x15a4] ss:$40 sps:$4 sm:$0xff]  }
 0x1f6   :  { %5545 = vmatprep.subr.bf16.mxu0 %v23482_v3  ;;  %v23566_v1 = vld [vmem:[#allocation7 + $0x1ac] ss:$40 sps:$4 sm:$0xff]   ;;  %v23561_v2 = vld [vmem:[#allocation7 + $0x15a0] ss:$40 sps:$4 sm:$0xff]   ;;  %v26402_v46 = vld [vmem:[#allocation10 + $0x11f0] ss:$40 sps:$4 sm:$0xff]  }
 0x1f7   :  { %v23564_v3 = vld [vmem:[#allocation7 + $0x1a8] ss:$40 sps:$4 sm:$0xff]  }
 0x1f8   :  { %5374 = vmatpush1.bf16.msra.mxu1 %v23477_v47  ;;  %v23569_v47 = vld [vmem:[#allocation7 + $0x15f4] ss:$40 sps:$4 sm:$0xff]   ;;  %v26303_v0 = vld [vmem:[#allocation10 + $0x11e8] ss:$40 sps:$4 sm:$0xff]  }
 0x1f9   :  { %5546 = vmatpush1.bf16.msra.mxu0 %v23480_v4  ;;  %5375 = vmatprep.subr.bf16.mxu1 %v23485_v5  ;;  %v23572_v4 = vld [vmem:[#allocation7 + $0x1fc] ss:$40 sps:$4 sm:$0xff]   ;;  %v23567_v5 = vld [vmem:[#allocation7 + $0x15f0] ss:$40 sps:$4 sm:$0xff]  }
 0x1fa   :  { %5547 = vmatprep.subr.bf16.mxu0 %v23488_v7  ;;  %v23570_v7 = vld [vmem:[#allocation7 + $0x1f8] ss:$40 sps:$4 sm:$0xff]  }
 0x1fc   :  { %5376 = vmatpush1.bf16.msra.mxu1 %v23483_v51  ;;  %v23575_v51 = vld [vmem:[#allocation7 + $0x1644] ss:$40 sps:$4 sm:$0xff]  }
 0x1fd   :  { %5548 = vmatpush1.bf16.msra.mxu0 %v23486_v8  ;;  %5377 = vmatprep.subr.bf16.mxu1 %v23491_v9  ;;  %v23578_v8 = vld [vmem:[#allocation7 + $0x24c] ss:$40 sps:$4 sm:$0xff]   ;;  %v23573_v9 = vld [vmem:[#allocation7 + $0x1640] ss:$40 sps:$4 sm:$0xff]  }
 0x1fe   :  { %5549 = vmatprep.subr.bf16.mxu0 %v23494_v10  ;;  %v23576_v10 = vld [vmem:[#allocation7 + $0x248] ss:$40 sps:$4 sm:$0xff]  }
 0x200   :  { %5378 = vmatpush1.bf16.msra.mxu1 %v23489_v52  ;;  %v23581_v52 = vld [vmem:[#allocation7 + $0x1694] ss:$40 sps:$4 sm:$0xff]  }
 0x201   :  { %5550 = vmatpush1.bf16.msra.mxu0 %v23492_v11  ;;  %5379 = vmatprep.subr.bf16.mxu1 %v23497_v13  ;;  %v23584_v11 = vld [vmem:[#allocation7 + $0x29c] ss:$40 sps:$4 sm:$0xff]   ;;  %v23579_v13 = vld [vmem:[#allocation7 + $0x1690] ss:$40 sps:$4 sm:$0xff]  }
 0x202   :  { %5551 = vmatprep.subr.bf16.mxu0 %v23500_v14  ;;  %v23582_v14 = vld [vmem:[#allocation7 + $0x298] ss:$40 sps:$4 sm:$0xff]  }
 0x204   :  { %5380 = vmatpush1.bf16.msra.mxu1 %v23495_v15  ;;  %v23587_v15 = vld [vmem:[#allocation7 + $0x16e4] ss:$40 sps:$4 sm:$0xff]  }
 0x205   :  { %5552 = vmatpush1.bf16.msra.mxu0 %v23498_v16  ;;  %5381 = vmatprep.subr.bf16.mxu1 %v23503_v17  ;;  %v23590_v16 = vld [vmem:[#allocation7 + $0x2ec] ss:$40 sps:$4 sm:$0xff]   ;;  %v23585_v17 = vld [vmem:[#allocation7 + $0x16e0] ss:$40 sps:$4 sm:$0xff]  }
 0x206   :  { %5553 = vmatprep.subr.bf16.mxu0 %v23506_v18  ;;  %v23588_v18 = vld [vmem:[#allocation7 + $0x2e8] ss:$40 sps:$4 sm:$0xff]  }
 0x208   :  { %5382 = vmatpush1.bf16.msra.mxu1 %v23501_v19  ;;  %v23593_v19 = vld [vmem:[#allocation7 + $0x1734] ss:$40 sps:$4 sm:$0xff]  }
 0x209   :  { %5554 = vmatpush1.bf16.msra.mxu0 %v23504_v20  ;;  %5383 = vmatprep.subr.bf16.mxu1 %v23509_v21  ;;  %v23596_v20 = vld [vmem:[#allocation7 + $0x33c] ss:$40 sps:$4 sm:$0xff]   ;;  %v23591_v21 = vld [vmem:[#allocation7 + $0x1730] ss:$40 sps:$4 sm:$0xff]  }
 0x20a   :  { %5555 = vmatprep.subr.bf16.mxu0 %v23512_v22  ;;  %v23594_v22 = vld [vmem:[#allocation7 + $0x338] ss:$40 sps:$4 sm:$0xff]  }
 0x20c   :  { %5384 = vmatpush1.bf16.msra.mxu1 %v23507_v23  ;;  %v23599_v23 = vld [vmem:[#allocation7 + $0x1784] ss:$40 sps:$4 sm:$0xff]  }
 0x20d   :  { %5556 = vmatpush1.bf16.msra.mxu0 %v23510_v24  ;;  %5385 = vmatprep.subr.bf16.mxu1 %v23515_v25  ;;  %v23602_v24 = vld [vmem:[#allocation7 + $0x38c] ss:$40 sps:$4 sm:$0xff]   ;;  %v23597_v25 = vld [vmem:[#allocation7 + $0x1780] ss:$40 sps:$4 sm:$0xff]  }
 0x20e   :  { %5557 = vmatprep.subr.bf16.mxu0 %v23518_v27  ;;  %v23600_v27 = vld [vmem:[#allocation7 + $0x388] ss:$40 sps:$4 sm:$0xff]  }
 0x210   :  { %5386 = vmatpush1.bf16.msra.mxu1 %v23513_v6  ;;  %v23605_v6 = vld [vmem:[#allocation7 + $0x17d4] ss:$40 sps:$4 sm:$0xff]  }
 0x211   :  { %5558 = vmatpush1.bf16.msra.mxu0 %v23516_v29  ;;  %5387 = vmatprep.subr.bf16.mxu1 %v23521_v30  ;;  %v23608_v29 = vld [vmem:[#allocation7 + $0x3dc] ss:$40 sps:$4 sm:$0xff]   ;;  %v23603_v30 = vld [vmem:[#allocation7 + $0x17d0] ss:$40 sps:$4 sm:$0xff]  }
 0x212   :  { %5559 = vmatprep.subr.bf16.mxu0 %v23524_v12  ;;  %v23606_v12 = vld [vmem:[#allocation7 + $0x3d8] ss:$40 sps:$4 sm:$0xff]  }
 0x214   :  { %5388 = vmatpush1.bf16.msra.mxu1 %v23519_v31  ;;  %v23611_v31 = vld [vmem:[#allocation7 + $0x1824] ss:$40 sps:$4 sm:$0xff]  }
 0x215   :  { %5560 = vmatpush1.bf16.msra.mxu0 %v23522_v32  ;;  %5389 = vmatprep.subr.bf16.mxu1 %v23527_v33  ;;  %v23614_v32 = vld [vmem:[#allocation7 + $0x42c] ss:$40 sps:$4 sm:$0xff]   ;;  %v23609_v33 = vld [vmem:[#allocation7 + $0x1820] ss:$40 sps:$4 sm:$0xff]  }
 0x216   :  { %5561 = vmatprep.subr.bf16.mxu0 %v23530_v35  ;;  %v23612_v35 = vld [vmem:[#allocation7 + $0x428] ss:$40 sps:$4 sm:$0xff]  }
 0x218   :  { %5390 = vmatpush1.bf16.msra.mxu1 %v23525_v36  ;;  %v23617_v36 = vld [vmem:[#allocation7 + $0x1874] ss:$40 sps:$4 sm:$0xff]  }
 0x219   :  { %5562 = vmatpush1.bf16.msra.mxu0 %v23528_v37  ;;  %5617 = vmatprep.subr.bf16.mxu1 %v23536_v28  ;;  %v23620_v37 = vld [vmem:[#allocation7 + $0x47c] ss:$40 sps:$4 sm:$0xff]   ;;  %v23618_v28 = vld [vmem:[#allocation7 + $0x478] ss:$40 sps:$4 sm:$0xff]  }
 0x21a   :  { %5574 = vmatprep.subr.bf16.mxu0 %v23533_v39  ;;  %v23615_v39 = vld [vmem:[#allocation7 + $0x1870] ss:$40 sps:$4 sm:$0xff]  }
 0x21b   :  { %5392 = vmatmul.mubr.bf16.vlgmr.msra.gmra.mrb[4].mxu1 %v26953_v43 }
 0x21c   :  { %5564 = vmatmul.mubr.bf16.vlgmr.msra.gmra.mrb[4].mxu0 %v26933_v34  ;;  %5618 = vmatpush1.bf16.msra.mxu1 %v23534_v40  ;;  %v23551_v34 = vld [vmem:[#allocation7 + $0x1504] ss:$40 sps:$4 sm:$0xff]  }
 0x21d   :  { %5575 = vmatpush1.bf16.msra.mxu0 %v23531_v26  ;;  %5619 = vmatprep.subr.bf16.mxu1 %v23542_v42  ;;  %v23623_v26 = vld [vmem:[#allocation7 + $0x18c4] ss:$40 sps:$4 sm:$0xff]   ;;  %v23624_v42 = vld [vmem:[#allocation7 + $0x4c8] ss:$40 sps:$4 sm:$0xff]  }
 0x21e   :  { %5576 = vmatprep.subr.bf16.mxu0 %v23539_v41  ;;  %5606 = vmatprep.mubr.bf16.mxu0 %v26937_v38  ;;  %v23560_v38 = vld [vmem:[#allocation7 + $0x15c] ss:$40 sps:$4 sm:$0xff]   ;;  %v23626_v40 = vld [vmem:[#allocation7 + $0x4cc] ss:$40 sps:$4 sm:$0xff]   ;;  %v23621_v41 = vld [vmem:[#allocation7 + $0x18c0] ss:$40 sps:$4 sm:$0xff]  }
 0x21f   :  { %5649 = vmatprep.mubr.bf16.mxu1 %v26958_v50 }
 0x220   :  { %5620 = vmatpush1.bf16.msra.mxu1 %v23540_v45  ;;  %v23632_v45 = vld [vmem:[#allocation7 + $0x24] ss:$40 sps:$4 sm:$0xff]  }
 0x221   :  { %5577 = vmatpush1.bf16.msra.mxu0 %v23537_v44  ;;  %5621 = vmatprep.subr.bf16.mxu1 %v23548_v49  ;;  %v23629_v44 = vld [vmem:[#allocation7 + $0x51c] ss:$40 sps:$4 sm:$0xff]   ;;  %v23630_v49 = vld [vmem:[#allocation7 + $0x20] ss:$40 sps:$4 sm:$0xff]  }
 0x222   :  { %5578 = vmatprep.subr.bf16.mxu0 %v23545_v48  ;;  %v23627_v48 = vld [vmem:[#allocation7 + $0x518] ss:$40 sps:$4 sm:$0xff]  }
 0x224   :  { %5622 = vmatpush1.bf16.msra.mxu1 %v23546_v54  ;;  %v23638_v54 = vld [vmem:[#allocation7 + $0x74] ss:$40 sps:$4 sm:$0xff]  }
 0x225   :  { %5579 = vmatpush1.bf16.msra.mxu0 %v23543_v53  ;;  %5623 = vmatprep.subr.bf16.mxu1 %v23554_v55  ;;  %v23635_v53 = vld [vmem:[#allocation7 + $0x56c] ss:$40 sps:$4 sm:$0xff]   ;;  %v23633_v55 = vld [vmem:[#allocation7 + $0x568] ss:$40 sps:$4 sm:$0xff]  }
 0x226   :  { %5580 = vmatprep.subr.bf16.mxu0 %v23551_v34  ;;  %v26962_v34 = vld [vmem:[#allocation2] ss:$40 sps:$4 sm:$0xff]  }
 0x228   :  { %5624 = vmatpush1.bf16.msra.mxu1 %v23552_v57  ;;  %v23641_v57 = vld [vmem:[#allocation7 + $0x5bc] ss:$40 sps:$4 sm:$0xff]  }
 0x229   :  { %5581 = vmatpush1.bf16.msra.mxu0 %v23549_v56  ;;  %5625 = vmatprep.subr.bf16.mxu1 %v23560_v38  ;;  %v23636_v56 = vld [vmem:[#allocation7 + $0x70] ss:$40 sps:$4 sm:$0xff]   ;;  %v26965_v38 = vld [vmem:[#allocation2 + $0xc] ss:$40 sps:$4 sm:$0xff]  }
 0x22a   :  { %5582 = vmatprep.subr.bf16.mxu0 %v23557_v59  ;;  %v23644_v59 = vld [vmem:[#allocation7 + $0xc4] ss:$40 sps:$4 sm:$0xff]  }
 0x22c   :  { %5626 = vmatpush1.bf16.msra.mxu1 %v23558_v62  ;;  %v23647_v62 = vld [vmem:[#allocation7 + $0x60c] ss:$40 sps:$4 sm:$0xff]  }
 0x22d   :  { %5583 = vmatpush1.bf16.msra.mxu0 %v23555_v61  ;;  %5627 = vmatprep.subr.bf16.mxu1 %v23566_v1  ;;  %v23642_v61 = vld [vmem:[#allocation7 + $0xc0] ss:$40 sps:$4 sm:$0xff]  }
 0x22e   :  { %5584 = vmatprep.subr.bf16.mxu0 %v23563_v63  ;;  %v23650_v63 = vld [vmem:[#allocation7 + $0x114] ss:$40 sps:$4 sm:$0xff]   ;;  %v23645_v1 = vld [vmem:[#allocation7 + $0x608] ss:$40 sps:$4 sm:$0xff]  }
 0x230   :  { %5628 = vmatpush1.bf16.msra.mxu1 %v23564_v3  ;;  %v23653_v3 = vld [vmem:[#allocation7 + $0x65c] ss:$40 sps:$4 sm:$0xff]  }
 0x231   :  { %5585 = vmatpush1.bf16.msra.mxu0 %v23561_v2  ;;  %5629 = vmatprep.subr.bf16.mxu1 %v23572_v4  ;;  %v23648_v2 = vld [vmem:[#allocation7 + $0x110] ss:$40 sps:$4 sm:$0xff]  }
 0x232   :  { %5586 = vmatprep.subr.bf16.mxu0 %v23569_v47  ;;  %v23656_v47 = vld [vmem:[#allocation7 + $0x164] ss:$40 sps:$4 sm:$0xff]   ;;  %v23651_v4 = vld [vmem:[#allocation7 + $0x658] ss:$40 sps:$4 sm:$0xff]  }
 0x234   :  { %5630 = vmatpush1.bf16.msra.mxu1 %v23570_v7  ;;  %v23662_v7 = vld [vmem:[#allocation7 + $0x1b4] ss:$40 sps:$4 sm:$0xff]  }
 0x235   :  { %5587 = vmatpush1.bf16.msra.mxu0 %v23567_v5  ;;  %5631 = vmatprep.subr.bf16.mxu1 %v23578_v8  ;;  %v23659_v5 = vld [vmem:[#allocation7 + $0x6ac] ss:$40 sps:$4 sm:$0xff]   ;;  %v23660_v8 = vld [vmem:[#allocation7 + $0x1b0] ss:$40 sps:$4 sm:$0xff]  }
 0x236   :  { %5588 = vmatprep.subr.bf16.mxu0 %v23575_v51  ;;  %v23657_v51 = vld [vmem:[#allocation7 + $0x6a8] ss:$40 sps:$4 sm:$0xff]  }
 0x238   :  { %5632 = vmatpush1.bf16.msra.mxu1 %v23576_v10  ;;  %v23668_v10 = vld [vmem:[#allocation7 + $0x204] ss:$40 sps:$4 sm:$0xff]  }
 0x239   :  { %5589 = vmatpush1.bf16.msra.mxu0 %v23573_v9  ;;  %5633 = vmatprep.subr.bf16.mxu1 %v23584_v11  ;;  %v23665_v9 = vld [vmem:[#allocation7 + $0x6fc] ss:$40 sps:$4 sm:$0xff]   ;;  %v23666_v11 = vld [vmem:[#allocation7 + $0x200] ss:$40 sps:$4 sm:$0xff]  }
 0x23a   :  { %5590 = vmatprep.subr.bf16.mxu0 %v23581_v52  ;;  %v23663_v52 = vld [vmem:[#allocation7 + $0x6f8] ss:$40 sps:$4 sm:$0xff]  }
 0x23c   :  { %5634 = vmatpush1.bf16.msra.mxu1 %v23582_v14  ;;  %v23674_v14 = vld [vmem:[#allocation7 + $0x254] ss:$40 sps:$4 sm:$0xff]  }
 0x23d   :  { %5591 = vmatpush1.bf16.msra.mxu0 %v23579_v13  ;;  %5635 = vmatprep.subr.bf16.mxu1 %v23590_v16  ;;  %v23671_v13 = vld [vmem:[#allocation7 + $0x74c] ss:$40 sps:$4 sm:$0xff]   ;;  %v23672_v16 = vld [vmem:[#allocation7 + $0x250] ss:$40 sps:$4 sm:$0xff]  }
 0x23e   :  { %5592 = vmatprep.subr.bf16.mxu0 %v23587_v15  ;;  %v23669_v15 = vld [vmem:[#allocation7 + $0x748] ss:$40 sps:$4 sm:$0xff]  }
 0x240   :  { %5636 = vmatpush1.bf16.msra.mxu1 %v23588_v18  ;;  %v23680_v18 = vld [vmem:[#allocation7 + $0x2a4] ss:$40 sps:$4 sm:$0xff]  }
 0x241   :  { %5593 = vmatpush1.bf16.msra.mxu0 %v23585_v17  ;;  %5637 = vmatprep.subr.bf16.mxu1 %v23596_v20  ;;  %v23677_v17 = vld [vmem:[#allocation7 + $0x79c] ss:$40 sps:$4 sm:$0xff]   ;;  %v23678_v20 = vld [vmem:[#allocation7 + $0x2a0] ss:$40 sps:$4 sm:$0xff]  }
 0x242   :  { %5594 = vmatprep.subr.bf16.mxu0 %v23593_v19  ;;  %v23675_v19 = vld [vmem:[#allocation7 + $0x798] ss:$40 sps:$4 sm:$0xff]  }
 0x244   :  { %5638 = vmatpush1.bf16.msra.mxu1 %v23594_v22  ;;  %v23686_v22 = vld [vmem:[#allocation7 + $0x2f4] ss:$40 sps:$4 sm:$0xff]  }
 0x245   :  { %5595 = vmatpush1.bf16.msra.mxu0 %v23591_v21  ;;  %5639 = vmatprep.subr.bf16.mxu1 %v23602_v24  ;;  %v23683_v21 = vld [vmem:[#allocation7 + $0x7ec] ss:$40 sps:$4 sm:$0xff]   ;;  %v23684_v24 = vld [vmem:[#allocation7 + $0x2f0] ss:$40 sps:$4 sm:$0xff]  }
 0x246   :  { %5596 = vmatprep.subr.bf16.mxu0 %v23599_v23  ;;  %v23681_v23 = vld [vmem:[#allocation7 + $0x7e8] ss:$40 sps:$4 sm:$0xff]  }
 0x248   :  { %5640 = vmatpush1.bf16.msra.mxu1 %v23600_v27  ;;  %v23692_v27 = vld [vmem:[#allocation7 + $0x344] ss:$40 sps:$4 sm:$0xff]  }
 0x249   :  { %5597 = vmatpush1.bf16.msra.mxu0 %v23597_v25  ;;  %5641 = vmatprep.subr.bf16.mxu1 %v23608_v29  ;;  %v23689_v25 = vld [vmem:[#allocation7 + $0x83c] ss:$40 sps:$4 sm:$0xff]   ;;  %v23690_v29 = vld [vmem:[#allocation7 + $0x340] ss:$40 sps:$4 sm:$0xff]  }
 0x24a   :  { %5598 = vmatprep.subr.bf16.mxu0 %v23605_v6  ;;  %v23687_v6 = vld [vmem:[#allocation7 + $0x838] ss:$40 sps:$4 sm:$0xff]  }
 0x24c   :  { %5642 = vmatpush1.bf16.msra.mxu1 %v23606_v12  ;;  %v23698_v12 = vld [vmem:[#allocation7 + $0x394] ss:$40 sps:$4 sm:$0xff]  }
 0x24d   :  { %5599 = vmatpush1.bf16.msra.mxu0 %v23603_v30  ;;  %5643 = vmatprep.subr.bf16.mxu1 %v23614_v32  ;;  %v23695_v30 = vld [vmem:[#allocation7 + $0x88c] ss:$40 sps:$4 sm:$0xff]   ;;  %v23696_v32 = vld [vmem:[#allocation7 + $0x390] ss:$40 sps:$4 sm:$0xff]  }
 0x24e   :  { %5600 = vmatprep.subr.bf16.mxu0 %v23611_v31  ;;  %v23693_v31 = vld [vmem:[#allocation7 + $0x888] ss:$40 sps:$4 sm:$0xff]  }
 0x250   :  { %5644 = vmatpush1.bf16.msra.mxu1 %v23612_v35  ;;  %v23704_v35 = vld [vmem:[#allocation7 + $0x3e4] ss:$40 sps:$4 sm:$0xff]  }
 0x251   :  { %5601 = vmatpush1.bf16.msra.mxu0 %v23609_v33  ;;  %5645 = vmatprep.subr.bf16.mxu1 %v23620_v37  ;;  %v23701_v33 = vld [vmem:[#allocation7 + $0x8dc] ss:$40 sps:$4 sm:$0xff]   ;;  %v23702_v37 = vld [vmem:[#allocation7 + $0x3e0] ss:$40 sps:$4 sm:$0xff]  }
 0x252   :  { %5602 = vmatprep.subr.bf16.mxu0 %v23617_v36  ;;  %v23699_v36 = vld [vmem:[#allocation7 + $0x8d8] ss:$40 sps:$4 sm:$0xff]  }
 0x254   :  { %5646 = vmatpush1.bf16.msra.mxu1 %v23618_v28  ;;  %v23710_v28 = vld [vmem:[#allocation7 + $0x434] ss:$40 sps:$4 sm:$0xff]  }
 0x255   :  { %5603 = vmatpush1.bf16.msra.mxu0 %v23615_v39  ;;  %5647 = vmatprep.subr.bf16.mxu1 %v23626_v40  ;;  %v23707_v39 = vld [vmem:[#allocation7 + $0x92c] ss:$40 sps:$4 sm:$0xff]   ;;  %v23708_v40 = vld [vmem:[#allocation7 + $0x430] ss:$40 sps:$4 sm:$0xff]  }
 0x256   :  { %5604 = vmatprep.subr.bf16.mxu0 %v23623_v26  ;;  %v23705_v26 = vld [vmem:[#allocation7 + $0x928] ss:$40 sps:$4 sm:$0xff]  }
 0x258   :  { %5648 = vmatpush1.bf16.msra.mxu1 %v23624_v42  ;;  %v23716_v42 = vld [vmem:[#allocation7 + $0x484] ss:$40 sps:$4 sm:$0xff]  }
 0x259   :  { %5605 = vmatpush1.bf16.msra.mxu0 %v23621_v41  ;;  %5660 = vmatprep.subr.bf16.mxu1 %v23629_v44  ;;  %v23713_v41 = vld [vmem:[#allocation7 + $0x97c] ss:$40 sps:$4 sm:$0xff]   ;;  %v23711_v44 = vld [vmem:[#allocation7 + $0x978] ss:$40 sps:$4 sm:$0xff]  }
 0x25a   :  { %5832 = vmatprep.subr.bf16.mxu0 %v23632_v45  ;;  %v23714_v45 = vld [vmem:[#allocation7 + $0x480] ss:$40 sps:$4 sm:$0xff]  }
 0x25b   :  { %5650 = vmatmul.mubr.bf16.vlgmr.msra.gmra.mrb[8].mxu1 %v26962_v34 }
 0x25c   :  { %5607 = vmatmul.mubr.bf16.vlgmr.msra.gmra.mrb[4].mxu0 %v26953_v43  ;;  %5661 = vmatpush1.bf16.msra.mxu1 %v23627_v48  ;;  %v23639_v43 = vld [vmem:[#allocation7 + $0x5b8] ss:$40 sps:$4 sm:$0xff]   ;;  %v23719_v48 = vld [vmem:[#allocation7 + $0x9cc] ss:$40 sps:$4 sm:$0xff]  }
 0x25d   :  { %5833 = vmatpush1.bf16.msra.mxu0 %v23630_v49  ;;  %5662 = vmatprep.subr.bf16.mxu1 %v23635_v53  ;;  %v23722_v49 = vld [vmem:[#allocation7 + $0x4d4] ss:$40 sps:$4 sm:$0xff]   ;;  %v23717_v53 = vld [vmem:[#allocation7 + $0x9c8] ss:$40 sps:$4 sm:$0xff]  }
 0x25e   :  { %5834 = vmatprep.subr.bf16.mxu0 %v23638_v54  ;;  %5692 = vmatprep.mubr.bf16.mxu1 %v26965_v38  ;;  %v23720_v54 = vld [vmem:[#allocation7 + $0x4d0] ss:$40 sps:$4 sm:$0xff]  }
 0x25f   :  { %5864 = vmatprep.mubr.bf16.mxu0 %v26958_v50  ;;  %v23654_v50 = vld [vmem:[#allocation7 + $0x160] ss:$40 sps:$4 sm:$0xff]  }
 0x260   :  { %5663 = vmatpush1.bf16.msra.mxu1 %v23633_v55  ;;  %v23725_v55 = vld [vmem:[#allocation7 + $0xa1c] ss:$40 sps:$4 sm:$0xff]  }
 0x261   :  { %5835 = vmatpush1.bf16.msra.mxu0 %v23636_v56  ;;  %5664 = vmatprep.subr.bf16.mxu1 %v23641_v57  ;;  %v23728_v56 = vld [vmem:[#allocation7 + $0x524] ss:$40 sps:$4 sm:$0xff]   ;;  %v23723_v57 = vld [vmem:[#allocation7 + $0xa18] ss:$40 sps:$4 sm:$0xff]  }
 0x262   :  { %5836 = vmatprep.subr.bf16.mxu0 %v23644_v59  ;;  %v23726_v59 = vld [vmem:[#allocation7 + $0x520] ss:$40 sps:$4 sm:$0xff]  }
 0x264   :  { %5665 = vmatpush1.bf16.msra.mxu1 %v23639_v43  ;;  %v23731_v43 = vld [vmem:[#allocation7 + $0xa6c] ss:$40 sps:$4 sm:$0xff]  }
 0x265   :  { %5837 = vmatpush1.bf16.msra.mxu0 %v23642_v61  ;;  %5666 = vmatprep.subr.bf16.mxu1 %v23647_v62  ;;  %v23734_v61 = vld [vmem:[#allocation7 + $0x574] ss:$40 sps:$4 sm:$0xff]   ;;  %v26969_v62 = vld [vmem:[#allocation2 + $0x8] ss:$40 sps:$4 sm:$0xff]  }
 0x266   :  { %5838 = vmatprep.subr.bf16.mxu0 %v23650_v63  ;;  %v23729_v63 = vld [vmem:[#allocation7 + $0xa68] ss:$40 sps:$4 sm:$0xff]  }
 0x268   :  { %5667 = vmatpush1.bf16.msra.mxu1 %v23645_v1  ;;  %v23732_v1 = vld [vmem:[#allocation7 + $0x570] ss:$40 sps:$4 sm:$0xff]  }
 0x269   :  { %5839 = vmatpush1.bf16.msra.mxu0 %v23648_v2  ;;  %5668 = vmatprep.subr.bf16.mxu1 %v23653_v3  ;;  %v23737_v2 = vld [vmem:[#allocation7 + $0xabc] ss:$40 sps:$4 sm:$0xff]  }
 0x26a   :  { %5840 = vmatprep.subr.bf16.mxu0 %v23656_v47  ;;  %v23740_v3 = vld [vmem:[#allocation7 + $0x5c4] ss:$40 sps:$4 sm:$0xff]  }
 0x26b   :  { %v26973_v47 = vld [vmem:[#allocation2 + $0x14] ss:$40 sps:$4 sm:$0xff]  }
 0x26c   :  { %5669 = vmatpush1.bf16.msra.mxu1 %v23651_v4  ;;  %v23735_v4 = vld [vmem:[#allocation7 + $0xab8] ss:$40 sps:$4 sm:$0xff]  }
 0x26d   :  { %5841 = vmatpush1.bf16.msra.mxu0 %v23654_v50  ;;  %5670 = vmatprep.subr.bf16.mxu1 %v23659_v5  ;;  %v23738_v50 = vld [vmem:[#allocation7 + $0x5c0] ss:$40 sps:$4 sm:$0xff]   ;;  %v23746_v5 = vld [vmem:[#allocation7 + $0x614] ss:$40 sps:$4 sm:$0xff]  }
 0x26e   :  { %5842 = vmatprep.subr.bf16.mxu0 %v23662_v7  ;;  %v23741_v7 = vld [vmem:[#allocation7 + $0xb08] ss:$40 sps:$4 sm:$0xff]  }
 0x270   :  { %5671 = vmatpush1.bf16.msra.mxu1 %v23657_v51  ;;  %v23744_v51 = vld [vmem:[#allocation7 + $0x610] ss:$40 sps:$4 sm:$0xff]  }
 0x271   :  { %5843 = vmatpush1.bf16.msra.mxu0 %v23660_v8  ;;  %5672 = vmatprep.subr.bf16.mxu1 %v23665_v9  ;;  %v23749_v8 = vld [vmem:[#allocation7 + $0xb5c] ss:$40 sps:$4 sm:$0xff]  }
 0x272   :  { %5844 = vmatprep.subr.bf16.mxu0 %v23668_v10  ;;  %v23752_v9 = vld [vmem:[#allocation7 + $0x664] ss:$40 sps:$4 sm:$0xff]   ;;  %v23747_v10 = vld [vmem:[#allocation7 + $0xb58] ss:$40 sps:$4 sm:$0xff]  }
 0x274   :  { %5673 = vmatpush1.bf16.msra.mxu1 %v23663_v52  ;;  %v23755_v52 = vld [vmem:[#allocation7 + $0xbac] ss:$40 sps:$4 sm:$0xff]  }
 0x275   :  { %5845 = vmatpush1.bf16.msra.mxu0 %v23666_v11  ;;  %5674 = vmatprep.subr.bf16.mxu1 %v23671_v13  ;;  %v23758_v11 = vld [vmem:[#allocation7 + $0x6b4] ss:$40 sps:$4 sm:$0xff]   ;;  %v23753_v13 = vld [vmem:[#allocation7 + $0xba8] ss:$40 sps:$4 sm:$0xff]  }
 0x276   :  { %5846 = vmatprep.subr.bf16.mxu0 %v23674_v14  ;;  %v23756_v14 = vld [vmem:[#allocation7 + $0x6b0] ss:$40 sps:$4 sm:$0xff]  }
 0x278   :  { %5675 = vmatpush1.bf16.msra.mxu1 %v23669_v15  ;;  %v23761_v15 = vld [vmem:[#allocation7 + $0xbfc] ss:$40 sps:$4 sm:$0xff]  }
 0x279   :  { %5847 = vmatpush1.bf16.msra.mxu0 %v23672_v16  ;;  %5676 = vmatprep.subr.bf16.mxu1 %v23677_v17  ;;  %v23764_v16 = vld [vmem:[#allocation7 + $0x704] ss:$40 sps:$4 sm:$0xff]   ;;  %v23759_v17 = vld [vmem:[#allocation7 + $0xbf8] ss:$40 sps:$4 sm:$0xff]  }
 0x27a   :  { %5848 = vmatprep.subr.bf16.mxu0 %v23680_v18  ;;  %v23762_v18 = vld [vmem:[#allocation7 + $0x700] ss:$40 sps:$4 sm:$0xff]  }
 0x27c   :  { %5677 = vmatpush1.bf16.msra.mxu1 %v23675_v19  ;;  %v23767_v19 = vld [vmem:[#allocation7 + $0xc4c] ss:$40 sps:$4 sm:$0xff]  }
 0x27d   :  { %5849 = vmatpush1.bf16.msra.mxu0 %v23678_v20  ;;  %5678 = vmatprep.subr.bf16.mxu1 %v23683_v21  ;;  %v23770_v20 = vld [vmem:[#allocation7 + $0x754] ss:$40 sps:$4 sm:$0xff]   ;;  %v23765_v21 = vld [vmem:[#allocation7 + $0xc48] ss:$40 sps:$4 sm:$0xff]  }
 0x27e   :  { %5850 = vmatprep.subr.bf16.mxu0 %v23686_v22  ;;  %v23768_v22 = vld [vmem:[#allocation7 + $0x750] ss:$40 sps:$4 sm:$0xff]  }
 0x280   :  { %5679 = vmatpush1.bf16.msra.mxu1 %v23681_v23  ;;  %v23773_v23 = vld [vmem:[#allocation7 + $0xc9c] ss:$40 sps:$4 sm:$0xff]  }
 0x281   :  { %5851 = vmatpush1.bf16.msra.mxu0 %v23684_v24  ;;  %5680 = vmatprep.subr.bf16.mxu1 %v23689_v25  ;;  %v23776_v24 = vld [vmem:[#allocation7 + $0x7a4] ss:$40 sps:$4 sm:$0xff]   ;;  %v23771_v25 = vld [vmem:[#allocation7 + $0xc98] ss:$40 sps:$4 sm:$0xff]  }
 0x282   :  { %5852 = vmatprep.subr.bf16.mxu0 %v23692_v27  ;;  %v23774_v27 = vld [vmem:[#allocation7 + $0x7a0] ss:$40 sps:$4 sm:$0xff]  }
 0x284   :  { %5681 = vmatpush1.bf16.msra.mxu1 %v23687_v6  ;;  %v23779_v6 = vld [vmem:[#allocation7 + $0xcec] ss:$40 sps:$4 sm:$0xff]  }
 0x285   :  { %5853 = vmatpush1.bf16.msra.mxu0 %v23690_v29  ;;  %5682 = vmatprep.subr.bf16.mxu1 %v23695_v30  ;;  %v23782_v29 = vld [vmem:[#allocation7 + $0x7f4] ss:$40 sps:$4 sm:$0xff]   ;;  %v23777_v30 = vld [vmem:[#allocation7 + $0xce8] ss:$40 sps:$4 sm:$0xff]  }
 0x286   :  { %5854 = vmatprep.subr.bf16.mxu0 %v23698_v12  ;;  %v23780_v12 = vld [vmem:[#allocation7 + $0x7f0] ss:$40 sps:$4 sm:$0xff]  }
 0x288   :  { %5683 = vmatpush1.bf16.msra.mxu1 %v23693_v31  ;;  %v23785_v31 = vld [vmem:[#allocation7 + $0xd3c] ss:$40 sps:$4 sm:$0xff]  }
 0x289   :  { %5855 = vmatpush1.bf16.msra.mxu0 %v23696_v32  ;;  %5684 = vmatprep.subr.bf16.mxu1 %v23701_v33  ;;  %v23788_v32 = vld [vmem:[#allocation7 + $0x844] ss:$40 sps:$4 sm:$0xff]   ;;  %v23783_v33 = vld [vmem:[#allocation7 + $0xd38] ss:$40 sps:$4 sm:$0xff]  }
 0x28a   :  { %5856 = vmatprep.subr.bf16.mxu0 %v23704_v35  ;;  %v23786_v35 = vld [vmem:[#allocation7 + $0x840] ss:$40 sps:$4 sm:$0xff]  }
 0x28c   :  { %5685 = vmatpush1.bf16.msra.mxu1 %v23699_v36  ;;  %v23791_v36 = vld [vmem:[#allocation7 + $0xd8c] ss:$40 sps:$4 sm:$0xff]  }
 0x28d   :  { %5857 = vmatpush1.bf16.msra.mxu0 %v23702_v37  ;;  %5686 = vmatprep.subr.bf16.mxu1 %v23707_v39  ;;  %v23794_v37 = vld [vmem:[#allocation7 + $0x894] ss:$40 sps:$4 sm:$0xff]   ;;  %v23789_v39 = vld [vmem:[#allocation7 + $0xd88] ss:$40 sps:$4 sm:$0xff]  }
 0x28e   :  { %5858 = vmatprep.subr.bf16.mxu0 %v23710_v28  ;;  %v23792_v28 = vld [vmem:[#allocation7 + $0x890] ss:$40 sps:$4 sm:$0xff]  }
 0x290   :  { %5687 = vmatpush1.bf16.msra.mxu1 %v23705_v26  ;;  %v23797_v26 = vld [vmem:[#allocation7 + $0xddc] ss:$40 sps:$4 sm:$0xff]  }
 0x291   :  { %5859 = vmatpush1.bf16.msra.mxu0 %v23708_v40  ;;  %5688 = vmatprep.subr.bf16.mxu1 %v23713_v41  ;;  %v23800_v40 = vld [vmem:[#allocation7 + $0x8e4] ss:$40 sps:$4 sm:$0xff]   ;;  %v23795_v41 = vld [vmem:[#allocation7 + $0xdd8] ss:$40 sps:$4 sm:$0xff]  }
 0x292   :  { %5860 = vmatprep.subr.bf16.mxu0 %v23716_v42  ;;  %v23798_v42 = vld [vmem:[#allocation7 + $0x8e0] ss:$40 sps:$4 sm:$0xff]  }
 0x294   :  { %5689 = vmatpush1.bf16.msra.mxu1 %v23711_v44  ;;  %v23803_v44 = vld [vmem:[#allocation7 + $0xe2c] ss:$40 sps:$4 sm:$0xff]  }
 0x295   :  { %5861 = vmatpush1.bf16.msra.mxu0 %v23714_v45  ;;  %5690 = vmatprep.subr.bf16.mxu1 %v23719_v48  ;;  %v23806_v45 = vld [vmem:[#allocation7 + $0x934] ss:$40 sps:$4 sm:$0xff]   ;;  %v23801_v48 = vld [vmem:[#allocation7 + $0xe28] ss:$40 sps:$4 sm:$0xff]  }
 0x296   :  { %5862 = vmatprep.subr.bf16.mxu0 %v23722_v49  ;;  %v23804_v49 = vld [vmem:[#allocation7 + $0x930] ss:$40 sps:$4 sm:$0xff]  }
 0x298   :  { %5691 = vmatpush1.bf16.msra.mxu1 %v23717_v53  ;;  %v23809_v53 = vld [vmem:[#allocation7 + $0xe7c] ss:$40 sps:$4 sm:$0xff]  }
 0x299   :  { %5863 = vmatpush1.bf16.msra.mxu0 %v23720_v54  ;;  %5703 = vmatprep.subr.bf16.mxu1 %v23725_v55  ;;  %v23812_v54 = vld [vmem:[#allocation7 + $0x984] ss:$40 sps:$4 sm:$0xff]   ;;  %v23807_v55 = vld [vmem:[#allocation7 + $0xe78] ss:$40 sps:$4 sm:$0xff]  }
 0x29a   :  { %5875 = vmatprep.subr.bf16.mxu0 %v23728_v56  ;;  %v23810_v56 = vld [vmem:[#allocation7 + $0x980] ss:$40 sps:$4 sm:$0xff]  }
 0x29b   :  { %5693 = vmatmul.mubr.bf16.vlgmr.msra.gmra.mrb[8].mxu1 %v26969_v62 }
 0x29c   :  { %5865 = vmatmul.mubr.bf16.vlgmr.msra.gmra.mrb[8].mxu0 %v26962_v34  ;;  %5704 = vmatpush1.bf16.msra.mxu1 %v23723_v57  ;;  %v23743_v34 = vld [vmem:[#allocation7 + $0xb0c] ss:$40 sps:$4 sm:$0xff]  }
 0x29d   :  { %5876 = vmatpush1.bf16.msra.mxu0 %v23726_v59  ;;  %5705 = vmatprep.subr.bf16.mxu1 %v23731_v43  ;;  %v23815_v57 = vld [vmem:[#allocation7 + $0xecc] ss:$40 sps:$4 sm:$0xff]   ;;  %v23813_v43 = vld [vmem:[#allocation7 + $0xec8] ss:$40 sps:$4 sm:$0xff]  }
 0x29e   :  { %5877 = vmatprep.subr.bf16.mxu0 %v23734_v61  ;;  %5735 = vmatprep.mubr.bf16.mxu1 %v26973_v47  ;;  %v23818_v59 = vld [vmem:[#allocation7 + $0x9d4] ss:$40 sps:$4 sm:$0xff]   ;;  %v23816_v61 = vld [vmem:[#allocation7 + $0x9d0] ss:$40 sps:$4 sm:$0xff]  }
 0x29f   :  { %5907 = vmatprep.mubr.bf16.mxu0 %v26965_v38  ;;  %v23750_v38 = vld [vmem:[#allocation7 + $0x660] ss:$40 sps:$4 sm:$0xff]  }
 0x2a0   :  { %5706 = vmatpush1.bf16.msra.mxu1 %v23729_v63  ;;  %v23821_v63 = vld [vmem:[#allocation7 + $0xf1c] ss:$40 sps:$4 sm:$0xff]  }
 0x2a1   :  { %5878 = vmatpush1.bf16.msra.mxu0 %v23732_v1  ;;  %5707 = vmatprep.subr.bf16.mxu1 %v23737_v2  ;;  %v23824_v1 = vld [vmem:[#allocation7 + $0xa24] ss:$40 sps:$4 sm:$0xff]   ;;  %v23819_v2 = vld [vmem:[#allocation7 + $0xf18] ss:$40 sps:$4 sm:$0xff]  }
 0x2a2   :  { %5879 = vmatprep.subr.bf16.mxu0 %v23740_v3  ;;  %v23822_v3 = vld [vmem:[#allocation7 + $0xa20] ss:$40 sps:$4 sm:$0xff]  }
 0x2a4   :  { %5708 = vmatpush1.bf16.msra.mxu1 %v23735_v4  ;;  %v23827_v4 = vld [vmem:[#allocation7 + $0xf6c] ss:$40 sps:$4 sm:$0xff]  }
 0x2a5   :  { %5880 = vmatpush1.bf16.msra.mxu0 %v23738_v50  ;;  %5709 = vmatprep.subr.bf16.mxu1 %v23743_v34  ;;  %v23830_v50 = vld [vmem:[#allocation7 + $0xa74] ss:$40 sps:$4 sm:$0xff]   ;;  %v26977_v34 = vld [vmem:[#allocation2 + $0x10] ss:$40 sps:$4 sm:$0xff]  }
 0x2a6   :  { %5881 = vmatprep.subr.bf16.mxu0 %v23746_v5  ;;  %v23825_v5 = vld [vmem:[#allocation7 + $0xf68] ss:$40 sps:$4 sm:$0xff]  }
 0x2a8   :  { %5710 = vmatpush1.bf16.msra.mxu1 %v23741_v7  ;;  %v23828_v7 = vld [vmem:[#allocation7 + $0xa70] ss:$40 sps:$4 sm:$0xff]  }
 0x2a9   :  { %5882 = vmatpush1.bf16.msra.mxu0 %v23744_v51  ;;  %5711 = vmatprep.subr.bf16.mxu1 %v23749_v8  ;;  %v23833_v51 = vld [vmem:[#allocation7 + $0xfbc] ss:$40 sps:$4 sm:$0xff]  }
 0x2aa   :  { %5883 = vmatprep.subr.bf16.mxu0 %v23752_v9  ;;  %v23836_v8 = vld [vmem:[#allocation7 + $0xac4] ss:$40 sps:$4 sm:$0xff]  }
 0x2ab   :  { %v26981_v9 = vld [vmem:[#allocation2 + $0x1c] ss:$40 sps:$4 sm:$0xff]  }
 0x2ac   :  { %5712 = vmatpush1.bf16.msra.mxu1 %v23747_v10  ;;  %v23831_v10 = vld [vmem:[#allocation7 + $0xfb8] ss:$40 sps:$4 sm:$0xff]  }
 0x2ad   :  { %5884 = vmatpush1.bf16.msra.mxu0 %v23750_v38  ;;  %5713 = vmatprep.subr.bf16.mxu1 %v23755_v52  ;;  %v23834_v38 = vld [vmem:[#allocation7 + $0xac0] ss:$40 sps:$4 sm:$0xff]   ;;  %v23842_v52 = vld [vmem:[#allocation7 + $0xb14] ss:$40 sps:$4 sm:$0xff]  }
 0x2ae   :  { %5885 = vmatprep.subr.bf16.mxu0 %v23758_v11  ;;  %v23837_v11 = vld [vmem:[#allocation7 + $0x1008] ss:$40 sps:$4 sm:$0xff]  }
 0x2b0   :  { %5714 = vmatpush1.bf16.msra.mxu1 %v23753_v13  ;;  %v23840_v13 = vld [vmem:[#allocation7 + $0xb10] ss:$40 sps:$4 sm:$0xff]  }
 0x2b1   :  { %5886 = vmatpush1.bf16.msra.mxu0 %v23756_v14  ;;  %5715 = vmatprep.subr.bf16.mxu1 %v23761_v15  ;;  %v23845_v14 = vld [vmem:[#allocation7 + $0x105c] ss:$40 sps:$4 sm:$0xff]  }
 0x2b2   :  { %5887 = vmatprep.subr.bf16.mxu0 %v23764_v16  ;;  %v23848_v15 = vld [vmem:[#allocation7 + $0xb64] ss:$40 sps:$4 sm:$0xff]   ;;  %v23843_v16 = vld [vmem:[#allocation7 + $0x1058] ss:$40 sps:$4 sm:$0xff]  }
 0x2b4   :  { %5716 = vmatpush1.bf16.msra.mxu1 %v23759_v17  ;;  %v23851_v17 = vld [vmem:[#allocation7 + $0x10ac] ss:$40 sps:$4 sm:$0xff]  }
 0x2b5   :  { %5888 = vmatpush1.bf16.msra.mxu0 %v23762_v18  ;;  %5717 = vmatprep.subr.bf16.mxu1 %v23767_v19  ;;  %v23854_v18 = vld [vmem:[#allocation7 + $0xbb4] ss:$40 sps:$4 sm:$0xff]   ;;  %v23849_v19 = vld [vmem:[#allocation7 + $0x10a8] ss:$40 sps:$4 sm:$0xff]  }
 0x2b6   :  { %5889 = vmatprep.subr.bf16.mxu0 %v23770_v20  ;;  %v23852_v20 = vld [vmem:[#allocation7 + $0xbb0] ss:$40 sps:$4 sm:$0xff]  }
 0x2b8   :  { %5718 = vmatpush1.bf16.msra.mxu1 %v23765_v21  ;;  %v23857_v21 = vld [vmem:[#allocation7 + $0x10fc] ss:$40 sps:$4 sm:$0xff]  }
 0x2b9   :  { %5890 = vmatpush1.bf16.msra.mxu0 %v23768_v22  ;;  %5719 = vmatprep.subr.bf16.mxu1 %v23773_v23  ;;  %v23860_v22 = vld [vmem:[#allocation7 + $0xc04] ss:$40 sps:$4 sm:$0xff]  }
 0x2ba   :  { %5891 = vmatprep.subr.bf16.mxu0 %v23776_v24 }
 0x2bc   :  { %5720 = vmatpush1.bf16.msra.mxu1 %v23771_v25 }
 0x2bd   :  { %5892 = vmatpush1.bf16.msra.mxu0 %v23774_v27  ;;  %5721 = vmatprep.subr.bf16.mxu1 %v23779_v6  ;;  %v23855_v27 = vld [vmem:[#allocation7 + $0x10f8] ss:$40 sps:$4 sm:$0xff]  }
 0x2be   :  { %5893 = vmatprep.subr.bf16.mxu0 %v23782_v29  ;;  %v23858_v6 = vld [vmem:[#allocation7 + $0xc00] ss:$40 sps:$4 sm:$0xff]  }
 0x2c0   :  { %5722 = vmatpush1.bf16.msra.mxu1 %v23777_v30  ;;  %v23863_v30 = vld [vmem:[#allocation7 + $0x114c] ss:$40 sps:$4 sm:$0xff]  }
 0x2c1   :  { %5894 = vmatpush1.bf16.msra.mxu0 %v23780_v12  ;;  %5723 = vmatprep.subr.bf16.mxu1 %v23785_v31  ;;  %v23866_v12 = vld [vmem:[#allocation7 + $0xc54] ss:$40 sps:$4 sm:$0xff]   ;;  %v23861_v31 = vld [vmem:[#allocation7 + $0x1148] ss:$40 sps:$4 sm:$0xff]  }
 0x2c2   :  { %5895 = vmatprep.subr.bf16.mxu0 %v23788_v32  ;;  %v23864_v32 = vld [vmem:[#allocation7 + $0xc50] ss:$40 sps:$4 sm:$0xff]  }
 0x2c4   :  { %5724 = vmatpush1.bf16.msra.mxu1 %v23783_v33  ;;  %v23869_v33 = vld [vmem:[#allocation7 + $0x119c] ss:$40 sps:$4 sm:$0xff]  }
 0x2c5   :  { %5896 = vmatpush1.bf16.msra.mxu0 %v23786_v35  ;;  %5725 = vmatprep.subr.bf16.mxu1 %v23791_v36  ;;  %v23872_v35 = vld [vmem:[#allocation7 + $0xca4] ss:$40 sps:$4 sm:$0xff]   ;;  %v23867_v36 = vld [vmem:[#allocation7 + $0x1198] ss:$40 sps:$4 sm:$0xff]  }
 0x2c6   :  { %5897 = vmatprep.subr.bf16.mxu0 %v23794_v37  ;;  %v23870_v37 = vld [vmem:[#allocation7 + $0xca0] ss:$40 sps:$4 sm:$0xff]  }
 0x2c8   :  { %5726 = vmatpush1.bf16.msra.mxu1 %v23789_v39  ;;  %v23875_v39 = vld [vmem:[#allocation7 + $0x11ec] ss:$40 sps:$4 sm:$0xff]  }
 0x2c9   :  { %5898 = vmatpush1.bf16.msra.mxu0 %v23792_v28  ;;  %5727 = vmatprep.subr.bf16.mxu1 %v23797_v26  ;;  %v23878_v28 = vld [vmem:[#allocation7 + $0xcf4] ss:$40 sps:$4 sm:$0xff]   ;;  %v23873_v26 = vld [vmem:[#allocation7 + $0x11e8] ss:$40 sps:$4 sm:$0xff]  }
 0x2ca   :  { %5899 = vmatprep.subr.bf16.mxu0 %v23800_v40  ;;  %v23876_v40 = vld [vmem:[#allocation7 + $0xcf0] ss:$40 sps:$4 sm:$0xff]  }
 0x2cc   :  { %5728 = vmatpush1.bf16.msra.mxu1 %v23795_v41  ;;  %v23881_v41 = vld [vmem:[#allocation7 + $0x123c] ss:$40 sps:$4 sm:$0xff]  }
 0x2cd   :  { %5900 = vmatpush1.bf16.msra.mxu0 %v23798_v42  ;;  %5729 = vmatprep.subr.bf16.mxu1 %v23803_v44  ;;  %v23884_v42 = vld [vmem:[#allocation7 + $0xd44] ss:$40 sps:$4 sm:$0xff]   ;;  %v23879_v44 = vld [vmem:[#allocation7 + $0x1238] ss:$40 sps:$4 sm:$0xff]  }
 0x2ce   :  { %5901 = vmatprep.subr.bf16.mxu0 %v23806_v45  ;;  %v23882_v45 = vld [vmem:[#allocation7 + $0xd40] ss:$40 sps:$4 sm:$0xff]  }
 0x2d0   :  { %5730 = vmatpush1.bf16.msra.mxu1 %v23801_v48  ;;  %v23887_v48 = vld [vmem:[#allocation7 + $0x128c] ss:$40 sps:$4 sm:$0xff]  }
 0x2d1   :  { %5902 = vmatpush1.bf16.msra.mxu0 %v23804_v49  ;;  %5731 = vmatprep.subr.bf16.mxu1 %v23809_v53  ;;  %v23890_v49 = vld [vmem:[#allocation7 + $0xd94] ss:$40 sps:$4 sm:$0xff]   ;;  %v23885_v53 = vld [vmem:[#allocation7 + $0x1288] ss:$40 sps:$4 sm:$0xff]  }
 0x2d2   :  { %5903 = vmatprep.subr.bf16.mxu0 %v23812_v54  ;;  %v23888_v54 = vld [vmem:[#allocation7 + $0xd90] ss:$40 sps:$4 sm:$0xff]  }
 0x2d4   :  { %5732 = vmatpush1.bf16.msra.mxu1 %v23807_v55  ;;  %v23893_v55 = vld [vmem:[#allocation7 + $0x12dc] ss:$40 sps:$4 sm:$0xff]  }
 0x2d5   :  { %5904 = vmatpush1.bf16.msra.mxu0 %v23810_v56  ;;  %5733 = vmatprep.subr.bf16.mxu1 %v23815_v57  ;;  %v23896_v56 = vld [vmem:[#allocation7 + $0xde4] ss:$40 sps:$4 sm:$0xff]   ;;  %v23891_v57 = vld [vmem:[#allocation7 + $0x12d8] ss:$40 sps:$4 sm:$0xff]  }
 0x2d6   :  { %5905 = vmatprep.subr.bf16.mxu0 %v23818_v59  ;;  %v23894_v59 = vld [vmem:[#allocation7 + $0xde0] ss:$40 sps:$4 sm:$0xff]  }
 0x2d8   :  { %5734 = vmatpush1.bf16.msra.mxu1 %v23813_v43  ;;  %v23899_v43 = vld [vmem:[#allocation7 + $0x132c] ss:$40 sps:$4 sm:$0xff]  }
 0x2d9   :  { %5906 = vmatpush1.bf16.msra.mxu0 %v23816_v61  ;;  %5746 = vmatprep.subr.bf16.mxu1 %v23821_v63  ;;  %v23902_v61 = vld [vmem:[#allocation7 + $0xe34] ss:$40 sps:$4 sm:$0xff]   ;;  %v23897_v63 = vld [vmem:[#allocation7 + $0x1328] ss:$40 sps:$4 sm:$0xff]  }
 0x2da   :  { %5918 = vmatprep.subr.bf16.mxu0 %v23824_v1  ;;  %v23900_v1 = vld [vmem:[#allocation7 + $0xe30] ss:$40 sps:$4 sm:$0xff]  }
 0x2db   :  { %5736 = vmatmul.mubr.bf16.vlgmr.msra.gmra.mrb[8].mxu1 %v26977_v34 }
 0x2dc   :  { %5908 = vmatmul.mubr.bf16.vlgmr.msra.gmra.mrb[8].mxu0 %v26969_v62  ;;  %5747 = vmatpush1.bf16.msra.mxu1 %v23819_v2  ;;  %v23839_v62 = vld [vmem:[#allocation7 + $0x100c] ss:$40 sps:$4 sm:$0xff]   ;;  %v23905_v2 = vld [vmem:[#allocation7 + $0x137c] ss:$40 sps:$4 sm:$0xff]  }
 0x2dd   :  { %5919 = vmatpush1.bf16.msra.mxu0 %v23822_v3  ;;  %5748 = vmatprep.subr.bf16.mxu1 %v23827_v4  ;;  %v23908_v3 = vld [vmem:[#allocation7 + $0xe84] ss:$40 sps:$4 sm:$0xff]   ;;  %v23903_v4 = vld [vmem:[#allocation7 + $0x1378] ss:$40 sps:$4 sm:$0xff]  }
 0x2de   :  { %5920 = vmatprep.subr.bf16.mxu0 %v23830_v50  ;;  %5778 = vmatprep.mubr.bf16.mxu1 %v26981_v9  ;;  %v23906_v50 = vld [vmem:[#allocation7 + $0xe80] ss:$40 sps:$4 sm:$0xff]  }
 0x2df   :  { %5950 = vmatprep.mubr.bf16.mxu0 %v26973_v47  ;;  %v23846_v47 = vld [vmem:[#allocation7 + $0xb60] ss:$40 sps:$4 sm:$0xff]  }
 0x2e0   :  { %5749 = vmatpush1.bf16.msra.mxu1 %v23825_v5  ;;  %v23911_v5 = vld [vmem:[#allocation7 + $0x13cc] ss:$40 sps:$4 sm:$0xff]  }
 0x2e1   :  { %5921 = vmatpush1.bf16.msra.mxu0 %v23828_v7  ;;  %5750 = vmatprep.subr.bf16.mxu1 %v23833_v51  ;;  %v23914_v7 = vld [vmem:[#allocation7 + $0xed4] ss:$40 sps:$4 sm:$0xff]   ;;  %v23909_v51 = vld [vmem:[#allocation7 + $0x13c8] ss:$40 sps:$4 sm:$0xff]  }
 0x2e2   :  { %5922 = vmatprep.subr.bf16.mxu0 %v23836_v8  ;;  %v23912_v8 = vld [vmem:[#allocation7 + $0xed0] ss:$40 sps:$4 sm:$0xff]  }
 0x2e4   :  { %5751 = vmatpush1.bf16.msra.mxu1 %v23831_v10  ;;  %v23917_v10 = vld [vmem:[#allocation7 + $0x141c] ss:$40 sps:$4 sm:$0xff]  }
 0x2e5   :  { %5923 = vmatpush1.bf16.msra.mxu0 %v23834_v38  ;;  %5752 = vmatprep.subr.bf16.mxu1 %v23839_v62  ;;  %v23920_v38 = vld [vmem:[#allocation7 + $0xf24] ss:$40 sps:$4 sm:$0xff]   ;;  %v23915_v62 = vld [vmem:[#allocation7 + $0x1418] ss:$40 sps:$4 sm:$0xff]  }
 0x2e6   :  { %5924 = vmatprep.subr.bf16.mxu0 %v23842_v52  ;;  %v23918_v52 = vld [vmem:[#allocation7 + $0xf20] ss:$40 sps:$4 sm:$0xff]  }
 0x2e8   :  { %5753 = vmatpush1.bf16.msra.mxu1 %v23837_v11  ;;  %v23923_v11 = vld [vmem:[#allocation7 + $0x146c] ss:$40 sps:$4 sm:$0xff]  }
 0x2e9   :  { %5925 = vmatpush1.bf16.msra.mxu0 %v23840_v13  ;;  %5754 = vmatprep.subr.bf16.mxu1 %v23845_v14  ;;  %v23926_v13 = vld [vmem:[#allocation7 + $0xf74] ss:$40 sps:$4 sm:$0xff]   ;;  %v26993_v14 = vld [vmem:[#allocation2 + $0x18] ss:$40 sps:$4 sm:$0xff]  }
 0x2ea   :  { %5926 = vmatprep.subr.bf16.mxu0 %v23848_v15  ;;  %v23921_v15 = vld [vmem:[#allocation7 + $0x1468] ss:$40 sps:$4 sm:$0xff]  }
 0x2ec   :  { %5755 = vmatpush1.bf16.msra.mxu1 %v23843_v16  ;;  %v23924_v16 = vld [vmem:[#allocation7 + $0xf70] ss:$40 sps:$4 sm:$0xff]  }
 0x2ed   :  { %5927 = vmatpush1.bf16.msra.mxu0 %v23846_v47  ;;  %5756 = vmatprep.subr.bf16.mxu1 %v23851_v17  ;;  %v23929_v47 = vld [vmem:[#allocation7 + $0x14bc] ss:$40 sps:$4 sm:$0xff]  }
 0x2ee   :  { %5928 = vmatprep.subr.bf16.mxu0 %v23854_v18  ;;  %v26985_v23 = vpop.f32.mrb[4].mxu1  ;;  %v23932_v17 = vld [vmem:[#allocation7 + $0xfc4] ss:$40 sps:$4 sm:$0xff]   ;;  %v26997_v18 = vld [vmem:[#allocation2 + $0x24] ss:$40 sps:$4 sm:$0xff]  }
 0x2ef   :  { %v26987_v24 = vpop.f32.mrb[5].mxu1 }
 0x2f0   :  { %v26989_v25 = vpop.f32.mrb[6].mxu1  ;;  %5757 = vmatpush1.bf16.msra.mxu1 %v23849_v19  ;;  %v23927_v19 = vld [vmem:[#allocation7 + $0x14b8] ss:$40 sps:$4 sm:$0xff]  }
 0x2f1   :  { %27862 = vst [vmem:[#allocation21_spill] sm:$0xff] %v26989_v25  ;;  %5929 = vmatpush1.bf16.msra.mxu0 %v23852_v20  ;;  %v26991_v29 = vpop.f32.mrb[7].mxu1  ;;  %5758 = vmatprep.subr.bf16.mxu1 %v23857_v21  ;;  %v23930_v20 = vld [vmem:[#allocation7 + $0xfc0] ss:$40 sps:$4 sm:$0xff]   ;;  %v23938_v21 = vld [vmem:[#allocation7 + $0x1014] ss:$40 sps:$4 sm:$0xff]  }
 0x2f2   :  { %27863 = vst [vmem:[#allocation22_spill] sm:$0xff] %v26991_v29  ;;  %5930 = vmatprep.subr.bf16.mxu0 %v23860_v22  ;;  %v23933_v22 = vld [vmem:[#allocation7 + $0x1508] ss:$40 sps:$4 sm:$0xff]  }
 0x2f3   :  { %v25922_v29 = vld [vmem:[#allocation10 + $0x11e0] ss:$40 sps:$4 sm:$0xff]  }
 0x2f4   :  { %5759 = vmatpush1.bf16.msra.mxu1 %v23855_v27  ;;  %v23936_v27 = vld [vmem:[#allocation7 + $0x1010] ss:$40 sps:$4 sm:$0xff]  }
 0x2f5   :  { %5931 = vmatpush1.bf16.msra.mxu0 %v23858_v6  ;;  %5760 = vmatprep.subr.bf16.mxu1 %v23863_v30  ;;  %v23941_v6 = vld [vmem:[#allocation7 + $0x155c] ss:$40 sps:$4 sm:$0xff]  }
 0x2f6   :  { %5932 = vmatprep.subr.bf16.mxu0 %v23866_v12  ;;  %v23944_v30 = vld [vmem:[#allocation7 + $0x1064] ss:$40 sps:$4 sm:$0xff]   ;;  %v23939_v12 = vld [vmem:[#allocation7 + $0x1558] ss:$40 sps:$4 sm:$0xff]  }
 0x2f8   :  { %5761 = vmatpush1.bf16.msra.mxu1 %v23861_v31  ;;  %v23947_v31 = vld [vmem:[#allocation7 + $0x15ac] ss:$40 sps:$4 sm:$0xff]  }
 0x2f9   :  { %5933 = vmatpush1.bf16.msra.mxu0 %v23864_v32  ;;  %5762 = vmatprep.subr.bf16.mxu1 %v23869_v33  ;;  %v23950_v32 = vld [vmem:[#allocation7 + $0x10b4] ss:$40 sps:$4 sm:$0xff]   ;;  %v23945_v33 = vld [vmem:[#allocation7 + $0x15a8] ss:$40 sps:$4 sm:$0xff]  }
 0x2fa   :  { %5934 = vmatprep.subr.bf16.mxu0 %v23872_v35  ;;  %v23948_v35 = vld [vmem:[#allocation7 + $0x10b0] ss:$40 sps:$4 sm:$0xff]  }
 0x2fc   :  { %5763 = vmatpush1.bf16.msra.mxu1 %v23867_v36  ;;  %v23953_v36 = vld [vmem:[#allocation7 + $0x15fc] ss:$40 sps:$4 sm:$0xff]  }
 0x2fd   :  { %5935 = vmatpush1.bf16.msra.mxu0 %v23870_v37  ;;  %5764 = vmatprep.subr.bf16.mxu1 %v23875_v39  ;;  %v23956_v37 = vld [vmem:[#allocation7 + $0x1104] ss:$40 sps:$4 sm:$0xff]  }
 0x2fe   :  { %5936 = vmatprep.subr.bf16.mxu0 %v23878_v28 }
 0x300   :  { %5765 = vmatpush1.bf16.msra.mxu1 %v23873_v26 }
 0x301   :  { %5937 = vmatpush1.bf16.msra.mxu0 %v23876_v40  ;;  %5766 = vmatprep.subr.bf16.mxu1 %v23881_v41  ;;  %v23951_v40 = vld [vmem:[#allocation7 + $0x15f8] ss:$40 sps:$4 sm:$0xff]  }
 0x302   :  { %5938 = vmatprep.subr.bf16.mxu0 %v23884_v42  ;;  %v23954_v41 = vld [vmem:[#allocation7 + $0x1100] ss:$40 sps:$4 sm:$0xff]  }
 0x304   :  { %5767 = vmatpush1.bf16.msra.mxu1 %v23879_v44  ;;  %v23959_v44 = vld [vmem:[#allocation7 + $0x164c] ss:$40 sps:$4 sm:$0xff]  }
 0x305   :  { %5939 = vmatpush1.bf16.msra.mxu0 %v23882_v45  ;;  %5768 = vmatprep.subr.bf16.mxu1 %v23887_v48  ;;  %v23962_v45 = vld [vmem:[#allocation7 + $0x1154] ss:$40 sps:$4 sm:$0xff]   ;;  %v23957_v48 = vld [vmem:[#allocation7 + $0x1648] ss:$40 sps:$4 sm:$0xff]  }
 0x306   :  { %5940 = vmatprep.subr.bf16.mxu0 %v23890_v49  ;;  %v23960_v49 = vld [vmem:[#allocation7 + $0x1150] ss:$40 sps:$4 sm:$0xff]  }
 0x308   :  { %5769 = vmatpush1.bf16.msra.mxu1 %v23885_v53  ;;  %v23965_v53 = vld [vmem:[#allocation7 + $0x169c] ss:$40 sps:$4 sm:$0xff]  }
 0x309   :  { %5941 = vmatpush1.bf16.msra.mxu0 %v23888_v54  ;;  %5770 = vmatprep.subr.bf16.mxu1 %v23893_v55  ;;  %v23968_v54 = vld [vmem:[#allocation7 + $0x11a4] ss:$40 sps:$4 sm:$0xff]   ;;  %v23963_v55 = vld [vmem:[#allocation7 + $0x1698] ss:$40 sps:$4 sm:$0xff]  }
 0x30a   :  { %5942 = vmatprep.subr.bf16.mxu0 %v23896_v56  ;;  %v23966_v56 = vld [vmem:[#allocation7 + $0x11a0] ss:$40 sps:$4 sm:$0xff]  }
 0x30c   :  { %5771 = vmatpush1.bf16.msra.mxu1 %v23891_v57  ;;  %v23971_v57 = vld [vmem:[#allocation7 + $0x16ec] ss:$40 sps:$4 sm:$0xff]  }
 0x30d   :  { %5943 = vmatpush1.bf16.msra.mxu0 %v23894_v59  ;;  %5772 = vmatprep.subr.bf16.mxu1 %v23899_v43  ;;  %v23974_v59 = vld [vmem:[#allocation7 + $0x11f4] ss:$40 sps:$4 sm:$0xff]   ;;  %v23969_v43 = vld [vmem:[#allocation7 + $0x16e8] ss:$40 sps:$4 sm:$0xff]  }
 0x30e   :  { %5944 = vmatprep.subr.bf16.mxu0 %v23902_v61  ;;  %v23972_v61 = vld [vmem:[#allocation7 + $0x11f0] ss:$40 sps:$4 sm:$0xff]  }
 0x310   :  { %5773 = vmatpush1.bf16.msra.mxu1 %v23897_v63  ;;  %v23977_v63 = vld [vmem:[#allocation7 + $0x173c] ss:$40 sps:$4 sm:$0xff]  }
 0x311   :  { %5945 = vmatpush1.bf16.msra.mxu0 %v23900_v1  ;;  %5774 = vmatprep.subr.bf16.mxu1 %v23905_v2  ;;  %v23980_v1 = vld [vmem:[#allocation7 + $0x1244] ss:$40 sps:$4 sm:$0xff]   ;;  %v23975_v2 = vld [vmem:[#allocation7 + $0x1738] ss:$40 sps:$4 sm:$0xff]  }
 0x312   :  { %5946 = vmatprep.subr.bf16.mxu0 %v23908_v3  ;;  %v23978_v3 = vld [vmem:[#allocation7 + $0x1240] ss:$40 sps:$4 sm:$0xff]  }
 0x314   :  { %5775 = vmatpush1.bf16.msra.mxu1 %v23903_v4  ;;  %v23983_v4 = vld [vmem:[#allocation7 + $0x178c] ss:$40 sps:$4 sm:$0xff]  }
 0x315   :  { %5947 = vmatpush1.bf16.msra.mxu0 %v23906_v50  ;;  %5776 = vmatprep.subr.bf16.mxu1 %v23911_v5  ;;  %v23986_v50 = vld [vmem:[#allocation7 + $0x1294] ss:$40 sps:$4 sm:$0xff]   ;;  %v23981_v5 = vld [vmem:[#allocation7 + $0x1788] ss:$40 sps:$4 sm:$0xff]  }
 0x316   :  { %5948 = vmatprep.subr.bf16.mxu0 %v23914_v7  ;;  %v23984_v7 = vld [vmem:[#allocation7 + $0x1290] ss:$40 sps:$4 sm:$0xff]  }
 0x318   :  { %5777 = vmatpush1.bf16.msra.mxu1 %v23909_v51  ;;  %v23989_v51 = vld [vmem:[#allocation7 + $0x17dc] ss:$40 sps:$4 sm:$0xff]  }
 0x319   :  { %5949 = vmatpush1.bf16.msra.mxu0 %v23912_v8  ;;  %5789 = vmatprep.subr.bf16.mxu1 %v23917_v10  ;;  %v23992_v8 = vld [vmem:[#allocation7 + $0x12e4] ss:$40 sps:$4 sm:$0xff]   ;;  %v23987_v10 = vld [vmem:[#allocation7 + $0x17d8] ss:$40 sps:$4 sm:$0xff]  }
 0x31a   :  { %5961 = vmatprep.subr.bf16.mxu0 %v23920_v38  ;;  %v23990_v38 = vld [vmem:[#allocation7 + $0x12e0] ss:$40 sps:$4 sm:$0xff]  }
 0x31b   :  { %5779 = vmatmul.mubr.bf16.vlgmr.msra.gmra.mrb[8].mxu1 %v26993_v14 }
 0x31c   :  { %5951 = vmatmul.mubr.bf16.vlgmr.msra.gmra.mrb[8].mxu0 %v26977_v34  ;;  %5790 = vmatpush1.bf16.msra.mxu1 %v23915_v62  ;;  %v23935_v34 = vld [vmem:[#allocation7 + $0x150c] ss:$40 sps:$4 sm:$0xff]  }
 0x31d   :  { %5962 = vmatpush1.bf16.msra.mxu0 %v23918_v52  ;;  %5791 = vmatprep.subr.bf16.mxu1 %v23923_v11  ;;  %v23995_v62 = vld [vmem:[#allocation7 + $0x182c] ss:$40 sps:$4 sm:$0xff]   ;;  %v23993_v11 = vld [vmem:[#allocation7 + $0x1828] ss:$40 sps:$4 sm:$0xff]  }
 0x31e   :  { %5963 = vmatprep.subr.bf16.mxu0 %v23926_v13  ;;  %5821 = vmatprep.mubr.bf16.mxu1 %v26997_v18  ;;  %v23998_v52 = vld [vmem:[#allocation7 + $0x1334] ss:$40 sps:$4 sm:$0xff]   ;;  %v23996_v13 = vld [vmem:[#allocation7 + $0x1330] ss:$40 sps:$4 sm:$0xff]  }
 0x31f   :  { %5993 = vmatprep.mubr.bf16.mxu0 %v26981_v9  ;;  %v23942_v9 = vld [vmem:[#allocation7 + $0x1060] ss:$40 sps:$4 sm:$0xff]  }
 0x320   :  { %5792 = vmatpush1.bf16.msra.mxu1 %v23921_v15  ;;  %v24001_v15 = vld [vmem:[#allocation7 + $0x187c] ss:$40 sps:$4 sm:$0xff]  }
 0x321   :  { %5964 = vmatpush1.bf16.msra.mxu0 %v23924_v16  ;;  %5793 = vmatprep.subr.bf16.mxu1 %v23929_v47  ;;  %v24004_v16 = vld [vmem:[#allocation7 + $0x1384] ss:$40 sps:$4 sm:$0xff]   ;;  %v23999_v47 = vld [vmem:[#allocation7 + $0x1878] ss:$40 sps:$4 sm:$0xff]  }
 0x322   :  { %5965 = vmatprep.subr.bf16.mxu0 %v23932_v17  ;;  %v24002_v17 = vld [vmem:[#allocation7 + $0x1380] ss:$40 sps:$4 sm:$0xff]  }
 0x324   :  { %5794 = vmatpush1.bf16.msra.mxu1 %v23927_v19  ;;  %v24007_v19 = vld [vmem:[#allocation7 + $0x18cc] ss:$40 sps:$4 sm:$0xff]  }
 0x325   :  { %5966 = vmatpush1.bf16.msra.mxu0 %v23930_v20  ;;  %5795 = vmatprep.subr.bf16.mxu1 %v23935_v34  ;;  %v24010_v20 = vld [vmem:[#allocation7 + $0x13d4] ss:$40 sps:$4 sm:$0xff]   ;;  %v24005_v34 = vld [vmem:[#allocation7 + $0x18c8] ss:$40 sps:$4 sm:$0xff]  }
 0x326   :  { %5967 = vmatprep.subr.bf16.mxu0 %v23938_v21  ;;  %v24008_v21 = vld [vmem:[#allocation7 + $0x13d0] ss:$40 sps:$4 sm:$0xff]  }
 0x328   :  { %5796 = vmatpush1.bf16.msra.mxu1 %v23933_v22  ;;  %v24013_v22 = vld [vmem:[#allocation7 + $0x1424] ss:$40 sps:$4 sm:$0xff]  }
 0x329   :  { %5968 = vmatpush1.bf16.msra.mxu0 %v23936_v27  ;;  %5797 = vmatprep.subr.bf16.mxu1 %v23941_v6  ;;  %v24016_v27 = vld [vmem:[#allocation8 + $0x4] ss:$40 sps:$4 sm:$0xff]   ;;  %v24011_v6 = vld [vmem:[#allocation7 + $0x1420] ss:$40 sps:$4 sm:$0xff]  }
 0x32a   :  { %5969 = vmatprep.subr.bf16.mxu0 %v23944_v30  ;;  %v24014_v30 = vld [vmem:[#allocation8] ss:$40 sps:$4 sm:$0xff]  }
 0x32c   :  { %5798 = vmatpush1.bf16.msra.mxu1 %v23939_v12  ;;  %v24019_v12 = vld [vmem:[#allocation7 + $0x1474] ss:$40 sps:$4 sm:$0xff]  }
 0x32d   :  { %5970 = vmatpush1.bf16.msra.mxu0 %v23942_v9  ;;  %5799 = vmatprep.subr.bf16.mxu1 %v23947_v31  ;;  %v24022_v9 = vld [vmem:[#allocation8 + $0x54] ss:$40 sps:$4 sm:$0xff]   ;;  %v27009_v31 = vld [vmem:[#allocation5 + $0x4] ss:$40 sps:$4 sm:$0xff]  }
 0x32e   :  { %5971 = vmatprep.subr.bf16.mxu0 %v23950_v32  ;;  %v27011_v32 = vld [vmem:[#allocation2 + $0x20] ss:$40 sps:$4 sm:$0xff]  }
 0x32f   :  { %v27001_v39 = vpop.f32.mrb[4].mxu0 }
 0x330   :  { %v27003_v28 = vpop.f32.mrb[5].mxu0  ;;  %5800 = vmatpush1.bf16.msra.mxu1 %v23945_v33  ;;  %v24017_v33 = vld [vmem:[#allocation7 + $0x1470] ss:$40 sps:$4 sm:$0xff]  }
 0x331   :  { %v27005_v26 = vpop.f32.mrb[6].mxu0  ;;  %5972 = vmatpush1.bf16.msra.mxu0 %v23948_v35  ;;  %5801 = vmatprep.subr.bf16.mxu1 %v23953_v36  ;;  %v24020_v35 = vld [vmem:[#allocation8 + $0x50] ss:$40 sps:$4 sm:$0xff]   ;;  %v24025_v36 = vld [vmem:[#allocation7 + $0x14c4] ss:$40 sps:$4 sm:$0xff]  }
 0x332   :  { %27864 = vst [vmem:[#allocation23_spill] sm:$0xff] %v27005_v26  ;;  %v27007_v42 = vpop.f32.mrb[7].mxu0  ;;  %5973 = vmatprep.subr.bf16.mxu0 %v23956_v37  ;;  %v24028_v37 = vld [vmem:[#allocation8 + $0xa4] ss:$40 sps:$4 sm:$0xff]  }
 0x333   :  { %27865 = vst [vmem:[#allocation24_spill] sm:$0xff] %v27007_v42 }
 0x334   :  { %5802 = vmatpush1.bf16.msra.mxu1 %v23951_v40  ;;  %v24023_v40 = vld [vmem:[#allocation7 + $0x14c0] ss:$40 sps:$4 sm:$0xff]  }
 0x335   :  { %5974 = vmatpush1.bf16.msra.mxu0 %v23954_v41  ;;  %5803 = vmatprep.subr.bf16.mxu1 %v23959_v44  ;;  %v24026_v41 = vld [vmem:[#allocation8 + $0xa0] ss:$40 sps:$4 sm:$0xff]   ;;  %v24031_v44 = vld [vmem:[#allocation7 + $0x1514] ss:$40 sps:$4 sm:$0xff]  }
 0x336   :  { %5975 = vmatprep.subr.bf16.mxu0 %v23962_v45  ;;  %v24029_v45 = vld [vmem:[#allocation7 + $0x1510] ss:$40 sps:$4 sm:$0xff]  }
 0x338   :  { %5804 = vmatpush1.bf16.msra.mxu1 %v23957_v48  ;;  %v24032_v48 = vld [vmem:[#allocation8 + $0xf0] ss:$40 sps:$4 sm:$0xff]  }
 0x339   :  { %5976 = vmatpush1.bf16.msra.mxu0 %v23960_v49  ;;  %5805 = vmatprep.subr.bf16.mxu1 %v23965_v53  ;;  %v24037_v49 = vld [vmem:[#allocation7 + $0x1564] ss:$40 sps:$4 sm:$0xff]  }
 0x33a   :  { %5977 = vmatprep.subr.bf16.mxu0 %v23968_v54  ;;  %v24040_v53 = vld [vmem:[#allocation8 + $0x144] ss:$40 sps:$4 sm:$0xff]   ;;  %v24038_v54 = vld [vmem:[#allocation8 + $0x140] ss:$40 sps:$4 sm:$0xff]  }
 0x33c   :  { %5806 = vmatpush1.bf16.msra.mxu1 %v23963_v55  ;;  %v24043_v55 = vld [vmem:[#allocation7 + $0x15b4] ss:$40 sps:$4 sm:$0xff]  }
 0x33d   :  { %5978 = vmatpush1.bf16.msra.mxu0 %v23966_v56  ;;  %5807 = vmatprep.subr.bf16.mxu1 %v23971_v57  ;;  %v24046_v56 = vld [vmem:[#allocation8 + $0x194] ss:$40 sps:$4 sm:$0xff]   ;;  %v24041_v57 = vld [vmem:[#allocation7 + $0x15b0] ss:$40 sps:$4 sm:$0xff]  }
 0x33e   :  { %5979 = vmatprep.subr.bf16.mxu0 %v23974_v59  ;;  %v24044_v59 = vld [vmem:[#allocation8 + $0x190] ss:$40 sps:$4 sm:$0xff]  }
 0x340   :  { %5808 = vmatpush1.bf16.msra.mxu1 %v23969_v43  ;;  %v24049_v43 = vld [vmem:[#allocation7 + $0x1604] ss:$40 sps:$4 sm:$0xff]  }
 0x341   :  { %5980 = vmatpush1.bf16.msra.mxu0 %v23972_v61  ;;  %5809 = vmatprep.subr.bf16.mxu1 %v23977_v63  ;;  %v24052_v61 = vld [vmem:[#allocation8 + $0x1e4] ss:$40 sps:$4 sm:$0xff]   ;;  %v24047_v63 = vld [vmem:[#allocation7 + $0x1600] ss:$40 sps:$4 sm:$0xff]  }
 0x342   :  { %5981 = vmatprep.subr.bf16.mxu0 %v23980_v1  ;;  %v24050_v1 = vld [vmem:[#allocation8 + $0x1e0] ss:$40 sps:$4 sm:$0xff]  }
 0x344   :  { %5810 = vmatpush1.bf16.msra.mxu1 %v23975_v2  ;;  %v24055_v2 = vld [vmem:[#allocation7 + $0x1654] ss:$40 sps:$4 sm:$0xff]  }
 0x345   :  { %5982 = vmatpush1.bf16.msra.mxu0 %v23978_v3  ;;  %5811 = vmatprep.subr.bf16.mxu1 %v23983_v4  ;;  %v24058_v3 = vld [vmem:[#allocation8 + $0x234] ss:$40 sps:$4 sm:$0xff]   ;;  %v24053_v4 = vld [vmem:[#allocation7 + $0x1650] ss:$40 sps:$4 sm:$0xff]  }
 0x346   :  { %5983 = vmatprep.subr.bf16.mxu0 %v23986_v50  ;;  %v24056_v50 = vld [vmem:[#allocation8 + $0x230] ss:$40 sps:$4 sm:$0xff]  }
 0x348   :  { %5812 = vmatpush1.bf16.msra.mxu1 %v23981_v5  ;;  %v24061_v5 = vld [vmem:[#allocation7 + $0x16a4] ss:$40 sps:$4 sm:$0xff]  }
 0x349   :  { %5984 = vmatpush1.bf16.msra.mxu0 %v23984_v7  ;;  %5813 = vmatprep.subr.bf16.mxu1 %v23989_v51  ;;  %v24064_v7 = vld [vmem:[#allocation8 + $0x284] ss:$40 sps:$4 sm:$0xff]   ;;  %v24059_v51 = vld [vmem:[#allocation7 + $0x16a0] ss:$40 sps:$4 sm:$0xff]  }
 0x34a   :  { %5985 = vmatprep.subr.bf16.mxu0 %v23992_v8  ;;  %v24062_v8 = vld [vmem:[#allocation8 + $0x280] ss:$40 sps:$4 sm:$0xff]  }
 0x34c   :  { %5814 = vmatpush1.bf16.msra.mxu1 %v23987_v10  ;;  %v24067_v10 = vld [vmem:[#allocation7 + $0x16f4] ss:$40 sps:$4 sm:$0xff]  }
 0x34d   :  { %5986 = vmatpush1.bf16.msra.mxu0 %v23990_v38  ;;  %5815 = vmatprep.subr.bf16.mxu1 %v23995_v62  ;;  %v24070_v38 = vld [vmem:[#allocation8 + $0x2d4] ss:$40 sps:$4 sm:$0xff]   ;;  %v24065_v62 = vld [vmem:[#allocation7 + $0x16f0] ss:$40 sps:$4 sm:$0xff]  }
 0x34e   :  { %5987 = vmatprep.subr.bf16.mxu0 %v23998_v52  ;;  %v24068_v52 = vld [vmem:[#allocation8 + $0x2d0] ss:$40 sps:$4 sm:$0xff]  }
 0x350   :  { %5816 = vmatpush1.bf16.msra.mxu1 %v23993_v11  ;;  %v24073_v11 = vld [vmem:[#allocation7 + $0x1744] ss:$40 sps:$4 sm:$0xff]  }
 0x351   :  { %5988 = vmatpush1.bf16.msra.mxu0 %v23996_v13  ;;  %5817 = vmatprep.subr.bf16.mxu1 %v24001_v15  ;;  %v24076_v13 = vld [vmem:[#allocation8 + $0x324] ss:$40 sps:$4 sm:$0xff]   ;;  %v24071_v15 = vld [vmem:[#allocation7 + $0x1740] ss:$40 sps:$4 sm:$0xff]  }
 0x352   :  { %5989 = vmatprep.subr.bf16.mxu0 %v24004_v16  ;;  %v24074_v16 = vld [vmem:[#allocation8 + $0x320] ss:$40 sps:$4 sm:$0xff]  }
 0x354   :  { %5818 = vmatpush1.bf16.msra.mxu1 %v23999_v47  ;;  %v24079_v47 = vld [vmem:[#allocation7 + $0x1794] ss:$40 sps:$4 sm:$0xff]  }
 0x355   :  { %5990 = vmatpush1.bf16.msra.mxu0 %v24002_v17  ;;  %5819 = vmatprep.subr.bf16.mxu1 %v24007_v19  ;;  %v24082_v17 = vld [vmem:[#allocation8 + $0x374] ss:$40 sps:$4 sm:$0xff]   ;;  %v24077_v19 = vld [vmem:[#allocation7 + $0x1790] ss:$40 sps:$4 sm:$0xff]  }
 0x356   :  { %5991 = vmatprep.subr.bf16.mxu0 %v24010_v20  ;;  %v24080_v20 = vld [vmem:[#allocation8 + $0x370] ss:$40 sps:$4 sm:$0xff]  }
 0x358   :  { %5820 = vmatpush1.bf16.msra.mxu1 %v24005_v34  ;;  %v24085_v34 = vld [vmem:[#allocation7 + $0x17e4] ss:$40 sps:$4 sm:$0xff]  }
 0x359   :  { %5992 = vmatpush1.bf16.msra.mxu0 %v24008_v21  ;;  %10947 = vmatprep.subr.bf16.mxu1 %v24016_v27  ;;  %v24088_v21 = vld [vmem:[#allocation8 + $0x3c4] ss:$40 sps:$4 sm:$0xff]   ;;  %v24086_v27 = vld [vmem:[#allocation8 + $0x3c0] ss:$40 sps:$4 sm:$0xff]  }
 0x35a   :  { %6004 = vmatprep.subr.bf16.mxu0 %v24013_v22  ;;  %v24083_v22 = vld [vmem:[#allocation7 + $0x17e0] ss:$40 sps:$4 sm:$0xff]  }
 0x35b   :  { %5822 = vmatmul.mubr.bf16.vlgmr.msra.gmra.mrb[8].mxu1 %v27011_v32 }
 0x35c   :  { %5994 = vmatmul.mubr.bf16.vlgmr.msra.gmra.mrb[8].mxu0 %v26993_v14  ;;  %10948 = vmatpush1.bf16.msra.mxu1 %v24014_v30  ;;  %v24034_v14 = vld [vmem:[#allocation8 + $0xf4] ss:$40 sps:$4 sm:$0xff]  }
 0x35d   :  { %6005 = vmatpush1.bf16.msra.mxu0 %v24011_v6  ;;  %10949 = vmatprep.subr.bf16.mxu1 %v24022_v9  ;;  %v24091_v6 = vld [vmem:[#allocation7 + $0x1834] ss:$40 sps:$4 sm:$0xff]   ;;  %v24092_v9 = vld [vmem:[#allocation8 + $0x410] ss:$40 sps:$4 sm:$0xff]  }
 0x35e   :  { %6006 = vmatprep.subr.bf16.mxu0 %v24019_v12  ;;  %6036 = vmatprep.mubr.bf16.mxu0 %v26997_v18  ;;  %v24035_v18 = vld [vmem:[#allocation7 + $0x1560] ss:$40 sps:$4 sm:$0xff]   ;;  %v24094_v30 = vld [vmem:[#allocation8 + $0x414] ss:$40 sps:$4 sm:$0xff]   ;;  %v24089_v12 = vld [vmem:[#allocation7 + $0x1830] ss:$40 sps:$4 sm:$0xff]  }
 0x35f   :  { %10979 = vmatprep.mubr.bf16.mxu1 %v27009_v31 }
 0x360   :  { %10950 = vmatpush1.bf16.msra.mxu1 %v24020_v35  ;;  %v24100_v35 = vld [vmem:[#allocation8 + $0x464] ss:$40 sps:$4 sm:$0xff]  }
 0x361   :  { %6007 = vmatpush1.bf16.msra.mxu0 %v24017_v33  ;;  %10951 = vmatprep.subr.bf16.mxu1 %v24028_v37  ;;  %v24097_v33 = vld [vmem:[#allocation7 + $0x1884] ss:$40 sps:$4 sm:$0xff]   ;;  %v24098_v37 = vld [vmem:[#allocation8 + $0x460] ss:$40 sps:$4 sm:$0xff]  }
 0x362   :  { %6008 = vmatprep.subr.bf16.mxu0 %v24025_v36  ;;  %v24095_v36 = vld [vmem:[#allocation7 + $0x1880] ss:$40 sps:$4 sm:$0xff]  }
 0x364   :  { %10952 = vmatpush1.bf16.msra.mxu1 %v24026_v41  ;;  %v24106_v41 = vld [vmem:[#allocation8 + $0x4b4] ss:$40 sps:$4 sm:$0xff]  }
 0x365   :  { %6009 = vmatpush1.bf16.msra.mxu0 %v24023_v40  ;;  %10953 = vmatprep.subr.bf16.mxu1 %v24034_v14  ;;  %v24103_v40 = vld [vmem:[#allocation7 + $0x18d4] ss:$40 sps:$4 sm:$0xff]   ;;  %v24104_v14 = vld [vmem:[#allocation8 + $0x4b0] ss:$40 sps:$4 sm:$0xff]  }
 0x366   :  { %6010 = vmatprep.subr.bf16.mxu0 %v24031_v44  ;;  %v24101_v44 = vld [vmem:[#allocation7 + $0x18d0] ss:$40 sps:$4 sm:$0xff]  }
 0x368   :  { %10954 = vmatpush1.bf16.msra.mxu1 %v24032_v48  ;;  %v24114_v48 = vld [vmem:[#allocation8 + $0xc] ss:$40 sps:$4 sm:$0xff]  }
 0x369   :  { %6011 = vmatpush1.bf16.msra.mxu0 %v24029_v45  ;;  %10955 = vmatprep.subr.bf16.mxu1 %v24040_v53  ;;  %v24111_v45 = vld [vmem:[#allocation8 + $0x504] ss:$40 sps:$4 sm:$0xff]   ;;  %v24109_v53 = vld [vmem:[#allocation8 + $0x500] ss:$40 sps:$4 sm:$0xff]  }
 0x36a   :  { %6012 = vmatprep.subr.bf16.mxu0 %v24037_v49  ;;  %v27017_v49 = vld [vmem:[#allocation5] ss:$40 sps:$4 sm:$0xff]  }
 0x36c   :  { %10956 = vmatpush1.bf16.msra.mxu1 %v24038_v54  ;;  %v24118_v54 = vld [vmem:[#allocation8 + $0x554] ss:$40 sps:$4 sm:$0xff]  }
 0x36d   :  { %6013 = vmatpush1.bf16.msra.mxu0 %v24035_v18  ;;  %10957 = vmatprep.subr.bf16.mxu1 %v24046_v56  ;;  %v24112_v18 = vld [vmem:[#allocation8 + $0x8] ss:$40 sps:$4 sm:$0xff]   ;;  %v27019_v56 = vld [vmem:[#allocation5 + $0x54] ss:$40 sps:$4 sm:$0xff]  }
 0x36e   :  { %6014 = vmatprep.subr.bf16.mxu0 %v24043_v55  ;;  %v24121_v55 = vld [vmem:[#allocation8 + $0x5c] ss:$40 sps:$4 sm:$0xff]  }
 0x370   :  { %10958 = vmatpush1.bf16.msra.mxu1 %v24044_v59  ;;  %v24119_v59 = vld [vmem:[#allocation8 + $0x58] ss:$40 sps:$4 sm:$0xff]  }
 0x371   :  { %6015 = vmatpush1.bf16.msra.mxu0 %v24041_v57  ;;  %10959 = vmatprep.subr.bf16.mxu1 %v24052_v61  ;;  %v24116_v57 = vld [vmem:[#allocation8 + $0x550] ss:$40 sps:$4 sm:$0xff]   ;;  %v24127_v61 = vld [vmem:[#allocation8 + $0xac] ss:$40 sps:$4 sm:$0xff]  }
 0x372   :  { %6016 = vmatprep.subr.bf16.mxu0 %v24049_v43  ;;  %v24124_v43 = vld [vmem:[#allocation8 + $0x5a4] ss:$40 sps:$4 sm:$0xff]  }
 0x374   :  { %10960 = vmatpush1.bf16.msra.mxu1 %v24050_v1  ;;  %v24122_v1 = vld [vmem:[#allocation8 + $0x5a0] ss:$40 sps:$4 sm:$0xff]  }
 0x375   :  { %6017 = vmatpush1.bf16.msra.mxu0 %v24047_v63  ;;  %10961 = vmatprep.subr.bf16.mxu1 %v24058_v3  ;;  %v27023_v63 = vld [vmem:[#allocation5 + $0x50] ss:$40 sps:$4 sm:$0xff]   ;;  %v24133_v3 = vld [vmem:[#allocation8 + $0xfc] ss:$40 sps:$4 sm:$0xff]  }
 0x376   :  { %6018 = vmatprep.subr.bf16.mxu0 %v24055_v2  ;;  %v24125_v2 = vld [vmem:[#allocation8 + $0xa8] ss:$40 sps:$4 sm:$0xff]  }
 0x378   :  { %10962 = vmatpush1.bf16.msra.mxu1 %v24056_v50  ;;  %v24128_v50 = vld [vmem:[#allocation8 + $0x5f0] ss:$40 sps:$4 sm:$0xff]  }
 0x379   :  { %6019 = vmatpush1.bf16.msra.mxu0 %v24053_v4  ;;  %10963 = vmatprep.subr.bf16.mxu1 %v24064_v7  ;;  %v27027_v4 = vld [vmem:[#allocation5 + $0xc] ss:$40 sps:$4 sm:$0xff]  }
 0x37a   :  { %6020 = vmatprep.subr.bf16.mxu0 %v24061_v5  ;;  %v24131_v5 = vld [vmem:[#allocation8 + $0xf8] ss:$40 sps:$4 sm:$0xff]   ;;  %v24136_v7 = vld [vmem:[#allocation8 + $0x644] ss:$40 sps:$4 sm:$0xff]  }
 0x37c   :  { %10964 = vmatpush1.bf16.msra.mxu1 %v24062_v8  ;;  %v24137_v8 = vld [vmem:[#allocation8 + $0x148] ss:$40 sps:$4 sm:$0xff]  }
 0x37d   :  { %6021 = vmatpush1.bf16.msra.mxu0 %v24059_v51  ;;  %10965 = vmatprep.subr.bf16.mxu1 %v24070_v38  ;;  %v24139_v51 = vld [vmem:[#allocation8 + $0x14c] ss:$40 sps:$4 sm:$0xff]   ;;  %v24145_v38 = vld [vmem:[#allocation8 + $0x19c] ss:$40 sps:$4 sm:$0xff]  }
 0x37e   :  { %6022 = vmatprep.subr.bf16.mxu0 %v24067_v10  ;;  %v24142_v10 = vld [vmem:[#allocation8 + $0x694] ss:$40 sps:$4 sm:$0xff]  }
 0x380   :  { %10966 = vmatpush1.bf16.msra.mxu1 %v24068_v52  ;;  %v24143_v52 = vld [vmem:[#allocation8 + $0x198] ss:$40 sps:$4 sm:$0xff]  }
 0x381   :  { %6023 = vmatpush1.bf16.msra.mxu0 %v24065_v62  ;;  %10967 = vmatprep.subr.bf16.mxu1 %v24076_v13  ;;  %v24140_v62 = vld [vmem:[#allocation8 + $0x690] ss:$40 sps:$4 sm:$0xff]   ;;  %v24151_v13 = vld [vmem:[#allocation8 + $0x1ec] ss:$40 sps:$4 sm:$0xff]  }
 0x382   :  { %6024 = vmatprep.subr.bf16.mxu0 %v24073_v11  ;;  %v24148_v11 = vld [vmem:[#allocation8 + $0x6e4] ss:$40 sps:$4 sm:$0xff]  }
 0x384   :  { %10968 = vmatpush1.bf16.msra.mxu1 %v24074_v16  ;;  %v24149_v16 = vld [vmem:[#allocation8 + $0x1e8] ss:$40 sps:$4 sm:$0xff]  }
 0x385   :  { %6025 = vmatpush1.bf16.msra.mxu0 %v24071_v15  ;;  %10969 = vmatprep.subr.bf16.mxu1 %v24082_v17  ;;  %v24146_v15 = vld [vmem:[#allocation8 + $0x6e0] ss:$40 sps:$4 sm:$0xff]   ;;  %v24157_v17 = vld [vmem:[#allocation8 + $0x23c] ss:$40 sps:$4 sm:$0xff]  }
 0x386   :  { %6026 = vmatprep.subr.bf16.mxu0 %v24079_v47  ;;  %v24154_v47 = vld [vmem:[#allocation8 + $0x734] ss:$40 sps:$4 sm:$0xff]  }
 0x388   :  { %10970 = vmatpush1.bf16.msra.mxu1 %v24080_v20  ;;  %v24155_v20 = vld [vmem:[#allocation8 + $0x238] ss:$40 sps:$4 sm:$0xff]  }
 0x389   :  { %6027 = vmatpush1.bf16.msra.mxu0 %v24077_v19  ;;  %10971 = vmatprep.subr.bf16.mxu1 %v24088_v21  ;;  %v24152_v19 = vld [vmem:[#allocation8 + $0x730] ss:$40 sps:$4 sm:$0xff]   ;;  %v24163_v21 = vld [vmem:[#allocation8 + $0x28c] ss:$40 sps:$4 sm:$0xff]  }
 0x38a   :  { %6028 = vmatprep.subr.bf16.mxu0 %v24085_v34  ;;  %v24160_v34 = vld [vmem:[#allocation8 + $0x784] ss:$40 sps:$4 sm:$0xff]  }
 0x38c   :  { %10972 = vmatpush1.bf16.msra.mxu1 %v24086_v27  ;;  %v24161_v27 = vld [vmem:[#allocation8 + $0x288] ss:$40 sps:$4 sm:$0xff]  }
 0x38d   :  { %6029 = vmatpush1.bf16.msra.mxu0 %v24083_v22  ;;  %10973 = vmatprep.subr.bf16.mxu1 %v24094_v30  ;;  %v24158_v22 = vld [vmem:[#allocation8 + $0x780] ss:$40 sps:$4 sm:$0xff]   ;;  %v24169_v30 = vld [vmem:[#allocation8 + $0x2dc] ss:$40 sps:$4 sm:$0xff]  }
 0x38e   :  { %6030 = vmatprep.subr.bf16.mxu0 %v24091_v6  ;;  %v24166_v6 = vld [vmem:[#allocation8 + $0x7d4] ss:$40 sps:$4 sm:$0xff]  }
 0x390   :  { %10974 = vmatpush1.bf16.msra.mxu1 %v24092_v9  ;;  %v24167_v9 = vld [vmem:[#allocation8 + $0x2d8] ss:$40 sps:$4 sm:$0xff]  }
 0x391   :  { %6031 = vmatpush1.bf16.msra.mxu0 %v24089_v12  ;;  %10975 = vmatprep.subr.bf16.mxu1 %v24100_v35  ;;  %v24164_v12 = vld [vmem:[#allocation8 + $0x7d0] ss:$40 sps:$4 sm:$0xff]   ;;  %v24175_v35 = vld [vmem:[#allocation8 + $0x32c] ss:$40 sps:$4 sm:$0xff]  }
 0x392   :  { %6032 = vmatprep.subr.bf16.mxu0 %v24097_v33  ;;  %v24172_v33 = vld [vmem:[#allocation8 + $0x824] ss:$40 sps:$4 sm:$0xff]  }
 0x394   :  { %10976 = vmatpush1.bf16.msra.mxu1 %v24098_v37  ;;  %v24173_v37 = vld [vmem:[#allocation8 + $0x328] ss:$40 sps:$4 sm:$0xff]  }
 0x395   :  { %6033 = vmatpush1.bf16.msra.mxu0 %v24095_v36  ;;  %10977 = vmatprep.subr.bf16.mxu1 %v24106_v41  ;;  %v24170_v36 = vld [vmem:[#allocation8 + $0x820] ss:$40 sps:$4 sm:$0xff]   ;;  %v24181_v41 = vld [vmem:[#allocation8 + $0x37c] ss:$40 sps:$4 sm:$0xff]  }
 0x396   :  { %6034 = vmatprep.subr.bf16.mxu0 %v24103_v40  ;;  %v24178_v40 = vld [vmem:[#allocation8 + $0x874] ss:$40 sps:$4 sm:$0xff]  }
 0x398   :  { %10978 = vmatpush1.bf16.msra.mxu1 %v24104_v14  ;;  %v24179_v14 = vld [vmem:[#allocation8 + $0x378] ss:$40 sps:$4 sm:$0xff]  }
 0x399   :  { %6035 = vmatpush1.bf16.msra.mxu0 %v24101_v44  ;;  %11000 = vmatprep.subr.bf16.mxu1 %v24111_v45  ;;  %v24176_v44 = vld [vmem:[#allocation8 + $0x870] ss:$40 sps:$4 sm:$0xff]   ;;  %v24184_v45 = vld [vmem:[#allocation8 + $0x8c4] ss:$40 sps:$4 sm:$0xff]  }
 0x39a   :  { %11212 = vmatprep.subr.bf16.mxu0 %v24114_v48  ;;  %v24187_v48 = vld [vmem:[#allocation8 + $0x3cc] ss:$40 sps:$4 sm:$0xff]  }
 0x39b   :  { %10980 = vmatmul.mubr.bf16.vlgmr.msra.gmra.mrb[12].mxu1 %v27017_v49 }
 0x39c   :  { %6037 = vmatmul.mubr.bf16.vlgmr.msra.gmra.mrb[8].mxu0 %v27011_v32  ;;  %11001 = vmatpush1.bf16.msra.mxu1 %v24109_v53  ;;  %v24130_v32 = vld [vmem:[#allocation8 + $0x5f4] ss:$40 sps:$4 sm:$0xff]   ;;  %v24182_v53 = vld [vmem:[#allocation8 + $0x8c0] ss:$40 sps:$4 sm:$0xff]  }
 0x39d   :  { %11213 = vmatpush1.bf16.msra.mxu0 %v24112_v18  ;;  %11002 = vmatprep.subr.bf16.mxu1 %v24118_v54  ;;  %v24185_v18 = vld [vmem:[#allocation8 + $0x3c8] ss:$40 sps:$4 sm:$0xff]   ;;  %v24190_v54 = vld [vmem:[#allocation8 + $0x914] ss:$40 sps:$4 sm:$0xff]  }
 0x39e   :  { %11214 = vmatprep.subr.bf16.mxu0 %v24121_v55  ;;  %10989 = vmatprep.mubr.bf16.mxu1 %v27019_v56  ;;  %v24193_v55 = vld [vmem:[#allocation8 + $0x41c] ss:$40 sps:$4 sm:$0xff]  }
 0x39f   :  { %11244 = vmatprep.mubr.bf16.mxu0 %v27009_v31  ;;  %v24134_v31 = vld [vmem:[#allocation8 + $0x640] ss:$40 sps:$4 sm:$0xff]  }
 0x3a0   :  { %11003 = vmatpush1.bf16.msra.mxu1 %v24116_v57  ;;  %v24188_v57 = vld [vmem:[#allocation8 + $0x910] ss:$40 sps:$4 sm:$0xff]  }
 0x3a1   :  { %11215 = vmatpush1.bf16.msra.mxu0 %v24119_v59  ;;  %11004 = vmatprep.subr.bf16.mxu1 %v24124_v43  ;;  %v24191_v59 = vld [vmem:[#allocation8 + $0x418] ss:$40 sps:$4 sm:$0xff]   ;;  %v24198_v43 = vld [vmem:[#allocation8 + $0x964] ss:$40 sps:$4 sm:$0xff]  }
 0x3a2   :  { %11216 = vmatprep.subr.bf16.mxu0 %v24127_v61  ;;  %v24201_v61 = vld [vmem:[#allocation8 + $0x46c] ss:$40 sps:$4 sm:$0xff]  }
 0x3a3   :  { %10990 = vmatmul.mubr.bf16.gmra.mrb[16].mxu1 %v27023_v63 }
 0x3a4   :  { %11005 = vmatpush1.bf16.msra.mxu1 %v24122_v1  ;;  %11032 = vmatprep.mubr.bf16.mxu1 %v27027_v4  ;;  %v24196_v1 = vld [vmem:[#allocation8 + $0x960] ss:$40 sps:$4 sm:$0xff]  }
 0x3a5   :  { %11217 = vmatpush1.bf16.msra.mxu0 %v24125_v2  ;;  %11006 = vmatprep.subr.bf16.mxu1 %v24130_v32  ;;  %v24199_v2 = vld [vmem:[#allocation8 + $0x468] ss:$40 sps:$4 sm:$0xff]   ;;  %v24205_v32 = vld [vmem:[#allocation8 + $0x9b4] ss:$40 sps:$4 sm:$0xff]  }
 0x3a6   :  { %11218 = vmatprep.subr.bf16.mxu0 %v24133_v3  ;;  %v24208_v3 = vld [vmem:[#allocation8 + $0x4bc] ss:$40 sps:$4 sm:$0xff]  }
 0x3a8   :  { %11007 = vmatpush1.bf16.msra.mxu1 %v24128_v50  ;;  %v24203_v50 = vld [vmem:[#allocation8 + $0x9b0] ss:$40 sps:$4 sm:$0xff]  }
 0x3a9   :  { %11219 = vmatpush1.bf16.msra.mxu0 %v24131_v5  ;;  %11008 = vmatprep.subr.bf16.mxu1 %v24136_v7  ;;  %v24206_v5 = vld [vmem:[#allocation8 + $0x4b8] ss:$40 sps:$4 sm:$0xff]   ;;  %v24213_v7 = vld [vmem:[#allocation8 + $0xa04] ss:$40 sps:$4 sm:$0xff]  }
 0x3aa   :  { %11220 = vmatprep.subr.bf16.mxu0 %v24139_v51  ;;  %v24216_v51 = vld [vmem:[#allocation8 + $0x50c] ss:$40 sps:$4 sm:$0xff]  }
 0x3ac   :  { %11009 = vmatpush1.bf16.msra.mxu1 %v24134_v31  ;;  %v27031_v31 = vld [vmem:[#allocation5 + $0x8] ss:$40 sps:$4 sm:$0xff]  }
 0x3ad   :  { %11221 = vmatpush1.bf16.msra.mxu0 %v24137_v8  ;;  %11010 = vmatprep.subr.bf16.mxu1 %v24142_v10  ;;  %v24211_v8 = vld [vmem:[#allocation8 + $0xa00] ss:$40 sps:$4 sm:$0xff]  }
 0x3ae   :  { %11222 = vmatprep.subr.bf16.mxu0 %v24145_v38  ;;  %v24214_v10 = vld [vmem:[#allocation8 + $0x508] ss:$40 sps:$4 sm:$0xff]   ;;  %v24220_v38 = vld [vmem:[#allocation8 + $0xa54] ss:$40 sps:$4 sm:$0xff]  }
 0x3b0   :  { %11011 = vmatpush1.bf16.msra.mxu1 %v24140_v62  ;;  %v24223_v62 = vld [vmem:[#allocation8 + $0x55c] ss:$40 sps:$4 sm:$0xff]  }
 0x3b1   :  { %11223 = vmatpush1.bf16.msra.mxu0 %v24143_v52  ;;  %11012 = vmatprep.subr.bf16.mxu1 %v24148_v11  ;;  %v27033_v52 = vld [vmem:[#allocation5 + $0x5c] ss:$40 sps:$4 sm:$0xff]   ;;  %v24218_v11 = vld [vmem:[#allocation8 + $0xa50] ss:$40 sps:$4 sm:$0xff]  }
 0x3b2   :  { %11224 = vmatprep.subr.bf16.mxu0 %v24151_v13  ;;  %v24221_v13 = vld [vmem:[#allocation8 + $0x558] ss:$40 sps:$4 sm:$0xff]  }
 0x3b4   :  { %11013 = vmatpush1.bf16.msra.mxu1 %v24146_v15  ;;  %v24226_v15 = vld [vmem:[#allocation8 + $0xaa4] ss:$40 sps:$4 sm:$0xff]  }
 0x3b5   :  { %11225 = vmatpush1.bf16.msra.mxu0 %v24149_v16  ;;  %11014 = vmatprep.subr.bf16.mxu1 %v24154_v47  ;;  %v24229_v16 = vld [vmem:[#allocation8 + $0x5ac] ss:$40 sps:$4 sm:$0xff]   ;;  %v27037_v47 = vld [vmem:[#allocation5 + $0x58] ss:$40 sps:$4 sm:$0xff]  }
 0x3b6   :  { %11226 = vmatprep.subr.bf16.mxu0 %v24157_v17  ;;  %v24224_v17 = vld [vmem:[#allocation8 + $0xaa0] ss:$40 sps:$4 sm:$0xff]  }
 0x3b8   :  { %11015 = vmatpush1.bf16.msra.mxu1 %v24152_v19  ;;  %v24227_v19 = vld [vmem:[#allocation8 + $0x5a8] ss:$40 sps:$4 sm:$0xff]  }
 0x3b9   :  { %11227 = vmatpush1.bf16.msra.mxu0 %v24155_v20  ;;  %11016 = vmatprep.subr.bf16.mxu1 %v24160_v34  ;;  %v24232_v20 = vld [vmem:[#allocation8 + $0xaf4] ss:$40 sps:$4 sm:$0xff]  }
 0x3ba   :  { %11228 = vmatprep.subr.bf16.mxu0 %v24163_v21  ;;  %v27041_v34 = vld [vmem:[#allocation5 + $0x14] ss:$40 sps:$4 sm:$0xff]   ;;  %v24230_v21 = vld [vmem:[#allocation8 + $0xaf0] ss:$40 sps:$4 sm:$0xff]  }
 0x3bc   :  { %11017 = vmatpush1.bf16.msra.mxu1 %v24158_v22  ;;  %v24233_v22 = vld [vmem:[#allocation8 + $0x5f8] ss:$40 sps:$4 sm:$0xff]  }
 0x3bd   :  { %11229 = vmatpush1.bf16.msra.mxu0 %v24161_v27  ;;  %11018 = vmatprep.subr.bf16.mxu1 %v24166_v6  ;;  %v24241_v27 = vld [vmem:[#allocation8 + $0x64c] ss:$40 sps:$4 sm:$0xff]   ;;  %v24236_v6 = vld [vmem:[#allocation8 + $0xb40] ss:$40 sps:$4 sm:$0xff]  }
 0x3be   :  { %11230 = vmatprep.subr.bf16.mxu0 %v24169_v30  ;;  %v24239_v30 = vld [vmem:[#allocation8 + $0x648] ss:$40 sps:$4 sm:$0xff]  }
 0x3c0   :  { %11019 = vmatpush1.bf16.msra.mxu1 %v24164_v12  ;;  %v24244_v12 = vld [vmem:[#allocation8 + $0xb94] ss:$40 sps:$4 sm:$0xff]  }
 0x3c1   :  { %11231 = vmatpush1.bf16.msra.mxu0 %v24167_v9  ;;  %11020 = vmatprep.subr.bf16.mxu1 %v24172_v33  ;;  %v24242_v9 = vld [vmem:[#allocation8 + $0xb90] ss:$40 sps:$4 sm:$0xff]  }
 0x3c2   :  { %11232 = vmatprep.subr.bf16.mxu0 %v24175_v35  ;;  %v24245_v33 = vld [vmem:[#allocation8 + $0x698] ss:$40 sps:$4 sm:$0xff]   ;;  %v24250_v35 = vld [vmem:[#allocation8 + $0xbe4] ss:$40 sps:$4 sm:$0xff]  }
 0x3c4   :  { %11021 = vmatpush1.bf16.msra.mxu1 %v24170_v36  ;;  %v24253_v36 = vld [vmem:[#allocation8 + $0x6ec] ss:$40 sps:$4 sm:$0xff]  }
 0x3c5   :  { %11233 = vmatpush1.bf16.msra.mxu0 %v24173_v37  ;;  %11022 = vmatprep.subr.bf16.mxu1 %v24178_v40  ;;  %v24248_v37 = vld [vmem:[#allocation8 + $0xbe0] ss:$40 sps:$4 sm:$0xff]  }
 0x3c6   :  { %11234 = vmatprep.subr.bf16.mxu0 %v24181_v41  ;;  %v24251_v40 = vld [vmem:[#allocation8 + $0x6e8] ss:$40 sps:$4 sm:$0xff]   ;;  %v24259_v41 = vld [vmem:[#allocation8 + $0x73c] ss:$40 sps:$4 sm:$0xff]  }
 0x3c8   :  { %11023 = vmatpush1.bf16.msra.mxu1 %v24176_v44  ;;  %v24254_v44 = vld [vmem:[#allocation8 + $0xc30] ss:$40 sps:$4 sm:$0xff]  }
 0x3c9   :  { %11235 = vmatpush1.bf16.msra.mxu0 %v24179_v14  ;;  %11024 = vmatprep.subr.bf16.mxu1 %v24184_v45  ;;  %v24257_v14 = vld [vmem:[#allocation8 + $0x738] ss:$40 sps:$4 sm:$0xff]   ;;  %v24262_v45 = vld [vmem:[#allocation8 + $0xc84] ss:$40 sps:$4 sm:$0xff]  }
 0x3ca   :  { %11236 = vmatprep.subr.bf16.mxu0 %v24187_v48  ;;  %v24265_v48 = vld [vmem:[#allocation8 + $0x78c] ss:$40 sps:$4 sm:$0xff]  }
 0x3cc   :  { %11025 = vmatpush1.bf16.msra.mxu1 %v24182_v53  ;;  %v24260_v53 = vld [vmem:[#allocation8 + $0xc80] ss:$40 sps:$4 sm:$0xff]  }
 0x3cd   :  { %11237 = vmatpush1.bf16.msra.mxu0 %v24185_v18  ;;  %11026 = vmatprep.subr.bf16.mxu1 %v24190_v54  ;;  %v24263_v18 = vld [vmem:[#allocation8 + $0x788] ss:$40 sps:$4 sm:$0xff]   ;;  %v24268_v54 = vld [vmem:[#allocation8 + $0xcd4] ss:$40 sps:$4 sm:$0xff]  }
 0x3ce   :  { %11238 = vmatprep.subr.bf16.mxu0 %v24193_v55  ;;  %v24271_v55 = vld [vmem:[#allocation8 + $0x7dc] ss:$40 sps:$4 sm:$0xff]  }
 0x3d0   :  { %11027 = vmatpush1.bf16.msra.mxu1 %v24188_v57  ;;  %v24266_v57 = vld [vmem:[#allocation8 + $0xcd0] ss:$40 sps:$4 sm:$0xff]  }
 0x3d1   :  { %11239 = vmatpush1.bf16.msra.mxu0 %v24191_v59  ;;  %11028 = vmatprep.subr.bf16.mxu1 %v24198_v43  ;;  %v24269_v59 = vld [vmem:[#allocation8 + $0x7d8] ss:$40 sps:$4 sm:$0xff]   ;;  %v24274_v43 = vld [vmem:[#allocation8 + $0xd24] ss:$40 sps:$4 sm:$0xff]  }
 0x3d2   :  { %11240 = vmatprep.subr.bf16.mxu0 %v24201_v61  ;;  %v24277_v61 = vld [vmem:[#allocation8 + $0x82c] ss:$40 sps:$4 sm:$0xff]  }
 0x3d4   :  { %11029 = vmatpush1.bf16.msra.mxu1 %v24196_v1  ;;  %v24272_v1 = vld [vmem:[#allocation8 + $0xd20] ss:$40 sps:$4 sm:$0xff]  }
 0x3d5   :  { %11241 = vmatpush1.bf16.msra.mxu0 %v24199_v2  ;;  %11030 = vmatprep.subr.bf16.mxu1 %v24205_v32  ;;  %v24275_v2 = vld [vmem:[#allocation8 + $0x828] ss:$40 sps:$4 sm:$0xff]   ;;  %v24280_v32 = vld [vmem:[#allocation8 + $0xd74] ss:$40 sps:$4 sm:$0xff]  }
 0x3d6   :  { %11242 = vmatprep.subr.bf16.mxu0 %v24208_v3  ;;  %v24283_v3 = vld [vmem:[#allocation8 + $0x87c] ss:$40 sps:$4 sm:$0xff]  }
 0x3d8   :  { %11031 = vmatpush1.bf16.msra.mxu1 %v24203_v50  ;;  %v24278_v50 = vld [vmem:[#allocation8 + $0xd70] ss:$40 sps:$4 sm:$0xff]  }
 0x3d9   :  { %11243 = vmatpush1.bf16.msra.mxu0 %v24206_v5  ;;  %11053 = vmatprep.subr.bf16.mxu1 %v24213_v7  ;;  %v24281_v5 = vld [vmem:[#allocation8 + $0x878] ss:$40 sps:$4 sm:$0xff]   ;;  %v24286_v7 = vld [vmem:[#allocation8 + $0xdc4] ss:$40 sps:$4 sm:$0xff]  }
 0x3da   :  { %11265 = vmatprep.subr.bf16.mxu0 %v24216_v51  ;;  %v24289_v51 = vld [vmem:[#allocation8 + $0x8cc] ss:$40 sps:$4 sm:$0xff]  }
 0x3db   :  { %11033 = vmatmul.mubr.bf16.vlgmr.msra.gmra.mrb[12].mxu1 %v27031_v31 }
 0x3dc   :  { %11245 = vmatmul.mubr.bf16.vlgmr.msra.gmra.mrb[12].mxu0 %v27017_v49  ;;  %11054 = vmatpush1.bf16.msra.mxu1 %v24211_v8  ;;  %v24235_v49 = vld [vmem:[#allocation8 + $0x5fc] ss:$40 sps:$4 sm:$0xff]   ;;  %v24284_v8 = vld [vmem:[#allocation8 + $0xdc0] ss:$40 sps:$4 sm:$0xff]  }
 0x3dd   :  { %11266 = vmatpush1.bf16.msra.mxu0 %v24214_v10  ;;  %11055 = vmatprep.subr.bf16.mxu1 %v24220_v38  ;;  %v24287_v10 = vld [vmem:[#allocation8 + $0x8c8] ss:$40 sps:$4 sm:$0xff]   ;;  %v24292_v38 = vld [vmem:[#allocation8 + $0xe14] ss:$40 sps:$4 sm:$0xff]  }
 0x3de   :  { %11267 = vmatprep.subr.bf16.mxu0 %v24223_v62  ;;  %11042 = vmatprep.mubr.bf16.mxu1 %v27033_v52  ;;  %v24295_v62 = vld [vmem:[#allocation8 + $0x91c] ss:$40 sps:$4 sm:$0xff]  }
 0x3df   :  { %11254 = vmatprep.mubr.bf16.mxu0 %v27019_v56  ;;  %v24238_v56 = vld [vmem:[#allocation8 + $0xb44] ss:$40 sps:$4 sm:$0xff]  }
 0x3e0   :  { %11056 = vmatpush1.bf16.msra.mxu1 %v24218_v11  ;;  %v24290_v11 = vld [vmem:[#allocation8 + $0xe10] ss:$40 sps:$4 sm:$0xff]  }
 0x3e1   :  { %11268 = vmatpush1.bf16.msra.mxu0 %v24221_v13  ;;  %11057 = vmatprep.subr.bf16.mxu1 %v24226_v15  ;;  %v24293_v13 = vld [vmem:[#allocation8 + $0x918] ss:$40 sps:$4 sm:$0xff]   ;;  %v24300_v15 = vld [vmem:[#allocation8 + $0xe64] ss:$40 sps:$4 sm:$0xff]  }
 0x3e2   :  { %11269 = vmatprep.subr.bf16.mxu0 %v24229_v16  ;;  %v24303_v16 = vld [vmem:[#allocation8 + $0x96c] ss:$40 sps:$4 sm:$0xff]  }
 0x3e3   :  { %11043 = vmatmul.mubr.bf16.gmra.mrb[16].mxu1 %v27037_v47 }
 0x3e4   :  { %11255 = vmatmul.mubr.bf16.gmra.mrb[16].mxu0 %v27023_v63  ;;  %11058 = vmatpush1.bf16.msra.mxu1 %v24224_v17  ;;  %v24247_v63 = vld [vmem:[#allocation8 + $0x69c] ss:$40 sps:$4 sm:$0xff]   ;;  %v24298_v17 = vld [vmem:[#allocation8 + $0xe60] ss:$40 sps:$4 sm:$0xff]  }
 0x3e5   :  { %11270 = vmatpush1.bf16.msra.mxu0 %v24227_v19  ;;  %11059 = vmatprep.subr.bf16.mxu1 %v24232_v20  ;;  %v24301_v19 = vld [vmem:[#allocation8 + $0x968] ss:$40 sps:$4 sm:$0xff]   ;;  %v24307_v20 = vld [vmem:[#allocation8 + $0xeb4] ss:$40 sps:$4 sm:$0xff]  }
 0x3e6   :  { %11271 = vmatprep.subr.bf16.mxu0 %v24235_v49  ;;  %11085 = vmatprep.mubr.bf16.mxu1 %v27041_v34  ;;  %v24310_v49 = vld [vmem:[#allocation8 + $0x9bc] ss:$40 sps:$4 sm:$0xff]  }
 0x3e7   :  { %11297 = vmatprep.mubr.bf16.mxu0 %v27027_v4  ;;  %v24256_v4 = vld [vmem:[#allocation8 + $0xc34] ss:$40 sps:$4 sm:$0xff]  }
 0x3e8   :  { %11060 = vmatpush1.bf16.msra.mxu1 %v24230_v21  ;;  %v24305_v21 = vld [vmem:[#allocation8 + $0xeb0] ss:$40 sps:$4 sm:$0xff]  }
 0x3e9   :  { %11272 = vmatpush1.bf16.msra.mxu0 %v24233_v22  ;;  %11061 = vmatprep.subr.bf16.mxu1 %v24238_v56  ;;  %v24308_v22 = vld [vmem:[#allocation8 + $0x9b8] ss:$40 sps:$4 sm:$0xff]   ;;  %v24315_v56 = vld [vmem:[#allocation8 + $0xf04] ss:$40 sps:$4 sm:$0xff]  }
 0x3ea   :  { %11273 = vmatprep.subr.bf16.mxu0 %v24241_v27  ;;  %v24318_v27 = vld [vmem:[#allocation8 + $0xa0c] ss:$40 sps:$4 sm:$0xff]  }
 0x3ec   :  { %11062 = vmatpush1.bf16.msra.mxu1 %v24236_v6  ;;  %v27047_v6 = vld [vmem:[#allocation5 + $0x10] ss:$40 sps:$4 sm:$0xff]  }
 0x3ed   :  { %11274 = vmatpush1.bf16.msra.mxu0 %v24239_v30  ;;  %11063 = vmatprep.subr.bf16.mxu1 %v24244_v12  ;;  %v24313_v30 = vld [vmem:[#allocation8 + $0xf00] ss:$40 sps:$4 sm:$0xff]  }
 0x3ee   :  { %11275 = vmatprep.subr.bf16.mxu0 %v24247_v63  ;;  %v24316_v12 = vld [vmem:[#allocation8 + $0xa08] ss:$40 sps:$4 sm:$0xff]   ;;  %v24322_v63 = vld [vmem:[#allocation8 + $0xf54] ss:$40 sps:$4 sm:$0xff]  }
 0x3f0   :  { %11064 = vmatpush1.bf16.msra.mxu1 %v24242_v9  ;;  %v24325_v9 = vld [vmem:[#allocation8 + $0xa5c] ss:$40 sps:$4 sm:$0xff]  }
 0x3f1   :  { %11276 = vmatpush1.bf16.msra.mxu0 %v24245_v33  ;;  %11065 = vmatprep.subr.bf16.mxu1 %v24250_v35  ;;  %v24320_v33 = vld [vmem:[#allocation8 + $0xf50] ss:$40 sps:$4 sm:$0xff]   ;;  %v27049_v35 = vld [vmem:[#allocation5 + $0x64] ss:$40 sps:$4 sm:$0xff]  }
 0x3f2   :  { %11277 = vmatprep.subr.bf16.mxu0 %v24253_v36  ;;  %v24323_v36 = vld [vmem:[#allocation8 + $0xa58] ss:$40 sps:$4 sm:$0xff]  }
 0x3f4   :  { %11066 = vmatpush1.bf16.msra.mxu1 %v24248_v37  ;;  %v24328_v37 = vld [vmem:[#allocation8 + $0xfa4] ss:$40 sps:$4 sm:$0xff]  }
 0x3f5   :  { %11278 = vmatpush1.bf16.msra.mxu0 %v24251_v40  ;;  %11067 = vmatprep.subr.bf16.mxu1 %v24256_v4  ;;  %v24331_v40 = vld [vmem:[#allocation8 + $0xaac] ss:$40 sps:$4 sm:$0xff]   ;;  %v27053_v4 = vld [vmem:[#allocation5 + $0x60] ss:$40 sps:$4 sm:$0xff]  }
 0x3f6   :  { %11279 = vmatprep.subr.bf16.mxu0 %v24259_v41  ;;  %v24326_v41 = vld [vmem:[#allocation8 + $0xfa0] ss:$40 sps:$4 sm:$0xff]  }
 0x3f8   :  { %11068 = vmatpush1.bf16.msra.mxu1 %v24254_v44  ;;  %v24329_v44 = vld [vmem:[#allocation8 + $0xaa8] ss:$40 sps:$4 sm:$0xff]  }
 0x3f9   :  { %11280 = vmatpush1.bf16.msra.mxu0 %v24257_v14  ;;  %11069 = vmatprep.subr.bf16.mxu1 %v24262_v45  ;;  %v24337_v14 = vld [vmem:[#allocation8 + $0xafc] ss:$40 sps:$4 sm:$0xff]  }
 0x3fa   :  { %11281 = vmatprep.subr.bf16.mxu0 %v24265_v48  ;;  %v27057_v45 = vld [vmem:[#allocation5 + $0x1c] ss:$40 sps:$4 sm:$0xff]   ;;  %v24332_v48 = vld [vmem:[#allocation8 + $0xff0] ss:$40 sps:$4 sm:$0xff]  }
 0x3fc   :  { %11070 = vmatpush1.bf16.msra.mxu1 %v24260_v53  ;;  %v24335_v53 = vld [vmem:[#allocation8 + $0xaf8] ss:$40 sps:$4 sm:$0xff]  }
 0x3fd   :  { %11282 = vmatpush1.bf16.msra.mxu0 %v24263_v18  ;;  %11071 = vmatprep.subr.bf16.mxu1 %v24268_v54  ;;  %v24343_v18 = vld [vmem:[#allocation8 + $0xb4c] ss:$40 sps:$4 sm:$0xff]   ;;  %v24338_v54 = vld [vmem:[#allocation8 + $0x1040] ss:$40 sps:$4 sm:$0xff]  }
 0x3fe   :  { %11283 = vmatprep.subr.bf16.mxu0 %v24271_v55  ;;  %v24341_v55 = vld [vmem:[#allocation8 + $0xb48] ss:$40 sps:$4 sm:$0xff]  }
 0x400   :  { %11072 = vmatpush1.bf16.msra.mxu1 %v24266_v57  ;;  %v24346_v57 = vld [vmem:[#allocation8 + $0x1094] ss:$40 sps:$4 sm:$0xff]  }
 0x401   :  { %11284 = vmatpush1.bf16.msra.mxu0 %v24269_v59  ;;  %11073 = vmatprep.subr.bf16.mxu1 %v24274_v43  ;;  %v24344_v59 = vld [vmem:[#allocation8 + $0x1090] ss:$40 sps:$4 sm:$0xff]  }
 0x402   :  { %11285 = vmatprep.subr.bf16.mxu0 %v24277_v61  ;;  %v24347_v43 = vld [vmem:[#allocation8 + $0xb98] ss:$40 sps:$4 sm:$0xff]   ;;  %v24352_v61 = vld [vmem:[#allocation8 + $0x10e4] ss:$40 sps:$4 sm:$0xff]  }
 0x404   :  { %11074 = vmatpush1.bf16.msra.mxu1 %v24272_v1  ;;  %v24355_v1 = vld [vmem:[#allocation8 + $0xbec] ss:$40 sps:$4 sm:$0xff]  }
 0x405   :  { %11286 = vmatpush1.bf16.msra.mxu0 %v24275_v2  ;;  %11075 = vmatprep.subr.bf16.mxu1 %v24280_v32 }
 0x406   :  { %11287 = vmatprep.subr.bf16.mxu0 %v24283_v3  ;;  %v24350_v3 = vld [vmem:[#allocation8 + $0x10e0] ss:$40 sps:$4 sm:$0xff]  }
 0x408   :  { %11076 = vmatpush1.bf16.msra.mxu1 %v24278_v50  ;;  %v24353_v50 = vld [vmem:[#allocation8 + $0xbe8] ss:$40 sps:$4 sm:$0xff]  }
 0x409   :  { %11288 = vmatpush1.bf16.msra.mxu0 %v24281_v5  ;;  %11077 = vmatprep.subr.bf16.mxu1 %v24286_v7  ;;  %v24358_v7 = vld [vmem:[#allocation8 + $0x1134] ss:$40 sps:$4 sm:$0xff]  }
 0x40a   :  { %11289 = vmatprep.subr.bf16.mxu0 %v24289_v51  ;;  %v24361_v51 = vld [vmem:[#allocation8 + $0xc3c] ss:$40 sps:$4 sm:$0xff]  }
 0x40c   :  { %11078 = vmatpush1.bf16.msra.mxu1 %v24284_v8  ;;  %v24356_v8 = vld [vmem:[#allocation8 + $0x1130] ss:$40 sps:$4 sm:$0xff]  }
 0x40d   :  { %11290 = vmatpush1.bf16.msra.mxu0 %v24287_v10  ;;  %11079 = vmatprep.subr.bf16.mxu1 %v24292_v38  ;;  %v24359_v10 = vld [vmem:[#allocation8 + $0xc38] ss:$40 sps:$4 sm:$0xff]   ;;  %v24364_v38 = vld [vmem:[#allocation8 + $0x1184] ss:$40 sps:$4 sm:$0xff]  }
 0x40e   :  { %11291 = vmatprep.subr.bf16.mxu0 %v24295_v62  ;;  %v24367_v62 = vld [vmem:[#allocation8 + $0xc8c] ss:$40 sps:$4 sm:$0xff]  }
 0x410   :  { %11080 = vmatpush1.bf16.msra.mxu1 %v24290_v11  ;;  %v24362_v11 = vld [vmem:[#allocation8 + $0x1180] ss:$40 sps:$4 sm:$0xff]  }
 0x411   :  { %11292 = vmatpush1.bf16.msra.mxu0 %v24293_v13  ;;  %11081 = vmatprep.subr.bf16.mxu1 %v24300_v15  ;;  %v24365_v13 = vld [vmem:[#allocation8 + $0xc88] ss:$40 sps:$4 sm:$0xff]   ;;  %v24370_v15 = vld [vmem:[#allocation8 + $0x11d4] ss:$40 sps:$4 sm:$0xff]  }
 0x412   :  { %11293 = vmatprep.subr.bf16.mxu0 %v24303_v16  ;;  %v24373_v16 = vld [vmem:[#allocation8 + $0xcdc] ss:$40 sps:$4 sm:$0xff]  }
 0x414   :  { %11082 = vmatpush1.bf16.msra.mxu1 %v24298_v17  ;;  %v24368_v17 = vld [vmem:[#allocation8 + $0x11d0] ss:$40 sps:$4 sm:$0xff]  }
 0x415   :  { %11294 = vmatpush1.bf16.msra.mxu0 %v24301_v19  ;;  %11083 = vmatprep.subr.bf16.mxu1 %v24307_v20  ;;  %v24371_v19 = vld [vmem:[#allocation8 + $0xcd8] ss:$40 sps:$4 sm:$0xff]   ;;  %v24376_v20 = vld [vmem:[#allocation8 + $0x1224] ss:$40 sps:$4 sm:$0xff]  }
 0x416   :  { %11295 = vmatprep.subr.bf16.mxu0 %v24310_v49  ;;  %v24379_v49 = vld [vmem:[#allocation8 + $0xd2c] ss:$40 sps:$4 sm:$0xff]  }
 0x418   :  { %11084 = vmatpush1.bf16.msra.mxu1 %v24305_v21  ;;  %v24374_v21 = vld [vmem:[#allocation8 + $0x1220] ss:$40 sps:$4 sm:$0xff]  }
 0x419   :  { %11296 = vmatpush1.bf16.msra.mxu0 %v24308_v22  ;;  %11106 = vmatprep.subr.bf16.mxu1 %v24315_v56  ;;  %v24377_v22 = vld [vmem:[#allocation8 + $0xd28] ss:$40 sps:$4 sm:$0xff]   ;;  %v24382_v56 = vld [vmem:[#allocation8 + $0x1274] ss:$40 sps:$4 sm:$0xff]  }
 0x41a   :  { %11318 = vmatprep.subr.bf16.mxu0 %v24318_v27  ;;  %v24385_v27 = vld [vmem:[#allocation8 + $0xd7c] ss:$40 sps:$4 sm:$0xff]  }
 0x41b   :  { %11086 = vmatmul.mubr.bf16.vlgmr.msra.gmra.mrb[12].mxu1 %v27047_v6 }
 0x41c   :  { %11298 = vmatmul.mubr.bf16.vlgmr.msra.gmra.mrb[12].mxu0 %v27031_v31  ;;  %11107 = vmatpush1.bf16.msra.mxu1 %v24313_v30  ;;  %v24334_v31 = vld [vmem:[#allocation8 + $0xff4] ss:$40 sps:$4 sm:$0xff]   ;;  %v24380_v30 = vld [vmem:[#allocation8 + $0x1270] ss:$40 sps:$4 sm:$0xff]  }
 0x41d   :  { %11319 = vmatpush1.bf16.msra.mxu0 %v24316_v12  ;;  %11108 = vmatprep.subr.bf16.mxu1 %v24322_v63  ;;  %v24383_v12 = vld [vmem:[#allocation8 + $0xd78] ss:$40 sps:$4 sm:$0xff]   ;;  %v24388_v63 = vld [vmem:[#allocation8 + $0x12c4] ss:$40 sps:$4 sm:$0xff]  }
 0x41e   :  { %11320 = vmatprep.subr.bf16.mxu0 %v24325_v9  ;;  %11095 = vmatprep.mubr.bf16.mxu1 %v27049_v35  ;;  %v24391_v9 = vld [vmem:[#allocation8 + $0xdcc] ss:$40 sps:$4 sm:$0xff]  }
 0x41f   :  { %11307 = vmatprep.mubr.bf16.mxu0 %v27033_v52  ;;  %v24340_v52 = vld [vmem:[#allocation8 + $0x1044] ss:$40 sps:$4 sm:$0xff]  }
 0x420   :  { %11109 = vmatpush1.bf16.msra.mxu1 %v24320_v33  ;;  %v24386_v33 = vld [vmem:[#allocation8 + $0x12c0] ss:$40 sps:$4 sm:$0xff]  }
 0x421   :  { %11321 = vmatpush1.bf16.msra.mxu0 %v24323_v36  ;;  %11110 = vmatprep.subr.bf16.mxu1 %v24328_v37  ;;  %v24389_v36 = vld [vmem:[#allocation8 + $0xdc8] ss:$40 sps:$4 sm:$0xff]   ;;  %v24394_v37 = vld [vmem:[#allocation8 + $0x1314] ss:$40 sps:$4 sm:$0xff]  }
 0x422   :  { %11322 = vmatprep.subr.bf16.mxu0 %v24331_v40  ;;  %v24397_v40 = vld [vmem:[#allocation8 + $0xe1c] ss:$40 sps:$4 sm:$0xff]  }
 0x423   :  { %11096 = vmatmul.mubr.bf16.gmra.mrb[16].mxu1 %v27053_v4 }
 0x424   :  { %11308 = vmatmul.mubr.bf16.gmra.mrb[16].mxu0 %v27037_v47  ;;  %11111 = vmatpush1.bf16.msra.mxu1 %v24326_v41  ;;  %v24349_v47 = vld [vmem:[#allocation8 + $0xb9c] ss:$40 sps:$4 sm:$0xff]   ;;  %v24392_v41 = vld [vmem:[#allocation8 + $0x1310] ss:$40 sps:$4 sm:$0xff]  }
 0x425   :  { %11323 = vmatpush1.bf16.msra.mxu0 %v24329_v44  ;;  %11112 = vmatprep.subr.bf16.mxu1 %v24334_v31  ;;  %v24395_v44 = vld [vmem:[#allocation8 + $0xe18] ss:$40 sps:$4 sm:$0xff]   ;;  %v24402_v31 = vld [vmem:[#allocation8 + $0x1364] ss:$40 sps:$4 sm:$0xff]  }
 0x426   :  { %11324 = vmatprep.subr.bf16.mxu0 %v24337_v14  ;;  %11138 = vmatprep.mubr.bf16.mxu1 %v27057_v45  ;;  %v24405_v14 = vld [vmem:[#allocation8 + $0xe6c] ss:$40 sps:$4 sm:$0xff]  }
 0x427   :  { %11350 = vmatprep.mubr.bf16.mxu0 %v27041_v34 }
 0x428   :  { %11113 = vmatpush1.bf16.msra.mxu1 %v24332_v48  ;;  %v24400_v48 = vld [vmem:[#allocation8 + $0x1360] ss:$40 sps:$4 sm:$0xff]  }
 0x429   :  { %11325 = vmatpush1.bf16.msra.mxu0 %v24335_v53  ;;  %11114 = vmatprep.subr.bf16.mxu1 %v24340_v52  ;;  %v24403_v53 = vld [vmem:[#allocation8 + $0xe68] ss:$40 sps:$4 sm:$0xff]   ;;  %v24409_v52 = vld [vmem:[#allocation8 + $0x13b4] ss:$40 sps:$4 sm:$0xff]  }
 0x42a   :  { %11326 = vmatprep.subr.bf16.mxu0 %v24343_v18  ;;  %v24412_v18 = vld [vmem:[#allocation8 + $0xebc] ss:$40 sps:$4 sm:$0xff]  }
 0x42c   :  { %11115 = vmatpush1.bf16.msra.mxu1 %v24338_v54  ;;  %v24407_v54 = vld [vmem:[#allocation8 + $0x13b0] ss:$40 sps:$4 sm:$0xff]  }
 0x42d   :  { %11327 = vmatpush1.bf16.msra.mxu0 %v24341_v55  ;;  %11116 = vmatprep.subr.bf16.mxu1 %v24346_v57  ;;  %v24410_v55 = vld [vmem:[#allocation8 + $0xeb8] ss:$40 sps:$4 sm:$0xff]   ;;  %v24417_v57 = vld [vmem:[#allocation8 + $0x1404] ss:$40 sps:$4 sm:$0xff]  }
 0x42e   :  { %11328 = vmatprep.subr.bf16.mxu0 %v24349_v47  ;;  %v27063_v2 = vpop.f32.mrb[8].mxu1  ;;  %v24420_v47 = vld [vmem:[#allocation8 + $0xf0c] ss:$40 sps:$4 sm:$0xff]  }
 0x42f   :  { %v27065_v32 = vpop.f32.mrb[9].mxu1 }
 0x430   :  { %v27067_v34 = vpop.f32.mrb[10].mxu1  ;;  %11117 = vmatpush1.bf16.msra.mxu1 %v24344_v59  ;;  %v27071_v59 = vld [vmem:[#allocation5 + $0x18] ss:$40 sps:$4 sm:$0xff]  }
 0x431   :  { %27866 = vst [vmem:[#allocation25_spill] sm:$0xff] %v27067_v34  ;;  %11329 = vmatpush1.bf16.msra.mxu0 %v24347_v43  ;;  %v27069_v5 = vpop.f32.mrb[11].mxu1  ;;  %11118 = vmatprep.subr.bf16.mxu1 %v24352_v61  ;;  %v24415_v43 = vld [vmem:[#allocation8 + $0x1400] ss:$40 sps:$4 sm:$0xff]   ;;  %v25439_v34 = vld [vmem:[#allocation8 + $0x16f0] ss:$40 sps:$4 sm:$0xff]  }
 0x432   :  { %27867 = vst [vmem:[#allocation26_spill] sm:$0xff] %v27069_v5  ;;  %11330 = vmatprep.subr.bf16.mxu0 %v24355_v1  ;;  %v24418_v61 = vld [vmem:[#allocation8 + $0xf08] ss:$40 sps:$4 sm:$0xff]   ;;  %v24424_v1 = vld [vmem:[#allocation8 + $0x1454] ss:$40 sps:$4 sm:$0xff]  }
 0x433   :  { %v25442_v5 = vld [vmem:[#allocation10 + $0x11d0] ss:$40 sps:$4 sm:$0xff]  }
 0x434   :  { %11119 = vmatpush1.bf16.msra.mxu1 %v24350_v3  ;;  %v24427_v3 = vld [vmem:[#allocation8 + $0xf5c] ss:$40 sps:$4 sm:$0xff]  }
 0x435   :  { %11331 = vmatpush1.bf16.msra.mxu0 %v24353_v50  ;;  %11120 = vmatprep.subr.bf16.mxu1 %v24358_v7  ;;  %v24422_v50 = vld [vmem:[#allocation8 + $0x1450] ss:$40 sps:$4 sm:$0xff]   ;;  %v27073_v7 = vld [vmem:[#allocation5 + $0x6c] ss:$40 sps:$4 sm:$0xff]  }
 0x436   :  { %11332 = vmatprep.subr.bf16.mxu0 %v24361_v51  ;;  %v24425_v51 = vld [vmem:[#allocation8 + $0xf58] ss:$40 sps:$4 sm:$0xff]  }
 0x438   :  { %11121 = vmatpush1.bf16.msra.mxu1 %v24356_v8  ;;  %v24430_v8 = vld [vmem:[#allocation8 + $0x14a4] ss:$40 sps:$4 sm:$0xff]  }
 0x439   :  { %11333 = vmatpush1.bf16.msra.mxu0 %v24359_v10  ;;  %11122 = vmatprep.subr.bf16.mxu1 %v24364_v38  ;;  %v24433_v10 = vld [vmem:[#allocation8 + $0xfac] ss:$40 sps:$4 sm:$0xff]   ;;  %v27077_v38 = vld [vmem:[#allocation5 + $0x68] ss:$40 sps:$4 sm:$0xff]  }
 0x43a   :  { %11334 = vmatprep.subr.bf16.mxu0 %v24367_v62  ;;  %v24428_v62 = vld [vmem:[#allocation8 + $0x14a0] ss:$40 sps:$4 sm:$0xff]  }
 0x43c   :  { %11123 = vmatpush1.bf16.msra.mxu1 %v24362_v11  ;;  %v24431_v11 = vld [vmem:[#allocation8 + $0xfa8] ss:$40 sps:$4 sm:$0xff]  }
 0x43d   :  { %11335 = vmatpush1.bf16.msra.mxu0 %v24365_v13  ;;  %11124 = vmatprep.subr.bf16.mxu1 %v24370_v15  ;;  %v24439_v13 = vld [vmem:[#allocation8 + $0xffc] ss:$40 sps:$4 sm:$0xff]  }
 0x43e   :  { %11336 = vmatprep.subr.bf16.mxu0 %v24373_v16  ;;  %v27081_v15 = vld [vmem:[#allocation5 + $0x24] ss:$40 sps:$4 sm:$0xff]   ;;  %v24434_v16 = vld [vmem:[#allocation8 + $0x14f0] ss:$40 sps:$4 sm:$0xff]  }
 0x440   :  { %11125 = vmatpush1.bf16.msra.mxu1 %v24368_v17  ;;  %v24437_v17 = vld [vmem:[#allocation8 + $0xff8] ss:$40 sps:$4 sm:$0xff]  }
 0x441   :  { %11337 = vmatpush1.bf16.msra.mxu0 %v24371_v19  ;;  %11126 = vmatprep.subr.bf16.mxu1 %v24376_v20  ;;  %v24442_v19 = vld [vmem:[#allocation8 + $0x1544] ss:$40 sps:$4 sm:$0xff]   ;;  %v24440_v20 = vld [vmem:[#allocation8 + $0x1540] ss:$40 sps:$4 sm:$0xff]  }
 0x442   :  { %11338 = vmatprep.subr.bf16.mxu0 %v24379_v49  ;;  %v24443_v49 = vld [vmem:[#allocation8 + $0x1048] ss:$40 sps:$4 sm:$0xff]  }
 0x444   :  { %11127 = vmatpush1.bf16.msra.mxu1 %v24374_v21  ;;  %v24448_v21 = vld [vmem:[#allocation8 + $0x1594] ss:$40 sps:$4 sm:$0xff]  }
 0x445   :  { %11339 = vmatpush1.bf16.msra.mxu0 %v24377_v22  ;;  %11128 = vmatprep.subr.bf16.mxu1 %v24382_v56  ;;  %v24446_v22 = vld [vmem:[#allocation8 + $0x1590] ss:$40 sps:$4 sm:$0xff]  }
 0x446   :  { %11340 = vmatprep.subr.bf16.mxu0 %v24385_v27  ;;  %v24449_v56 = vld [vmem:[#allocation8 + $0x1098] ss:$40 sps:$4 sm:$0xff]   ;;  %v24454_v27 = vld [vmem:[#allocation8 + $0x15e4] ss:$40 sps:$4 sm:$0xff]  }
 0x448   :  { %11129 = vmatpush1.bf16.msra.mxu1 %v24380_v30  ;;  %v24457_v30 = vld [vmem:[#allocation8 + $0x10ec] ss:$40 sps:$4 sm:$0xff]  }
 0x449   :  { %11341 = vmatpush1.bf16.msra.mxu0 %v24383_v12  ;;  %11130 = vmatprep.subr.bf16.mxu1 %v24388_v63 }
 0x44a   :  { %11342 = vmatprep.subr.bf16.mxu0 %v24391_v9  ;;  %v24452_v9 = vld [vmem:[#allocation8 + $0x15e0] ss:$40 sps:$4 sm:$0xff]  }
 0x44c   :  { %11131 = vmatpush1.bf16.msra.mxu1 %v24386_v33  ;;  %v24455_v33 = vld [vmem:[#allocation8 + $0x10e8] ss:$40 sps:$4 sm:$0xff]  }
 0x44d   :  { %11343 = vmatpush1.bf16.msra.mxu0 %v24389_v36  ;;  %11132 = vmatprep.subr.bf16.mxu1 %v24394_v37  ;;  %v24460_v37 = vld [vmem:[#allocation8 + $0x1634] ss:$40 sps:$4 sm:$0xff]  }
 0x44e   :  { %11344 = vmatprep.subr.bf16.mxu0 %v24397_v40  ;;  %v24463_v40 = vld [vmem:[#allocation8 + $0x113c] ss:$40 sps:$4 sm:$0xff]  }
 0x450   :  { %11133 = vmatpush1.bf16.msra.mxu1 %v24392_v41  ;;  %v24458_v41 = vld [vmem:[#allocation8 + $0x1630] ss:$40 sps:$4 sm:$0xff]  }
 0x451   :  { %11345 = vmatpush1.bf16.msra.mxu0 %v24395_v44  ;;  %11134 = vmatprep.subr.bf16.mxu1 %v24402_v31  ;;  %v24461_v44 = vld [vmem:[#allocation8 + $0x1138] ss:$40 sps:$4 sm:$0xff]   ;;  %v24466_v31 = vld [vmem:[#allocation8 + $0x1684] ss:$40 sps:$4 sm:$0xff]  }
 0x452   :  { %11346 = vmatprep.subr.bf16.mxu0 %v24405_v14  ;;  %v24469_v14 = vld [vmem:[#allocation8 + $0x118c] ss:$40 sps:$4 sm:$0xff]  }
 0x454   :  { %11135 = vmatpush1.bf16.msra.mxu1 %v24400_v48  ;;  %v24464_v48 = vld [vmem:[#allocation8 + $0x1680] ss:$40 sps:$4 sm:$0xff]  }
 0x455   :  { %11347 = vmatpush1.bf16.msra.mxu0 %v24403_v53  ;;  %11136 = vmatprep.subr.bf16.mxu1 %v24409_v52  ;;  %v24467_v53 = vld [vmem:[#allocation8 + $0x1188] ss:$40 sps:$4 sm:$0xff]   ;;  %v24472_v52 = vld [vmem:[#allocation8 + $0x16d4] ss:$40 sps:$4 sm:$0xff]  }
 0x456   :  { %11348 = vmatprep.subr.bf16.mxu0 %v24412_v18  ;;  %v24475_v18 = vld [vmem:[#allocation8 + $0x11dc] ss:$40 sps:$4 sm:$0xff]  }
 0x458   :  { %11137 = vmatpush1.bf16.msra.mxu1 %v24407_v54  ;;  %v24470_v54 = vld [vmem:[#allocation8 + $0x16d0] ss:$40 sps:$4 sm:$0xff]  }
 0x459   :  { %11349 = vmatpush1.bf16.msra.mxu0 %v24410_v55  ;;  %11159 = vmatprep.subr.bf16.mxu1 %v24417_v57  ;;  %v24473_v55 = vld [vmem:[#allocation8 + $0x11d8] ss:$40 sps:$4 sm:$0xff]   ;;  %v24478_v57 = vld [vmem:[#allocation8 + $0x1724] ss:$40 sps:$4 sm:$0xff]  }
 0x45a   :  { %11371 = vmatprep.subr.bf16.mxu0 %v24420_v47  ;;  %v24481_v47 = vld [vmem:[#allocation8 + $0x122c] ss:$40 sps:$4 sm:$0xff]  }
 0x45b   :  { %11139 = vmatmul.mubr.bf16.vlgmr.msra.gmra.mrb[12].mxu1 %v27071_v59 }
 0x45c   :  { %11351 = vmatmul.mubr.bf16.vlgmr.msra.gmra.mrb[12].mxu0 %v27047_v6  ;;  %11160 = vmatpush1.bf16.msra.mxu1 %v24415_v43  ;;  %v24436_v6 = vld [vmem:[#allocation8 + $0x14f4] ss:$40 sps:$4 sm:$0xff]   ;;  %v24476_v43 = vld [vmem:[#allocation8 + $0x1720] ss:$40 sps:$4 sm:$0xff]  }
 0x45d   :  { %11372 = vmatpush1.bf16.msra.mxu0 %v24418_v61  ;;  %11161 = vmatprep.subr.bf16.mxu1 %v24424_v1  ;;  %v24479_v61 = vld [vmem:[#allocation8 + $0x1228] ss:$40 sps:$4 sm:$0xff]   ;;  %v24484_v1 = vld [vmem:[#allocation8 + $0x1774] ss:$40 sps:$4 sm:$0xff]  }
 0x45e   :  { %11373 = vmatprep.subr.bf16.mxu0 %v24427_v3  ;;  %11148 = vmatprep.mubr.bf16.mxu1 %v27073_v7  ;;  %v24487_v3 = vld [vmem:[#allocation8 + $0x127c] ss:$40 sps:$4 sm:$0xff]  }
 0x45f   :  { %11360 = vmatprep.mubr.bf16.mxu0 %v27049_v35  ;;  %v24445_v35 = vld [vmem:[#allocation8 + $0x104c] ss:$40 sps:$4 sm:$0xff]  }
 0x460   :  { %11162 = vmatpush1.bf16.msra.mxu1 %v24422_v50  ;;  %v24482_v50 = vld [vmem:[#allocation8 + $0x1770] ss:$40 sps:$4 sm:$0xff]  }
 0x461   :  { %11374 = vmatpush1.bf16.msra.mxu0 %v24425_v51  ;;  %11163 = vmatprep.subr.bf16.mxu1 %v24430_v8  ;;  %v24485_v51 = vld [vmem:[#allocation8 + $0x1278] ss:$40 sps:$4 sm:$0xff]   ;;  %v24490_v8 = vld [vmem:[#allocation8 + $0x17c4] ss:$40 sps:$4 sm:$0xff]  }
 0x462   :  { %11375 = vmatprep.subr.bf16.mxu0 %v24433_v10  ;;  %v24493_v10 = vld [vmem:[#allocation8 + $0x12cc] ss:$40 sps:$4 sm:$0xff]  }
 0x463   :  { %11149 = vmatmul.mubr.bf16.gmra.mrb[16].mxu1 %v27077_v38 }
 0x464   :  { %11361 = vmatmul.mubr.bf16.gmra.mrb[16].mxu0 %v27053_v4  ;;  %11164 = vmatpush1.bf16.msra.mxu1 %v24428_v62  ;;  %v24451_v4 = vld [vmem:[#allocation8 + $0x109c] ss:$40 sps:$4 sm:$0xff]   ;;  %v24488_v62 = vld [vmem:[#allocation8 + $0x17c0] ss:$40 sps:$4 sm:$0xff]  }
 0x465   :  { %11376 = vmatpush1.bf16.msra.mxu0 %v24431_v11  ;;  %11165 = vmatprep.subr.bf16.mxu1 %v24436_v6  ;;  %v24491_v11 = vld [vmem:[#allocation8 + $0x12c8] ss:$40 sps:$4 sm:$0xff]   ;;  %v24496_v6 = vld [vmem:[#allocation8 + $0x1814] ss:$40 sps:$4 sm:$0xff]  }
 0x466   :  { %11377 = vmatprep.subr.bf16.mxu0 %v24439_v13  ;;  %11191 = vmatprep.mubr.bf16.mxu1 %v27081_v15  ;;  %v24499_v13 = vld [vmem:[#allocation8 + $0x131c] ss:$40 sps:$4 sm:$0xff]  }
 0x467   :  { %11403 = vmatprep.mubr.bf16.mxu0 %v27057_v45 }
 0x468   :  { %11166 = vmatpush1.bf16.msra.mxu1 %v24434_v16  ;;  %v24494_v16 = vld [vmem:[#allocation8 + $0x1810] ss:$40 sps:$4 sm:$0xff]  }
 0x469   :  { %11378 = vmatpush1.bf16.msra.mxu0 %v24437_v17  ;;  %11167 = vmatprep.subr.bf16.mxu1 %v24442_v19  ;;  %v24497_v17 = vld [vmem:[#allocation8 + $0x1318] ss:$40 sps:$4 sm:$0xff]   ;;  %v24505_v19 = vld [vmem:[#allocation8 + $0x1864] ss:$40 sps:$4 sm:$0xff]  }
 0x46a   :  { %11379 = vmatprep.subr.bf16.mxu0 %v24445_v35  ;;  %v24508_v35 = vld [vmem:[#allocation8 + $0x136c] ss:$40 sps:$4 sm:$0xff]  }
 0x46c   :  { %11168 = vmatpush1.bf16.msra.mxu1 %v24440_v20  ;;  %v24503_v20 = vld [vmem:[#allocation8 + $0x1860] ss:$40 sps:$4 sm:$0xff]  }
 0x46d   :  { %11380 = vmatpush1.bf16.msra.mxu0 %v24443_v49  ;;  %11169 = vmatprep.subr.bf16.mxu1 %v24448_v21  ;;  %v24506_v49 = vld [vmem:[#allocation8 + $0x1368] ss:$40 sps:$4 sm:$0xff]   ;;  %v24511_v21 = vld [vmem:[#allocation8 + $0x18b4] ss:$40 sps:$4 sm:$0xff]  }
 0x46e   :  { %11381 = vmatprep.subr.bf16.mxu0 %v24451_v4  ;;  %v24514_v4 = vld [vmem:[#allocation8 + $0x13bc] ss:$40 sps:$4 sm:$0xff]  }
 0x46f   :  { %v27087_v12 = vpop.f32.mrb[8].mxu0 }
 0x470   :  { %v27089_v63 = vpop.f32.mrb[9].mxu0  ;;  %11170 = vmatpush1.bf16.msra.mxu1 %v24446_v22  ;;  %v24509_v22 = vld [vmem:[#allocation8 + $0x18b0] ss:$40 sps:$4 sm:$0xff]  }
 0x471   :  { %v27091_v45 = vpop.f32.mrb[10].mxu0  ;;  %11382 = vmatpush1.bf16.msra.mxu0 %v24449_v56  ;;  %11171 = vmatprep.subr.bf16.mxu1 %v24454_v27  ;;  %v24512_v56 = vld [vmem:[#allocation8 + $0x13b8] ss:$40 sps:$4 sm:$0xff]  }
 0x472   :  { %27868 = vst [vmem:[#allocation27_spill] sm:$0xff] %v27091_v45  ;;  %v27093_v36 = vpop.f32.mrb[11].mxu0  ;;  %11383 = vmatprep.subr.bf16.mxu0 %v24457_v30  ;;  %v27095_v27 = vld [vmem:[#allocation5 + $0x20] ss:$40 sps:$4 sm:$0xff]   ;;  %v24520_v30 = vld [vmem:[#allocation8 + $0x140c] ss:$40 sps:$4 sm:$0xff]  }
 0x473   :  { %27869 = vst [vmem:[#allocation28_spill] sm:$0xff] %v27093_v36 }
 0x474   :  { %11172 = vmatpush1.bf16.msra.mxu1 %v24452_v9  ;;  %v24523_v9 = vld [vmem:[#allocation8 + $0x14] ss:$40 sps:$4 sm:$0xff]  }
 0x475   :  { %11384 = vmatpush1.bf16.msra.mxu0 %v24455_v33  ;;  %11173 = vmatprep.subr.bf16.mxu1 %v24460_v37  ;;  %v24518_v33 = vld [vmem:[#allocation8 + $0x1408] ss:$40 sps:$4 sm:$0xff]  }
 0x476   :  { %11385 = vmatprep.subr.bf16.mxu0 %v24463_v40  ;;  %v24521_v37 = vld [vmem:[#allocation8 + $0x10] ss:$40 sps:$4 sm:$0xff]   ;;  %v24526_v40 = vld [vmem:[#allocation8 + $0x145c] ss:$40 sps:$4 sm:$0xff]  }
 0x478   :  { %11174 = vmatpush1.bf16.msra.mxu1 %v24458_v41  ;;  %v24529_v41 = vld [vmem:[#allocation8 + $0x64] ss:$40 sps:$4 sm:$0xff]  }
 0x479   :  { %11386 = vmatpush1.bf16.msra.mxu0 %v24461_v44  ;;  %11175 = vmatprep.subr.bf16.mxu1 %v24466_v31  ;;  %v27097_v44 = vld [vmem:[#allocation5 + $0x74] ss:$40 sps:$4 sm:$0xff]   ;;  %v24524_v31 = vld [vmem:[#allocation8 + $0x1458] ss:$40 sps:$4 sm:$0xff]  }
 0x47a   :  { %11387 = vmatprep.subr.bf16.mxu0 %v24469_v14  ;;  %v24527_v14 = vld [vmem:[#allocation8 + $0x60] ss:$40 sps:$4 sm:$0xff]  }
 0x47c   :  { %11176 = vmatpush1.bf16.msra.mxu1 %v24464_v48  ;;  %v27101_v48 = vld [vmem:[#allocation5 + $0x70] ss:$40 sps:$4 sm:$0xff]  }
 0x47d   :  { %11388 = vmatpush1.bf16.msra.mxu0 %v24467_v53  ;;  %11177 = vmatprep.subr.bf16.mxu1 %v24472_v52  ;;  %v24535_v53 = vld [vmem:[#allocation8 + $0x14ac] ss:$40 sps:$4 sm:$0xff]  }
 0x47e   :  { %11389 = vmatprep.subr.bf16.mxu0 %v24475_v18  ;;  %v24538_v52 = vld [vmem:[#allocation8 + $0xb4] ss:$40 sps:$4 sm:$0xff]   ;;  %v24533_v18 = vld [vmem:[#allocation8 + $0x14a8] ss:$40 sps:$4 sm:$0xff]  }
 0x480   :  { %11178 = vmatpush1.bf16.msra.mxu1 %v24470_v54  ;;  %v24536_v54 = vld [vmem:[#allocation8 + $0xb0] ss:$40 sps:$4 sm:$0xff]  }
 0x481   :  { %11390 = vmatpush1.bf16.msra.mxu0 %v24473_v55  ;;  %11179 = vmatprep.subr.bf16.mxu1 %v24478_v57  ;;  %v24544_v55 = vld [vmem:[#allocation8 + $0x104] ss:$40 sps:$4 sm:$0xff]   ;;  %v24539_v57 = vld [vmem:[#allocation8 + $0x14f8] ss:$40 sps:$4 sm:$0xff]  }
 0x482   :  { %11391 = vmatprep.subr.bf16.mxu0 %v24481_v47  ;;  %v24542_v47 = vld [vmem:[#allocation8 + $0x100] ss:$40 sps:$4 sm:$0xff]  }
 0x484   :  { %11180 = vmatpush1.bf16.msra.mxu1 %v24476_v43  ;;  %v24547_v43 = vld [vmem:[#allocation8 + $0x154c] ss:$40 sps:$4 sm:$0xff]  }
 0x485   :  { %11392 = vmatpush1.bf16.msra.mxu0 %v24479_v61  ;;  %11181 = vmatprep.subr.bf16.mxu1 %v24484_v1  ;;  %v27108_v61 = vld [vmem:[#allocation5 + $0x4] ss:$40 sps:$4 sm:$0xff]   ;;  %v24545_v1 = vld [vmem:[#allocation8 + $0x1548] ss:$40 sps:$4 sm:$0xff]  }
 0x486   :  { %11393 = vmatprep.subr.bf16.mxu0 %v24487_v3  ;;  %v24548_v3 = vld [vmem:[#allocation8 + $0x150] ss:$40 sps:$4 sm:$0xff]  }
 0x488   :  { %11182 = vmatpush1.bf16.msra.mxu1 %v24482_v50  ;;  %v24556_v50 = vld [vmem:[#allocation8 + $0x1a4] ss:$40 sps:$4 sm:$0xff]  }
 0x489   :  { %11394 = vmatpush1.bf16.msra.mxu0 %v24485_v51  ;;  %11183 = vmatprep.subr.bf16.mxu1 %v24490_v8  ;;  %v24551_v51 = vld [vmem:[#allocation8 + $0x1598] ss:$40 sps:$4 sm:$0xff]  }
 0x48a   :  { %11395 = vmatprep.subr.bf16.mxu0 %v24493_v10  ;;  %v24554_v8 = vld [vmem:[#allocation8 + $0x1a0] ss:$40 sps:$4 sm:$0xff]   ;;  %v24559_v10 = vld [vmem:[#allocation8 + $0x15ec] ss:$40 sps:$4 sm:$0xff]  }
 0x48c   :  { %11184 = vmatpush1.bf16.msra.mxu1 %v24488_v62  ;;  %v24557_v62 = vld [vmem:[#allocation8 + $0x15e8] ss:$40 sps:$4 sm:$0xff]  }
 0x48d   :  { %11396 = vmatpush1.bf16.msra.mxu0 %v24491_v11  ;;  %11185 = vmatprep.subr.bf16.mxu1 %v24496_v6  ;;  %v24560_v11 = vld [vmem:[#allocation8 + $0x1f0] ss:$40 sps:$4 sm:$0xff]   ;;  %v24565_v6 = vld [vmem:[#allocation8 + $0x163c] ss:$40 sps:$4 sm:$0xff]  }
 0x48e   :  { %11397 = vmatprep.subr.bf16.mxu0 %v24499_v13  ;;  %v24568_v13 = vld [vmem:[#allocation8 + $0x244] ss:$40 sps:$4 sm:$0xff]  }
 0x490   :  { %11186 = vmatpush1.bf16.msra.mxu1 %v24494_v16  ;;  %v24563_v16 = vld [vmem:[#allocation8 + $0x1638] ss:$40 sps:$4 sm:$0xff]  }
 0x491   :  { %11398 = vmatpush1.bf16.msra.mxu0 %v24497_v17  ;;  %11187 = vmatprep.subr.bf16.mxu1 %v24505_v19  ;;  %v24566_v17 = vld [vmem:[#allocation8 + $0x240] ss:$40 sps:$4 sm:$0xff]   ;;  %v24571_v19 = vld [vmem:[#allocation8 + $0x168c] ss:$40 sps:$4 sm:$0xff]  }
 0x492   :  { %11399 = vmatprep.subr.bf16.mxu0 %v24508_v35  ;;  %v24574_v35 = vld [vmem:[#allocation8 + $0x294] ss:$40 sps:$4 sm:$0xff]  }
 0x494   :  { %11188 = vmatpush1.bf16.msra.mxu1 %v24503_v20  ;;  %v24569_v20 = vld [vmem:[#allocation8 + $0x1688] ss:$40 sps:$4 sm:$0xff]  }
 0x495   :  { %11400 = vmatpush1.bf16.msra.mxu0 %v24506_v49  ;;  %11189 = vmatprep.subr.bf16.mxu1 %v24511_v21  ;;  %v24572_v49 = vld [vmem:[#allocation8 + $0x290] ss:$40 sps:$4 sm:$0xff]   ;;  %v24577_v21 = vld [vmem:[#allocation8 + $0x16dc] ss:$40 sps:$4 sm:$0xff]  }
 0x496   :  { %11401 = vmatprep.subr.bf16.mxu0 %v24514_v4  ;;  %v24580_v4 = vld [vmem:[#allocation8 + $0x2e4] ss:$40 sps:$4 sm:$0xff]  }
 0x498   :  { %11190 = vmatpush1.bf16.msra.mxu1 %v24509_v22  ;;  %v24575_v22 = vld [vmem:[#allocation8 + $0x16d8] ss:$40 sps:$4 sm:$0xff]  }
 0x499   :  { %11402 = vmatpush1.bf16.msra.mxu0 %v24512_v56  ;;  %11477 = vmatprep.subr.bf16.mxu1 %v24523_v9  ;;  %v24578_v56 = vld [vmem:[#allocation8 + $0x2e0] ss:$40 sps:$4 sm:$0xff]   ;;  %v24586_v9 = vld [vmem:[#allocation8 + $0x334] ss:$40 sps:$4 sm:$0xff]  }
 0x49a   :  { %11424 = vmatprep.subr.bf16.mxu0 %v24520_v30  ;;  %v24583_v30 = vld [vmem:[#allocation8 + $0x172c] ss:$40 sps:$4 sm:$0xff]  }
 0x49b   :  { %11192 = vmatmul.mubr.bf16.vlgmr.msra.gmra.mrb[12].mxu1 %v27095_v27 }
 0x49c   :  { %11404 = vmatmul.mubr.bf16.vlgmr.msra.gmra.mrb[12].mxu0 %v27071_v59  ;;  %11478 = vmatpush1.bf16.msra.mxu1 %v24521_v37  ;;  %v24541_v59 = vld [vmem:[#allocation8 + $0x14fc] ss:$40 sps:$4 sm:$0xff]   ;;  %v24584_v37 = vld [vmem:[#allocation8 + $0x330] ss:$40 sps:$4 sm:$0xff]  }
 0x49d   :  { %11425 = vmatpush1.bf16.msra.mxu0 %v24518_v33  ;;  %11479 = vmatprep.subr.bf16.mxu1 %v24529_v41  ;;  %v24581_v33 = vld [vmem:[#allocation8 + $0x1728] ss:$40 sps:$4 sm:$0xff]   ;;  %v24592_v41 = vld [vmem:[#allocation8 + $0x384] ss:$40 sps:$4 sm:$0xff]  }
 0x49e   :  { %11426 = vmatprep.subr.bf16.mxu0 %v24526_v40  ;;  %11201 = vmatprep.mubr.bf16.mxu1 %v27097_v44  ;;  %v24589_v40 = vld [vmem:[#allocation8 + $0x177c] ss:$40 sps:$4 sm:$0xff]  }
 0x49f   :  { %11413 = vmatprep.mubr.bf16.mxu0 %v27073_v7  ;;  %v24550_v7 = vld [vmem:[#allocation8 + $0x154] ss:$40 sps:$4 sm:$0xff]  }
 0x4a0   :  { %11480 = vmatpush1.bf16.msra.mxu1 %v24527_v14  ;;  %v24590_v14 = vld [vmem:[#allocation8 + $0x380] ss:$40 sps:$4 sm:$0xff]  }
 0x4a1   :  { %11427 = vmatpush1.bf16.msra.mxu0 %v24524_v31  ;;  %11481 = vmatprep.subr.bf16.mxu1 %v24538_v52  ;;  %v24587_v31 = vld [vmem:[#allocation8 + $0x1778] ss:$40 sps:$4 sm:$0xff]   ;;  %v24598_v52 = vld [vmem:[#allocation8 + $0x3d4] ss:$40 sps:$4 sm:$0xff]  }
 0x4a2   :  { %11428 = vmatprep.subr.bf16.mxu0 %v24535_v53  ;;  %v24595_v53 = vld [vmem:[#allocation8 + $0x17cc] ss:$40 sps:$4 sm:$0xff]  }
 0x4a3   :  { %11202 = vmatmul.mubr.bf16.gmra.mrb[16].mxu1 %v27101_v48 }
 0x4a4   :  { %11414 = vmatmul.mubr.bf16.gmra.mrb[16].mxu0 %v27077_v38  ;;  %11482 = vmatpush1.bf16.msra.mxu1 %v24536_v54  ;;  %v24553_v38 = vld [vmem:[#allocation8 + $0x159c] ss:$40 sps:$4 sm:$0xff]   ;;  %v24596_v54 = vld [vmem:[#allocation8 + $0x3d0] ss:$40 sps:$4 sm:$0xff]  }
 0x4a5   :  { %11429 = vmatpush1.bf16.msra.mxu0 %v24533_v18  ;;  %11483 = vmatprep.subr.bf16.mxu1 %v24544_v55  ;;  %v24593_v18 = vld [vmem:[#allocation8 + $0x17c8] ss:$40 sps:$4 sm:$0xff]   ;;  %v24604_v55 = vld [vmem:[#allocation8 + $0x424] ss:$40 sps:$4 sm:$0xff]  }
 0x4a6   :  { %11430 = vmatprep.subr.bf16.mxu0 %v24541_v59  ;;  %11456 = vmatprep.mubr.bf16.mxu0 %v27081_v15  ;;  %v24562_v15 = vld [vmem:[#allocation8 + $0x1f4] ss:$40 sps:$4 sm:$0xff]  }
 0x4a7   :  { %11509 = vmatprep.mubr.bf16.mxu1 %v27108_v61  ;;  %v24601_v59 = vld [vmem:[#allocation8 + $0x181c] ss:$40 sps:$4 sm:$0xff]  }
 0x4a8   :  { %11484 = vmatpush1.bf16.msra.mxu1 %v24542_v47  ;;  %v24602_v47 = vld [vmem:[#allocation8 + $0x420] ss:$40 sps:$4 sm:$0xff]  }
 0x4a9   :  { %11431 = vmatpush1.bf16.msra.mxu0 %v24539_v57  ;;  %11485 = vmatprep.subr.bf16.mxu1 %v24550_v7  ;;  %v24599_v57 = vld [vmem:[#allocation8 + $0x1818] ss:$40 sps:$4 sm:$0xff]   ;;  %v24610_v7 = vld [vmem:[#allocation8 + $0x474] ss:$40 sps:$4 sm:$0xff]  }
 0x4aa   :  { %11432 = vmatprep.subr.bf16.mxu0 %v24547_v43  ;;  %v24607_v43 = vld [vmem:[#allocation8 + $0x186c] ss:$40 sps:$4 sm:$0xff]  }
 0x4ac   :  { %11486 = vmatpush1.bf16.msra.mxu1 %v24548_v3  ;;  %v24608_v3 = vld [vmem:[#allocation8 + $0x470] ss:$40 sps:$4 sm:$0xff]  }
 0x4ad   :  { %11433 = vmatpush1.bf16.msra.mxu0 %v24545_v1  ;;  %11487 = vmatprep.subr.bf16.mxu1 %v24556_v50  ;;  %v24605_v1 = vld [vmem:[#allocation8 + $0x1868] ss:$40 sps:$4 sm:$0xff]   ;;  %v24616_v50 = vld [vmem:[#allocation8 + $0x4c4] ss:$40 sps:$4 sm:$0xff]  }
 0x4ae   :  { %11434 = vmatprep.subr.bf16.mxu0 %v24553_v38  ;;  %v24613_v38 = vld [vmem:[#allocation8 + $0x18bc] ss:$40 sps:$4 sm:$0xff]  }
 0x4b0   :  { %11488 = vmatpush1.bf16.msra.mxu1 %v24554_v8  ;;  %v24614_v8 = vld [vmem:[#allocation8 + $0x4c0] ss:$40 sps:$4 sm:$0xff]  }
 0x4b1   :  { %11435 = vmatpush1.bf16.msra.mxu0 %v24551_v51  ;;  %11489 = vmatprep.subr.bf16.mxu1 %v24562_v15  ;;  %v24611_v51 = vld [vmem:[#allocation8 + $0x18b8] ss:$40 sps:$4 sm:$0xff]   ;;  %v24622_v15 = vld [vmem:[#allocation8 + $0x1c] ss:$40 sps:$4 sm:$0xff]  }
 0x4b2   :  { %11436 = vmatprep.subr.bf16.mxu0 %v24559_v10  ;;  %v24619_v10 = vld [vmem:[#allocation8 + $0x514] ss:$40 sps:$4 sm:$0xff]  }
 0x4b4   :  { %11490 = vmatpush1.bf16.msra.mxu1 %v24560_v11  ;;  %v24620_v11 = vld [vmem:[#allocation8 + $0x18] ss:$40 sps:$4 sm:$0xff]  }
 0x4b5   :  { %11437 = vmatpush1.bf16.msra.mxu0 %v24557_v62  ;;  %11491 = vmatprep.subr.bf16.mxu1 %v24568_v13  ;;  %v24617_v62 = vld [vmem:[#allocation8 + $0x510] ss:$40 sps:$4 sm:$0xff]   ;;  %v24628_v13 = vld [vmem:[#allocation8 + $0x6c] ss:$40 sps:$4 sm:$0xff]  }
 0x4b6   :  { %11438 = vmatprep.subr.bf16.mxu0 %v24565_v6  ;;  %v24625_v6 = vld [vmem:[#allocation8 + $0x564] ss:$40 sps:$4 sm:$0xff]  }
 0x4b8   :  { %11492 = vmatpush1.bf16.msra.mxu1 %v24566_v17  ;;  %v24623_v17 = vld [vmem:[#allocation8 + $0x560] ss:$40 sps:$4 sm:$0xff]  }
 0x4b9   :  { %11439 = vmatpush1.bf16.msra.mxu0 %v24563_v16  ;;  %11493 = vmatprep.subr.bf16.mxu1 %v24574_v35  ;;  %v27112_v16 = vld [vmem:[#allocation5] ss:$40 sps:$4 sm:$0xff]   ;;  %v24631_v35 = vld [vmem:[#allocation8 + $0x5b4] ss:$40 sps:$4 sm:$0xff]  }
 0x4ba   :  { %11440 = vmatprep.subr.bf16.mxu0 %v24571_v19  ;;  %v24626_v19 = vld [vmem:[#allocation8 + $0x68] ss:$40 sps:$4 sm:$0xff]  }
 0x4bc   :  { %11494 = vmatpush1.bf16.msra.mxu1 %v24572_v49  ;;  %v27116_v49 = vld [vmem:[#allocation5 + $0x54] ss:$40 sps:$4 sm:$0xff]  }
 0x4bd   :  { %11441 = vmatpush1.bf16.msra.mxu0 %v24569_v20  ;;  %11495 = vmatprep.subr.bf16.mxu1 %v24580_v4  ;;  %v24634_v20 = vld [vmem:[#allocation8 + $0xbc] ss:$40 sps:$4 sm:$0xff]  }
 0x4be   :  { %11442 = vmatprep.subr.bf16.mxu0 %v24577_v21  ;;  %v24632_v21 = vld [vmem:[#allocation8 + $0xb8] ss:$40 sps:$4 sm:$0xff]   ;;  %v24637_v4 = vld [vmem:[#allocation8 + $0x604] ss:$40 sps:$4 sm:$0xff]  }
 0x4c0   :  { %11496 = vmatpush1.bf16.msra.mxu1 %v24578_v56  ;;  %v27120_v56 = vld [vmem:[#allocation5 + $0x50] ss:$40 sps:$4 sm:$0xff]  }
 0x4c1   :  { %11443 = vmatpush1.bf16.msra.mxu0 %v24575_v22  ;;  %11497 = vmatprep.subr.bf16.mxu1 %v24586_v9  ;;  %v24640_v22 = vld [vmem:[#allocation8 + $0x10c] ss:$40 sps:$4 sm:$0xff]  }
 0x4c2   :  { %11444 = vmatprep.subr.bf16.mxu0 %v24583_v30  ;;  %v24638_v30 = vld [vmem:[#allocation8 + $0x108] ss:$40 sps:$4 sm:$0xff]   ;;  %v24643_v9 = vld [vmem:[#allocation8 + $0x654] ss:$40 sps:$4 sm:$0xff]  }
 0x4c4   :  { %11498 = vmatpush1.bf16.msra.mxu1 %v24584_v37  ;;  %v27123_v37 = vld [vmem:[#allocation5 + $0xc] ss:$40 sps:$4 sm:$0xff]  }
 0x4c5   :  { %11445 = vmatpush1.bf16.msra.mxu0 %v24581_v33  ;;  %11499 = vmatprep.subr.bf16.mxu1 %v24592_v41  ;;  %v24646_v33 = vld [vmem:[#allocation8 + $0x15c] ss:$40 sps:$4 sm:$0xff]  }
 0x4c6   :  { %11446 = vmatprep.subr.bf16.mxu0 %v24589_v40  ;;  %v24644_v40 = vld [vmem:[#allocation8 + $0x158] ss:$40 sps:$4 sm:$0xff]   ;;  %v24649_v41 = vld [vmem:[#allocation8 + $0x6a4] ss:$40 sps:$4 sm:$0xff]  }
 0x4c8   :  { %11500 = vmatpush1.bf16.msra.mxu1 %v24590_v14  ;;  %v24647_v14 = vld [vmem:[#allocation8 + $0x6a0] ss:$40 sps:$4 sm:$0xff]  }
 0x4c9   :  { %11447 = vmatpush1.bf16.msra.mxu0 %v24587_v31  ;;  %11501 = vmatprep.subr.bf16.mxu1 %v24598_v52  ;;  %v24652_v31 = vld [vmem:[#allocation8 + $0x1ac] ss:$40 sps:$4 sm:$0xff]  }
 0x4ca   :  { %11448 = vmatprep.subr.bf16.mxu0 %v24595_v53  ;;  %v24650_v53 = vld [vmem:[#allocation8 + $0x1a8] ss:$40 sps:$4 sm:$0xff]   ;;  %v24655_v52 = vld [vmem:[#allocation8 + $0x6f4] ss:$40 sps:$4 sm:$0xff]  }
 0x4cc   :  { %11502 = vmatpush1.bf16.msra.mxu1 %v24596_v54  ;;  %v24653_v54 = vld [vmem:[#allocation8 + $0x6f0] ss:$40 sps:$4 sm:$0xff]  }
 0x4cd   :  { %11449 = vmatpush1.bf16.msra.mxu0 %v24593_v18  ;;  %11503 = vmatprep.subr.bf16.mxu1 %v24604_v55  ;;  %v24658_v18 = vld [vmem:[#allocation8 + $0x1fc] ss:$40 sps:$4 sm:$0xff]   ;;  %v24664_v55 = vld [vmem:[#allocation8 + $0x24c] ss:$40 sps:$4 sm:$0xff]  }
 0x4ce   :  { %11450 = vmatprep.subr.bf16.mxu0 %v24601_v59  ;;  %v24656_v59 = vld [vmem:[#allocation8 + $0x1f8] ss:$40 sps:$4 sm:$0xff]  }
 0x4d0   :  { %11504 = vmatpush1.bf16.msra.mxu1 %v24602_v47  ;;  %v24662_v47 = vld [vmem:[#allocation8 + $0x248] ss:$40 sps:$4 sm:$0xff]  }
 0x4d1   :  { %11451 = vmatpush1.bf16.msra.mxu0 %v24599_v57  ;;  %11505 = vmatprep.subr.bf16.mxu1 %v24610_v7  ;;  %v24659_v57 = vld [vmem:[#allocation8 + $0x740] ss:$40 sps:$4 sm:$0xff]   ;;  %v24670_v7 = vld [vmem:[#allocation8 + $0x29c] ss:$40 sps:$4 sm:$0xff]  }
 0x4d2   :  { %11452 = vmatprep.subr.bf16.mxu0 %v24607_v43  ;;  %v24667_v43 = vld [vmem:[#allocation8 + $0x794] ss:$40 sps:$4 sm:$0xff]  }
 0x4d4   :  { %11506 = vmatpush1.bf16.msra.mxu1 %v24608_v3  ;;  %v24668_v3 = vld [vmem:[#allocation8 + $0x298] ss:$40 sps:$4 sm:$0xff]  }
 0x4d5   :  { %11453 = vmatpush1.bf16.msra.mxu0 %v24605_v1  ;;  %11507 = vmatprep.subr.bf16.mxu1 %v24616_v50  ;;  %v24665_v1 = vld [vmem:[#allocation8 + $0x790] ss:$40 sps:$4 sm:$0xff]   ;;  %v24676_v50 = vld [vmem:[#allocation8 + $0x2ec] ss:$40 sps:$4 sm:$0xff]  }
 0x4d6   :  { %11454 = vmatprep.subr.bf16.mxu0 %v24613_v38  ;;  %v24673_v38 = vld [vmem:[#allocation8 + $0x7e4] ss:$40 sps:$4 sm:$0xff]  }
 0x4d8   :  { %11508 = vmatpush1.bf16.msra.mxu1 %v24614_v8  ;;  %v24674_v8 = vld [vmem:[#allocation8 + $0x2e8] ss:$40 sps:$4 sm:$0xff]  }
 0x4d9   :  { %11455 = vmatpush1.bf16.msra.mxu0 %v24611_v51  ;;  %11530 = vmatprep.subr.bf16.mxu1 %v24619_v10  ;;  %v24671_v51 = vld [vmem:[#allocation8 + $0x7e0] ss:$40 sps:$4 sm:$0xff]   ;;  %v24679_v10 = vld [vmem:[#allocation8 + $0x834] ss:$40 sps:$4 sm:$0xff]  }
 0x4da   :  { %11742 = vmatprep.subr.bf16.mxu0 %v24622_v15  ;;  %v24682_v15 = vld [vmem:[#allocation8 + $0x33c] ss:$40 sps:$4 sm:$0xff]  }
 0x4db   :  { %11510 = vmatmul.mubr.bf16.vlgmr.msra.gmra.mrb[20].mxu1 %v27112_v16 }
 0x4dc   :  { %11457 = vmatmul.mubr.bf16.vlgmr.msra.gmra.mrb[12].mxu0 %v27095_v27  ;;  %11531 = vmatpush1.bf16.msra.mxu1 %v24617_v62  ;;  %v24629_v27 = vld [vmem:[#allocation8 + $0x5b0] ss:$40 sps:$4 sm:$0xff]  }
 0x4dd   :  { %11743 = vmatpush1.bf16.msra.mxu0 %v24620_v11  ;;  %11532 = vmatprep.subr.bf16.mxu1 %v24625_v6  ;;  %v24677_v62 = vld [vmem:[#allocation8 + $0x830] ss:$40 sps:$4 sm:$0xff]   ;;  %v24685_v6 = vld [vmem:[#allocation8 + $0x884] ss:$40 sps:$4 sm:$0xff]  }
 0x4de   :  { %11744 = vmatprep.subr.bf16.mxu0 %v24628_v13  ;;  %11466 = vmatprep.mubr.bf16.mxu0 %v27097_v44  ;;  %v24635_v44 = vld [vmem:[#allocation8 + $0x600] ss:$40 sps:$4 sm:$0xff]   ;;  %v24688_v13 = vld [vmem:[#allocation8 + $0x38c] ss:$40 sps:$4 sm:$0xff]  }
 0x4df   :  { %11519 = vmatprep.mubr.bf16.mxu1 %v27116_v49  ;;  %v24680_v11 = vld [vmem:[#allocation8 + $0x338] ss:$40 sps:$4 sm:$0xff]  }
 0x4e0   :  { %11533 = vmatpush1.bf16.msra.mxu1 %v24623_v17  ;;  %v24683_v17 = vld [vmem:[#allocation8 + $0x880] ss:$40 sps:$4 sm:$0xff]  }
 0x4e1   :  { %11745 = vmatpush1.bf16.msra.mxu0 %v24626_v19  ;;  %11534 = vmatprep.subr.bf16.mxu1 %v24631_v35  ;;  %v24686_v19 = vld [vmem:[#allocation8 + $0x388] ss:$40 sps:$4 sm:$0xff]   ;;  %v24691_v35 = vld [vmem:[#allocation8 + $0x8d4] ss:$40 sps:$4 sm:$0xff]  }
 0x4e2   :  { %11746 = vmatprep.subr.bf16.mxu0 %v24634_v20  ;;  %v24694_v20 = vld [vmem:[#allocation8 + $0x3dc] ss:$40 sps:$4 sm:$0xff]  }
 0x4e3   :  { %11520 = vmatmul.mubr.bf16.gmra.mrb[24].mxu1 %v27120_v56 }
 0x4e4   :  { %11467 = vmatmul.mubr.bf16.gmra.mrb[16].mxu0 %v27101_v48  ;;  %11535 = vmatpush1.bf16.msra.mxu1 %v24629_v27  ;;  %v24641_v48 = vld [vmem:[#allocation8 + $0x650] ss:$40 sps:$4 sm:$0xff]  }
 0x4e5   :  { %11747 = vmatpush1.bf16.msra.mxu0 %v24632_v21  ;;  %11536 = vmatprep.subr.bf16.mxu1 %v24637_v4  ;;  %v24689_v27 = vld [vmem:[#allocation8 + $0x8d0] ss:$40 sps:$4 sm:$0xff]   ;;  %v24697_v4 = vld [vmem:[#allocation8 + $0x924] ss:$40 sps:$4 sm:$0xff]  }
 0x4e6   :  { %11748 = vmatprep.subr.bf16.mxu0 %v24640_v22  ;;  %11562 = vmatprep.mubr.bf16.mxu1 %v27123_v37  ;;  %v24692_v21 = vld [vmem:[#allocation8 + $0x3d8] ss:$40 sps:$4 sm:$0xff]   ;;  %v24700_v22 = vld [vmem:[#allocation8 + $0x42c] ss:$40 sps:$4 sm:$0xff]  }
 0x4e7   :  { %11774 = vmatprep.mubr.bf16.mxu0 %v27108_v61  ;;  %v24661_v61 = vld [vmem:[#allocation8 + $0x744] ss:$40 sps:$4 sm:$0xff]  }
 0x4e8   :  { %11537 = vmatpush1.bf16.msra.mxu1 %v24635_v44  ;;  %v24695_v44 = vld [vmem:[#allocation8 + $0x920] ss:$40 sps:$4 sm:$0xff]  }
 0x4e9   :  { %11749 = vmatpush1.bf16.msra.mxu0 %v24638_v30  ;;  %11538 = vmatprep.subr.bf16.mxu1 %v24643_v9  ;;  %v24698_v30 = vld [vmem:[#allocation8 + $0x428] ss:$40 sps:$4 sm:$0xff]   ;;  %v24703_v9 = vld [vmem:[#allocation8 + $0x974] ss:$40 sps:$4 sm:$0xff]  }
 0x4ea   :  { %11750 = vmatprep.subr.bf16.mxu0 %v24646_v33  ;;  %v24706_v33 = vld [vmem:[#allocation8 + $0x47c] ss:$40 sps:$4 sm:$0xff]  }
 0x4ec   :  { %11539 = vmatpush1.bf16.msra.mxu1 %v24641_v48  ;;  %v24701_v48 = vld [vmem:[#allocation8 + $0x970] ss:$40 sps:$4 sm:$0xff]  }
 0x4ed   :  { %11751 = vmatpush1.bf16.msra.mxu0 %v24644_v40  ;;  %11540 = vmatprep.subr.bf16.mxu1 %v24649_v41  ;;  %v24704_v40 = vld [vmem:[#allocation8 + $0x478] ss:$40 sps:$4 sm:$0xff]   ;;  %v24709_v41 = vld [vmem:[#allocation8 + $0x9c4] ss:$40 sps:$4 sm:$0xff]  }
 0x4ee   :  { %11752 = vmatprep.subr.bf16.mxu0 %v24652_v31  ;;  %v24712_v31 = vld [vmem:[#allocation8 + $0x4cc] ss:$40 sps:$4 sm:$0xff]  }
 0x4f0   :  { %11541 = vmatpush1.bf16.msra.mxu1 %v24647_v14  ;;  %v24707_v14 = vld [vmem:[#allocation8 + $0x9c0] ss:$40 sps:$4 sm:$0xff]  }
 0x4f1   :  { %11753 = vmatpush1.bf16.msra.mxu0 %v24650_v53  ;;  %11542 = vmatprep.subr.bf16.mxu1 %v24655_v52  ;;  %v24710_v53 = vld [vmem:[#allocation8 + $0x4c8] ss:$40 sps:$4 sm:$0xff]   ;;  %v24715_v52 = vld [vmem:[#allocation8 + $0xa14] ss:$40 sps:$4 sm:$0xff]  }
 0x4f2   :  { %11754 = vmatprep.subr.bf16.mxu0 %v24658_v18  ;;  %v24718_v18 = vld [vmem:[#allocation8 + $0x51c] ss:$40 sps:$4 sm:$0xff]  }
 0x4f4   :  { %11543 = vmatpush1.bf16.msra.mxu1 %v24653_v54  ;;  %v24713_v54 = vld [vmem:[#allocation8 + $0xa10] ss:$40 sps:$4 sm:$0xff]  }
 0x4f5   :  { %11755 = vmatpush1.bf16.msra.mxu0 %v24656_v59  ;;  %11544 = vmatprep.subr.bf16.mxu1 %v24661_v61  ;;  %v24716_v59 = vld [vmem:[#allocation8 + $0x518] ss:$40 sps:$4 sm:$0xff]   ;;  %v24721_v61 = vld [vmem:[#allocation8 + $0xa64] ss:$40 sps:$4 sm:$0xff]  }
 0x4f6   :  { %11756 = vmatprep.subr.bf16.mxu0 %v24664_v55  ;;  %v24724_v55 = vld [vmem:[#allocation8 + $0x56c] ss:$40 sps:$4 sm:$0xff]  }
 0x4f8   :  { %11545 = vmatpush1.bf16.msra.mxu1 %v24659_v57  ;;  %v27127_v57 = vld [vmem:[#allocation5 + $0x8] ss:$40 sps:$4 sm:$0xff]  }
 0x4f9   :  { %11757 = vmatpush1.bf16.msra.mxu0 %v24662_v47  ;;  %11546 = vmatprep.subr.bf16.mxu1 %v24667_v43  ;;  %v24719_v47 = vld [vmem:[#allocation8 + $0xa60] ss:$40 sps:$4 sm:$0xff]  }
 0x4fa   :  { %11758 = vmatprep.subr.bf16.mxu0 %v24670_v7  ;;  %v24722_v43 = vld [vmem:[#allocation8 + $0x568] ss:$40 sps:$4 sm:$0xff]   ;;  %v24727_v7 = vld [vmem:[#allocation8 + $0xab4] ss:$40 sps:$4 sm:$0xff]  }
 0x4fc   :  { %11547 = vmatpush1.bf16.msra.mxu1 %v24665_v1  ;;  %v24730_v1 = vld [vmem:[#allocation8 + $0x5bc] ss:$40 sps:$4 sm:$0xff]  }
 0x4fd   :  { %11759 = vmatpush1.bf16.msra.mxu0 %v24668_v3  ;;  %11548 = vmatprep.subr.bf16.mxu1 %v24673_v38  ;;  %v27131_v3 = vld [vmem:[#allocation5 + $0x5c] ss:$40 sps:$4 sm:$0xff]   ;;  %v24725_v38 = vld [vmem:[#allocation8 + $0xab0] ss:$40 sps:$4 sm:$0xff]  }
 0x4fe   :  { %11760 = vmatprep.subr.bf16.mxu0 %v24676_v50  ;;  %v24728_v50 = vld [vmem:[#allocation8 + $0x5b8] ss:$40 sps:$4 sm:$0xff]  }
 0x500   :  { %11549 = vmatpush1.bf16.msra.mxu1 %v24671_v51  ;;  %v24736_v51 = vld [vmem:[#allocation8 + $0x60c] ss:$40 sps:$4 sm:$0xff]  }
 0x501   :  { %11761 = vmatpush1.bf16.msra.mxu0 %v24674_v8  ;;  %11550 = vmatprep.subr.bf16.mxu1 %v24679_v10  ;;  %v27135_v8 = vld [vmem:[#allocation5 + $0x58] ss:$40 sps:$4 sm:$0xff]  }
 0x502   :  { %11762 = vmatprep.subr.bf16.mxu0 %v24682_v15  ;;  %v24731_v10 = vld [vmem:[#allocation8 + $0xb00] ss:$40 sps:$4 sm:$0xff]  }
 0x503   :  { %v24734_v15 = vld [vmem:[#allocation8 + $0x608] ss:$40 sps:$4 sm:$0xff]  }
 0x504   :  { %11551 = vmatpush1.bf16.msra.mxu1 %v24677_v62  ;;  %v24742_v62 = vld [vmem:[#allocation8 + $0x65c] ss:$40 sps:$4 sm:$0xff]  }
 0x505   :  { %11763 = vmatpush1.bf16.msra.mxu0 %v24680_v11  ;;  %11552 = vmatprep.subr.bf16.mxu1 %v24685_v6  ;;  %v27139_v11 = vld [vmem:[#allocation5 + $0x14] ss:$40 sps:$4 sm:$0xff]   ;;  %v24737_v6 = vld [vmem:[#allocation8 + $0xb50] ss:$40 sps:$4 sm:$0xff]  }
 0x506   :  { %11764 = vmatprep.subr.bf16.mxu0 %v24688_v13  ;;  %v24740_v13 = vld [vmem:[#allocation8 + $0x658] ss:$40 sps:$4 sm:$0xff]  }
 0x508   :  { %11553 = vmatpush1.bf16.msra.mxu1 %v24683_v17  ;;  %v24748_v17 = vld [vmem:[#allocation8 + $0x6ac] ss:$40 sps:$4 sm:$0xff]  }
 0x509   :  { %11765 = vmatpush1.bf16.msra.mxu0 %v24686_v19  ;;  %11554 = vmatprep.subr.bf16.mxu1 %v24691_v35  ;;  %v24743_v19 = vld [vmem:[#allocation8 + $0xba0] ss:$40 sps:$4 sm:$0xff]  }
 0x50a   :  { %11766 = vmatprep.subr.bf16.mxu0 %v24694_v20  ;;  %v24746_v35 = vld [vmem:[#allocation8 + $0x6a8] ss:$40 sps:$4 sm:$0xff]   ;;  %v24751_v20 = vld [vmem:[#allocation8 + $0xbf4] ss:$40 sps:$4 sm:$0xff]  }
 0x50c   :  { %11555 = vmatpush1.bf16.msra.mxu1 %v24689_v27  ;;  %v24754_v27 = vld [vmem:[#allocation8 + $0x6fc] ss:$40 sps:$4 sm:$0xff]  }
 0x50d   :  { %11767 = vmatpush1.bf16.msra.mxu0 %v24692_v21  ;;  %11556 = vmatprep.subr.bf16.mxu1 %v24697_v4  ;;  %v24749_v21 = vld [vmem:[#allocation8 + $0xbf0] ss:$40 sps:$4 sm:$0xff]  }
 0x50e   :  { %11768 = vmatprep.subr.bf16.mxu0 %v24700_v22  ;;  %v24752_v4 = vld [vmem:[#allocation8 + $0x6f8] ss:$40 sps:$4 sm:$0xff]   ;;  %v24760_v22 = vld [vmem:[#allocation8 + $0x74c] ss:$40 sps:$4 sm:$0xff]  }
 0x510   :  { %11557 = vmatpush1.bf16.msra.mxu1 %v24695_v44  ;;  %v24755_v44 = vld [vmem:[#allocation8 + $0xc40] ss:$40 sps:$4 sm:$0xff]  }
 0x511   :  { %11769 = vmatpush1.bf16.msra.mxu0 %v24698_v30  ;;  %11558 = vmatprep.subr.bf16.mxu1 %v24703_v9  ;;  %v24758_v30 = vld [vmem:[#allocation8 + $0x748] ss:$40 sps:$4 sm:$0xff]   ;;  %v24763_v9 = vld [vmem:[#allocation8 + $0xc94] ss:$40 sps:$4 sm:$0xff]  }
 0x512   :  { %11770 = vmatprep.subr.bf16.mxu0 %v24706_v33  ;;  %v24766_v33 = vld [vmem:[#allocation8 + $0x79c] ss:$40 sps:$4 sm:$0xff]  }
 0x514   :  { %11559 = vmatpush1.bf16.msra.mxu1 %v24701_v48  ;;  %v24761_v48 = vld [vmem:[#allocation8 + $0xc90] ss:$40 sps:$4 sm:$0xff]  }
 0x515   :  { %11771 = vmatpush1.bf16.msra.mxu0 %v24704_v40  ;;  %11560 = vmatprep.subr.bf16.mxu1 %v24709_v41  ;;  %v24764_v40 = vld [vmem:[#allocation8 + $0x798] ss:$40 sps:$4 sm:$0xff]   ;;  %v24769_v41 = vld [vmem:[#allocation8 + $0xce4] ss:$40 sps:$4 sm:$0xff]  }
 0x516   :  { %11772 = vmatprep.subr.bf16.mxu0 %v24712_v31  ;;  %v24772_v31 = vld [vmem:[#allocation8 + $0x7ec] ss:$40 sps:$4 sm:$0xff]  }
 0x518   :  { %11561 = vmatpush1.bf16.msra.mxu1 %v24707_v14  ;;  %v24767_v14 = vld [vmem:[#allocation8 + $0xce0] ss:$40 sps:$4 sm:$0xff]  }
 0x519   :  { %11773 = vmatpush1.bf16.msra.mxu0 %v24710_v53  ;;  %11583 = vmatprep.subr.bf16.mxu1 %v24715_v52  ;;  %v24770_v53 = vld [vmem:[#allocation8 + $0x7e8] ss:$40 sps:$4 sm:$0xff]   ;;  %v24775_v52 = vld [vmem:[#allocation8 + $0xd34] ss:$40 sps:$4 sm:$0xff]  }
 0x51a   :  { %11795 = vmatprep.subr.bf16.mxu0 %v24718_v18  ;;  %v24778_v18 = vld [vmem:[#allocation8 + $0x83c] ss:$40 sps:$4 sm:$0xff]  }
 0x51b   :  { %11563 = vmatmul.mubr.bf16.vlgmr.msra.gmra.mrb[20].mxu1 %v27127_v57 }
 0x51c   :  { %11775 = vmatmul.mubr.bf16.vlgmr.msra.gmra.mrb[20].mxu0 %v27112_v16  ;;  %11584 = vmatpush1.bf16.msra.mxu1 %v24713_v54  ;;  %v24733_v16 = vld [vmem:[#allocation8 + $0xb04] ss:$40 sps:$4 sm:$0xff]   ;;  %v24773_v54 = vld [vmem:[#allocation8 + $0xd30] ss:$40 sps:$4 sm:$0xff]  }
 0x51d   :  { %11796 = vmatpush1.bf16.msra.mxu0 %v24716_v59  ;;  %11585 = vmatprep.subr.bf16.mxu1 %v24721_v61  ;;  %v24776_v59 = vld [vmem:[#allocation8 + $0x838] ss:$40 sps:$4 sm:$0xff]   ;;  %v24781_v61 = vld [vmem:[#allocation8 + $0xd84] ss:$40 sps:$4 sm:$0xff]  }
 0x51e   :  { %11797 = vmatprep.subr.bf16.mxu0 %v24724_v55  ;;  %11572 = vmatprep.mubr.bf16.mxu1 %v27131_v3  ;;  %v24784_v55 = vld [vmem:[#allocation8 + $0x88c] ss:$40 sps:$4 sm:$0xff]  }
 0x51f   :  { %11784 = vmatprep.mubr.bf16.mxu0 %v27116_v49  ;;  %v24739_v49 = vld [vmem:[#allocation8 + $0xb54] ss:$40 sps:$4 sm:$0xff]  }
 0x520   :  { %11586 = vmatpush1.bf16.msra.mxu1 %v24719_v47  ;;  %v24779_v47 = vld [vmem:[#allocation8 + $0xd80] ss:$40 sps:$4 sm:$0xff]  }
 0x521   :  { %11798 = vmatpush1.bf16.msra.mxu0 %v24722_v43  ;;  %11587 = vmatprep.subr.bf16.mxu1 %v24727_v7  ;;  %v24782_v43 = vld [vmem:[#allocation8 + $0x888] ss:$40 sps:$4 sm:$0xff]   ;;  %v24787_v7 = vld [vmem:[#allocation8 + $0xdd4] ss:$40 sps:$4 sm:$0xff]  }
 0x522   :  { %11799 = vmatprep.subr.bf16.mxu0 %v24730_v1  ;;  %v24790_v1 = vld [vmem:[#allocation8 + $0x8dc] ss:$40 sps:$4 sm:$0xff]  }
 0x523   :  { %11573 = vmatmul.mubr.bf16.gmra.mrb[24].mxu1 %v27135_v8 }
 0x524   :  { %11785 = vmatmul.mubr.bf16.gmra.mrb[24].mxu0 %v27120_v56  ;;  %11588 = vmatpush1.bf16.msra.mxu1 %v24725_v38  ;;  %v24745_v56 = vld [vmem:[#allocation8 + $0xba4] ss:$40 sps:$4 sm:$0xff]   ;;  %v24785_v38 = vld [vmem:[#allocation8 + $0xdd0] ss:$40 sps:$4 sm:$0xff]  }
 0x525   :  { %11800 = vmatpush1.bf16.msra.mxu0 %v24728_v50  ;;  %11589 = vmatprep.subr.bf16.mxu1 %v24733_v16  ;;  %v24788_v50 = vld [vmem:[#allocation8 + $0x8d8] ss:$40 sps:$4 sm:$0xff]   ;;  %v24793_v16 = vld [vmem:[#allocation8 + $0xe24] ss:$40 sps:$4 sm:$0xff]  }
 0x526   :  { %11801 = vmatprep.subr.bf16.mxu0 %v24736_v51  ;;  %11615 = vmatprep.mubr.bf16.mxu1 %v27139_v11  ;;  %v24796_v51 = vld [vmem:[#allocation8 + $0x92c] ss:$40 sps:$4 sm:$0xff]  }
 0x527   :  { %11827 = vmatprep.mubr.bf16.mxu0 %v27123_v37  ;;  %v24757_v37 = vld [vmem:[#allocation8 + $0xc44] ss:$40 sps:$4 sm:$0xff]  }
 0x528   :  { %11590 = vmatpush1.bf16.msra.mxu1 %v24731_v10  ;;  %v24791_v10 = vld [vmem:[#allocation8 + $0xe20] ss:$40 sps:$4 sm:$0xff]  }
 0x529   :  { %11802 = vmatpush1.bf16.msra.mxu0 %v24734_v15  ;;  %11591 = vmatprep.subr.bf16.mxu1 %v24739_v49  ;;  %v24794_v15 = vld [vmem:[#allocation8 + $0x928] ss:$40 sps:$4 sm:$0xff]   ;;  %v24799_v49 = vld [vmem:[#allocation8 + $0xe74] ss:$40 sps:$4 sm:$0xff]  }
 0x52a   :  { %11803 = vmatprep.subr.bf16.mxu0 %v24742_v62  ;;  %v24802_v62 = vld [vmem:[#allocation8 + $0x97c] ss:$40 sps:$4 sm:$0xff]  }
 0x52c   :  { %11592 = vmatpush1.bf16.msra.mxu1 %v24737_v6  ;;  %v24797_v6 = vld [vmem:[#allocation8 + $0xe70] ss:$40 sps:$4 sm:$0xff]  }
 0x52d   :  { %11804 = vmatpush1.bf16.msra.mxu0 %v24740_v13  ;;  %11593 = vmatprep.subr.bf16.mxu1 %v24745_v56  ;;  %v24800_v13 = vld [vmem:[#allocation8 + $0x978] ss:$40 sps:$4 sm:$0xff]   ;;  %v24805_v56 = vld [vmem:[#allocation8 + $0xec4] ss:$40 sps:$4 sm:$0xff]  }
 0x52e   :  { %11805 = vmatprep.subr.bf16.mxu0 %v24748_v17  ;;  %v24808_v17 = vld [vmem:[#allocation8 + $0x9cc] ss:$40 sps:$4 sm:$0xff]  }
 0x530   :  { %11594 = vmatpush1.bf16.msra.mxu1 %v24743_v19  ;;  %v24803_v19 = vld [vmem:[#allocation8 + $0xec0] ss:$40 sps:$4 sm:$0xff]  }
 0x531   :  { %11806 = vmatpush1.bf16.msra.mxu0 %v24746_v35  ;;  %11595 = vmatprep.subr.bf16.mxu1 %v24751_v20  ;;  %v24806_v35 = vld [vmem:[#allocation8 + $0x9c8] ss:$40 sps:$4 sm:$0xff]   ;;  %v24811_v20 = vld [vmem:[#allocation8 + $0xf14] ss:$40 sps:$4 sm:$0xff]  }
 0x532   :  { %11807 = vmatprep.subr.bf16.mxu0 %v24754_v27  ;;  %v24814_v27 = vld [vmem:[#allocation8 + $0xa1c] ss:$40 sps:$4 sm:$0xff]  }
 0x534   :  { %11596 = vmatpush1.bf16.msra.mxu1 %v24749_v21  ;;  %v24809_v21 = vld [vmem:[#allocation8 + $0xf10] ss:$40 sps:$4 sm:$0xff]  }
 0x535   :  { %11808 = vmatpush1.bf16.msra.mxu0 %v24752_v4  ;;  %11597 = vmatprep.subr.bf16.mxu1 %v24757_v37  ;;  %v24812_v4 = vld [vmem:[#allocation8 + $0xa18] ss:$40 sps:$4 sm:$0xff]   ;;  %v24817_v37 = vld [vmem:[#allocation8 + $0xf64] ss:$40 sps:$4 sm:$0xff]  }
 0x536   :  { %11809 = vmatprep.subr.bf16.mxu0 %v24760_v22  ;;  %v24820_v22 = vld [vmem:[#allocation8 + $0xa6c] ss:$40 sps:$4 sm:$0xff]  }
 0x538   :  { %11598 = vmatpush1.bf16.msra.mxu1 %v24755_v44  ;;  %v27143_v44 = vld [vmem:[#allocation5 + $0x10] ss:$40 sps:$4 sm:$0xff]  }
 0x539   :  { %11810 = vmatpush1.bf16.msra.mxu0 %v24758_v30  ;;  %11599 = vmatprep.subr.bf16.mxu1 %v24763_v9  ;;  %v24815_v30 = vld [vmem:[#allocation8 + $0xf60] ss:$40 sps:$4 sm:$0xff]  }
 0x53a   :  { %11811 = vmatprep.subr.bf16.mxu0 %v24766_v33  ;;  %v24818_v9 = vld [vmem:[#allocation8 + $0xa68] ss:$40 sps:$4 sm:$0xff]   ;;  %v24823_v33 = vld [vmem:[#allocation8 + $0xfb4] ss:$40 sps:$4 sm:$0xff]  }
 0x53c   :  { %11600 = vmatpush1.bf16.msra.mxu1 %v24761_v48  ;;  %v24826_v48 = vld [vmem:[#allocation8 + $0xabc] ss:$40 sps:$4 sm:$0xff]  }
 0x53d   :  { %11812 = vmatpush1.bf16.msra.mxu0 %v24764_v40  ;;  %11601 = vmatprep.subr.bf16.mxu1 %v24769_v41  ;;  %v24821_v40 = vld [vmem:[#allocation8 + $0xfb0] ss:$40 sps:$4 sm:$0xff]  }
 0x53e   :  { %11813 = vmatprep.subr.bf16.mxu0 %v24772_v31  ;;  %v24824_v41 = vld [vmem:[#allocation8 + $0xab8] ss:$40 sps:$4 sm:$0xff]   ;;  %v27147_v31 = vld [vmem:[#allocation5 + $0x64] ss:$40 sps:$4 sm:$0xff]  }
 0x540   :  { %11602 = vmatpush1.bf16.msra.mxu1 %v24767_v14  ;;  %v24832_v14 = vld [vmem:[#allocation8 + $0xb0c] ss:$40 sps:$4 sm:$0xff]  }
 0x541   :  { %11814 = vmatpush1.bf16.msra.mxu0 %v24770_v53  ;;  %11603 = vmatprep.subr.bf16.mxu1 %v24775_v52  ;;  %v27151_v53 = vld [vmem:[#allocation5 + $0x60] ss:$40 sps:$4 sm:$0xff]  }
 0x542   :  { %11815 = vmatprep.subr.bf16.mxu0 %v24778_v18  ;;  %v24827_v52 = vld [vmem:[#allocation8 + $0x1000] ss:$40 sps:$4 sm:$0xff]  }
 0x543   :  { %v24830_v18 = vld [vmem:[#allocation8 + $0xb08] ss:$40 sps:$4 sm:$0xff]  }
 0x544   :  { %11604 = vmatpush1.bf16.msra.mxu1 %v24773_v54  ;;  %v24835_v54 = vld [vmem:[#allocation8 + $0x1054] ss:$40 sps:$4 sm:$0xff]  }
 0x545   :  { %11816 = vmatpush1.bf16.msra.mxu0 %v24776_v59  ;;  %11605 = vmatprep.subr.bf16.mxu1 %v24781_v61  ;;  %v27155_v59 = vld [vmem:[#allocation5 + $0x1c] ss:$40 sps:$4 sm:$0xff]   ;;  %v24833_v61 = vld [vmem:[#allocation8 + $0x1050] ss:$40 sps:$4 sm:$0xff]  }
 0x546   :  { %11817 = vmatprep.subr.bf16.mxu0 %v24784_v55  ;;  %v24836_v55 = vld [vmem:[#allocation8 + $0xb58] ss:$40 sps:$4 sm:$0xff]  }
 0x548   :  { %11606 = vmatpush1.bf16.msra.mxu1 %v24779_v47  ;;  %v24844_v47 = vld [vmem:[#allocation8 + $0xbac] ss:$40 sps:$4 sm:$0xff]  }
 0x549   :  { %11818 = vmatpush1.bf16.msra.mxu0 %v24782_v43  ;;  %11607 = vmatprep.subr.bf16.mxu1 %v24787_v7  ;;  %v24839_v43 = vld [vmem:[#allocation8 + $0x10a0] ss:$40 sps:$4 sm:$0xff]  }
 0x54a   :  { %11819 = vmatprep.subr.bf16.mxu0 %v24790_v1  ;;  %v24842_v7 = vld [vmem:[#allocation8 + $0xba8] ss:$40 sps:$4 sm:$0xff]   ;;  %v24847_v1 = vld [vmem:[#allocation8 + $0x10f4] ss:$40 sps:$4 sm:$0xff]  }
 0x54c   :  { %11608 = vmatpush1.bf16.msra.mxu1 %v24785_v38  ;;  %v24850_v38 = vld [vmem:[#allocation8 + $0xbfc] ss:$40 sps:$4 sm:$0xff]  }
 0x54d   :  { %11820 = vmatpush1.bf16.msra.mxu0 %v24788_v50  ;;  %11609 = vmatprep.subr.bf16.mxu1 %v24793_v16 }
 0x54e   :  { %11821 = vmatprep.subr.bf16.mxu0 %v24796_v51  ;;  %v24845_v51 = vld [vmem:[#allocation8 + $0x10f0] ss:$40 sps:$4 sm:$0xff]  }
 0x550   :  { %11610 = vmatpush1.bf16.msra.mxu1 %v24791_v10  ;;  %v24848_v10 = vld [vmem:[#allocation8 + $0xbf8] ss:$40 sps:$4 sm:$0xff]  }
 0x551   :  { %11822 = vmatpush1.bf16.msra.mxu0 %v24794_v15  ;;  %11611 = vmatprep.subr.bf16.mxu1 %v24799_v49 }
 0x552   :  { %11823 = vmatprep.subr.bf16.mxu0 %v24802_v62  ;;  %v24853_v62 = vld [vmem:[#allocation8 + $0x1144] ss:$40 sps:$4 sm:$0xff]  }
 0x554   :  { %11612 = vmatpush1.bf16.msra.mxu1 %v24797_v6  ;;  %v24856_v6 = vld [vmem:[#allocation8 + $0xc4c] ss:$40 sps:$4 sm:$0xff]  }
 0x555   :  { %11824 = vmatpush1.bf16.msra.mxu0 %v24800_v13  ;;  %11613 = vmatprep.subr.bf16.mxu1 %v24805_v56  ;;  %v24851_v56 = vld [vmem:[#allocation8 + $0x1140] ss:$40 sps:$4 sm:$0xff]   ;;  %v25430_v13 = vld [vmem:[#allocation10 + $0x1130] ss:$40 sps:$4 sm:$0xff]  }
 0x556   :  { %11825 = vmatprep.subr.bf16.mxu0 %v24808_v17  ;;  %v24854_v17 = vld [vmem:[#allocation8 + $0xc48] ss:$40 sps:$4 sm:$0xff]  }
 0x558   :  { %11614 = vmatpush1.bf16.msra.mxu1 %v24803_v19  ;;  %v24859_v19 = vld [vmem:[#allocation8 + $0x1194] ss:$40 sps:$4 sm:$0xff]  }
 0x559   :  { %11826 = vmatpush1.bf16.msra.mxu0 %v24806_v35  ;;  %11636 = vmatprep.subr.bf16.mxu1 %v24811_v20  ;;  %v24862_v35 = vld [vmem:[#allocation8 + $0xc9c] ss:$40 sps:$4 sm:$0xff]  }
 0x55a   :  { %11848 = vmatprep.subr.bf16.mxu0 %v24814_v27 }
 0x55b   :  { %11616 = vmatmul.mubr.bf16.vlgmr.msra.gmra.mrb[20].mxu1 %v27143_v44 }
 0x55c   :  { %11828 = vmatmul.mubr.bf16.vlgmr.msra.gmra.mrb[20].mxu0 %v27127_v57  ;;  %11637 = vmatpush1.bf16.msra.mxu1 %v24809_v21  ;;  %v24829_v57 = vld [vmem:[#allocation8 + $0x1004] ss:$40 sps:$4 sm:$0xff]  }
 0x55d   :  { %11849 = vmatpush1.bf16.msra.mxu0 %v24812_v4  ;;  %11638 = vmatprep.subr.bf16.mxu1 %v24817_v37  ;;  %v24857_v4 = vld [vmem:[#allocation8 + $0x1190] ss:$40 sps:$4 sm:$0xff]  }
 0x55e   :  { %11850 = vmatprep.subr.bf16.mxu0 %v24820_v22  ;;  %11625 = vmatprep.mubr.bf16.mxu1 %v27147_v31  ;;  %v24860_v37 = vld [vmem:[#allocation8 + $0xc98] ss:$40 sps:$4 sm:$0xff]  }
 0x55f   :  { %11837 = vmatprep.mubr.bf16.mxu0 %v27131_v3  ;;  %v24838_v3 = vld [vmem:[#allocation8 + $0xb5c] ss:$40 sps:$4 sm:$0xff]  }
 0x560   :  { %11639 = vmatpush1.bf16.msra.mxu1 %v24815_v30 }
 0x561   :  { %11851 = vmatpush1.bf16.msra.mxu0 %v24818_v9  ;;  %11640 = vmatprep.subr.bf16.mxu1 %v24823_v33  ;;  %v24865_v9 = vld [vmem:[#allocation8 + $0x11e4] ss:$40 sps:$4 sm:$0xff]  }
 0x562   :  { %11852 = vmatprep.subr.bf16.mxu0 %v24826_v48  ;;  %v24868_v33 = vld [vmem:[#allocation8 + $0xcec] ss:$40 sps:$4 sm:$0xff]   ;;  %v25358_v48 = vld [vmem:[#allocation10 + $0xd70] ss:$40 sps:$4 sm:$0xff]  }
 0x563   :  { %11626 = vmatmul.mubr.bf16.gmra.mrb[24].mxu1 %v27151_v53 }
 0x564   :  { %11838 = vmatmul.mubr.bf16.gmra.mrb[24].mxu0 %v27135_v8  ;;  %11641 = vmatpush1.bf16.msra.mxu1 %v24821_v40  ;;  %v24841_v8 = vld [vmem:[#allocation8 + $0x10a4] ss:$40 sps:$4 sm:$0xff]   ;;  %v24863_v40 = vld [vmem:[#allocation8 + $0x11e0] ss:$40 sps:$4 sm:$0xff]  }
 0x565   :  { %11853 = vmatpush1.bf16.msra.mxu0 %v24824_v41  ;;  %11642 = vmatprep.subr.bf16.mxu1 %v24829_v57  ;;  %v24866_v41 = vld [vmem:[#allocation8 + $0xce8] ss:$40 sps:$4 sm:$0xff]   ;;  %v24871_v57 = vld [vmem:[#allocation8 + $0x1234] ss:$40 sps:$4 sm:$0xff]  }
 0x566   :  { %11854 = vmatprep.subr.bf16.mxu0 %v24832_v14  ;;  %11668 = vmatprep.mubr.bf16.mxu1 %v27155_v59  ;;  %v24874_v14 = vld [vmem:[#allocation8 + $0xd3c] ss:$40 sps:$4 sm:$0xff]  }
 0x567   :  { %11880 = vmatprep.mubr.bf16.mxu0 %v27139_v11 }
 0x568   :  { %11643 = vmatpush1.bf16.msra.mxu1 %v24827_v52  ;;  %v24869_v52 = vld [vmem:[#allocation8 + $0x1230] ss:$40 sps:$4 sm:$0xff]  }
 0x569   :  { %11855 = vmatpush1.bf16.msra.mxu0 %v24830_v18  ;;  %11644 = vmatprep.subr.bf16.mxu1 %v24835_v54  ;;  %v24872_v18 = vld [vmem:[#allocation8 + $0xd38] ss:$40 sps:$4 sm:$0xff]   ;;  %v24877_v54 = vld [vmem:[#allocation8 + $0x1284] ss:$40 sps:$4 sm:$0xff]  }
 0x56a   :  { %11856 = vmatprep.subr.bf16.mxu0 %v24838_v3  ;;  %v24880_v3 = vld [vmem:[#allocation8 + $0xd8c] ss:$40 sps:$4 sm:$0xff]  }
 0x56c   :  { %11645 = vmatpush1.bf16.msra.mxu1 %v24833_v61  ;;  %v24875_v61 = vld [vmem:[#allocation8 + $0x1280] ss:$40 sps:$4 sm:$0xff]  }
 0x56d   :  { %11857 = vmatpush1.bf16.msra.mxu0 %v24836_v55  ;;  %11646 = vmatprep.subr.bf16.mxu1 %v24841_v8  ;;  %v24878_v55 = vld [vmem:[#allocation8 + $0xd88] ss:$40 sps:$4 sm:$0xff]   ;;  %v24883_v8 = vld [vmem:[#allocation8 + $0x12d4] ss:$40 sps:$4 sm:$0xff]  }
 0x56e   :  { %11858 = vmatprep.subr.bf16.mxu0 %v24844_v47  ;;  %v27159_v50 = vpop.f32.mrb[12].mxu1  ;;  %v24886_v47 = vld [vmem:[#allocation8 + $0xddc] ss:$40 sps:$4 sm:$0xff]  }
 0x56f   :  { %v27161_v16 = vpop.f32.mrb[13].mxu1 }
 0x570   :  { %v27163_v11 = vpop.f32.mrb[14].mxu1  ;;  %11647 = vmatpush1.bf16.msra.mxu1 %v24839_v43  ;;  %v24881_v43 = vld [vmem:[#allocation8 + $0x12d0] ss:$40 sps:$4 sm:$0xff]  }
 0x571   :  { %11859 = vmatpush1.bf16.msra.mxu0 %v24842_v7  ;;  %v27167_v49 = vpop.f32.mrb[15].mxu1  ;;  %11648 = vmatprep.subr.bf16.mxu1 %v24847_v1  ;;  %v24884_v7 = vld [vmem:[#allocation8 + $0xdd8] ss:$40 sps:$4 sm:$0xff]   ;;  %v24889_v1 = vld [vmem:[#allocation8 + $0x1324] ss:$40 sps:$4 sm:$0xff]  }
 0x572   :  { %11860 = vmatprep.subr.bf16.mxu0 %v24850_v38  ;;  %v24892_v38 = vld [vmem:[#allocation8 + $0xe2c] ss:$40 sps:$4 sm:$0xff]  }
 0x574   :  { %11649 = vmatpush1.bf16.msra.mxu1 %v24845_v51  ;;  %v24887_v51 = vld [vmem:[#allocation8 + $0x1320] ss:$40 sps:$4 sm:$0xff]  }
 0x575   :  { %11861 = vmatpush1.bf16.msra.mxu0 %v24848_v10  ;;  %11650 = vmatprep.subr.bf16.mxu1 %v24853_v62  ;;  %v24890_v10 = vld [vmem:[#allocation8 + $0xe28] ss:$40 sps:$4 sm:$0xff]   ;;  %v24895_v62 = vld [vmem:[#allocation8 + $0x1374] ss:$40 sps:$4 sm:$0xff]  }
 0x576   :  { %11862 = vmatprep.subr.bf16.mxu0 %v24856_v6  ;;  %v27171_v20 = vpop.f32.mrb[16].mxu1  ;;  %v24898_v6 = vld [vmem:[#allocation8 + $0xe7c] ss:$40 sps:$4 sm:$0xff]  }
 0x577   :  { %27870 = vst [vmem:[#allocation29_spill] sm:$0xff] %v27171_v20  ;;  %v27173_v27 = vpop.f32.mrb[17].mxu1 }
 0x578   :  { %v27175_v21 = vpop.f32.mrb[18].mxu1  ;;  %11651 = vmatpush1.bf16.msra.mxu1 %v24851_v56  ;;  %v24893_v56 = vld [vmem:[#allocation8 + $0x1370] ss:$40 sps:$4 sm:$0xff]  }
 0x579   :  { %27871 = vst [vmem:[#allocation30_spill] sm:$0xff] %v27175_v21  ;;  %11863 = vmatpush1.bf16.msra.mxu0 %v24854_v17  ;;  %v27179_v30 = vpop.f32.mrb[19].mxu1  ;;  %11652 = vmatprep.subr.bf16.mxu1 %v24859_v19  ;;  %v24896_v17 = vld [vmem:[#allocation8 + $0xe78] ss:$40 sps:$4 sm:$0xff]   ;;  %v24901_v19 = vld [vmem:[#allocation8 + $0x13c4] ss:$40 sps:$4 sm:$0xff]  }
 0x57a   :  { %11864 = vmatprep.subr.bf16.mxu0 %v24862_v35  ;;  %v24904_v35 = vld [vmem:[#allocation8 + $0xecc] ss:$40 sps:$4 sm:$0xff]   ;;  %v26399_v21 = vld [vmem:[#allocation10 + $0x16e8] ss:$40 sps:$4 sm:$0xff]  }
 0x57c   :  { %11653 = vmatpush1.bf16.msra.mxu1 %v24857_v4  ;;  %v24899_v4 = vld [vmem:[#allocation8 + $0x13c0] ss:$40 sps:$4 sm:$0xff]  }
 0x57d   :  { %11865 = vmatpush1.bf16.msra.mxu0 %v24860_v37  ;;  %11654 = vmatprep.subr.bf16.mxu1 %v24865_v9  ;;  %v24902_v37 = vld [vmem:[#allocation8 + $0xec8] ss:$40 sps:$4 sm:$0xff]   ;;  %v24907_v9 = vld [vmem:[#allocation8 + $0x1414] ss:$40 sps:$4 sm:$0xff]  }
 0x57e   :  { %11866 = vmatprep.subr.bf16.mxu0 %v24868_v33  ;;  %v24910_v33 = vld [vmem:[#allocation8 + $0xf1c] ss:$40 sps:$4 sm:$0xff]  }
 0x580   :  { %11655 = vmatpush1.bf16.msra.mxu1 %v24863_v40  ;;  %v24905_v40 = vld [vmem:[#allocation8 + $0x1410] ss:$40 sps:$4 sm:$0xff]  }
 0x581   :  { %11867 = vmatpush1.bf16.msra.mxu0 %v24866_v41  ;;  %11656 = vmatprep.subr.bf16.mxu1 %v24871_v57  ;;  %v24908_v41 = vld [vmem:[#allocation8 + $0xf18] ss:$40 sps:$4 sm:$0xff]   ;;  %v24913_v57 = vld [vmem:[#allocation8 + $0x1464] ss:$40 sps:$4 sm:$0xff]  }
 0x582   :  { %11868 = vmatprep.subr.bf16.mxu0 %v24874_v14  ;;  %v24916_v14 = vld [vmem:[#allocation8 + $0xf6c] ss:$40 sps:$4 sm:$0xff]  }
 0x584   :  { %11657 = vmatpush1.bf16.msra.mxu1 %v24869_v52  ;;  %v27183_v52 = vld [vmem:[#allocation5 + $0x18] ss:$40 sps:$4 sm:$0xff]  }
 0x585   :  { %11869 = vmatpush1.bf16.msra.mxu0 %v24872_v18  ;;  %11658 = vmatprep.subr.bf16.mxu1 %v24877_v54  ;;  %v24911_v18 = vld [vmem:[#allocation8 + $0x1460] ss:$40 sps:$4 sm:$0xff]  }
 0x586   :  { %11870 = vmatprep.subr.bf16.mxu0 %v24880_v3  ;;  %v24914_v54 = vld [vmem:[#allocation8 + $0xf68] ss:$40 sps:$4 sm:$0xff]   ;;  %v24919_v3 = vld [vmem:[#allocation8 + $0x14b4] ss:$40 sps:$4 sm:$0xff]  }
 0x588   :  { %11659 = vmatpush1.bf16.msra.mxu1 %v24875_v61  ;;  %v24922_v61 = vld [vmem:[#allocation8 + $0xfbc] ss:$40 sps:$4 sm:$0xff]  }
 0x589   :  { %11871 = vmatpush1.bf16.msra.mxu0 %v24878_v55  ;;  %11660 = vmatprep.subr.bf16.mxu1 %v24883_v8  ;;  %v27187_v55 = vld [vmem:[#allocation5 + $0x6c] ss:$40 sps:$4 sm:$0xff]   ;;  %v24917_v8 = vld [vmem:[#allocation8 + $0x14b0] ss:$40 sps:$4 sm:$0xff]  }
 0x58a   :  { %11872 = vmatprep.subr.bf16.mxu0 %v24886_v47  ;;  %v24920_v47 = vld [vmem:[#allocation8 + $0xfb8] ss:$40 sps:$4 sm:$0xff]  }
 0x58c   :  { %11661 = vmatpush1.bf16.msra.mxu1 %v24881_v43  ;;  %v24928_v43 = vld [vmem:[#allocation8 + $0x100c] ss:$40 sps:$4 sm:$0xff]  }
 0x58d   :  { %11873 = vmatpush1.bf16.msra.mxu0 %v24884_v7  ;;  %11662 = vmatprep.subr.bf16.mxu1 %v24889_v1  ;;  %v27191_v7 = vld [vmem:[#allocation5 + $0x68] ss:$40 sps:$4 sm:$0xff]  }
 0x58e   :  { %11874 = vmatprep.subr.bf16.mxu0 %v24892_v38  ;;  %v24923_v1 = vld [vmem:[#allocation8 + $0x1500] ss:$40 sps:$4 sm:$0xff]  }
 0x58f   :  { %v24926_v38 = vld [vmem:[#allocation8 + $0x1008] ss:$40 sps:$4 sm:$0xff]  }
 0x590   :  { %11663 = vmatpush1.bf16.msra.mxu1 %v24887_v51  ;;  %v24934_v51 = vld [vmem:[#allocation8 + $0x105c] ss:$40 sps:$4 sm:$0xff]  }
 0x591   :  { %11875 = vmatpush1.bf16.msra.mxu0 %v24890_v10  ;;  %11664 = vmatprep.subr.bf16.mxu1 %v24895_v62  ;;  %v27195_v10 = vld [vmem:[#allocation5 + $0x24] ss:$40 sps:$4 sm:$0xff]   ;;  %v24929_v62 = vld [vmem:[#allocation8 + $0x1550] ss:$40 sps:$4 sm:$0xff]  }
 0x592   :  { %11876 = vmatprep.subr.bf16.mxu0 %v24898_v6  ;;  %v24932_v6 = vld [vmem:[#allocation8 + $0x1058] ss:$40 sps:$4 sm:$0xff]  }
 0x594   :  { %11665 = vmatpush1.bf16.msra.mxu1 %v24893_v56  ;;  %v24940_v56 = vld [vmem:[#allocation8 + $0x10ac] ss:$40 sps:$4 sm:$0xff]  }
 0x595   :  { %11877 = vmatpush1.bf16.msra.mxu0 %v24896_v17  ;;  %11666 = vmatprep.subr.bf16.mxu1 %v24901_v19  ;;  %v24935_v17 = vld [vmem:[#allocation8 + $0x15a0] ss:$40 sps:$4 sm:$0xff]  }
 0x596   :  { %11878 = vmatprep.subr.bf16.mxu0 %v24904_v35  ;;  %v24938_v19 = vld [vmem:[#allocation8 + $0x10a8] ss:$40 sps:$4 sm:$0xff]   ;;  %v24943_v35 = vld [vmem:[#allocation8 + $0x15f4] ss:$40 sps:$4 sm:$0xff]  }
 0x598   :  { %11667 = vmatpush1.bf16.msra.mxu1 %v24899_v4  ;;  %v24946_v4 = vld [vmem:[#allocation8 + $0x10fc] ss:$40 sps:$4 sm:$0xff]  }
 0x599   :  { %11879 = vmatpush1.bf16.msra.mxu0 %v24902_v37  ;;  %11689 = vmatprep.subr.bf16.mxu1 %v24907_v9 }
 0x59a   :  { %11901 = vmatprep.subr.bf16.mxu0 %v24910_v33  ;;  %v24941_v33 = vld [vmem:[#allocation8 + $0x15f0] ss:$40 sps:$4 sm:$0xff]  }
 0x59b   :  { %11669 = vmatmul.mubr.bf16.vlgmr.msra.gmra.mrb[20].mxu1 %v27183_v52 }
 0x59c   :  { %11881 = vmatmul.mubr.bf16.vlgmr.msra.gmra.mrb[20].mxu0 %v27143_v44  ;;  %11690 = vmatpush1.bf16.msra.mxu1 %v24905_v40  ;;  %v24925_v44 = vld [vmem:[#allocation8 + $0x1504] ss:$40 sps:$4 sm:$0xff]   ;;  %v24944_v40 = vld [vmem:[#allocation8 + $0x10f8] ss:$40 sps:$4 sm:$0xff]  }
 0x59d   :  { %11902 = vmatpush1.bf16.msra.mxu0 %v24908_v41  ;;  %11691 = vmatprep.subr.bf16.mxu1 %v24913_v57  ;;  %v25352_v41 = vld [vmem:[#allocation10 + $0xd20] ss:$40 sps:$4 sm:$0xff]  }
 0x59e   :  { %11903 = vmatprep.subr.bf16.mxu0 %v24916_v14  ;;  %11678 = vmatprep.mubr.bf16.mxu1 %v27187_v55  ;;  %v24949_v14 = vld [vmem:[#allocation8 + $0x1644] ss:$40 sps:$4 sm:$0xff]  }
 0x59f   :  { %11890 = vmatprep.mubr.bf16.mxu0 %v27147_v31  ;;  %v24931_v31 = vld [vmem:[#allocation8 + $0x1554] ss:$40 sps:$4 sm:$0xff]  }
 0x5a0   :  { %11692 = vmatpush1.bf16.msra.mxu1 %v24911_v18  ;;  %v24952_v18 = vld [vmem:[#allocation8 + $0x114c] ss:$40 sps:$4 sm:$0xff]  }
 0x5a1   :  { %11904 = vmatpush1.bf16.msra.mxu0 %v24914_v54  ;;  %11693 = vmatprep.subr.bf16.mxu1 %v24919_v3  ;;  %v24947_v3 = vld [vmem:[#allocation8 + $0x1640] ss:$40 sps:$4 sm:$0xff]   ;;  %v25355_v54 = vld [vmem:[#allocation8 + $0x1290] ss:$40 sps:$4 sm:$0xff]  }
 0x5a2   :  { %11905 = vmatprep.subr.bf16.mxu0 %v24922_v61  ;;  %v24950_v61 = vld [vmem:[#allocation8 + $0x1148] ss:$40 sps:$4 sm:$0xff]  }
 0x5a3   :  { %11679 = vmatmul.mubr.bf16.gmra.mrb[24].mxu1 %v27191_v7 }
 0x5a4   :  { %11891 = vmatmul.mubr.bf16.gmra.mrb[24].mxu0 %v27151_v53  ;;  %11694 = vmatpush1.bf16.msra.mxu1 %v24917_v8  ;;  %v24937_v53 = vld [vmem:[#allocation8 + $0x15a4] ss:$40 sps:$4 sm:$0xff]   ;;  %v24955_v8 = vld [vmem:[#allocation8 + $0x1694] ss:$40 sps:$4 sm:$0xff]  }
 0x5a5   :  { %11906 = vmatpush1.bf16.msra.mxu0 %v24920_v47  ;;  %11695 = vmatprep.subr.bf16.mxu1 %v24925_v44  ;;  %v24958_v47 = vld [vmem:[#allocation8 + $0x119c] ss:$40 sps:$4 sm:$0xff]  }
 0x5a6   :  { %11907 = vmatprep.subr.bf16.mxu0 %v24928_v43  ;;  %11721 = vmatprep.mubr.bf16.mxu1 %v27195_v10 }
 0x5a7   :  { %11933 = vmatprep.mubr.bf16.mxu0 %v27155_v59 }
 0x5a8   :  { %11696 = vmatpush1.bf16.msra.mxu1 %v24923_v1 }
 0x5a9   :  { %11908 = vmatpush1.bf16.msra.mxu0 %v24926_v38  ;;  %11697 = vmatprep.subr.bf16.mxu1 %v24931_v31  ;;  %v24953_v38 = vld [vmem:[#allocation8 + $0x1690] ss:$40 sps:$4 sm:$0xff]  }
 0x5aa   :  { %11909 = vmatprep.subr.bf16.mxu0 %v24934_v51  ;;  %v24956_v31 = vld [vmem:[#allocation8 + $0x1198] ss:$40 sps:$4 sm:$0xff]  }
 0x5ac   :  { %11698 = vmatpush1.bf16.msra.mxu1 %v24929_v62 }
 0x5ad   :  { %11910 = vmatpush1.bf16.msra.mxu0 %v24932_v6  ;;  %11699 = vmatprep.subr.bf16.mxu1 %v24937_v53  ;;  %v24961_v6 = vld [vmem:[#allocation8 + $0x16e4] ss:$40 sps:$4 sm:$0xff]  }
 0x5ae   :  { %11911 = vmatprep.subr.bf16.mxu0 %v24940_v56  ;;  %v24964_v53 = vld [vmem:[#allocation8 + $0x11ec] ss:$40 sps:$4 sm:$0xff]  }
 0x5af   :  { %v27199_v37 = vpop.f32.mrb[12].mxu0 }
 0x5b0   :  { %v27201_v9 = vpop.f32.mrb[13].mxu0  ;;  %11700 = vmatpush1.bf16.msra.mxu1 %v24935_v17  ;;  %v24959_v17 = vld [vmem:[#allocation8 + $0x16e0] ss:$40 sps:$4 sm:$0xff]  }
 0x5b1   :  { %v27203_v59 = vpop.f32.mrb[14].mxu0  ;;  %11912 = vmatpush1.bf16.msra.mxu0 %v24938_v19  ;;  %11701 = vmatprep.subr.bf16.mxu1 %v24943_v35  ;;  %v24962_v19 = vld [vmem:[#allocation8 + $0x11e8] ss:$40 sps:$4 sm:$0xff]   ;;  %v24967_v35 = vld [vmem:[#allocation8 + $0x1734] ss:$40 sps:$4 sm:$0xff]  }
 0x5b2   :  { %v27207_v57 = vpop.f32.mrb[15].mxu0  ;;  %11913 = vmatprep.subr.bf16.mxu0 %v24946_v4  ;;  %v24970_v4 = vld [vmem:[#allocation8 + $0x123c] ss:$40 sps:$4 sm:$0xff]  }
 0x5b4   :  { %11702 = vmatpush1.bf16.msra.mxu1 %v24941_v33  ;;  %v24965_v33 = vld [vmem:[#allocation8 + $0x1730] ss:$40 sps:$4 sm:$0xff]  }
 0x5b5   :  { %11914 = vmatpush1.bf16.msra.mxu0 %v24944_v40  ;;  %11703 = vmatprep.subr.bf16.mxu1 %v24949_v14  ;;  %v24968_v40 = vld [vmem:[#allocation8 + $0x1238] ss:$40 sps:$4 sm:$0xff]   ;;  %v24973_v14 = vld [vmem:[#allocation8 + $0x1784] ss:$40 sps:$4 sm:$0xff]  }
 0x5b6   :  { %11915 = vmatprep.subr.bf16.mxu0 %v24952_v18  ;;  %v24976_v18 = vld [vmem:[#allocation8 + $0x128c] ss:$40 sps:$4 sm:$0xff]  }
 0x5b7   :  { %v27211_v44 = vpop.f32.mrb[16].mxu0 }
 0x5b8   :  { %27872 = vst [vmem:[#allocation31_spill] sm:$0xff] %v27211_v44  ;;  %v27213_v43 = vpop.f32.mrb[17].mxu0  ;;  %11704 = vmatpush1.bf16.msra.mxu1 %v24947_v3  ;;  %v24971_v3 = vld [vmem:[#allocation8 + $0x1780] ss:$40 sps:$4 sm:$0xff]  }
 0x5b9   :  { %27873 = vst [vmem:[#allocation32_spill] sm:$0xff] %v27213_v43  ;;  %v27215_v1 = vpop.f32.mrb[18].mxu0  ;;  %11916 = vmatpush1.bf16.msra.mxu0 %v24950_v61  ;;  %11705 = vmatprep.subr.bf16.mxu1 %v24955_v8  ;;  %v24974_v61 = vld [vmem:[#allocation8 + $0x1288] ss:$40 sps:$4 sm:$0xff]   ;;  %v24979_v8 = vld [vmem:[#allocation8 + $0x17d4] ss:$40 sps:$4 sm:$0xff]  }
 0x5ba   :  { %27874 = vst [vmem:[#allocation33_spill] sm:$0xff] %v27215_v1  ;;  %v27219_v62 = vpop.f32.mrb[19].mxu0  ;;  %11917 = vmatprep.subr.bf16.mxu0 %v24958_v47  ;;  %v24982_v47 = vld [vmem:[#allocation8 + $0x12dc] ss:$40 sps:$4 sm:$0xff]   ;;  %v26306_v43 = vld [vmem:[#allocation10 + $0xcf0] ss:$40 sps:$4 sm:$0xff]  }
 0x5bb   :  { %27875 = vst [vmem:[#allocation34_spill] sm:$0xff] %v27219_v62 }
 0x5bc   :  { %11706 = vmatpush1.bf16.msra.mxu1 %v24953_v38  ;;  %v24977_v38 = vld [vmem:[#allocation8 + $0x17d0] ss:$40 sps:$4 sm:$0xff]  }
 0x5bd   :  { %11918 = vmatpush1.bf16.msra.mxu0 %v24956_v31  ;;  %11707 = vmatprep.subr.bf16.mxu1 %v24961_v6  ;;  %v24980_v31 = vld [vmem:[#allocation8 + $0x12d8] ss:$40 sps:$4 sm:$0xff]   ;;  %v24985_v6 = vld [vmem:[#allocation8 + $0x1824] ss:$40 sps:$4 sm:$0xff]  }
 0x5be   :  { %11919 = vmatprep.subr.bf16.mxu0 %v24964_v53  ;;  %v24988_v53 = vld [vmem:[#allocation8 + $0x132c] ss:$40 sps:$4 sm:$0xff]  }
 0x5c0   :  { %11708 = vmatpush1.bf16.msra.mxu1 %v24959_v17  ;;  %v24983_v17 = vld [vmem:[#allocation8 + $0x1820] ss:$40 sps:$4 sm:$0xff]  }
 0x5c1   :  { %11920 = vmatpush1.bf16.msra.mxu0 %v24962_v19  ;;  %11709 = vmatprep.subr.bf16.mxu1 %v24967_v35  ;;  %v24986_v19 = vld [vmem:[#allocation8 + $0x1328] ss:$40 sps:$4 sm:$0xff]   ;;  %v24991_v35 = vld [vmem:[#allocation8 + $0x1874] ss:$40 sps:$4 sm:$0xff]  }
 0x5c2   :  { %11921 = vmatprep.subr.bf16.mxu0 %v24970_v4  ;;  %v24994_v4 = vld [vmem:[#allocation8 + $0x137c] ss:$40 sps:$4 sm:$0xff]  }
 0x5c4   :  { %11710 = vmatpush1.bf16.msra.mxu1 %v24965_v33  ;;  %v24989_v33 = vld [vmem:[#allocation8 + $0x1870] ss:$40 sps:$4 sm:$0xff]  }
 0x5c5   :  { %11922 = vmatpush1.bf16.msra.mxu0 %v24968_v40  ;;  %11711 = vmatprep.subr.bf16.mxu1 %v24973_v14  ;;  %v24992_v40 = vld [vmem:[#allocation8 + $0x1378] ss:$40 sps:$4 sm:$0xff]   ;;  %v24997_v14 = vld [vmem:[#allocation8 + $0x18c4] ss:$40 sps:$4 sm:$0xff]  }
 0x5c6   :  { %11923 = vmatprep.subr.bf16.mxu0 %v24976_v18  ;;  %v25000_v18 = vld [vmem:[#allocation8 + $0x13cc] ss:$40 sps:$4 sm:$0xff]  }
 0x5c8   :  { %11712 = vmatpush1.bf16.msra.mxu1 %v24971_v3  ;;  %v24995_v3 = vld [vmem:[#allocation8 + $0x18c0] ss:$40 sps:$4 sm:$0xff]  }
 0x5c9   :  { %11924 = vmatpush1.bf16.msra.mxu0 %v24974_v61  ;;  %11713 = vmatprep.subr.bf16.mxu1 %v24979_v8  ;;  %v24998_v61 = vld [vmem:[#allocation8 + $0x13c8] ss:$40 sps:$4 sm:$0xff]   ;;  %v25003_v8 = vld [vmem:[#allocation8 + $0x141c] ss:$40 sps:$4 sm:$0xff]  }
 0x5ca   :  { %11925 = vmatprep.subr.bf16.mxu0 %v24982_v47  ;;  %v25006_v47 = vld [vmem:[#allocation8 + $0x24] ss:$40 sps:$4 sm:$0xff]  }
 0x5cc   :  { %11714 = vmatpush1.bf16.msra.mxu1 %v24977_v38  ;;  %v25001_v38 = vld [vmem:[#allocation8 + $0x1418] ss:$40 sps:$4 sm:$0xff]  }
 0x5cd   :  { %11926 = vmatpush1.bf16.msra.mxu0 %v24980_v31  ;;  %11715 = vmatprep.subr.bf16.mxu1 %v24985_v6  ;;  %v25004_v31 = vld [vmem:[#allocation8 + $0x20] ss:$40 sps:$4 sm:$0xff]   ;;  %v25009_v6 = vld [vmem:[#allocation8 + $0x146c] ss:$40 sps:$4 sm:$0xff]  }
 0x5ce   :  { %11927 = vmatprep.subr.bf16.mxu0 %v24988_v53  ;;  %v25012_v53 = vld [vmem:[#allocation8 + $0x74] ss:$40 sps:$4 sm:$0xff]  }
 0x5d0   :  { %11716 = vmatpush1.bf16.msra.mxu1 %v24983_v17  ;;  %v27223_v17 = vld [vmem:[#allocation5 + $0x20] ss:$40 sps:$4 sm:$0xff]  }
 0x5d1   :  { %11928 = vmatpush1.bf16.msra.mxu0 %v24986_v19  ;;  %11717 = vmatprep.subr.bf16.mxu1 %v24991_v35  ;;  %v25007_v19 = vld [vmem:[#allocation8 + $0x1468] ss:$40 sps:$4 sm:$0xff]  }
 0x5d2   :  { %11929 = vmatprep.subr.bf16.mxu0 %v24994_v4  ;;  %v25010_v35 = vld [vmem:[#allocation8 + $0x70] ss:$40 sps:$4 sm:$0xff]   ;;  %v25015_v4 = vld [vmem:[#allocation8 + $0x14bc] ss:$40 sps:$4 sm:$0xff]  }
 0x5d4   :  { %11718 = vmatpush1.bf16.msra.mxu1 %v24989_v33  ;;  %v25018_v33 = vld [vmem:[#allocation8 + $0xc4] ss:$40 sps:$4 sm:$0xff]  }
 0x5d5   :  { %11930 = vmatpush1.bf16.msra.mxu0 %v24992_v40  ;;  %11719 = vmatprep.subr.bf16.mxu1 %v24997_v14  ;;  %v27227_v40 = vld [vmem:[#allocation5 + $0x74] ss:$40 sps:$4 sm:$0xff]   ;;  %v25013_v14 = vld [vmem:[#allocation8 + $0x14b8] ss:$40 sps:$4 sm:$0xff]  }
 0x5d6   :  { %11931 = vmatprep.subr.bf16.mxu0 %v25000_v18  ;;  %v25016_v18 = vld [vmem:[#allocation8 + $0xc0] ss:$40 sps:$4 sm:$0xff]  }
 0x5d8   :  { %11720 = vmatpush1.bf16.msra.mxu1 %v24995_v3  ;;  %v25024_v3 = vld [vmem:[#allocation8 + $0x114] ss:$40 sps:$4 sm:$0xff]  }
 0x5d9   :  { %11932 = vmatpush1.bf16.msra.mxu0 %v24998_v61  ;;  %12007 = vmatprep.subr.bf16.mxu1 %v25006_v47  ;;  %v27231_v61 = vld [vmem:[#allocation5 + $0x70] ss:$40 sps:$4 sm:$0xff]  }
 0x5da   :  { %11954 = vmatprep.subr.bf16.mxu0 %v25003_v8  ;;  %v25019_v8 = vld [vmem:[#allocation8 + $0x1508] ss:$40 sps:$4 sm:$0xff]  }
 0x5db   :  { %11722 = vmatmul.mubr.bf16.vlgmr.msra.gmra.mrb[20].mxu1 %v27223_v17  ;;  %v25022_v47 = vld [vmem:[#allocation8 + $0x110] ss:$40 sps:$4 sm:$0xff]  }
 0x5dc   :  { %11934 = vmatmul.mubr.bf16.vlgmr.msra.gmra.mrb[20].mxu0 %v27183_v52  ;;  %12008 = vmatpush1.bf16.msra.mxu1 %v25004_v31  ;;  %v25021_v52 = vld [vmem:[#allocation8 + $0x150c] ss:$40 sps:$4 sm:$0xff]  }
 0x5dd   :  { %11955 = vmatpush1.bf16.msra.mxu0 %v25001_v38  ;;  %12009 = vmatprep.subr.bf16.mxu1 %v25012_v53  ;;  %v25030_v38 = vld [vmem:[#allocation8 + $0x164] ss:$40 sps:$4 sm:$0xff]   ;;  %v25028_v53 = vld [vmem:[#allocation8 + $0x160] ss:$40 sps:$4 sm:$0xff]  }
 0x5de   :  { %11956 = vmatprep.subr.bf16.mxu0 %v25009_v6  ;;  %11731 = vmatprep.mubr.bf16.mxu1 %v27227_v40  ;;  %v27236_v31 = vld [vmem:[#allocation5 + $0x4] ss:$40 sps:$4 sm:$0xff]   ;;  %v25025_v6 = vld [vmem:[#allocation8 + $0x1558] ss:$40 sps:$4 sm:$0xff]  }
 0x5df   :  { %11943 = vmatprep.mubr.bf16.mxu0 %v27187_v55  ;;  %v25027_v55 = vld [vmem:[#allocation8 + $0x155c] ss:$40 sps:$4 sm:$0xff]  }
 0x5e0   :  { %12010 = vmatpush1.bf16.msra.mxu1 %v25010_v35  ;;  %v25031_v35 = vld [vmem:[#allocation8 + $0x15a8] ss:$40 sps:$4 sm:$0xff]  }
 0x5e1   :  { %11957 = vmatpush1.bf16.msra.mxu0 %v25007_v19  ;;  %12011 = vmatprep.subr.bf16.mxu1 %v25018_v33  ;;  %v25036_v19 = vld [vmem:[#allocation8 + $0x1b4] ss:$40 sps:$4 sm:$0xff]  }
 0x5e2   :  { %11958 = vmatprep.subr.bf16.mxu0 %v25015_v4  ;;  %v25034_v4 = vld [vmem:[#allocation8 + $0x1b0] ss:$40 sps:$4 sm:$0xff]   ;;  %v25039_v33 = vld [vmem:[#allocation8 + $0x15fc] ss:$40 sps:$4 sm:$0xff]  }
 0x5e3   :  { %11732 = vmatmul.mubr.bf16.gmra.mrb[24].mxu1 %v27231_v61 }
 0x5e4   :  { %11944 = vmatmul.mubr.bf16.gmra.mrb[24].mxu0 %v27191_v7  ;;  %12012 = vmatpush1.bf16.msra.mxu1 %v25016_v18  ;;  %v25033_v7 = vld [vmem:[#allocation8 + $0x15ac] ss:$40 sps:$4 sm:$0xff]   ;;  %v25040_v18 = vld [vmem:[#allocation8 + $0x200] ss:$40 sps:$4 sm:$0xff]  }
 0x5e5   :  { %11959 = vmatpush1.bf16.msra.mxu0 %v25013_v14  ;;  %12013 = vmatprep.subr.bf16.mxu1 %v25024_v3  ;;  %v25037_v14 = vld [vmem:[#allocation8 + $0x15f8] ss:$40 sps:$4 sm:$0xff]   ;;  %v25048_v3 = vld [vmem:[#allocation8 + $0x254] ss:$40 sps:$4 sm:$0xff]  }
 0x5e6   :  { %11960 = vmatprep.subr.bf16.mxu0 %v25021_v52  ;;  %11986 = vmatprep.mubr.bf16.mxu0 %v27195_v10  ;;  %v25042_v10 = vld [vmem:[#allocation8 + $0x204] ss:$40 sps:$4 sm:$0xff]  }
 0x5e7   :  { %12039 = vmatprep.mubr.bf16.mxu1 %v27236_v31  ;;  %v25045_v52 = vld [vmem:[#allocation8 + $0x164c] ss:$40 sps:$4 sm:$0xff]  }
 0x5e8   :  { %12014 = vmatpush1.bf16.msra.mxu1 %v25022_v47  ;;  %v25046_v47 = vld [vmem:[#allocation8 + $0x250] ss:$40 sps:$4 sm:$0xff]  }
 0x5e9   :  { %11961 = vmatpush1.bf16.msra.mxu0 %v25019_v8  ;;  %12015 = vmatprep.subr.bf16.mxu1 %v25030_v38  ;;  %v25043_v8 = vld [vmem:[#allocation8 + $0x1648] ss:$40 sps:$4 sm:$0xff]   ;;  %v25054_v38 = vld [vmem:[#allocation8 + $0x2a4] ss:$40 sps:$4 sm:$0xff]  }
 0x5ea   :  { %11962 = vmatprep.subr.bf16.mxu0 %v25027_v55  ;;  %v25051_v55 = vld [vmem:[#allocation8 + $0x169c] ss:$40 sps:$4 sm:$0xff]  }
 0x5ec   :  { %12016 = vmatpush1.bf16.msra.mxu1 %v25028_v53  ;;  %v25052_v53 = vld [vmem:[#allocation8 + $0x2a0] ss:$40 sps:$4 sm:$0xff]  }
 0x5ed   :  { %11963 = vmatpush1.bf16.msra.mxu0 %v25025_v6  ;;  %12017 = vmatprep.subr.bf16.mxu1 %v25036_v19  ;;  %v25049_v6 = vld [vmem:[#allocation8 + $0x1698] ss:$40 sps:$4 sm:$0xff]   ;;  %v25060_v19 = vld [vmem:[#allocation8 + $0x2f4] ss:$40 sps:$4 sm:$0xff]  }
 0x5ee   :  { %11964 = vmatprep.subr.bf16.mxu0 %v25033_v7  ;;  %v25057_v7 = vld [vmem:[#allocation8 + $0x16ec] ss:$40 sps:$4 sm:$0xff]  }
 0x5f0   :  { %12018 = vmatpush1.bf16.msra.mxu1 %v25034_v4  ;;  %v25058_v4 = vld [vmem:[#allocation8 + $0x2f0] ss:$40 sps:$4 sm:$0xff]  }
 0x5f1   :  { %11965 = vmatpush1.bf16.msra.mxu0 %v25031_v35  ;;  %12019 = vmatprep.subr.bf16.mxu1 %v25042_v10  ;;  %v25055_v35 = vld [vmem:[#allocation8 + $0x16e8] ss:$40 sps:$4 sm:$0xff]   ;;  %v25066_v10 = vld [vmem:[#allocation8 + $0x344] ss:$40 sps:$4 sm:$0xff]  }
 0x5f2   :  { %11966 = vmatprep.subr.bf16.mxu0 %v25039_v33  ;;  %v25063_v33 = vld [vmem:[#allocation8 + $0x173c] ss:$40 sps:$4 sm:$0xff]  }
 0x5f4   :  { %12020 = vmatpush1.bf16.msra.mxu1 %v25040_v18  ;;  %v25064_v18 = vld [vmem:[#allocation8 + $0x340] ss:$40 sps:$4 sm:$0xff]  }
 0x5f5   :  { %11967 = vmatpush1.bf16.msra.mxu0 %v25037_v14  ;;  %12021 = vmatprep.subr.bf16.mxu1 %v25048_v3  ;;  %v25061_v14 = vld [vmem:[#allocation8 + $0x1738] ss:$40 sps:$4 sm:$0xff]   ;;  %v25072_v3 = vld [vmem:[#allocation8 + $0x394] ss:$40 sps:$4 sm:$0xff]  }
 0x5f6   :  { %11968 = vmatprep.subr.bf16.mxu0 %v25045_v52  ;;  %v25069_v52 = vld [vmem:[#allocation8 + $0x178c] ss:$40 sps:$4 sm:$0xff]  }
 0x5f8   :  { %12022 = vmatpush1.bf16.msra.mxu1 %v25046_v47  ;;  %v25070_v47 = vld [vmem:[#allocation8 + $0x390] ss:$40 sps:$4 sm:$0xff]  }
 0x5f9   :  { %11969 = vmatpush1.bf16.msra.mxu0 %v25043_v8  ;;  %12023 = vmatprep.subr.bf16.mxu1 %v25054_v38  ;;  %v25067_v8 = vld [vmem:[#allocation8 + $0x1788] ss:$40 sps:$4 sm:$0xff]   ;;  %v25078_v38 = vld [vmem:[#allocation8 + $0x3e4] ss:$40 sps:$4 sm:$0xff]  }
 0x5fa   :  { %11970 = vmatprep.subr.bf16.mxu0 %v25051_v55  ;;  %v25075_v55 = vld [vmem:[#allocation8 + $0x17dc] ss:$40 sps:$4 sm:$0xff]  }
 0x5fc   :  { %12024 = vmatpush1.bf16.msra.mxu1 %v25052_v53  ;;  %v25076_v53 = vld [vmem:[#allocation8 + $0x3e0] ss:$40 sps:$4 sm:$0xff]  }
 0x5fd   :  { %11971 = vmatpush1.bf16.msra.mxu0 %v25049_v6  ;;  %12025 = vmatprep.subr.bf16.mxu1 %v25060_v19  ;;  %v25073_v6 = vld [vmem:[#allocation8 + $0x17d8] ss:$40 sps:$4 sm:$0xff]   ;;  %v25084_v19 = vld [vmem:[#allocation8 + $0x434] ss:$40 sps:$4 sm:$0xff]  }
 0x5fe   :  { %11972 = vmatprep.subr.bf16.mxu0 %v25057_v7  ;;  %v25081_v7 = vld [vmem:[#allocation8 + $0x182c] ss:$40 sps:$4 sm:$0xff]  }
 0x600   :  { %12026 = vmatpush1.bf16.msra.mxu1 %v25058_v4  ;;  %v25082_v4 = vld [vmem:[#allocation8 + $0x430] ss:$40 sps:$4 sm:$0xff]  }
 0x601   :  { %11973 = vmatpush1.bf16.msra.mxu0 %v25055_v35  ;;  %12027 = vmatprep.subr.bf16.mxu1 %v25066_v10  ;;  %v25079_v35 = vld [vmem:[#allocation8 + $0x1828] ss:$40 sps:$4 sm:$0xff]   ;;  %v25090_v10 = vld [vmem:[#allocation8 + $0x484] ss:$40 sps:$4 sm:$0xff]  }
 0x602   :  { %11974 = vmatprep.subr.bf16.mxu0 %v25063_v33  ;;  %v25087_v33 = vld [vmem:[#allocation8 + $0x187c] ss:$40 sps:$4 sm:$0xff]  }
 0x604   :  { %12028 = vmatpush1.bf16.msra.mxu1 %v25064_v18  ;;  %v25088_v18 = vld [vmem:[#allocation8 + $0x480] ss:$40 sps:$4 sm:$0xff]  }
 0x605   :  { %11975 = vmatpush1.bf16.msra.mxu0 %v25061_v14  ;;  %12029 = vmatprep.subr.bf16.mxu1 %v25072_v3  ;;  %v25085_v14 = vld [vmem:[#allocation8 + $0x1878] ss:$40 sps:$4 sm:$0xff]   ;;  %v25096_v3 = vld [vmem:[#allocation8 + $0x4d4] ss:$40 sps:$4 sm:$0xff]  }
 0x606   :  { %11976 = vmatprep.subr.bf16.mxu0 %v25069_v52  ;;  %v25093_v52 = vld [vmem:[#allocation8 + $0x18cc] ss:$40 sps:$4 sm:$0xff]  }
 0x608   :  { %12030 = vmatpush1.bf16.msra.mxu1 %v25070_v47  ;;  %v25094_v47 = vld [vmem:[#allocation8 + $0x4d0] ss:$40 sps:$4 sm:$0xff]  }
 0x609   :  { %11977 = vmatpush1.bf16.msra.mxu0 %v25067_v8  ;;  %12031 = vmatprep.subr.bf16.mxu1 %v25078_v38  ;;  %v25091_v8 = vld [vmem:[#allocation8 + $0x18c8] ss:$40 sps:$4 sm:$0xff]   ;;  %v25102_v38 = vld [vmem:[#allocation10 + $0x4] ss:$40 sps:$4 sm:$0xff]  }
 0x60a   :  { %11978 = vmatprep.subr.bf16.mxu0 %v25075_v55  ;;  %v25099_v55 = vld [vmem:[#allocation8 + $0x524] ss:$40 sps:$4 sm:$0xff]  }
 0x60c   :  { %12032 = vmatpush1.bf16.msra.mxu1 %v25076_v53  ;;  %v25100_v53 = vld [vmem:[#allocation10] ss:$40 sps:$4 sm:$0xff]  }
 0x60d   :  { %11979 = vmatpush1.bf16.msra.mxu0 %v25073_v6  ;;  %12033 = vmatprep.subr.bf16.mxu1 %v25084_v19  ;;  %v25097_v6 = vld [vmem:[#allocation8 + $0x520] ss:$40 sps:$4 sm:$0xff]   ;;  %v25108_v19 = vld [vmem:[#allocation10 + $0x54] ss:$40 sps:$4 sm:$0xff]  }
 0x60e   :  { %11980 = vmatprep.subr.bf16.mxu0 %v25081_v7  ;;  %v25105_v7 = vld [vmem:[#allocation8 + $0x574] ss:$40 sps:$4 sm:$0xff]  }
 0x610   :  { %12034 = vmatpush1.bf16.msra.mxu1 %v25082_v4  ;;  %v25103_v4 = vld [vmem:[#allocation8 + $0x570] ss:$40 sps:$4 sm:$0xff]  }
 0x611   :  { %11981 = vmatpush1.bf16.msra.mxu0 %v25079_v35  ;;  %12035 = vmatprep.subr.bf16.mxu1 %v25090_v10  ;;  %v27240_v35 = vld [vmem:[#allocation5] ss:$40 sps:$4 sm:$0xff]   ;;  %v25111_v10 = vld [vmem:[#allocation8 + $0x5c4] ss:$40 sps:$4 sm:$0xff]  }
 0x612   :  { %11982 = vmatprep.subr.bf16.mxu0 %v25087_v33  ;;  %v25106_v33 = vld [vmem:[#allocation10 + $0x50] ss:$40 sps:$4 sm:$0xff]  }
 0x614   :  { %12036 = vmatpush1.bf16.msra.mxu1 %v25088_v18  ;;  %v27244_v18 = vld [vmem:[#allocation5 + $0x54] ss:$40 sps:$4 sm:$0xff]  }
 0x615   :  { %11983 = vmatpush1.bf16.msra.mxu0 %v25085_v14  ;;  %12037 = vmatprep.subr.bf16.mxu1 %v25096_v3  ;;  %v25114_v14 = vld [vmem:[#allocation10 + $0xa4] ss:$40 sps:$4 sm:$0xff]   ;;  %v25117_v3 = vld [vmem:[#allocation8 + $0x614] ss:$40 sps:$4 sm:$0xff]  }
 0x616   :  { %11984 = vmatprep.subr.bf16.mxu0 %v25093_v52  ;;  %v25112_v52 = vld [vmem:[#allocation10 + $0xa0] ss:$40 sps:$4 sm:$0xff]  }
 0x618   :  { %12038 = vmatpush1.bf16.msra.mxu1 %v25094_v47  ;;  %v27248_v47 = vld [vmem:[#allocation5 + $0x50] ss:$40 sps:$4 sm:$0xff]  }
 0x619   :  { %11985 = vmatpush1.bf16.msra.mxu0 %v25091_v8  ;;  %12060 = vmatprep.subr.bf16.mxu1 %v25099_v55  ;;  %v25120_v8 = vld [vmem:[#allocation10 + $0xf4] ss:$40 sps:$4 sm:$0xff]   ;;  %v25118_v55 = vld [vmem:[#allocation10 + $0xf0] ss:$40 sps:$4 sm:$0xff]  }
 0x61a   :  { %17072 = vmatprep.subr.bf16.mxu0 %v25102_v38  ;;  %v25123_v38 = vld [vmem:[#allocation8 + $0x664] ss:$40 sps:$4 sm:$0xff]  }
 0x61b   :  { %12040 = vmatmul.mubr.bf16.vlgmr.msra.gmra.mrb[28].mxu1 %v27240_v35 }
 0x61c   :  { %11987 = vmatmul.mubr.bf16.vlgmr.msra.gmra.mrb[20].mxu0 %v27223_v17  ;;  %12061 = vmatpush1.bf16.msra.mxu1 %v25097_v6  ;;  %v25109_v17 = vld [vmem:[#allocation8 + $0x5c0] ss:$40 sps:$4 sm:$0xff]   ;;  %v25126_v6 = vld [vmem:[#allocation10 + $0x144] ss:$40 sps:$4 sm:$0xff]  }
 0x61d   :  { %17073 = vmatpush1.bf16.msra.mxu0 %v25100_v53  ;;  %12062 = vmatprep.subr.bf16.mxu1 %v25105_v7  ;;  %v27251_v53 = vld [vmem:[#allocation5 + $0xc] ss:$40 sps:$4 sm:$0xff]   ;;  %v25124_v7 = vld [vmem:[#allocation10 + $0x140] ss:$40 sps:$4 sm:$0xff]  }
 0x61e   :  { %17074 = vmatprep.subr.bf16.mxu0 %v25108_v19  ;;  %11996 = vmatprep.mubr.bf16.mxu0 %v27227_v40  ;;  %v25115_v40 = vld [vmem:[#allocation8 + $0x610] ss:$40 sps:$4 sm:$0xff]   ;;  %v25129_v19 = vld [vmem:[#allocation8 + $0x6b4] ss:$40 sps:$4 sm:$0xff]  }
 0x61f   :  { %12049 = vmatprep.mubr.bf16.mxu1 %v27244_v18 }
 0x620   :  { %12063 = vmatpush1.bf16.msra.mxu1 %v25103_v4  ;;  %v25132_v4 = vld [vmem:[#allocation10 + $0x194] ss:$40 sps:$4 sm:$0xff]  }
 0x621   :  { %17075 = vmatpush1.bf16.msra.mxu0 %v25106_v33  ;;  %12064 = vmatprep.subr.bf16.mxu1 %v25111_v10  ;;  %v25127_v33 = vld [vmem:[#allocation8 + $0x6b0] ss:$40 sps:$4 sm:$0xff]  }
 0x622   :  { %17076 = vmatprep.subr.bf16.mxu0 %v25114_v14  ;;  %v25130_v10 = vld [vmem:[#allocation10 + $0x190] ss:$40 sps:$4 sm:$0xff]   ;;  %v25135_v14 = vld [vmem:[#allocation8 + $0x704] ss:$40 sps:$4 sm:$0xff]  }
 0x623   :  { %12050 = vmatmul.mubr.bf16.gmra.mrb[32].mxu1 %v27248_v47 }
 0x624   :  { %11997 = vmatmul.mubr.bf16.gmra.mrb[24].mxu0 %v27231_v61  ;;  %12065 = vmatpush1.bf16.msra.mxu1 %v25109_v17  ;;  %v25121_v61 = vld [vmem:[#allocation8 + $0x660] ss:$40 sps:$4 sm:$0xff]   ;;  %v25138_v17 = vld [vmem:[#allocation10 + $0x1e4] ss:$40 sps:$4 sm:$0xff]  }
 0x625   :  { %17077 = vmatpush1.bf16.msra.mxu0 %v25112_v52  ;;  %12066 = vmatprep.subr.bf16.mxu1 %v25117_v3  ;;  %v25133_v52 = vld [vmem:[#allocation8 + $0x700] ss:$40 sps:$4 sm:$0xff]   ;;  %v25141_v3 = vld [vmem:[#allocation8 + $0x754] ss:$40 sps:$4 sm:$0xff]  }
 0x626   :  { %17078 = vmatprep.subr.bf16.mxu0 %v25120_v8  ;;  %12092 = vmatprep.mubr.bf16.mxu1 %v27251_v53  ;;  %v25144_v8 = vld [vmem:[#allocation10 + $0x234] ss:$40 sps:$4 sm:$0xff]  }
 0x627   :  { %17104 = vmatprep.mubr.bf16.mxu0 %v27236_v31  ;;  %v25136_v31 = vld [vmem:[#allocation10 + $0x1e0] ss:$40 sps:$4 sm:$0xff]  }
 0x628   :  { %12067 = vmatpush1.bf16.msra.mxu1 %v25115_v40  ;;  %v25139_v40 = vld [vmem:[#allocation8 + $0x750] ss:$40 sps:$4 sm:$0xff]  }
 0x629   :  { %17079 = vmatpush1.bf16.msra.mxu0 %v25118_v55  ;;  %12068 = vmatprep.subr.bf16.mxu1 %v25123_v38  ;;  %v25142_v55 = vld [vmem:[#allocation10 + $0x230] ss:$40 sps:$4 sm:$0xff]   ;;  %v25147_v38 = vld [vmem:[#allocation8 + $0x7a4] ss:$40 sps:$4 sm:$0xff]  }
 0x62a   :  { %17080 = vmatprep.subr.bf16.mxu0 %v25126_v6  ;;  %v25150_v6 = vld [vmem:[#allocation10 + $0x284] ss:$40 sps:$4 sm:$0xff]  }
 0x62c   :  { %12069 = vmatpush1.bf16.msra.mxu1 %v25121_v61  ;;  %v25145_v61 = vld [vmem:[#allocation8 + $0x7a0] ss:$40 sps:$4 sm:$0xff]  }
 0x62d   :  { %17081 = vmatpush1.bf16.msra.mxu0 %v25124_v7  ;;  %12070 = vmatprep.subr.bf16.mxu1 %v25129_v19  ;;  %v25148_v7 = vld [vmem:[#allocation10 + $0x280] ss:$40 sps:$4 sm:$0xff]   ;;  %v25153_v19 = vld [vmem:[#allocation8 + $0x7f4] ss:$40 sps:$4 sm:$0xff]  }
 0x62e   :  { %17082 = vmatprep.subr.bf16.mxu0 %v25132_v4  ;;  %v25156_v4 = vld [vmem:[#allocation10 + $0x2d4] ss:$40 sps:$4 sm:$0xff]  }
 0x630   :  { %12071 = vmatpush1.bf16.msra.mxu1 %v25127_v33  ;;  %v25151_v33 = vld [vmem:[#allocation8 + $0x7f0] ss:$40 sps:$4 sm:$0xff]  }
 0x631   :  { %17083 = vmatpush1.bf16.msra.mxu0 %v25130_v10  ;;  %12072 = vmatprep.subr.bf16.mxu1 %v25135_v14  ;;  %v25154_v10 = vld [vmem:[#allocation10 + $0x2d0] ss:$40 sps:$4 sm:$0xff]   ;;  %v25159_v14 = vld [vmem:[#allocation8 + $0x844] ss:$40 sps:$4 sm:$0xff]  }
 0x632   :  { %17084 = vmatprep.subr.bf16.mxu0 %v25138_v17  ;;  %v25162_v17 = vld [vmem:[#allocation10 + $0x324] ss:$40 sps:$4 sm:$0xff]  }
 0x634   :  { %12073 = vmatpush1.bf16.msra.mxu1 %v25133_v52  ;;  %v25157_v52 = vld [vmem:[#allocation8 + $0x840] ss:$40 sps:$4 sm:$0xff]  }
 0x635   :  { %17085 = vmatpush1.bf16.msra.mxu0 %v25136_v31  ;;  %12074 = vmatprep.subr.bf16.mxu1 %v25141_v3  ;;  %v25160_v31 = vld [vmem:[#allocation10 + $0x320] ss:$40 sps:$4 sm:$0xff]   ;;  %v25165_v3 = vld [vmem:[#allocation8 + $0x894] ss:$40 sps:$4 sm:$0xff]  }
 0x636   :  { %17086 = vmatprep.subr.bf16.mxu0 %v25144_v8  ;;  %v25168_v8 = vld [vmem:[#allocation10 + $0x374] ss:$40 sps:$4 sm:$0xff]  }
 0x638   :  { %12075 = vmatpush1.bf16.msra.mxu1 %v25139_v40  ;;  %v25163_v40 = vld [vmem:[#allocation8 + $0x890] ss:$40 sps:$4 sm:$0xff]  }
 0x639   :  { %17087 = vmatpush1.bf16.msra.mxu0 %v25142_v55  ;;  %12076 = vmatprep.subr.bf16.mxu1 %v25147_v38  ;;  %v25166_v55 = vld [vmem:[#allocation10 + $0x370] ss:$40 sps:$4 sm:$0xff]   ;;  %v25171_v38 = vld [vmem:[#allocation8 + $0x8e4] ss:$40 sps:$4 sm:$0xff]  }
 0x63a   :  { %17088 = vmatprep.subr.bf16.mxu0 %v25150_v6  ;;  %v25174_v6 = vld [vmem:[#allocation10 + $0x3c4] ss:$40 sps:$4 sm:$0xff]  }
 0x63c   :  { %12077 = vmatpush1.bf16.msra.mxu1 %v25145_v61  ;;  %v25169_v61 = vld [vmem:[#allocation8 + $0x8e0] ss:$40 sps:$4 sm:$0xff]  }
 0x63d   :  { %17089 = vmatpush1.bf16.msra.mxu0 %v25148_v7  ;;  %12078 = vmatprep.subr.bf16.mxu1 %v25153_v19  ;;  %v25172_v7 = vld [vmem:[#allocation10 + $0x3c0] ss:$40 sps:$4 sm:$0xff]   ;;  %v25177_v19 = vld [vmem:[#allocation8 + $0x934] ss:$40 sps:$4 sm:$0xff]  }
 0x63e   :  { %17090 = vmatprep.subr.bf16.mxu0 %v25156_v4  ;;  %v25180_v4 = vld [vmem:[#allocation10 + $0x414] ss:$40 sps:$4 sm:$0xff]  }
 0x640   :  { %12079 = vmatpush1.bf16.msra.mxu1 %v25151_v33  ;;  %v25175_v33 = vld [vmem:[#allocation8 + $0x930] ss:$40 sps:$4 sm:$0xff]  }
 0x641   :  { %17091 = vmatpush1.bf16.msra.mxu0 %v25154_v10  ;;  %12080 = vmatprep.subr.bf16.mxu1 %v25159_v14  ;;  %v25178_v10 = vld [vmem:[#allocation10 + $0x410] ss:$40 sps:$4 sm:$0xff]   ;;  %v25183_v14 = vld [vmem:[#allocation8 + $0x984] ss:$40 sps:$4 sm:$0xff]  }
 0x642   :  { %17092 = vmatprep.subr.bf16.mxu0 %v25162_v17  ;;  %v25186_v17 = vld [vmem:[#allocation10 + $0x464] ss:$40 sps:$4 sm:$0xff]  }
 0x644   :  { %12081 = vmatpush1.bf16.msra.mxu1 %v25157_v52  ;;  %v25181_v52 = vld [vmem:[#allocation8 + $0x980] ss:$40 sps:$4 sm:$0xff]  }
 0x645   :  { %17093 = vmatpush1.bf16.msra.mxu0 %v25160_v31  ;;  %12082 = vmatprep.subr.bf16.mxu1 %v25165_v3  ;;  %v25184_v31 = vld [vmem:[#allocation10 + $0x460] ss:$40 sps:$4 sm:$0xff]   ;;  %v25189_v3 = vld [vmem:[#allocation8 + $0x9d4] ss:$40 sps:$4 sm:$0xff]  }
 0x646   :  { %17094 = vmatprep.subr.bf16.mxu0 %v25168_v8  ;;  %v25192_v8 = vld [vmem:[#allocation10 + $0x4b4] ss:$40 sps:$4 sm:$0xff]  }
 0x648   :  { %12083 = vmatpush1.bf16.msra.mxu1 %v25163_v40  ;;  %v25187_v40 = vld [vmem:[#allocation8 + $0x9d0] ss:$40 sps:$4 sm:$0xff]  }
 0x649   :  { %17095 = vmatpush1.bf16.msra.mxu0 %v25166_v55  ;;  %12084 = vmatprep.subr.bf16.mxu1 %v25171_v38  ;;  %v25190_v55 = vld [vmem:[#allocation10 + $0x4b0] ss:$40 sps:$4 sm:$0xff]   ;;  %v25195_v38 = vld [vmem:[#allocation8 + $0xa24] ss:$40 sps:$4 sm:$0xff]  }
 0x64a   :  { %17096 = vmatprep.subr.bf16.mxu0 %v25174_v6  ;;  %v25198_v6 = vld [vmem:[#allocation10 + $0x504] ss:$40 sps:$4 sm:$0xff]  }
 0x64c   :  { %12085 = vmatpush1.bf16.msra.mxu1 %v25169_v61  ;;  %v25193_v61 = vld [vmem:[#allocation8 + $0xa20] ss:$40 sps:$4 sm:$0xff]  }
 0x64d   :  { %17097 = vmatpush1.bf16.msra.mxu0 %v25172_v7  ;;  %12086 = vmatprep.subr.bf16.mxu1 %v25177_v19  ;;  %v25196_v7 = vld [vmem:[#allocation10 + $0x500] ss:$40 sps:$4 sm:$0xff]   ;;  %v25201_v19 = vld [vmem:[#allocation8 + $0xa74] ss:$40 sps:$4 sm:$0xff]  }
 0x64e   :  { %17098 = vmatprep.subr.bf16.mxu0 %v25180_v4  ;;  %v25204_v4 = vld [vmem:[#allocation10 + $0x554] ss:$40 sps:$4 sm:$0xff]  }
 0x650   :  { %12087 = vmatpush1.bf16.msra.mxu1 %v25175_v33  ;;  %v27255_v33 = vld [vmem:[#allocation5 + $0x8] ss:$40 sps:$4 sm:$0xff]  }
 0x651   :  { %17099 = vmatpush1.bf16.msra.mxu0 %v25178_v10  ;;  %12088 = vmatprep.subr.bf16.mxu1 %v25183_v14  ;;  %v25199_v10 = vld [vmem:[#allocation8 + $0xa70] ss:$40 sps:$4 sm:$0xff]  }
 0x652   :  { %17100 = vmatprep.subr.bf16.mxu0 %v25186_v17  ;;  %v25202_v14 = vld [vmem:[#allocation10 + $0x550] ss:$40 sps:$4 sm:$0xff]   ;;  %v25207_v17 = vld [vmem:[#allocation8 + $0xac4] ss:$40 sps:$4 sm:$0xff]  }
 0x654   :  { %12089 = vmatpush1.bf16.msra.mxu1 %v25181_v52  ;;  %v25210_v52 = vld [vmem:[#allocation10 + $0x5a4] ss:$40 sps:$4 sm:$0xff]  }
 0x655   :  { %17101 = vmatpush1.bf16.msra.mxu0 %v25184_v31  ;;  %12090 = vmatprep.subr.bf16.mxu1 %v25189_v3  ;;  %v27259_v31 = vld [vmem:[#allocation5 + $0x5c] ss:$40 sps:$4 sm:$0xff]   ;;  %v25205_v3 = vld [vmem:[#allocation8 + $0xac0] ss:$40 sps:$4 sm:$0xff]  }
 0x656   :  { %17102 = vmatprep.subr.bf16.mxu0 %v25192_v8  ;;  %v25208_v8 = vld [vmem:[#allocation10 + $0x5a0] ss:$40 sps:$4 sm:$0xff]  }
 0x658   :  { %12091 = vmatpush1.bf16.msra.mxu1 %v25187_v40  ;;  %v25216_v40 = vld [vmem:[#allocation10 + $0x5f4] ss:$40 sps:$4 sm:$0xff]  }
 0x659   :  { %17103 = vmatpush1.bf16.msra.mxu0 %v25190_v55  ;;  %12113 = vmatprep.subr.bf16.mxu1 %v25195_v38  ;;  %v27263_v55 = vld [vmem:[#allocation5 + $0x58] ss:$40 sps:$4 sm:$0xff]  }
 0x65a   :  { %17125 = vmatprep.subr.bf16.mxu0 %v25198_v6  ;;  %v25211_v38 = vld [vmem:[#allocation8 + $0xb10] ss:$40 sps:$4 sm:$0xff]  }
 0x65b   :  { %12093 = vmatmul.mubr.bf16.vlgmr.msra.gmra.mrb[28].mxu1 %v27255_v33  ;;  %v25214_v6 = vld [vmem:[#allocation10 + $0x5f0] ss:$40 sps:$4 sm:$0xff]  }
 0x65c   :  { %17105 = vmatmul.mubr.bf16.vlgmr.msra.gmra.mrb[28].mxu0 %v27240_v35  ;;  %12114 = vmatpush1.bf16.msra.mxu1 %v25193_v61  ;;  %v25213_v35 = vld [vmem:[#allocation8 + $0xb14] ss:$40 sps:$4 sm:$0xff]   ;;  %v25222_v61 = vld [vmem:[#allocation10 + $0x644] ss:$40 sps:$4 sm:$0xff]  }
 0x65d   :  { %17126 = vmatpush1.bf16.msra.mxu0 %v25196_v7  ;;  %12115 = vmatprep.subr.bf16.mxu1 %v25201_v19  ;;  %v27267_v7 = vld [vmem:[#allocation5 + $0x14] ss:$40 sps:$4 sm:$0xff]   ;;  %v25217_v19 = vld [vmem:[#allocation8 + $0xb60] ss:$40 sps:$4 sm:$0xff]  }
 0x65e   :  { %17127 = vmatprep.subr.bf16.mxu0 %v25204_v4  ;;  %12102 = vmatprep.mubr.bf16.mxu1 %v27259_v31  ;;  %v25220_v4 = vld [vmem:[#allocation10 + $0x640] ss:$40 sps:$4 sm:$0xff]  }
 0x65f   :  { %17114 = vmatprep.mubr.bf16.mxu0 %v27244_v18  ;;  %v25219_v18 = vld [vmem:[#allocation8 + $0xb64] ss:$40 sps:$4 sm:$0xff]  }
 0x660   :  { %12116 = vmatpush1.bf16.msra.mxu1 %v25199_v10  ;;  %v25228_v10 = vld [vmem:[#allocation10 + $0x694] ss:$40 sps:$4 sm:$0xff]  }
 0x661   :  { %17128 = vmatpush1.bf16.msra.mxu0 %v25202_v14  ;;  %12117 = vmatprep.subr.bf16.mxu1 %v25207_v17  ;;  %v25223_v14 = vld [vmem:[#allocation8 + $0xbb0] ss:$40 sps:$4 sm:$0xff]  }
 0x662   :  { %17129 = vmatprep.subr.bf16.mxu0 %v25210_v52  ;;  %v25226_v17 = vld [vmem:[#allocation10 + $0x690] ss:$40 sps:$4 sm:$0xff]   ;;  %v25231_v52 = vld [vmem:[#allocation8 + $0xc04] ss:$40 sps:$4 sm:$0xff]  }
 0x663   :  { %12103 = vmatmul.mubr.bf16.gmra.mrb[32].mxu1 %v27263_v55 }
 0x664   :  { %17115 = vmatmul.mubr.bf16.gmra.mrb[32].mxu0 %v27248_v47  ;;  %12118 = vmatpush1.bf16.msra.mxu1 %v25205_v3  ;;  %v25225_v47 = vld [vmem:[#allocation8 + $0xbb4] ss:$40 sps:$4 sm:$0xff]   ;;  %v25234_v3 = vld [vmem:[#allocation10 + $0x6e4] ss:$40 sps:$4 sm:$0xff]  }
 0x665   :  { %17130 = vmatpush1.bf16.msra.mxu0 %v25208_v8  ;;  %12119 = vmatprep.subr.bf16.mxu1 %v25213_v35  ;;  %v25229_v8 = vld [vmem:[#allocation8 + $0xc00] ss:$40 sps:$4 sm:$0xff]   ;;  %v25237_v35 = vld [vmem:[#allocation8 + $0xc54] ss:$40 sps:$4 sm:$0xff]  }
 0x666   :  { %17131 = vmatprep.subr.bf16.mxu0 %v25216_v40  ;;  %12145 = vmatprep.mubr.bf16.mxu1 %v27267_v7  ;;  %v25240_v40 = vld [vmem:[#allocation10 + $0x734] ss:$40 sps:$4 sm:$0xff]  }
 0x667   :  { %17157 = vmatprep.mubr.bf16.mxu0 %v27251_v53  ;;  %v25232_v53 = vld [vmem:[#allocation10 + $0x6e0] ss:$40 sps:$4 sm:$0xff]  }
 0x668   :  { %12120 = vmatpush1.bf16.msra.mxu1 %v25211_v38  ;;  %v25235_v38 = vld [vmem:[#allocation8 + $0xc50] ss:$40 sps:$4 sm:$0xff]  }
 0x669   :  { %17132 = vmatpush1.bf16.msra.mxu0 %v25214_v6  ;;  %12121 = vmatprep.subr.bf16.mxu1 %v25219_v18  ;;  %v25238_v6 = vld [vmem:[#allocation10 + $0x730] ss:$40 sps:$4 sm:$0xff]   ;;  %v25243_v18 = vld [vmem:[#allocation8 + $0xca4] ss:$40 sps:$4 sm:$0xff]  }
 0x66a   :  { %17133 = vmatprep.subr.bf16.mxu0 %v25222_v61  ;;  %v25246_v61 = vld [vmem:[#allocation10 + $0x784] ss:$40 sps:$4 sm:$0xff]  }
 0x66c   :  { %12122 = vmatpush1.bf16.msra.mxu1 %v25217_v19  ;;  %v25241_v19 = vld [vmem:[#allocation8 + $0xca0] ss:$40 sps:$4 sm:$0xff]  }
 0x66d   :  { %17134 = vmatpush1.bf16.msra.mxu0 %v25220_v4  ;;  %12123 = vmatprep.subr.bf16.mxu1 %v25225_v47  ;;  %v25244_v4 = vld [vmem:[#allocation10 + $0x780] ss:$40 sps:$4 sm:$0xff]   ;;  %v25249_v47 = vld [vmem:[#allocation8 + $0xcf4] ss:$40 sps:$4 sm:$0xff]  }
 0x66e   :  { %17135 = vmatprep.subr.bf16.mxu0 %v25228_v10  ;;  %v25252_v10 = vld [vmem:[#allocation10 + $0x7d4] ss:$40 sps:$4 sm:$0xff]  }
 0x670   :  { %12124 = vmatpush1.bf16.msra.mxu1 %v25223_v14  ;;  %v25247_v14 = vld [vmem:[#allocation8 + $0xcf0] ss:$40 sps:$4 sm:$0xff]  }
 0x671   :  { %17136 = vmatpush1.bf16.msra.mxu0 %v25226_v17  ;;  %12125 = vmatprep.subr.bf16.mxu1 %v25231_v52  ;;  %v25250_v17 = vld [vmem:[#allocation10 + $0x7d0] ss:$40 sps:$4 sm:$0xff]   ;;  %v25255_v52 = vld [vmem:[#allocation8 + $0xd44] ss:$40 sps:$4 sm:$0xff]  }
 0x672   :  { %17137 = vmatprep.subr.bf16.mxu0 %v25234_v3  ;;  %v25258_v3 = vld [vmem:[#allocation10 + $0x824] ss:$40 sps:$4 sm:$0xff]  }
 0x674   :  { %12126 = vmatpush1.bf16.msra.mxu1 %v25229_v8  ;;  %v25253_v8 = vld [vmem:[#allocation8 + $0xd40] ss:$40 sps:$4 sm:$0xff]  }
 0x675   :  { %17138 = vmatpush1.bf16.msra.mxu0 %v25232_v53  ;;  %12127 = vmatprep.subr.bf16.mxu1 %v25237_v35  ;;  %v25256_v53 = vld [vmem:[#allocation10 + $0x820] ss:$40 sps:$4 sm:$0xff]   ;;  %v25261_v35 = vld [vmem:[#allocation8 + $0xd94] ss:$40 sps:$4 sm:$0xff]  }
 0x676   :  { %17139 = vmatprep.subr.bf16.mxu0 %v25240_v40  ;;  %v25264_v40 = vld [vmem:[#allocation10 + $0x874] ss:$40 sps:$4 sm:$0xff]  }
 0x678   :  { %12128 = vmatpush1.bf16.msra.mxu1 %v25235_v38  ;;  %v25259_v38 = vld [vmem:[#allocation8 + $0xd90] ss:$40 sps:$4 sm:$0xff]  }
 0x679   :  { %17140 = vmatpush1.bf16.msra.mxu0 %v25238_v6  ;;  %12129 = vmatprep.subr.bf16.mxu1 %v25243_v18  ;;  %v25262_v6 = vld [vmem:[#allocation10 + $0x870] ss:$40 sps:$4 sm:$0xff]   ;;  %v25267_v18 = vld [vmem:[#allocation8 + $0xde4] ss:$40 sps:$4 sm:$0xff]  }
 0x67a   :  { %17141 = vmatprep.subr.bf16.mxu0 %v25246_v61  ;;  %v25270_v61 = vld [vmem:[#allocation10 + $0x8c4] ss:$40 sps:$4 sm:$0xff]  }
 0x67c   :  { %12130 = vmatpush1.bf16.msra.mxu1 %v25241_v19  ;;  %v25265_v19 = vld [vmem:[#allocation8 + $0xde0] ss:$40 sps:$4 sm:$0xff]  }
 0x67d   :  { %17142 = vmatpush1.bf16.msra.mxu0 %v25244_v4  ;;  %12131 = vmatprep.subr.bf16.mxu1 %v25249_v47  ;;  %v25268_v4 = vld [vmem:[#allocation10 + $0x8c0] ss:$40 sps:$4 sm:$0xff]   ;;  %v25273_v47 = vld [vmem:[#allocation8 + $0xe34] ss:$40 sps:$4 sm:$0xff]  }
 0x67e   :  { %17143 = vmatprep.subr.bf16.mxu0 %v25252_v10  ;;  %v25276_v10 = vld [vmem:[#allocation10 + $0x914] ss:$40 sps:$4 sm:$0xff]  }
 0x680   :  { %12132 = vmatpush1.bf16.msra.mxu1 %v25247_v14  ;;  %v25271_v14 = vld [vmem:[#allocation8 + $0xe30] ss:$40 sps:$4 sm:$0xff]  }
 0x681   :  { %17144 = vmatpush1.bf16.msra.mxu0 %v25250_v17  ;;  %12133 = vmatprep.subr.bf16.mxu1 %v25255_v52  ;;  %v25274_v17 = vld [vmem:[#allocation10 + $0x910] ss:$40 sps:$4 sm:$0xff]   ;;  %v25279_v52 = vld [vmem:[#allocation8 + $0xe84] ss:$40 sps:$4 sm:$0xff]  }
 0x682   :  { %17145 = vmatprep.subr.bf16.mxu0 %v25258_v3  ;;  %v25282_v3 = vld [vmem:[#allocation10 + $0x964] ss:$40 sps:$4 sm:$0xff]  }
 0x684   :  { %12134 = vmatpush1.bf16.msra.mxu1 %v25253_v8  ;;  %v25277_v8 = vld [vmem:[#allocation8 + $0xe80] ss:$40 sps:$4 sm:$0xff]  }
 0x685   :  { %17146 = vmatpush1.bf16.msra.mxu0 %v25256_v53  ;;  %12135 = vmatprep.subr.bf16.mxu1 %v25261_v35  ;;  %v25280_v53 = vld [vmem:[#allocation10 + $0x960] ss:$40 sps:$4 sm:$0xff]   ;;  %v25285_v35 = vld [vmem:[#allocation8 + $0xed4] ss:$40 sps:$4 sm:$0xff]  }
 0x686   :  { %17147 = vmatprep.subr.bf16.mxu0 %v25264_v40  ;;  %v25288_v40 = vld [vmem:[#allocation10 + $0x9b4] ss:$40 sps:$4 sm:$0xff]  }
 0x688   :  { %12136 = vmatpush1.bf16.msra.mxu1 %v25259_v38  ;;  %v25283_v38 = vld [vmem:[#allocation8 + $0xed0] ss:$40 sps:$4 sm:$0xff]  }
 0x689   :  { %17148 = vmatpush1.bf16.msra.mxu0 %v25262_v6  ;;  %12137 = vmatprep.subr.bf16.mxu1 %v25267_v18  ;;  %v25286_v6 = vld [vmem:[#allocation10 + $0x9b0] ss:$40 sps:$4 sm:$0xff]   ;;  %v25291_v18 = vld [vmem:[#allocation8 + $0xf24] ss:$40 sps:$4 sm:$0xff]  }
 0x68a   :  { %17149 = vmatprep.subr.bf16.mxu0 %v25270_v61  ;;  %v25294_v61 = vld [vmem:[#allocation10 + $0xa04] ss:$40 sps:$4 sm:$0xff]  }
 0x68c   :  { %12138 = vmatpush1.bf16.msra.mxu1 %v25265_v19  ;;  %v25289_v19 = vld [vmem:[#allocation8 + $0xf20] ss:$40 sps:$4 sm:$0xff]  }
 0x68d   :  { %17150 = vmatpush1.bf16.msra.mxu0 %v25268_v4  ;;  %12139 = vmatprep.subr.bf16.mxu1 %v25273_v47  ;;  %v25292_v4 = vld [vmem:[#allocation10 + $0xa00] ss:$40 sps:$4 sm:$0xff]   ;;  %v25297_v47 = vld [vmem:[#allocation8 + $0xf74] ss:$40 sps:$4 sm:$0xff]  }
 0x68e   :  { %17151 = vmatprep.subr.bf16.mxu0 %v25276_v10  ;;  %v25300_v10 = vld [vmem:[#allocation10 + $0xa54] ss:$40 sps:$4 sm:$0xff]  }
 0x690   :  { %12140 = vmatpush1.bf16.msra.mxu1 %v25271_v14  ;;  %v27271_v14 = vld [vmem:[#allocation5 + $0x10] ss:$40 sps:$4 sm:$0xff]  }
 0x691   :  { %17152 = vmatpush1.bf16.msra.mxu0 %v25274_v17  ;;  %12141 = vmatprep.subr.bf16.mxu1 %v25279_v52  ;;  %v25295_v17 = vld [vmem:[#allocation8 + $0xf70] ss:$40 sps:$4 sm:$0xff]  }
 0x692   :  { %17153 = vmatprep.subr.bf16.mxu0 %v25282_v3  ;;  %v25298_v52 = vld [vmem:[#allocation10 + $0xa50] ss:$40 sps:$4 sm:$0xff]   ;;  %v25303_v3 = vld [vmem:[#allocation8 + $0xfc4] ss:$40 sps:$4 sm:$0xff]  }
 0x694   :  { %12142 = vmatpush1.bf16.msra.mxu1 %v25277_v8  ;;  %v25306_v8 = vld [vmem:[#allocation10 + $0xaa4] ss:$40 sps:$4 sm:$0xff]  }
 0x695   :  { %17154 = vmatpush1.bf16.msra.mxu0 %v25280_v53  ;;  %12143 = vmatprep.subr.bf16.mxu1 %v25285_v35  ;;  %v27275_v53 = vld [vmem:[#allocation5 + $0x64] ss:$40 sps:$4 sm:$0xff]   ;;  %v25301_v35 = vld [vmem:[#allocation8 + $0xfc0] ss:$40 sps:$4 sm:$0xff]  }
 0x696   :  { %17155 = vmatprep.subr.bf16.mxu0 %v25288_v40  ;;  %v25304_v40 = vld [vmem:[#allocation10 + $0xaa0] ss:$40 sps:$4 sm:$0xff]  }
 0x698   :  { %12144 = vmatpush1.bf16.msra.mxu1 %v25283_v38  ;;  %v25312_v38 = vld [vmem:[#allocation10 + $0xaf4] ss:$40 sps:$4 sm:$0xff]  }
 0x699   :  { %17156 = vmatpush1.bf16.msra.mxu0 %v25286_v6  ;;  %12166 = vmatprep.subr.bf16.mxu1 %v25291_v18  ;;  %v27279_v6 = vld [vmem:[#allocation5 + $0x60] ss:$40 sps:$4 sm:$0xff]   ;;  %v25307_v18 = vld [vmem:[#allocation8 + $0x1010] ss:$40 sps:$4 sm:$0xff]  }
 0x69a   :  { %17178 = vmatprep.subr.bf16.mxu0 %v25294_v61  ;;  %v25310_v61 = vld [vmem:[#allocation10 + $0xaf0] ss:$40 sps:$4 sm:$0xff]  }
 0x69b   :  { %12146 = vmatmul.mubr.bf16.vlgmr.msra.gmra.mrb[28].mxu1 %v27271_v14 }
 0x69c   :  { %17158 = vmatmul.mubr.bf16.vlgmr.msra.gmra.mrb[28].mxu0 %v27255_v33  ;;  %12167 = vmatpush1.bf16.msra.mxu1 %v25289_v19  ;;  %v25309_v33 = vld [vmem:[#allocation8 + $0x1014] ss:$40 sps:$4 sm:$0xff]   ;;  %v25318_v19 = vld [vmem:[#allocation10 + $0xb44] ss:$40 sps:$4 sm:$0xff]  }
 0x69d   :  { %17179 = vmatpush1.bf16.msra.mxu0 %v25292_v4  ;;  %12168 = vmatprep.subr.bf16.mxu1 %v25297_v47  ;;  %v27283_v4 = vld [vmem:[#allocation5 + $0x1c] ss:$40 sps:$4 sm:$0xff]   ;;  %v25313_v47 = vld [vmem:[#allocation8 + $0x1060] ss:$40 sps:$4 sm:$0xff]  }
 0x69e   :  { %17180 = vmatprep.subr.bf16.mxu0 %v25300_v10  ;;  %12155 = vmatprep.mubr.bf16.mxu1 %v27275_v53  ;;  %v25316_v10 = vld [vmem:[#allocation10 + $0xb40] ss:$40 sps:$4 sm:$0xff]  }
 0x69f   :  { %17167 = vmatprep.mubr.bf16.mxu0 %v27259_v31  ;;  %v25315_v31 = vld [vmem:[#allocation8 + $0x1064] ss:$40 sps:$4 sm:$0xff]  }
 0x6a0   :  { %12169 = vmatpush1.bf16.msra.mxu1 %v25295_v17  ;;  %v25324_v17 = vld [vmem:[#allocation10 + $0xb94] ss:$40 sps:$4 sm:$0xff]  }
 0x6a1   :  { %17181 = vmatpush1.bf16.msra.mxu0 %v25298_v52  ;;  %12170 = vmatprep.subr.bf16.mxu1 %v25303_v3  ;;  %v25319_v52 = vld [vmem:[#allocation8 + $0x10b0] ss:$40 sps:$4 sm:$0xff]  }
 0x6a2   :  { %17182 = vmatprep.subr.bf16.mxu0 %v25306_v8  ;;  %v25322_v3 = vld [vmem:[#allocation10 + $0xb90] ss:$40 sps:$4 sm:$0xff]   ;;  %v25327_v8 = vld [vmem:[#allocation8 + $0x1104] ss:$40 sps:$4 sm:$0xff]  }
 0x6a3   :  { %12156 = vmatmul.mubr.bf16.gmra.mrb[32].mxu1 %v27279_v6 }
 0x6a4   :  { %17168 = vmatmul.mubr.bf16.gmra.mrb[32].mxu0 %v27263_v55  ;;  %12171 = vmatpush1.bf16.msra.mxu1 %v25301_v35  ;;  %v25321_v55 = vld [vmem:[#allocation8 + $0x10b4] ss:$40 sps:$4 sm:$0xff]   ;;  %v25330_v35 = vld [vmem:[#allocation10 + $0xbe4] ss:$40 sps:$4 sm:$0xff]  }
 0x6a5   :  { %17183 = vmatpush1.bf16.msra.mxu0 %v25304_v40  ;;  %12172 = vmatprep.subr.bf16.mxu1 %v25309_v33 }
 0x6a6   :  { %17184 = vmatprep.subr.bf16.mxu0 %v25312_v38  ;;  %12198 = vmatprep.mubr.bf16.mxu1 %v27283_v4  ;;  %v25325_v38 = vld [vmem:[#allocation8 + $0x1100] ss:$40 sps:$4 sm:$0xff]  }
 0x6a7   :  { %17210 = vmatprep.mubr.bf16.mxu0 %v27267_v7 }
 0x6a8   :  { %12173 = vmatpush1.bf16.msra.mxu1 %v25307_v18  ;;  %v25328_v18 = vld [vmem:[#allocation10 + $0xbe0] ss:$40 sps:$4 sm:$0xff]  }
 0x6a9   :  { %17185 = vmatpush1.bf16.msra.mxu0 %v25310_v61  ;;  %12174 = vmatprep.subr.bf16.mxu1 %v25315_v31  ;;  %v25343_v61 = vld [vmem:[#allocation8 + $0x11f0] ss:$40 sps:$4 sm:$0xff]  }
 0x6aa   :  { %17186 = vmatprep.subr.bf16.mxu0 %v25318_v19  ;;  %v25333_v19 = vld [vmem:[#allocation8 + $0x1154] ss:$40 sps:$4 sm:$0xff]  }
 0x6ac   :  { %12175 = vmatpush1.bf16.msra.mxu1 %v25313_v47  ;;  %v25336_v47 = vld [vmem:[#allocation10 + $0xc34] ss:$40 sps:$4 sm:$0xff]  }
 0x6ad   :  { %17187 = vmatpush1.bf16.msra.mxu0 %v25316_v10  ;;  %12176 = vmatprep.subr.bf16.mxu1 %v25321_v55  ;;  %v25331_v55 = vld [vmem:[#allocation8 + $0x1150] ss:$40 sps:$4 sm:$0xff]  }
 0x6ae   :  { %17188 = vmatprep.subr.bf16.mxu0 %v25324_v17  ;;  %v27287_v40 = vpop.f32.mrb[20].mxu1  ;;  %v25334_v17 = vld [vmem:[#allocation10 + $0xc30] ss:$40 sps:$4 sm:$0xff]  }
 0x6af   :  { %v27289_v33 = vpop.f32.mrb[21].mxu1  ;;  %v25346_v10 = vld [vmem:[#allocation10 + $0xcd0] ss:$40 sps:$4 sm:$0xff]  }
 0x6b0   :  { %v27291_v7 = vpop.f32.mrb[22].mxu1  ;;  %12177 = vmatpush1.bf16.msra.mxu1 %v25319_v52  ;;  %v25339_v52 = vld [vmem:[#allocation8 + $0x11a4] ss:$40 sps:$4 sm:$0xff]  }
 0x6b1   :  { %17189 = vmatpush1.bf16.msra.mxu0 %v25322_v3  ;;  %v27295_v31 = vpop.f32.mrb[23].mxu1  ;;  %12178 = vmatprep.subr.bf16.mxu1 %v25327_v8  ;;  %v25342_v3 = vld [vmem:[#allocation10 + $0xc84] ss:$40 sps:$4 sm:$0xff]   ;;  %v25337_v8 = vld [vmem:[#allocation8 + $0x11a0] ss:$40 sps:$4 sm:$0xff]  }
 0x6b2   :  { %17190 = vmatprep.subr.bf16.mxu0 %v25330_v35  ;;  %v25340_v35 = vld [vmem:[#allocation10 + $0xc80] ss:$40 sps:$4 sm:$0xff]  }
 0x6b4   :  { %12179 = vmatpush1.bf16.msra.mxu1 %v25325_v38  ;;  %v25349_v38 = vld [vmem:[#allocation8 + $0x1240] ss:$40 sps:$4 sm:$0xff]  }
 0x6b5   :  { %17191 = vmatpush1.bf16.msra.mxu0 %v25328_v18  ;;  %12180 = vmatprep.subr.bf16.mxu1 %v25333_v19  ;;  %v25345_v19 = vld [vmem:[#allocation8 + $0x11f4] ss:$40 sps:$4 sm:$0xff]  }
 0x6b6   :  { %17192 = vmatprep.subr.bf16.mxu0 %v25336_v47  ;;  %v27299_v51 = vpop.f32.mrb[24].mxu1  ;;  %v25348_v47 = vld [vmem:[#allocation10 + $0xcd4] ss:$40 sps:$4 sm:$0xff]  }
 0x6b7   :  { %27876 = vst [vmem:[#allocation35_spill] sm:$0xff] %v27299_v51  ;;  %v27301_v56 = vpop.f32.mrb[25].mxu1  ;;  %v25823_v51 = vld [vmem:[#allocation10 + $0x11d8] ss:$40 sps:$4 sm:$0xff]  }
 0x6b8   :  { %27877 = vst [vmem:[#allocation36_spill] sm:$0xff] %v27301_v56  ;;  %v27303_v22 = vpop.f32.mrb[26].mxu1  ;;  %12181 = vmatpush1.bf16.msra.mxu1 %v25331_v55  ;;  %v25351_v55 = vld [vmem:[#allocation8 + $0x1244] ss:$40 sps:$4 sm:$0xff]  }
 0x6b9   :  { %27878 = vst [vmem:[#allocation37_spill] sm:$0xff] %v27303_v22  ;;  %17193 = vmatpush1.bf16.msra.mxu0 %v25334_v17  ;;  %v27307_v18 = vpop.f32.mrb[27].mxu1  ;;  %12182 = vmatprep.subr.bf16.mxu1 %v25339_v52  ;;  %v25354_v17 = vld [vmem:[#allocation10 + $0xd24] ss:$40 sps:$4 sm:$0xff]   ;;  %v25357_v52 = vld [vmem:[#allocation8 + $0x1294] ss:$40 sps:$4 sm:$0xff]  }
 0x6ba   :  { %27879 = vst [vmem:[#allocation38_spill] sm:$0xff] %v27307_v18  ;;  %17194 = vmatprep.subr.bf16.mxu0 %v25342_v3  ;;  %v25360_v3 = vld [vmem:[#allocation10 + $0xd74] ss:$40 sps:$4 sm:$0xff]   ;;  %v25826_v22 = vld [vmem:[#allocation10 + $0xce0] ss:$40 sps:$4 sm:$0xff]  }
 0x6bb   :  { %v25919_v18 = vld [vmem:[#allocation10 + $0x16d8] ss:$40 sps:$4 sm:$0xff]  }
 0x6bc   :  { %12183 = vmatpush1.bf16.msra.mxu1 %v25337_v8  ;;  %v25363_v8 = vld [vmem:[#allocation8 + $0x12e4] ss:$40 sps:$4 sm:$0xff]  }
 0x6bd   :  { %17195 = vmatpush1.bf16.msra.mxu0 %v25340_v35  ;;  %12184 = vmatprep.subr.bf16.mxu1 %v25345_v19  ;;  %v25366_v35 = vld [vmem:[#allocation10 + $0xdc4] ss:$40 sps:$4 sm:$0xff]   ;;  %v25361_v19 = vld [vmem:[#allocation8 + $0x12e0] ss:$40 sps:$4 sm:$0xff]  }
 0x6be   :  { %17196 = vmatprep.subr.bf16.mxu0 %v25348_v47  ;;  %v25364_v47 = vld [vmem:[#allocation10 + $0xdc0] ss:$40 sps:$4 sm:$0xff]  }
 0x6c0   :  { %12185 = vmatpush1.bf16.msra.mxu1 %v25343_v61  ;;  %v25369_v61 = vld [vmem:[#allocation8 + $0x1334] ss:$40 sps:$4 sm:$0xff]  }
 0x6c1   :  { %17197 = vmatpush1.bf16.msra.mxu0 %v25346_v10  ;;  %12186 = vmatprep.subr.bf16.mxu1 %v25351_v55  ;;  %v25372_v10 = vld [vmem:[#allocation10 + $0xe14] ss:$40 sps:$4 sm:$0xff]   ;;  %v25367_v55 = vld [vmem:[#allocation8 + $0x1330] ss:$40 sps:$4 sm:$0xff]  }
 0x6c2   :  { %17198 = vmatprep.subr.bf16.mxu0 %v25354_v17  ;;  %v25370_v17 = vld [vmem:[#allocation10 + $0xe10] ss:$40 sps:$4 sm:$0xff]  }
 0x6c4   :  { %12187 = vmatpush1.bf16.msra.mxu1 %v25349_v38  ;;  %v25378_v38 = vld [vmem:[#allocation10 + $0xe64] ss:$40 sps:$4 sm:$0xff]  }
 0x6c5   :  { %17199 = vmatpush1.bf16.msra.mxu0 %v25352_v41  ;;  %12188 = vmatprep.subr.bf16.mxu1 %v25357_v52  ;;  %v25375_v41 = vld [vmem:[#allocation8 + $0x1384] ss:$40 sps:$4 sm:$0xff]   ;;  %v25373_v52 = vld [vmem:[#allocation8 + $0x1380] ss:$40 sps:$4 sm:$0xff]  }
 0x6c6   :  { %17200 = vmatprep.subr.bf16.mxu0 %v25360_v3  ;;  %v25376_v3 = vld [vmem:[#allocation10 + $0xe60] ss:$40 sps:$4 sm:$0xff]  }
 0x6c8   :  { %12189 = vmatpush1.bf16.msra.mxu1 %v25355_v54  ;;  %v25384_v54 = vld [vmem:[#allocation10 + $0xeb4] ss:$40 sps:$4 sm:$0xff]  }
 0x6c9   :  { %17201 = vmatpush1.bf16.msra.mxu0 %v25358_v48  ;;  %12190 = vmatprep.subr.bf16.mxu1 %v25363_v8  ;;  %v25381_v48 = vld [vmem:[#allocation8 + $0x13d4] ss:$40 sps:$4 sm:$0xff]   ;;  %v25379_v8 = vld [vmem:[#allocation8 + $0x13d0] ss:$40 sps:$4 sm:$0xff]  }
 0x6ca   :  { %17202 = vmatprep.subr.bf16.mxu0 %v25366_v35  ;;  %v25382_v35 = vld [vmem:[#allocation10 + $0xeb0] ss:$40 sps:$4 sm:$0xff]  }
 0x6cc   :  { %12191 = vmatpush1.bf16.msra.mxu1 %v25361_v19  ;;  %v25387_v19 = vld [vmem:[#allocation8 + $0x1424] ss:$40 sps:$4 sm:$0xff]  }
 0x6cd   :  { %17203 = vmatpush1.bf16.msra.mxu0 %v25364_v47  ;;  %12192 = vmatprep.subr.bf16.mxu1 %v25369_v61  ;;  %v25390_v47 = vld [vmem:[#allocation10 + $0xf04] ss:$40 sps:$4 sm:$0xff]   ;;  %v25385_v61 = vld [vmem:[#allocation8 + $0x1420] ss:$40 sps:$4 sm:$0xff]  }
 0x6ce   :  { %17204 = vmatprep.subr.bf16.mxu0 %v25372_v10  ;;  %v25388_v10 = vld [vmem:[#allocation10 + $0xf00] ss:$40 sps:$4 sm:$0xff]  }
 0x6d0   :  { %12193 = vmatpush1.bf16.msra.mxu1 %v25367_v55  ;;  %v25393_v55 = vld [vmem:[#allocation8 + $0x1474] ss:$40 sps:$4 sm:$0xff]  }
 0x6d1   :  { %17205 = vmatpush1.bf16.msra.mxu0 %v25370_v17  ;;  %12194 = vmatprep.subr.bf16.mxu1 %v25375_v41  ;;  %v25396_v17 = vld [vmem:[#allocation10 + $0xf54] ss:$40 sps:$4 sm:$0xff]   ;;  %v27311_v41 = vld [vmem:[#allocation5 + $0x18] ss:$40 sps:$4 sm:$0xff]  }
 0x6d2   :  { %17206 = vmatprep.subr.bf16.mxu0 %v25378_v38  ;;  %v25391_v38 = vld [vmem:[#allocation8 + $0x1470] ss:$40 sps:$4 sm:$0xff]  }
 0x6d4   :  { %12195 = vmatpush1.bf16.msra.mxu1 %v25373_v52  ;;  %v25394_v52 = vld [vmem:[#allocation10 + $0xf50] ss:$40 sps:$4 sm:$0xff]  }
 0x6d5   :  { %17207 = vmatpush1.bf16.msra.mxu0 %v25376_v3  ;;  %12196 = vmatprep.subr.bf16.mxu1 %v25381_v48  ;;  %v25399_v3 = vld [vmem:[#allocation8 + $0x14c4] ss:$40 sps:$4 sm:$0xff]  }
 0x6d6   :  { %17208 = vmatprep.subr.bf16.mxu0 %v25384_v54  ;;  %v25402_v48 = vld [vmem:[#allocation10 + $0xfa4] ss:$40 sps:$4 sm:$0xff]  }
 0x6d7   :  { %v27315_v54 = vld [vmem:[#allocation5 + $0x6c] ss:$40 sps:$4 sm:$0xff]  }
 0x6d8   :  { %12197 = vmatpush1.bf16.msra.mxu1 %v25379_v8  ;;  %v25397_v8 = vld [vmem:[#allocation8 + $0x14c0] ss:$40 sps:$4 sm:$0xff]  }
 0x6d9   :  { %17209 = vmatpush1.bf16.msra.mxu0 %v25382_v35  ;;  %12219 = vmatprep.subr.bf16.mxu1 %v25387_v19  ;;  %v25400_v35 = vld [vmem:[#allocation10 + $0xfa0] ss:$40 sps:$4 sm:$0xff]   ;;  %v25408_v19 = vld [vmem:[#allocation10 + $0xff4] ss:$40 sps:$4 sm:$0xff]  }
 0x6da   :  { %17231 = vmatprep.subr.bf16.mxu0 %v25390_v47  ;;  %v27319_v47 = vld [vmem:[#allocation5 + $0x68] ss:$40 sps:$4 sm:$0xff]  }
 0x6db   :  { %12199 = vmatmul.mubr.bf16.vlgmr.msra.gmra.mrb[28].mxu1 %v27311_v41 }
 0x6dc   :  { %17211 = vmatmul.mubr.bf16.vlgmr.msra.gmra.mrb[28].mxu0 %v27271_v14  ;;  %12220 = vmatpush1.bf16.msra.mxu1 %v25385_v61  ;;  %v25405_v14 = vld [vmem:[#allocation8 + $0x1514] ss:$40 sps:$4 sm:$0xff]   ;;  %v25403_v61 = vld [vmem:[#allocation8 + $0x1510] ss:$40 sps:$4 sm:$0xff]  }
 0x6dd   :  { %17232 = vmatpush1.bf16.msra.mxu0 %v25388_v10  ;;  %12221 = vmatprep.subr.bf16.mxu1 %v25393_v55  ;;  %v25406_v10 = vld [vmem:[#allocation10 + $0xff0] ss:$40 sps:$4 sm:$0xff]   ;;  %v25414_v55 = vld [vmem:[#allocation10 + $0x1044] ss:$40 sps:$4 sm:$0xff]  }
 0x6de   :  { %17233 = vmatprep.subr.bf16.mxu0 %v25396_v17  ;;  %12208 = vmatprep.mubr.bf16.mxu1 %v27315_v54  ;;  %v27323_v17 = vld [vmem:[#allocation5 + $0x24] ss:$40 sps:$4 sm:$0xff]  }
 0x6df   :  { %17220 = vmatprep.mubr.bf16.mxu0 %v27275_v53  ;;  %v25411_v53 = vld [vmem:[#allocation8 + $0x1564] ss:$40 sps:$4 sm:$0xff]  }
 0x6e0   :  { %12222 = vmatpush1.bf16.msra.mxu1 %v25391_v38  ;;  %v25409_v38 = vld [vmem:[#allocation8 + $0x1560] ss:$40 sps:$4 sm:$0xff]  }
 0x6e1   :  { %17234 = vmatpush1.bf16.msra.mxu0 %v25394_v52  ;;  %12223 = vmatprep.subr.bf16.mxu1 %v25399_v3  ;;  %v25412_v52 = vld [vmem:[#allocation10 + $0x1040] ss:$40 sps:$4 sm:$0xff]   ;;  %v25420_v3 = vld [vmem:[#allocation10 + $0x1094] ss:$40 sps:$4 sm:$0xff]  }
 0x6e2   :  { %17235 = vmatprep.subr.bf16.mxu0 %v25402_v48  ;;  %v25415_v48 = vld [vmem:[#allocation8 + $0x15b0] ss:$40 sps:$4 sm:$0xff]  }
 0x6e3   :  { %12209 = vmatmul.mubr.bf16.gmra.mrb[32].mxu1 %v27319_v47 }
 0x6e4   :  { %17221 = vmatmul.mubr.bf16.gmra.mrb[32].mxu0 %v27279_v6  ;;  %12224 = vmatpush1.bf16.msra.mxu1 %v25397_v8  ;;  %v25417_v6 = vld [vmem:[#allocation8 + $0x15b4] ss:$40 sps:$4 sm:$0xff]   ;;  %v25418_v8 = vld [vmem:[#allocation10 + $0x1090] ss:$40 sps:$4 sm:$0xff]  }
 0x6e5   :  { %17236 = vmatpush1.bf16.msra.mxu0 %v25400_v35  ;;  %12225 = vmatprep.subr.bf16.mxu1 %v25405_v14  ;;  %v25423_v35 = vld [vmem:[#allocation8 + $0x1604] ss:$40 sps:$4 sm:$0xff]  }
 0x6e6   :  { %17237 = vmatprep.subr.bf16.mxu0 %v25408_v19  ;;  %12251 = vmatprep.mubr.bf16.mxu1 %v27323_v17  ;;  %v25426_v14 = vld [vmem:[#allocation10 + $0x10e4] ss:$40 sps:$4 sm:$0xff]  }
 0x6e7   :  { %17263 = vmatprep.mubr.bf16.mxu0 %v27283_v4 }
 0x6e8   :  { %12226 = vmatpush1.bf16.msra.mxu1 %v25403_v61  ;;  %v25421_v61 = vld [vmem:[#allocation8 + $0x1600] ss:$40 sps:$4 sm:$0xff]  }
 0x6e9   :  { %17238 = vmatpush1.bf16.msra.mxu0 %v25406_v10  ;;  %12227 = vmatprep.subr.bf16.mxu1 %v25411_v53  ;;  %v25424_v10 = vld [vmem:[#allocation10 + $0x10e0] ss:$40 sps:$4 sm:$0xff]  }
 0x6ea   :  { %17239 = vmatprep.subr.bf16.mxu0 %v25414_v55 }
 0x6ec   :  { %12228 = vmatpush1.bf16.msra.mxu1 %v25409_v38  ;;  %v25429_v38 = vld [vmem:[#allocation8 + $0x1654] ss:$40 sps:$4 sm:$0xff]  }
 0x6ed   :  { %17240 = vmatpush1.bf16.msra.mxu0 %v25412_v52  ;;  %12229 = vmatprep.subr.bf16.mxu1 %v25417_v6  ;;  %v25432_v52 = vld [vmem:[#allocation10 + $0x1134] ss:$40 sps:$4 sm:$0xff]   ;;  %v25454_v6 = vld [vmem:[#allocation10 + $0x1270] ss:$40 sps:$4 sm:$0xff]  }
 0x6ee   :  { %17241 = vmatprep.subr.bf16.mxu0 %v25420_v3  ;;  %v25427_v3 = vld [vmem:[#allocation8 + $0x1650] ss:$40 sps:$4 sm:$0xff]  }
 0x6ef   :  { %v27327_v19 = vpop.f32.mrb[20].mxu0 }
 0x6f0   :  { %v27329_v15 = vpop.f32.mrb[21].mxu0  ;;  %12230 = vmatpush1.bf16.msra.mxu1 %v25415_v48  ;;  %v25435_v48 = vld [vmem:[#allocation8 + $0x16a4] ss:$40 sps:$4 sm:$0xff]  }
 0x6f1   :  { %v27331_v4 = vpop.f32.mrb[22].mxu0  ;;  %17242 = vmatpush1.bf16.msra.mxu0 %v25418_v8  ;;  %12231 = vmatprep.subr.bf16.mxu1 %v25423_v35  ;;  %v25438_v8 = vld [vmem:[#allocation10 + $0x1184] ss:$40 sps:$4 sm:$0xff]   ;;  %v25433_v35 = vld [vmem:[#allocation8 + $0x16a0] ss:$40 sps:$4 sm:$0xff]  }
 0x6f2   :  { %v27335_v55 = vpop.f32.mrb[23].mxu0  ;;  %17243 = vmatprep.subr.bf16.mxu0 %v25426_v14  ;;  %v25436_v14 = vld [vmem:[#allocation10 + $0x1180] ss:$40 sps:$4 sm:$0xff]  }
 0x6f4   :  { %12232 = vmatpush1.bf16.msra.mxu1 %v25421_v61  ;;  %v25445_v61 = vld [vmem:[#allocation8 + $0x1740] ss:$40 sps:$4 sm:$0xff]  }
 0x6f5   :  { %17244 = vmatpush1.bf16.msra.mxu0 %v25424_v10  ;;  %12233 = vmatprep.subr.bf16.mxu1 %v25429_v38  ;;  %v25441_v38 = vld [vmem:[#allocation8 + $0x16f4] ss:$40 sps:$4 sm:$0xff]  }
 0x6f6   :  { %17245 = vmatprep.subr.bf16.mxu0 %v25432_v52  ;;  %v25444_v52 = vld [vmem:[#allocation10 + $0x11d4] ss:$40 sps:$4 sm:$0xff]  }
 0x6f7   :  { %v27339_v45 = vpop.f32.mrb[24].mxu0 }
 0x6f8   :  { %27880 = vst [vmem:[#allocation39_spill] sm:$0xff] %v27339_v45  ;;  %v27341_v53 = vpop.f32.mrb[25].mxu0  ;;  %12234 = vmatpush1.bf16.msra.mxu1 %v25427_v3  ;;  %v25450_v3 = vld [vmem:[#allocation10 + $0x1224] ss:$40 sps:$4 sm:$0xff]   ;;  %v25448_v45 = vld [vmem:[#allocation10 + $0x1220] ss:$40 sps:$4 sm:$0xff]  }
 0x6f9   :  { %27881 = vst [vmem:[#allocation40_spill] sm:$0xff] %v27341_v53  ;;  %v27343_v36 = vpop.f32.mrb[26].mxu0  ;;  %17246 = vmatpush1.bf16.msra.mxu0 %v25430_v13  ;;  %12235 = vmatprep.subr.bf16.mxu1 %v25435_v48  ;;  %v25447_v13 = vld [vmem:[#allocation8 + $0x1744] ss:$40 sps:$4 sm:$0xff]   ;;  %v25453_v48 = vld [vmem:[#allocation8 + $0x1794] ss:$40 sps:$4 sm:$0xff]  }
 0x6fa   :  { %27882 = vst [vmem:[#allocation41_spill] sm:$0xff] %v27343_v36  ;;  %v27347_v10 = vpop.f32.mrb[27].mxu0  ;;  %17247 = vmatprep.subr.bf16.mxu0 %v25438_v8  ;;  %v25456_v8 = vld [vmem:[#allocation10 + $0x1274] ss:$40 sps:$4 sm:$0xff]   ;;  %v25451_v36 = vld [vmem:[#allocation8 + $0x1790] ss:$40 sps:$4 sm:$0xff]  }
 0x6fb   :  { %27883 = vst [vmem:[#allocation42_spill] sm:$0xff] %v27347_v10  ;;  %v25814_v53 = vld [vmem:[#allocation10 + $0xc40] ss:$40 sps:$4 sm:$0xff]  }
 0x6fc   :  { %12236 = vmatpush1.bf16.msra.mxu1 %v25433_v35  ;;  %v25459_v35 = vld [vmem:[#allocation8 + $0x17e4] ss:$40 sps:$4 sm:$0xff]  }
 0x6fd   :  { %17248 = vmatpush1.bf16.msra.mxu0 %v25436_v14  ;;  %12237 = vmatprep.subr.bf16.mxu1 %v25441_v38  ;;  %v25462_v14 = vld [vmem:[#allocation10 + $0x12c4] ss:$40 sps:$4 sm:$0xff]   ;;  %v25457_v38 = vld [vmem:[#allocation8 + $0x17e0] ss:$40 sps:$4 sm:$0xff]  }
 0x6fe   :  { %17249 = vmatprep.subr.bf16.mxu0 %v25444_v52  ;;  %v25460_v52 = vld [vmem:[#allocation10 + $0x12c0] ss:$40 sps:$4 sm:$0xff]  }
 0x700   :  { %12238 = vmatpush1.bf16.msra.mxu1 %v25439_v34  ;;  %v25465_v34 = vld [vmem:[#allocation8 + $0x1834] ss:$40 sps:$4 sm:$0xff]  }
 0x701   :  { %17250 = vmatpush1.bf16.msra.mxu0 %v25442_v5  ;;  %12239 = vmatprep.subr.bf16.mxu1 %v25447_v13  ;;  %v25468_v5 = vld [vmem:[#allocation10 + $0x1314] ss:$40 sps:$4 sm:$0xff]   ;;  %v25463_v13 = vld [vmem:[#allocation8 + $0x1830] ss:$40 sps:$4 sm:$0xff]  }
 0x702   :  { %17251 = vmatprep.subr.bf16.mxu0 %v25450_v3  ;;  %v25466_v3 = vld [vmem:[#allocation10 + $0x1310] ss:$40 sps:$4 sm:$0xff]  }
 0x704   :  { %12240 = vmatpush1.bf16.msra.mxu1 %v25445_v61  ;;  %v25474_v61 = vld [vmem:[#allocation10 + $0x1364] ss:$40 sps:$4 sm:$0xff]  }
 0x705   :  { %17252 = vmatpush1.bf16.msra.mxu0 %v25448_v45  ;;  %12241 = vmatprep.subr.bf16.mxu1 %v25453_v48  ;;  %v25471_v45 = vld [vmem:[#allocation8 + $0x1884] ss:$40 sps:$4 sm:$0xff]   ;;  %v25469_v48 = vld [vmem:[#allocation8 + $0x1880] ss:$40 sps:$4 sm:$0xff]  }
 0x706   :  { %17253 = vmatprep.subr.bf16.mxu0 %v25456_v8  ;;  %v25472_v8 = vld [vmem:[#allocation10 + $0x1360] ss:$40 sps:$4 sm:$0xff]  }
 0x708   :  { %12242 = vmatpush1.bf16.msra.mxu1 %v25451_v36  ;;  %v25477_v36 = vld [vmem:[#allocation8 + $0x18d4] ss:$40 sps:$4 sm:$0xff]  }
 0x709   :  { %17254 = vmatpush1.bf16.msra.mxu0 %v25454_v6  ;;  %12243 = vmatprep.subr.bf16.mxu1 %v25459_v35  ;;  %v25480_v6 = vld [vmem:[#allocation10 + $0x13b4] ss:$40 sps:$4 sm:$0xff]   ;;  %v25475_v35 = vld [vmem:[#allocation8 + $0x18d0] ss:$40 sps:$4 sm:$0xff]  }
 0x70a   :  { %17255 = vmatprep.subr.bf16.mxu0 %v25462_v14  ;;  %v25478_v14 = vld [vmem:[#allocation10 + $0x13b0] ss:$40 sps:$4 sm:$0xff]  }
 0x70c   :  { %12244 = vmatpush1.bf16.msra.mxu1 %v25457_v38  ;;  %v25483_v38 = vld [vmem:[#allocation10 + $0x1404] ss:$40 sps:$4 sm:$0xff]  }
 0x70d   :  { %17256 = vmatpush1.bf16.msra.mxu0 %v25460_v52  ;;  %12245 = vmatprep.subr.bf16.mxu1 %v25465_v34  ;;  %v25486_v52 = vld [vmem:[#allocation10 + $0xc] ss:$40 sps:$4 sm:$0xff]   ;;  %v25481_v34 = vld [vmem:[#allocation10 + $0x1400] ss:$40 sps:$4 sm:$0xff]  }
 0x70e   :  { %17257 = vmatprep.subr.bf16.mxu0 %v25468_v5  ;;  %v25484_v5 = vld [vmem:[#allocation10 + $0x8] ss:$40 sps:$4 sm:$0xff]  }
 0x710   :  { %12246 = vmatpush1.bf16.msra.mxu1 %v25463_v13  ;;  %v25489_v13 = vld [vmem:[#allocation10 + $0x1454] ss:$40 sps:$4 sm:$0xff]  }
 0x711   :  { %17258 = vmatpush1.bf16.msra.mxu0 %v25466_v3  ;;  %12247 = vmatprep.subr.bf16.mxu1 %v25471_v45  ;;  %v25492_v3 = vld [vmem:[#allocation10 + $0x5c] ss:$40 sps:$4 sm:$0xff]   ;;  %v27351_v45 = vld [vmem:[#allocation5 + $0x20] ss:$40 sps:$4 sm:$0xff]  }
 0x712   :  { %17259 = vmatprep.subr.bf16.mxu0 %v25474_v61  ;;  %v25487_v61 = vld [vmem:[#allocation10 + $0x1450] ss:$40 sps:$4 sm:$0xff]  }
 0x714   :  { %12248 = vmatpush1.bf16.msra.mxu1 %v25469_v48  ;;  %v25490_v48 = vld [vmem:[#allocation10 + $0x58] ss:$40 sps:$4 sm:$0xff]  }
 0x715   :  { %17260 = vmatpush1.bf16.msra.mxu0 %v25472_v8  ;;  %12249 = vmatprep.subr.bf16.mxu1 %v25477_v36  ;;  %v25495_v8 = vld [vmem:[#allocation10 + $0x14a4] ss:$40 sps:$4 sm:$0xff]  }
 0x716   :  { %17261 = vmatprep.subr.bf16.mxu0 %v25480_v6  ;;  %v25498_v36 = vld [vmem:[#allocation10 + $0xac] ss:$40 sps:$4 sm:$0xff]  }
 0x717   :  { %v27355_v6 = vld [vmem:[#allocation5 + $0x74] ss:$40 sps:$4 sm:$0xff]  }
 0x718   :  { %12250 = vmatpush1.bf16.msra.mxu1 %v25475_v35  ;;  %v25493_v35 = vld [vmem:[#allocation10 + $0x14a0] ss:$40 sps:$4 sm:$0xff]  }
 0x719   :  { %17262 = vmatpush1.bf16.msra.mxu0 %v25478_v14  ;;  %17337 = vmatprep.subr.bf16.mxu1 %v25486_v52  ;;  %v25496_v14 = vld [vmem:[#allocation10 + $0xa8] ss:$40 sps:$4 sm:$0xff]  }
 0x71a   :  { %17284 = vmatprep.subr.bf16.mxu0 %v25483_v38  ;;  %v25504_v38 = vld [vmem:[#allocation10 + $0xfc] ss:$40 sps:$4 sm:$0xff]   ;;  %v27359_v52 = vld [vmem:[#allocation5 + $0x70] ss:$40 sps:$4 sm:$0xff]  }
 0x71b   :  { %12252 = vmatmul.mubr.bf16.vlgmr.msra.gmra.mrb[28].mxu1 %v27351_v45 }
 0x71c   :  { %17264 = vmatmul.mubr.bf16.vlgmr.msra.gmra.mrb[28].mxu0 %v27311_v41  ;;  %17338 = vmatpush1.bf16.msra.mxu1 %v25484_v5  ;;  %v25501_v41 = vld [vmem:[#allocation10 + $0x14f4] ss:$40 sps:$4 sm:$0xff]   ;;  %v25502_v5 = vld [vmem:[#allocation10 + $0xf8] ss:$40 sps:$4 sm:$0xff]  }
 0x71d   :  { %17285 = vmatpush1.bf16.msra.mxu0 %v25481_v34  ;;  %17339 = vmatprep.subr.bf16.mxu1 %v25492_v3  ;;  %v25499_v34 = vld [vmem:[#allocation10 + $0x14f0] ss:$40 sps:$4 sm:$0xff]   ;;  %v27364_v3 = vld [vmem:[#allocation5 + $0x4] ss:$40 sps:$4 sm:$0xff]  }
 0x71e   :  { %17286 = vmatprep.subr.bf16.mxu0 %v25489_v13  ;;  %12261 = vmatprep.mubr.bf16.mxu1 %v27355_v6  ;;  %v25510_v13 = vld [vmem:[#allocation10 + $0x14c] ss:$40 sps:$4 sm:$0xff]  }
 0x71f   :  { %17273 = vmatprep.mubr.bf16.mxu0 %v27315_v54  ;;  %v25507_v54 = vld [vmem:[#allocation10 + $0x1544] ss:$40 sps:$4 sm:$0xff]  }
 0x720   :  { %17340 = vmatpush1.bf16.msra.mxu1 %v25490_v48  ;;  %v25508_v48 = vld [vmem:[#allocation10 + $0x148] ss:$40 sps:$4 sm:$0xff]  }
 0x721   :  { %17287 = vmatpush1.bf16.msra.mxu0 %v25487_v61  ;;  %17341 = vmatprep.subr.bf16.mxu1 %v25498_v36  ;;  %v25505_v61 = vld [vmem:[#allocation10 + $0x1540] ss:$40 sps:$4 sm:$0xff]   ;;  %v25511_v36 = vld [vmem:[#allocation10 + $0x1590] ss:$40 sps:$4 sm:$0xff]  }
 0x722   :  { %17288 = vmatprep.subr.bf16.mxu0 %v25495_v8  ;;  %v25516_v8 = vld [vmem:[#allocation10 + $0x19c] ss:$40 sps:$4 sm:$0xff]  }
 0x723   :  { %12262 = vmatmul.mubr.bf16.gmra.mrb[32].mxu1 %v27359_v52 }
 0x724   :  { %17274 = vmatmul.mubr.bf16.gmra.mrb[32].mxu0 %v27319_v47  ;;  %17342 = vmatpush1.bf16.msra.mxu1 %v25496_v14  ;;  %v25513_v47 = vld [vmem:[#allocation10 + $0x1594] ss:$40 sps:$4 sm:$0xff]   ;;  %v25519_v14 = vld [vmem:[#allocation10 + $0x15e4] ss:$40 sps:$4 sm:$0xff]  }
 0x725   :  { %17289 = vmatpush1.bf16.msra.mxu0 %v25493_v35  ;;  %17343 = vmatprep.subr.bf16.mxu1 %v25504_v38  ;;  %v25514_v35 = vld [vmem:[#allocation10 + $0x198] ss:$40 sps:$4 sm:$0xff]   ;;  %v25520_v38 = vld [vmem:[#allocation10 + $0x1e8] ss:$40 sps:$4 sm:$0xff]  }
 0x726   :  { %17290 = vmatprep.subr.bf16.mxu0 %v25501_v41  ;;  %17316 = vmatprep.mubr.bf16.mxu0 %v27323_v17  ;;  %v25522_v17 = vld [vmem:[#allocation10 + $0x1ec] ss:$40 sps:$4 sm:$0xff]   ;;  %v25517_v41 = vld [vmem:[#allocation10 + $0x15e0] ss:$40 sps:$4 sm:$0xff]  }
 0x727   :  { %17369 = vmatprep.mubr.bf16.mxu1 %v27364_v3 }
 0x728   :  { %17344 = vmatpush1.bf16.msra.mxu1 %v25502_v5  ;;  %v25528_v5 = vld [vmem:[#allocation10 + $0x23c] ss:$40 sps:$4 sm:$0xff]  }
 0x729   :  { %17291 = vmatpush1.bf16.msra.mxu0 %v25499_v34  ;;  %17345 = vmatprep.subr.bf16.mxu1 %v25510_v13  ;;  %v25525_v34 = vld [vmem:[#allocation10 + $0x1634] ss:$40 sps:$4 sm:$0xff]   ;;  %v25526_v13 = vld [vmem:[#allocation10 + $0x238] ss:$40 sps:$4 sm:$0xff]  }
 0x72a   :  { %17292 = vmatprep.subr.bf16.mxu0 %v25507_v54  ;;  %v25523_v54 = vld [vmem:[#allocation10 + $0x1630] ss:$40 sps:$4 sm:$0xff]  }
 0x72c   :  { %17346 = vmatpush1.bf16.msra.mxu1 %v25508_v48  ;;  %v25534_v48 = vld [vmem:[#allocation10 + $0x28c] ss:$40 sps:$4 sm:$0xff]  }
 0x72d   :  { %17293 = vmatpush1.bf16.msra.mxu0 %v25505_v61  ;;  %17347 = vmatprep.subr.bf16.mxu1 %v25516_v8  ;;  %v25531_v61 = vld [vmem:[#allocation10 + $0x1684] ss:$40 sps:$4 sm:$0xff]   ;;  %v25532_v8 = vld [vmem:[#allocation10 + $0x288] ss:$40 sps:$4 sm:$0xff]  }
 0x72e   :  { %17294 = vmatprep.subr.bf16.mxu0 %v25513_v47  ;;  %v25529_v47 = vld [vmem:[#allocation10 + $0x1680] ss:$40 sps:$4 sm:$0xff]  }
 0x730   :  { %17348 = vmatpush1.bf16.msra.mxu1 %v25514_v35  ;;  %v25540_v35 = vld [vmem:[#allocation10 + $0x2dc] ss:$40 sps:$4 sm:$0xff]  }
 0x731   :  { %17295 = vmatpush1.bf16.msra.mxu0 %v25511_v36  ;;  %17349 = vmatprep.subr.bf16.mxu1 %v25522_v17  ;;  %v25537_v36 = vld [vmem:[#allocation10 + $0x16d4] ss:$40 sps:$4 sm:$0xff]   ;;  %v25538_v17 = vld [vmem:[#allocation10 + $0x2d8] ss:$40 sps:$4 sm:$0xff]  }
 0x732   :  { %17296 = vmatprep.subr.bf16.mxu0 %v25519_v14  ;;  %v25535_v14 = vld [vmem:[#allocation10 + $0x16d0] ss:$40 sps:$4 sm:$0xff]  }
 0x734   :  { %17350 = vmatpush1.bf16.msra.mxu1 %v25520_v38  ;;  %v25546_v38 = vld [vmem:[#allocation10 + $0x32c] ss:$40 sps:$4 sm:$0xff]  }
 0x735   :  { %17297 = vmatpush1.bf16.msra.mxu0 %v25517_v41  ;;  %17351 = vmatprep.subr.bf16.mxu1 %v25528_v5  ;;  %v25543_v41 = vld [vmem:[#allocation10 + $0x1724] ss:$40 sps:$4 sm:$0xff]   ;;  %v25544_v5 = vld [vmem:[#allocation10 + $0x328] ss:$40 sps:$4 sm:$0xff]  }
 0x736   :  { %17298 = vmatprep.subr.bf16.mxu0 %v25525_v34  ;;  %v25541_v34 = vld [vmem:[#allocation10 + $0x1720] ss:$40 sps:$4 sm:$0xff]  }
 0x738   :  { %17352 = vmatpush1.bf16.msra.mxu1 %v25526_v13  ;;  %v25552_v13 = vld [vmem:[#allocation10 + $0x37c] ss:$40 sps:$4 sm:$0xff]  }
 0x739   :  { %17299 = vmatpush1.bf16.msra.mxu0 %v25523_v54  ;;  %17353 = vmatprep.subr.bf16.mxu1 %v25534_v48  ;;  %v25549_v54 = vld [vmem:[#allocation10 + $0x1774] ss:$40 sps:$4 sm:$0xff]   ;;  %v25550_v48 = vld [vmem:[#allocation10 + $0x378] ss:$40 sps:$4 sm:$0xff]  }
 0x73a   :  { %17300 = vmatprep.subr.bf16.mxu0 %v25531_v61  ;;  %v25547_v61 = vld [vmem:[#allocation10 + $0x1770] ss:$40 sps:$4 sm:$0xff]  }
 0x73c   :  { %17354 = vmatpush1.bf16.msra.mxu1 %v25532_v8  ;;  %v25558_v8 = vld [vmem:[#allocation10 + $0x3cc] ss:$40 sps:$4 sm:$0xff]  }
 0x73d   :  { %17301 = vmatpush1.bf16.msra.mxu0 %v25529_v47  ;;  %17355 = vmatprep.subr.bf16.mxu1 %v25540_v35  ;;  %v25555_v47 = vld [vmem:[#allocation10 + $0x17c4] ss:$40 sps:$4 sm:$0xff]   ;;  %v25556_v35 = vld [vmem:[#allocation10 + $0x3c8] ss:$40 sps:$4 sm:$0xff]  }
 0x73e   :  { %17302 = vmatprep.subr.bf16.mxu0 %v25537_v36  ;;  %v25553_v36 = vld [vmem:[#allocation10 + $0x17c0] ss:$40 sps:$4 sm:$0xff]  }
 0x740   :  { %17356 = vmatpush1.bf16.msra.mxu1 %v25538_v17  ;;  %v25564_v17 = vld [vmem:[#allocation10 + $0x41c] ss:$40 sps:$4 sm:$0xff]  }
 0x741   :  { %17303 = vmatpush1.bf16.msra.mxu0 %v25535_v14  ;;  %17357 = vmatprep.subr.bf16.mxu1 %v25546_v38  ;;  %v25561_v14 = vld [vmem:[#allocation10 + $0x1814] ss:$40 sps:$4 sm:$0xff]   ;;  %v25562_v38 = vld [vmem:[#allocation10 + $0x418] ss:$40 sps:$4 sm:$0xff]  }
 0x742   :  { %17304 = vmatprep.subr.bf16.mxu0 %v25543_v41  ;;  %v25559_v41 = vld [vmem:[#allocation10 + $0x1810] ss:$40 sps:$4 sm:$0xff]  }
 0x744   :  { %17358 = vmatpush1.bf16.msra.mxu1 %v25544_v5  ;;  %v25570_v5 = vld [vmem:[#allocation10 + $0x46c] ss:$40 sps:$4 sm:$0xff]  }
 0x745   :  { %17305 = vmatpush1.bf16.msra.mxu0 %v25541_v34  ;;  %17359 = vmatprep.subr.bf16.mxu1 %v25552_v13  ;;  %v25567_v34 = vld [vmem:[#allocation10 + $0x1864] ss:$40 sps:$4 sm:$0xff]   ;;  %v25568_v13 = vld [vmem:[#allocation10 + $0x468] ss:$40 sps:$4 sm:$0xff]  }
 0x746   :  { %17306 = vmatprep.subr.bf16.mxu0 %v25549_v54  ;;  %v25565_v54 = vld [vmem:[#allocation10 + $0x1860] ss:$40 sps:$4 sm:$0xff]  }
 0x748   :  { %17360 = vmatpush1.bf16.msra.mxu1 %v25550_v48  ;;  %v25576_v48 = vld [vmem:[#allocation10 + $0x4bc] ss:$40 sps:$4 sm:$0xff]  }
 0x749   :  { %17307 = vmatpush1.bf16.msra.mxu0 %v25547_v61  ;;  %17361 = vmatprep.subr.bf16.mxu1 %v25558_v8  ;;  %v25573_v61 = vld [vmem:[#allocation10 + $0x18b4] ss:$40 sps:$4 sm:$0xff]   ;;  %v25574_v8 = vld [vmem:[#allocation10 + $0x4b8] ss:$40 sps:$4 sm:$0xff]  }
 0x74a   :  { %17308 = vmatprep.subr.bf16.mxu0 %v25555_v47  ;;  %v25571_v47 = vld [vmem:[#allocation10 + $0x18b0] ss:$40 sps:$4 sm:$0xff]  }
 0x74c   :  { %17362 = vmatpush1.bf16.msra.mxu1 %v25556_v35  ;;  %v25582_v35 = vld [vmem:[#allocation10 + $0x14] ss:$40 sps:$4 sm:$0xff]  }
 0x74d   :  { %17309 = vmatpush1.bf16.msra.mxu0 %v25553_v36  ;;  %17363 = vmatprep.subr.bf16.mxu1 %v25564_v17  ;;  %v25579_v36 = vld [vmem:[#allocation10 + $0x50c] ss:$40 sps:$4 sm:$0xff]   ;;  %v25580_v17 = vld [vmem:[#allocation10 + $0x10] ss:$40 sps:$4 sm:$0xff]  }
 0x74e   :  { %17310 = vmatprep.subr.bf16.mxu0 %v25561_v14  ;;  %v25577_v14 = vld [vmem:[#allocation10 + $0x508] ss:$40 sps:$4 sm:$0xff]  }
 0x750   :  { %17364 = vmatpush1.bf16.msra.mxu1 %v25562_v38  ;;  %v25588_v38 = vld [vmem:[#allocation10 + $0x64] ss:$40 sps:$4 sm:$0xff]  }
 0x751   :  { %17311 = vmatpush1.bf16.msra.mxu0 %v25559_v41  ;;  %17365 = vmatprep.subr.bf16.mxu1 %v25570_v5  ;;  %v25585_v41 = vld [vmem:[#allocation10 + $0x55c] ss:$40 sps:$4 sm:$0xff]   ;;  %v25583_v5 = vld [vmem:[#allocation10 + $0x558] ss:$40 sps:$4 sm:$0xff]  }
 0x752   :  { %17312 = vmatprep.subr.bf16.mxu0 %v25567_v34  ;;  %v27368_v34 = vld [vmem:[#allocation5] ss:$40 sps:$4 sm:$0xff]  }
 0x754   :  { %17366 = vmatpush1.bf16.msra.mxu1 %v25568_v13  ;;  %v25591_v13 = vld [vmem:[#allocation10 + $0x5ac] ss:$40 sps:$4 sm:$0xff]  }
 0x755   :  { %17313 = vmatpush1.bf16.msra.mxu0 %v25565_v54  ;;  %17367 = vmatprep.subr.bf16.mxu1 %v25576_v48  ;;  %v25586_v54 = vld [vmem:[#allocation10 + $0x60] ss:$40 sps:$4 sm:$0xff]   ;;  %v27372_v48 = vld [vmem:[#allocation5 + $0x54] ss:$40 sps:$4 sm:$0xff]  }
 0x756   :  { %17314 = vmatprep.subr.bf16.mxu0 %v25573_v61  ;;  %v25594_v61 = vld [vmem:[#allocation10 + $0xb4] ss:$40 sps:$4 sm:$0xff]  }
 0x758   :  { %17368 = vmatpush1.bf16.msra.mxu1 %v25574_v8  ;;  %v25597_v8 = vld [vmem:[#allocation10 + $0x5fc] ss:$40 sps:$4 sm:$0xff]  }
 0x759   :  { %17315 = vmatpush1.bf16.msra.mxu0 %v25571_v47  ;;  %17390 = vmatprep.subr.bf16.mxu1 %v25579_v36  ;;  %v25592_v47 = vld [vmem:[#allocation10 + $0xb0] ss:$40 sps:$4 sm:$0xff]   ;;  %v25600_v36 = vld [vmem:[#allocation10 + $0x104] ss:$40 sps:$4 sm:$0xff]  }
 0x75a   :  { %17602 = vmatprep.subr.bf16.mxu0 %v25582_v35  ;;  %v27376_v35 = vld [vmem:[#allocation5 + $0x50] ss:$40 sps:$4 sm:$0xff]  }
 0x75b   :  { %17370 = vmatmul.mubr.bf16.vlgmr.msra.gmra.mrb[36].mxu1 %v27368_v34 }
 0x75c   :  { %17317 = vmatmul.mubr.bf16.vlgmr.msra.gmra.mrb[28].mxu0 %v27351_v45  ;;  %17391 = vmatpush1.bf16.msra.mxu1 %v25577_v14  ;;  %v25589_v45 = vld [vmem:[#allocation10 + $0x5a8] ss:$40 sps:$4 sm:$0xff]  }
 0x75d   :  { %17603 = vmatpush1.bf16.msra.mxu0 %v25580_v17  ;;  %17392 = vmatprep.subr.bf16.mxu1 %v25585_v41  ;;  %v25598_v14 = vld [vmem:[#allocation10 + $0x100] ss:$40 sps:$4 sm:$0xff]   ;;  %v25603_v17 = vld [vmem:[#allocation10 + $0x64c] ss:$40 sps:$4 sm:$0xff]  }
 0x75e   :  { %17604 = vmatprep.subr.bf16.mxu0 %v25588_v38  ;;  %17326 = vmatprep.mubr.bf16.mxu0 %v27355_v6  ;;  %v25595_v6 = vld [vmem:[#allocation10 + $0x5f8] ss:$40 sps:$4 sm:$0xff]   ;;  %v25606_v41 = vld [vmem:[#allocation10 + $0x154] ss:$40 sps:$4 sm:$0xff]  }
 0x75f   :  { %17379 = vmatprep.mubr.bf16.mxu1 %v27372_v48  ;;  %v27379_v38 = vld [vmem:[#allocation5 + $0xc] ss:$40 sps:$4 sm:$0xff]  }
 0x760   :  { %17393 = vmatpush1.bf16.msra.mxu1 %v25583_v5  ;;  %v25604_v5 = vld [vmem:[#allocation10 + $0x150] ss:$40 sps:$4 sm:$0xff]  }
 0x761   :  { %17605 = vmatpush1.bf16.msra.mxu0 %v25586_v54  ;;  %17394 = vmatprep.subr.bf16.mxu1 %v25591_v13  ;;  %v25609_v54 = vld [vmem:[#allocation10 + $0x69c] ss:$40 sps:$4 sm:$0xff]  }
 0x762   :  { %17606 = vmatprep.subr.bf16.mxu0 %v25594_v61  ;;  %v25612_v13 = vld [vmem:[#allocation10 + $0x1a4] ss:$40 sps:$4 sm:$0xff]   ;;  %v25607_v61 = vld [vmem:[#allocation10 + $0x698] ss:$40 sps:$4 sm:$0xff]  }
 0x763   :  { %17380 = vmatmul.mubr.bf16.gmra.mrb[40].mxu1 %v27376_v35 }
 0x764   :  { %17327 = vmatmul.mubr.bf16.gmra.mrb[32].mxu0 %v27359_v52  ;;  %17395 = vmatpush1.bf16.msra.mxu1 %v25589_v45  ;;  %v25601_v52 = vld [vmem:[#allocation10 + $0x648] ss:$40 sps:$4 sm:$0xff]  }
 0x765   :  { %17607 = vmatpush1.bf16.msra.mxu0 %v25592_v47  ;;  %17396 = vmatprep.subr.bf16.mxu1 %v25597_v8  ;;  %v25610_v45 = vld [vmem:[#allocation10 + $0x1a0] ss:$40 sps:$4 sm:$0xff]   ;;  %v25615_v47 = vld [vmem:[#allocation10 + $0x6ec] ss:$40 sps:$4 sm:$0xff]  }
 0x766   :  { %17608 = vmatprep.subr.bf16.mxu0 %v25600_v36  ;;  %17422 = vmatprep.mubr.bf16.mxu1 %v27379_v38  ;;  %v25618_v8 = vld [vmem:[#allocation10 + $0x1f4] ss:$40 sps:$4 sm:$0xff]   ;;  %v25613_v36 = vld [vmem:[#allocation10 + $0x6e8] ss:$40 sps:$4 sm:$0xff]  }
 0x767   :  { %17634 = vmatprep.mubr.bf16.mxu0 %v27364_v3  ;;  %v25616_v3 = vld [vmem:[#allocation10 + $0x1f0] ss:$40 sps:$4 sm:$0xff]  }
 0x768   :  { %17397 = vmatpush1.bf16.msra.mxu1 %v25595_v6  ;;  %v25621_v6 = vld [vmem:[#allocation10 + $0x73c] ss:$40 sps:$4 sm:$0xff]  }
 0x769   :  { %17609 = vmatpush1.bf16.msra.mxu0 %v25598_v14  ;;  %17398 = vmatprep.subr.bf16.mxu1 %v25603_v17  ;;  %v25624_v14 = vld [vmem:[#allocation10 + $0x244] ss:$40 sps:$4 sm:$0xff]   ;;  %v25619_v17 = vld [vmem:[#allocation10 + $0x738] ss:$40 sps:$4 sm:$0xff]  }
 0x76a   :  { %17610 = vmatprep.subr.bf16.mxu0 %v25606_v41  ;;  %v25622_v41 = vld [vmem:[#allocation10 + $0x240] ss:$40 sps:$4 sm:$0xff]  }
 0x76c   :  { %17399 = vmatpush1.bf16.msra.mxu1 %v25601_v52  ;;  %v25627_v52 = vld [vmem:[#allocation10 + $0x78c] ss:$40 sps:$4 sm:$0xff]  }
 0x76d   :  { %17611 = vmatpush1.bf16.msra.mxu0 %v25604_v5  ;;  %17400 = vmatprep.subr.bf16.mxu1 %v25609_v54  ;;  %v25630_v5 = vld [vmem:[#allocation10 + $0x294] ss:$40 sps:$4 sm:$0xff]   ;;  %v25625_v54 = vld [vmem:[#allocation10 + $0x788] ss:$40 sps:$4 sm:$0xff]  }
 0x76e   :  { %17612 = vmatprep.subr.bf16.mxu0 %v25612_v13  ;;  %v25628_v13 = vld [vmem:[#allocation10 + $0x290] ss:$40 sps:$4 sm:$0xff]  }
 0x770   :  { %17401 = vmatpush1.bf16.msra.mxu1 %v25607_v61  ;;  %v25633_v61 = vld [vmem:[#allocation10 + $0x7dc] ss:$40 sps:$4 sm:$0xff]  }
 0x771   :  { %17613 = vmatpush1.bf16.msra.mxu0 %v25610_v45  ;;  %17402 = vmatprep.subr.bf16.mxu1 %v25615_v47  ;;  %v25636_v45 = vld [vmem:[#allocation10 + $0x2e4] ss:$40 sps:$4 sm:$0xff]   ;;  %v25631_v47 = vld [vmem:[#allocation10 + $0x7d8] ss:$40 sps:$4 sm:$0xff]  }
 0x772   :  { %17614 = vmatprep.subr.bf16.mxu0 %v25618_v8  ;;  %v25634_v8 = vld [vmem:[#allocation10 + $0x2e0] ss:$40 sps:$4 sm:$0xff]  }
 0x774   :  { %17403 = vmatpush1.bf16.msra.mxu1 %v25613_v36  ;;  %v25639_v36 = vld [vmem:[#allocation10 + $0x82c] ss:$40 sps:$4 sm:$0xff]  }
 0x775   :  { %17615 = vmatpush1.bf16.msra.mxu0 %v25616_v3  ;;  %17404 = vmatprep.subr.bf16.mxu1 %v25621_v6  ;;  %v25642_v3 = vld [vmem:[#allocation10 + $0x334] ss:$40 sps:$4 sm:$0xff]   ;;  %v25637_v6 = vld [vmem:[#allocation10 + $0x828] ss:$40 sps:$4 sm:$0xff]  }
 0x776   :  { %17616 = vmatprep.subr.bf16.mxu0 %v25624_v14  ;;  %v25640_v14 = vld [vmem:[#allocation10 + $0x330] ss:$40 sps:$4 sm:$0xff]  }
 0x778   :  { %17405 = vmatpush1.bf16.msra.mxu1 %v25619_v17  ;;  %v25645_v17 = vld [vmem:[#allocation10 + $0x87c] ss:$40 sps:$4 sm:$0xff]  }
 0x779   :  { %17617 = vmatpush1.bf16.msra.mxu0 %v25622_v41  ;;  %17406 = vmatprep.subr.bf16.mxu1 %v25627_v52  ;;  %v25648_v41 = vld [vmem:[#allocation10 + $0x384] ss:$40 sps:$4 sm:$0xff]   ;;  %v25643_v52 = vld [vmem:[#allocation10 + $0x878] ss:$40 sps:$4 sm:$0xff]  }
 0x77a   :  { %17618 = vmatprep.subr.bf16.mxu0 %v25630_v5  ;;  %v25646_v5 = vld [vmem:[#allocation10 + $0x380] ss:$40 sps:$4 sm:$0xff]  }
 0x77c   :  { %17407 = vmatpush1.bf16.msra.mxu1 %v25625_v54  ;;  %v25651_v54 = vld [vmem:[#allocation10 + $0x8cc] ss:$40 sps:$4 sm:$0xff]  }
 0x77d   :  { %17619 = vmatpush1.bf16.msra.mxu0 %v25628_v13  ;;  %17408 = vmatprep.subr.bf16.mxu1 %v25633_v61  ;;  %v25654_v13 = vld [vmem:[#allocation10 + $0x3d4] ss:$40 sps:$4 sm:$0xff]   ;;  %v25649_v61 = vld [vmem:[#allocation10 + $0x8c8] ss:$40 sps:$4 sm:$0xff]  }
 0x77e   :  { %17620 = vmatprep.subr.bf16.mxu0 %v25636_v45  ;;  %v25652_v45 = vld [vmem:[#allocation10 + $0x3d0] ss:$40 sps:$4 sm:$0xff]  }
 0x780   :  { %17409 = vmatpush1.bf16.msra.mxu1 %v25631_v47  ;;  %v25657_v47 = vld [vmem:[#allocation10 + $0x91c] ss:$40 sps:$4 sm:$0xff]  }
 0x781   :  { %17621 = vmatpush1.bf16.msra.mxu0 %v25634_v8  ;;  %17410 = vmatprep.subr.bf16.mxu1 %v25639_v36  ;;  %v25660_v8 = vld [vmem:[#allocation10 + $0x424] ss:$40 sps:$4 sm:$0xff]   ;;  %v25655_v36 = vld [vmem:[#allocation10 + $0x918] ss:$40 sps:$4 sm:$0xff]  }
 0x782   :  { %17622 = vmatprep.subr.bf16.mxu0 %v25642_v3  ;;  %v25658_v3 = vld [vmem:[#allocation10 + $0x420] ss:$40 sps:$4 sm:$0xff]  }
 0x784   :  { %17411 = vmatpush1.bf16.msra.mxu1 %v25637_v6  ;;  %v25663_v6 = vld [vmem:[#allocation10 + $0x96c] ss:$40 sps:$4 sm:$0xff]  }
 0x785   :  { %17623 = vmatpush1.bf16.msra.mxu0 %v25640_v14  ;;  %17412 = vmatprep.subr.bf16.mxu1 %v25645_v17  ;;  %v25666_v14 = vld [vmem:[#allocation10 + $0x474] ss:$40 sps:$4 sm:$0xff]   ;;  %v25661_v17 = vld [vmem:[#allocation10 + $0x968] ss:$40 sps:$4 sm:$0xff]  }
 0x786   :  { %17624 = vmatprep.subr.bf16.mxu0 %v25648_v41  ;;  %v25664_v41 = vld [vmem:[#allocation10 + $0x470] ss:$40 sps:$4 sm:$0xff]  }
 0x788   :  { %17413 = vmatpush1.bf16.msra.mxu1 %v25643_v52  ;;  %v25669_v52 = vld [vmem:[#allocation10 + $0x9bc] ss:$40 sps:$4 sm:$0xff]  }
 0x789   :  { %17625 = vmatpush1.bf16.msra.mxu0 %v25646_v5  ;;  %17414 = vmatprep.subr.bf16.mxu1 %v25651_v54  ;;  %v25672_v5 = vld [vmem:[#allocation10 + $0x4c4] ss:$40 sps:$4 sm:$0xff]   ;;  %v25667_v54 = vld [vmem:[#allocation10 + $0x9b8] ss:$40 sps:$4 sm:$0xff]  }
 0x78a   :  { %17626 = vmatprep.subr.bf16.mxu0 %v25654_v13  ;;  %v25670_v13 = vld [vmem:[#allocation10 + $0x4c0] ss:$40 sps:$4 sm:$0xff]  }
 0x78c   :  { %17415 = vmatpush1.bf16.msra.mxu1 %v25649_v61  ;;  %v25675_v61 = vld [vmem:[#allocation10 + $0xa0c] ss:$40 sps:$4 sm:$0xff]  }
 0x78d   :  { %17627 = vmatpush1.bf16.msra.mxu0 %v25652_v45  ;;  %17416 = vmatprep.subr.bf16.mxu1 %v25657_v47  ;;  %v25678_v45 = vld [vmem:[#allocation10 + $0x514] ss:$40 sps:$4 sm:$0xff]   ;;  %v25673_v47 = vld [vmem:[#allocation10 + $0xa08] ss:$40 sps:$4 sm:$0xff]  }
 0x78e   :  { %17628 = vmatprep.subr.bf16.mxu0 %v25660_v8  ;;  %v25676_v8 = vld [vmem:[#allocation10 + $0x510] ss:$40 sps:$4 sm:$0xff]  }
 0x790   :  { %17417 = vmatpush1.bf16.msra.mxu1 %v25655_v36  ;;  %v25681_v36 = vld [vmem:[#allocation10 + $0xa5c] ss:$40 sps:$4 sm:$0xff]  }
 0x791   :  { %17629 = vmatpush1.bf16.msra.mxu0 %v25658_v3  ;;  %17418 = vmatprep.subr.bf16.mxu1 %v25663_v6  ;;  %v25684_v3 = vld [vmem:[#allocation10 + $0x564] ss:$40 sps:$4 sm:$0xff]   ;;  %v27383_v6 = vld [vmem:[#allocation5 + $0x8] ss:$40 sps:$4 sm:$0xff]  }
 0x792   :  { %17630 = vmatprep.subr.bf16.mxu0 %v25666_v14  ;;  %v25679_v14 = vld [vmem:[#allocation10 + $0xa58] ss:$40 sps:$4 sm:$0xff]  }
 0x794   :  { %17419 = vmatpush1.bf16.msra.mxu1 %v25661_v17  ;;  %v25682_v17 = vld [vmem:[#allocation10 + $0x560] ss:$40 sps:$4 sm:$0xff]  }
 0x795   :  { %17631 = vmatpush1.bf16.msra.mxu0 %v25664_v41  ;;  %17420 = vmatprep.subr.bf16.mxu1 %v25669_v52  ;;  %v25687_v41 = vld [vmem:[#allocation10 + $0xaac] ss:$40 sps:$4 sm:$0xff]  }
 0x796   :  { %17632 = vmatprep.subr.bf16.mxu0 %v25672_v5  ;;  %v25690_v52 = vld [vmem:[#allocation10 + $0x5b4] ss:$40 sps:$4 sm:$0xff]  }
 0x797   :  { %v27387_v5 = vld [vmem:[#allocation5 + $0x5c] ss:$40 sps:$4 sm:$0xff]  }
 0x798   :  { %17421 = vmatpush1.bf16.msra.mxu1 %v25667_v54  ;;  %v25685_v54 = vld [vmem:[#allocation10 + $0xaa8] ss:$40 sps:$4 sm:$0xff]  }
 0x799   :  { %17633 = vmatpush1.bf16.msra.mxu0 %v25670_v13  ;;  %17443 = vmatprep.subr.bf16.mxu1 %v25675_v61  ;;  %v25688_v13 = vld [vmem:[#allocation10 + $0x5b0] ss:$40 sps:$4 sm:$0xff]   ;;  %v25696_v61 = vld [vmem:[#allocation10 + $0x604] ss:$40 sps:$4 sm:$0xff]  }
 0x79a   :  { %17655 = vmatprep.subr.bf16.mxu0 %v25678_v45  ;;  %v27391_v45 = vld [vmem:[#allocation5 + $0x58] ss:$40 sps:$4 sm:$0xff]  }
 0x79b   :  { %17423 = vmatmul.mubr.bf16.vlgmr.msra.gmra.mrb[36].mxu1 %v27383_v6 }
 0x79c   :  { %17635 = vmatmul.mubr.bf16.vlgmr.msra.gmra.mrb[36].mxu0 %v27368_v34  ;;  %17444 = vmatpush1.bf16.msra.mxu1 %v25673_v47  ;;  %v25693_v34 = vld [vmem:[#allocation10 + $0xafc] ss:$40 sps:$4 sm:$0xff]   ;;  %v25691_v47 = vld [vmem:[#allocation10 + $0xaf8] ss:$40 sps:$4 sm:$0xff]  }
 0x79d   :  { %17656 = vmatpush1.bf16.msra.mxu0 %v25676_v8  ;;  %17445 = vmatprep.subr.bf16.mxu1 %v25681_v36  ;;  %v25694_v8 = vld [vmem:[#allocation10 + $0x600] ss:$40 sps:$4 sm:$0xff]   ;;  %v25702_v36 = vld [vmem:[#allocation10 + $0x654] ss:$40 sps:$4 sm:$0xff]  }
 0x79e   :  { %17657 = vmatprep.subr.bf16.mxu0 %v25684_v3  ;;  %17432 = vmatprep.mubr.bf16.mxu1 %v27387_v5  ;;  %v27395_v3 = vld [vmem:[#allocation5 + $0x14] ss:$40 sps:$4 sm:$0xff]  }
 0x79f   :  { %17644 = vmatprep.mubr.bf16.mxu0 %v27372_v48  ;;  %v25699_v48 = vld [vmem:[#allocation10 + $0xb4c] ss:$40 sps:$4 sm:$0xff]  }
 0x7a0   :  { %17446 = vmatpush1.bf16.msra.mxu1 %v25679_v14  ;;  %v25697_v14 = vld [vmem:[#allocation10 + $0xb48] ss:$40 sps:$4 sm:$0xff]  }
 0x7a1   :  { %17658 = vmatpush1.bf16.msra.mxu0 %v25682_v17  ;;  %17447 = vmatprep.subr.bf16.mxu1 %v25687_v41  ;;  %v25700_v17 = vld [vmem:[#allocation10 + $0x650] ss:$40 sps:$4 sm:$0xff]   ;;  %v25708_v41 = vld [vmem:[#allocation10 + $0x6a4] ss:$40 sps:$4 sm:$0xff]  }
 0x7a2   :  { %17659 = vmatprep.subr.bf16.mxu0 %v25690_v52  ;;  %v25703_v52 = vld [vmem:[#allocation10 + $0xb98] ss:$40 sps:$4 sm:$0xff]  }
 0x7a3   :  { %17433 = vmatmul.mubr.bf16.gmra.mrb[40].mxu1 %v27391_v45 }
 0x7a4   :  { %17645 = vmatmul.mubr.bf16.gmra.mrb[40].mxu0 %v27376_v35  ;;  %17448 = vmatpush1.bf16.msra.mxu1 %v25685_v54  ;;  %v25705_v35 = vld [vmem:[#allocation10 + $0xb9c] ss:$40 sps:$4 sm:$0xff]   ;;  %v25706_v54 = vld [vmem:[#allocation10 + $0x6a0] ss:$40 sps:$4 sm:$0xff]  }
 0x7a5   :  { %17660 = vmatpush1.bf16.msra.mxu0 %v25688_v13  ;;  %17449 = vmatprep.subr.bf16.mxu1 %v25693_v34  ;;  %v25711_v13 = vld [vmem:[#allocation10 + $0xbec] ss:$40 sps:$4 sm:$0xff]  }
 0x7a6   :  { %17661 = vmatprep.subr.bf16.mxu0 %v25696_v61  ;;  %17475 = vmatprep.mubr.bf16.mxu1 %v27395_v3  ;;  %v25714_v34 = vld [vmem:[#allocation10 + $0x6f4] ss:$40 sps:$4 sm:$0xff]   ;;  %v25709_v61 = vld [vmem:[#allocation10 + $0xbe8] ss:$40 sps:$4 sm:$0xff]  }
 0x7a7   :  { %17687 = vmatprep.mubr.bf16.mxu0 %v27379_v38  ;;  %v25712_v38 = vld [vmem:[#allocation10 + $0x6f0] ss:$40 sps:$4 sm:$0xff]  }
 0x7a8   :  { %17450 = vmatpush1.bf16.msra.mxu1 %v25691_v47  ;;  %v25717_v47 = vld [vmem:[#allocation10 + $0xc3c] ss:$40 sps:$4 sm:$0xff]  }
 0x7a9   :  { %17662 = vmatpush1.bf16.msra.mxu0 %v25694_v8  ;;  %17451 = vmatprep.subr.bf16.mxu1 %v25699_v48  ;;  %v25720_v8 = vld [vmem:[#allocation10 + $0x744] ss:$40 sps:$4 sm:$0xff]   ;;  %v25715_v48 = vld [vmem:[#allocation10 + $0xc38] ss:$40 sps:$4 sm:$0xff]  }
 0x7aa   :  { %17663 = vmatprep.subr.bf16.mxu0 %v25702_v36  ;;  %v25718_v36 = vld [vmem:[#allocation10 + $0x740] ss:$40 sps:$4 sm:$0xff]  }
 0x7ac   :  { %17452 = vmatpush1.bf16.msra.mxu1 %v25697_v14  ;;  %v25723_v14 = vld [vmem:[#allocation10 + $0xc8c] ss:$40 sps:$4 sm:$0xff]  }
 0x7ad   :  { %17664 = vmatpush1.bf16.msra.mxu0 %v25700_v17  ;;  %17453 = vmatprep.subr.bf16.mxu1 %v25705_v35  ;;  %v25726_v17 = vld [vmem:[#allocation10 + $0x794] ss:$40 sps:$4 sm:$0xff]   ;;  %v25721_v35 = vld [vmem:[#allocation10 + $0xc88] ss:$40 sps:$4 sm:$0xff]  }
 0x7ae   :  { %17665 = vmatprep.subr.bf16.mxu0 %v25708_v41  ;;  %v25724_v41 = vld [vmem:[#allocation10 + $0x790] ss:$40 sps:$4 sm:$0xff]  }
 0x7b0   :  { %17454 = vmatpush1.bf16.msra.mxu1 %v25703_v52  ;;  %v25729_v52 = vld [vmem:[#allocation10 + $0xcdc] ss:$40 sps:$4 sm:$0xff]  }
 0x7b1   :  { %17666 = vmatpush1.bf16.msra.mxu0 %v25706_v54  ;;  %17455 = vmatprep.subr.bf16.mxu1 %v25711_v13  ;;  %v25732_v54 = vld [vmem:[#allocation10 + $0x7e4] ss:$40 sps:$4 sm:$0xff]   ;;  %v25727_v13 = vld [vmem:[#allocation10 + $0xcd8] ss:$40 sps:$4 sm:$0xff]  }
 0x7b2   :  { %17667 = vmatprep.subr.bf16.mxu0 %v25714_v34  ;;  %v25730_v34 = vld [vmem:[#allocation10 + $0x7e0] ss:$40 sps:$4 sm:$0xff]  }
 0x7b4   :  { %17456 = vmatpush1.bf16.msra.mxu1 %v25709_v61  ;;  %v25735_v61 = vld [vmem:[#allocation10 + $0xd2c] ss:$40 sps:$4 sm:$0xff]  }
 0x7b5   :  { %17668 = vmatpush1.bf16.msra.mxu0 %v25712_v38  ;;  %17457 = vmatprep.subr.bf16.mxu1 %v25717_v47  ;;  %v25738_v38 = vld [vmem:[#allocation10 + $0x834] ss:$40 sps:$4 sm:$0xff]   ;;  %v25733_v47 = vld [vmem:[#allocation10 + $0xd28] ss:$40 sps:$4 sm:$0xff]  }
 0x7b6   :  { %17669 = vmatprep.subr.bf16.mxu0 %v25720_v8  ;;  %v25736_v8 = vld [vmem:[#allocation10 + $0x830] ss:$40 sps:$4 sm:$0xff]  }
 0x7b8   :  { %17458 = vmatpush1.bf16.msra.mxu1 %v25715_v48  ;;  %v25741_v48 = vld [vmem:[#allocation10 + $0xd7c] ss:$40 sps:$4 sm:$0xff]  }
 0x7b9   :  { %17670 = vmatpush1.bf16.msra.mxu0 %v25718_v36  ;;  %17459 = vmatprep.subr.bf16.mxu1 %v25723_v14  ;;  %v25744_v36 = vld [vmem:[#allocation10 + $0x884] ss:$40 sps:$4 sm:$0xff]   ;;  %v25739_v14 = vld [vmem:[#allocation10 + $0xd78] ss:$40 sps:$4 sm:$0xff]  }
 0x7ba   :  { %17671 = vmatprep.subr.bf16.mxu0 %v25726_v17  ;;  %v25742_v17 = vld [vmem:[#allocation10 + $0x880] ss:$40 sps:$4 sm:$0xff]  }
 0x7bc   :  { %17460 = vmatpush1.bf16.msra.mxu1 %v25721_v35  ;;  %v25747_v35 = vld [vmem:[#allocation10 + $0xdcc] ss:$40 sps:$4 sm:$0xff]  }
 0x7bd   :  { %17672 = vmatpush1.bf16.msra.mxu0 %v25724_v41  ;;  %17461 = vmatprep.subr.bf16.mxu1 %v25729_v52  ;;  %v25750_v41 = vld [vmem:[#allocation10 + $0x8d4] ss:$40 sps:$4 sm:$0xff]   ;;  %v25745_v52 = vld [vmem:[#allocation10 + $0xdc8] ss:$40 sps:$4 sm:$0xff]  }
 0x7be   :  { %17673 = vmatprep.subr.bf16.mxu0 %v25732_v54  ;;  %v25748_v54 = vld [vmem:[#allocation10 + $0x8d0] ss:$40 sps:$4 sm:$0xff]  }
 0x7c0   :  { %17462 = vmatpush1.bf16.msra.mxu1 %v25727_v13  ;;  %v25753_v13 = vld [vmem:[#allocation10 + $0xe1c] ss:$40 sps:$4 sm:$0xff]  }
 0x7c1   :  { %17674 = vmatpush1.bf16.msra.mxu0 %v25730_v34  ;;  %17463 = vmatprep.subr.bf16.mxu1 %v25735_v61  ;;  %v25756_v34 = vld [vmem:[#allocation10 + $0x924] ss:$40 sps:$4 sm:$0xff]   ;;  %v25751_v61 = vld [vmem:[#allocation10 + $0xe18] ss:$40 sps:$4 sm:$0xff]  }
 0x7c2   :  { %17675 = vmatprep.subr.bf16.mxu0 %v25738_v38  ;;  %v25754_v38 = vld [vmem:[#allocation10 + $0x920] ss:$40 sps:$4 sm:$0xff]  }
 0x7c4   :  { %17464 = vmatpush1.bf16.msra.mxu1 %v25733_v47  ;;  %v25759_v47 = vld [vmem:[#allocation10 + $0xe6c] ss:$40 sps:$4 sm:$0xff]  }
 0x7c5   :  { %17676 = vmatpush1.bf16.msra.mxu0 %v25736_v8  ;;  %17465 = vmatprep.subr.bf16.mxu1 %v25741_v48  ;;  %v25762_v8 = vld [vmem:[#allocation10 + $0x974] ss:$40 sps:$4 sm:$0xff]   ;;  %v25757_v48 = vld [vmem:[#allocation10 + $0xe68] ss:$40 sps:$4 sm:$0xff]  }
 0x7c6   :  { %17677 = vmatprep.subr.bf16.mxu0 %v25744_v36  ;;  %v25760_v36 = vld [vmem:[#allocation10 + $0x970] ss:$40 sps:$4 sm:$0xff]  }
 0x7c8   :  { %17466 = vmatpush1.bf16.msra.mxu1 %v25739_v14  ;;  %v25765_v14 = vld [vmem:[#allocation10 + $0xebc] ss:$40 sps:$4 sm:$0xff]  }
 0x7c9   :  { %17678 = vmatpush1.bf16.msra.mxu0 %v25742_v17  ;;  %17467 = vmatprep.subr.bf16.mxu1 %v25747_v35  ;;  %v25768_v17 = vld [vmem:[#allocation10 + $0x9c4] ss:$40 sps:$4 sm:$0xff]   ;;  %v25763_v35 = vld [vmem:[#allocation10 + $0xeb8] ss:$40 sps:$4 sm:$0xff]  }
 0x7ca   :  { %17679 = vmatprep.subr.bf16.mxu0 %v25750_v41  ;;  %v25766_v41 = vld [vmem:[#allocation10 + $0x9c0] ss:$40 sps:$4 sm:$0xff]  }
 0x7cc   :  { %17468 = vmatpush1.bf16.msra.mxu1 %v25745_v52  ;;  %v25771_v52 = vld [vmem:[#allocation10 + $0xf0c] ss:$40 sps:$4 sm:$0xff]  }
 0x7cd   :  { %17680 = vmatpush1.bf16.msra.mxu0 %v25748_v54  ;;  %17469 = vmatprep.subr.bf16.mxu1 %v25753_v13  ;;  %v25774_v54 = vld [vmem:[#allocation10 + $0xa14] ss:$40 sps:$4 sm:$0xff]   ;;  %v25769_v13 = vld [vmem:[#allocation10 + $0xf08] ss:$40 sps:$4 sm:$0xff]  }
 0x7ce   :  { %17681 = vmatprep.subr.bf16.mxu0 %v25756_v34  ;;  %v25772_v34 = vld [vmem:[#allocation10 + $0xa10] ss:$40 sps:$4 sm:$0xff]  }
 0x7d0   :  { %17470 = vmatpush1.bf16.msra.mxu1 %v25751_v61  ;;  %v25777_v61 = vld [vmem:[#allocation10 + $0xf5c] ss:$40 sps:$4 sm:$0xff]  }
 0x7d1   :  { %17682 = vmatpush1.bf16.msra.mxu0 %v25754_v38  ;;  %17471 = vmatprep.subr.bf16.mxu1 %v25759_v47  ;;  %v25780_v38 = vld [vmem:[#allocation10 + $0xa64] ss:$40 sps:$4 sm:$0xff]   ;;  %v27399_v47 = vld [vmem:[#allocation5 + $0x10] ss:$40 sps:$4 sm:$0xff]  }
 0x7d2   :  { %17683 = vmatprep.subr.bf16.mxu0 %v25762_v8  ;;  %v25775_v8 = vld [vmem:[#allocation10 + $0xf58] ss:$40 sps:$4 sm:$0xff]  }
 0x7d4   :  { %17472 = vmatpush1.bf16.msra.mxu1 %v25757_v48  ;;  %v25778_v48 = vld [vmem:[#allocation10 + $0xa60] ss:$40 sps:$4 sm:$0xff]  }
 0x7d5   :  { %17684 = vmatpush1.bf16.msra.mxu0 %v25760_v36  ;;  %17473 = vmatprep.subr.bf16.mxu1 %v25765_v14  ;;  %v25783_v36 = vld [vmem:[#allocation10 + $0xfac] ss:$40 sps:$4 sm:$0xff]  }
 0x7d6   :  { %17685 = vmatprep.subr.bf16.mxu0 %v25768_v17  ;;  %v25786_v14 = vld [vmem:[#allocation10 + $0xab4] ss:$40 sps:$4 sm:$0xff]   ;;  %v27403_v17 = vld [vmem:[#allocation5 + $0x64] ss:$40 sps:$4 sm:$0xff]  }
 0x7d8   :  { %17474 = vmatpush1.bf16.msra.mxu1 %v25763_v35  ;;  %v25781_v35 = vld [vmem:[#allocation10 + $0xfa8] ss:$40 sps:$4 sm:$0xff]  }
 0x7d9   :  { %17686 = vmatpush1.bf16.msra.mxu0 %v25766_v41  ;;  %17496 = vmatprep.subr.bf16.mxu1 %v25771_v52  ;;  %v25784_v41 = vld [vmem:[#allocation10 + $0xab0] ss:$40 sps:$4 sm:$0xff]   ;;  %v25792_v52 = vld [vmem:[#allocation10 + $0xb04] ss:$40 sps:$4 sm:$0xff]  }
 0x7da   :  { %17708 = vmatprep.subr.bf16.mxu0 %v25774_v54  ;;  %v27407_v54 = vld [vmem:[#allocation5 + $0x60] ss:$40 sps:$4 sm:$0xff]  }
 0x7db   :  { %17476 = vmatmul.mubr.bf16.vlgmr.msra.gmra.mrb[36].mxu1 %v27399_v47 }
 0x7dc   :  { %17688 = vmatmul.mubr.bf16.vlgmr.msra.gmra.mrb[36].mxu0 %v27383_v6  ;;  %17497 = vmatpush1.bf16.msra.mxu1 %v25769_v13  ;;  %v25789_v6 = vld [vmem:[#allocation10 + $0xffc] ss:$40 sps:$4 sm:$0xff]   ;;  %v25787_v13 = vld [vmem:[#allocation10 + $0xff8] ss:$40 sps:$4 sm:$0xff]  }
 0x7dd   :  { %17709 = vmatpush1.bf16.msra.mxu0 %v25772_v34  ;;  %17498 = vmatprep.subr.bf16.mxu1 %v25777_v61  ;;  %v25790_v34 = vld [vmem:[#allocation10 + $0xb00] ss:$40 sps:$4 sm:$0xff]   ;;  %v25798_v61 = vld [vmem:[#allocation10 + $0xb54] ss:$40 sps:$4 sm:$0xff]  }
 0x7de   :  { %17710 = vmatprep.subr.bf16.mxu0 %v25780_v38  ;;  %17485 = vmatprep.mubr.bf16.mxu1 %v27403_v17  ;;  %v27411_v38 = vld [vmem:[#allocation5 + $0x1c] ss:$40 sps:$4 sm:$0xff]  }
 0x7df   :  { %17697 = vmatprep.mubr.bf16.mxu0 %v27387_v5  ;;  %v25795_v5 = vld [vmem:[#allocation10 + $0x104c] ss:$40 sps:$4 sm:$0xff]  }
 0x7e0   :  { %17499 = vmatpush1.bf16.msra.mxu1 %v25775_v8  ;;  %v25793_v8 = vld [vmem:[#allocation10 + $0x1048] ss:$40 sps:$4 sm:$0xff]  }
 0x7e1   :  { %17711 = vmatpush1.bf16.msra.mxu0 %v25778_v48  ;;  %17500 = vmatprep.subr.bf16.mxu1 %v25783_v36  ;;  %v25796_v48 = vld [vmem:[#allocation10 + $0xb50] ss:$40 sps:$4 sm:$0xff]   ;;  %v25804_v36 = vld [vmem:[#allocation10 + $0xba4] ss:$40 sps:$4 sm:$0xff]  }
 0x7e2   :  { %17712 = vmatprep.subr.bf16.mxu0 %v25786_v14  ;;  %v25799_v14 = vld [vmem:[#allocation10 + $0x1098] ss:$40 sps:$4 sm:$0xff]  }
 0x7e3   :  { %17486 = vmatmul.mubr.bf16.gmra.mrb[40].mxu1 %v27407_v54 }
 0x7e4   :  { %17698 = vmatmul.mubr.bf16.gmra.mrb[40].mxu0 %v27391_v45  ;;  %17501 = vmatpush1.bf16.msra.mxu1 %v25781_v35  ;;  %v25801_v45 = vld [vmem:[#allocation10 + $0x109c] ss:$40 sps:$4 sm:$0xff]   ;;  %v25802_v35 = vld [vmem:[#allocation10 + $0xba0] ss:$40 sps:$4 sm:$0xff]  }
 0x7e5   :  { %17713 = vmatpush1.bf16.msra.mxu0 %v25784_v41  ;;  %17502 = vmatprep.subr.bf16.mxu1 %v25789_v6  ;;  %v25807_v41 = vld [vmem:[#allocation10 + $0x10ec] ss:$40 sps:$4 sm:$0xff]  }
 0x7e6   :  { %17714 = vmatprep.subr.bf16.mxu0 %v25792_v52  ;;  %17528 = vmatprep.mubr.bf16.mxu1 %v27411_v38  ;;  %v25810_v6 = vld [vmem:[#allocation10 + $0xbf4] ss:$40 sps:$4 sm:$0xff]  }
 0x7e7   :  { %17740 = vmatprep.mubr.bf16.mxu0 %v27395_v3 }
 0x7e8   :  { %17503 = vmatpush1.bf16.msra.mxu1 %v25787_v13  ;;  %v25805_v13 = vld [vmem:[#allocation10 + $0x10e8] ss:$40 sps:$4 sm:$0xff]  }
 0x7e9   :  { %17715 = vmatpush1.bf16.msra.mxu0 %v25790_v34  ;;  %17504 = vmatprep.subr.bf16.mxu1 %v25795_v5  ;;  %v25808_v34 = vld [vmem:[#allocation10 + $0xbf0] ss:$40 sps:$4 sm:$0xff]  }
 0x7ea   :  { %17716 = vmatprep.subr.bf16.mxu0 %v25798_v61 }
 0x7ec   :  { %17505 = vmatpush1.bf16.msra.mxu1 %v25793_v8  ;;  %v25813_v8 = vld [vmem:[#allocation10 + $0x113c] ss:$40 sps:$4 sm:$0xff]  }
 0x7ed   :  { %17717 = vmatpush1.bf16.msra.mxu0 %v25796_v48  ;;  %17506 = vmatprep.subr.bf16.mxu1 %v25801_v45  ;;  %v25816_v48 = vld [vmem:[#allocation10 + $0xc44] ss:$40 sps:$4 sm:$0xff]   ;;  %v25838_v45 = vld [vmem:[#allocation10 + $0xd80] ss:$40 sps:$4 sm:$0xff]  }
 0x7ee   :  { %17718 = vmatprep.subr.bf16.mxu0 %v25804_v36  ;;  %v27415_v52 = vpop.f32.mrb[28].mxu1  ;;  %v25811_v36 = vld [vmem:[#allocation10 + $0x1138] ss:$40 sps:$4 sm:$0xff]  }
 0x7ef   :  { %v27417_v26 = vpop.f32.mrb[29].mxu1 }
 0x7f0   :  { %v27419_v3 = vpop.f32.mrb[30].mxu1  ;;  %17507 = vmatpush1.bf16.msra.mxu1 %v25799_v14  ;;  %v25819_v14 = vld [vmem:[#allocation10 + $0x118c] ss:$40 sps:$4 sm:$0xff]  }
 0x7f1   :  { %17719 = vmatpush1.bf16.msra.mxu0 %v25802_v35  ;;  %v27423_v61 = vpop.f32.mrb[31].mxu1  ;;  %17508 = vmatprep.subr.bf16.mxu1 %v25807_v41  ;;  %v25822_v35 = vld [vmem:[#allocation10 + $0xc94] ss:$40 sps:$4 sm:$0xff]   ;;  %v25817_v41 = vld [vmem:[#allocation10 + $0x1188] ss:$40 sps:$4 sm:$0xff]  }
 0x7f2   :  { %17720 = vmatprep.subr.bf16.mxu0 %v25810_v6  ;;  %v25820_v6 = vld [vmem:[#allocation10 + $0xc90] ss:$40 sps:$4 sm:$0xff]  }
 0x7f4   :  { %17509 = vmatpush1.bf16.msra.mxu1 %v25805_v13  ;;  %v25829_v13 = vld [vmem:[#allocation10 + $0x1228] ss:$40 sps:$4 sm:$0xff]  }
 0x7f5   :  { %17721 = vmatpush1.bf16.msra.mxu0 %v25808_v34  ;;  %17510 = vmatprep.subr.bf16.mxu1 %v25813_v8  ;;  %v25825_v8 = vld [vmem:[#allocation10 + $0x11dc] ss:$40 sps:$4 sm:$0xff]  }
 0x7f6   :  { %17722 = vmatprep.subr.bf16.mxu0 %v25816_v48  ;;  %v27427_v10 = vpop.f32.mrb[32].mxu1  ;;  %v25828_v48 = vld [vmem:[#allocation10 + $0xce4] ss:$40 sps:$4 sm:$0xff]  }
 0x7f7   :  { %27884 = vst [vmem:[#allocation43_spill] sm:$0xff] %v27427_v10  ;;  %v27429_v5 = vpop.f32.mrb[33].mxu1  ;;  %v25832_v10 = vld [vmem:[#allocation10 + $0xd30] ss:$40 sps:$4 sm:$0xff]  }
 0x7f8   :  { %27885 = vst [vmem:[#allocation44_spill] sm:$0xff] %v27429_v5  ;;  %v27431_v42 = vpop.f32.mrb[34].mxu1  ;;  %17511 = vmatpush1.bf16.msra.mxu1 %v25811_v36  ;;  %v25834_v36 = vld [vmem:[#allocation10 + $0xd34] ss:$40 sps:$4 sm:$0xff]  }
 0x7f9   :  { %27886 = vst [vmem:[#allocation45_spill] sm:$0xff] %v27431_v42  ;;  %17723 = vmatpush1.bf16.msra.mxu0 %v25814_v53  ;;  %v27435_v34 = vpop.f32.mrb[35].mxu1  ;;  %17512 = vmatprep.subr.bf16.mxu1 %v25819_v14  ;;  %v25831_v53 = vld [vmem:[#allocation10 + $0x122c] ss:$40 sps:$4 sm:$0xff]   ;;  %v25837_v14 = vld [vmem:[#allocation10 + $0x127c] ss:$40 sps:$4 sm:$0xff]  }
 0x7fa   :  { %27887 = vst [vmem:[#allocation46_spill] sm:$0xff] %v27435_v34  ;;  %17724 = vmatprep.subr.bf16.mxu0 %v25822_v35  ;;  %v25840_v35 = vld [vmem:[#allocation10 + $0xd84] ss:$40 sps:$4 sm:$0xff]   ;;  %v25835_v42 = vld [vmem:[#allocation10 + $0x1278] ss:$40 sps:$4 sm:$0xff]  }
 0x7fb   :  { %v25910_v34 = vld [vmem:[#allocation10 + $0x1140] ss:$40 sps:$4 sm:$0xff]  }
 0x7fc   :  { %17513 = vmatpush1.bf16.msra.mxu1 %v25817_v41  ;;  %v25843_v41 = vld [vmem:[#allocation10 + $0x12cc] ss:$40 sps:$4 sm:$0xff]  }
 0x7fd   :  { %17725 = vmatpush1.bf16.msra.mxu0 %v25820_v6  ;;  %17514 = vmatprep.subr.bf16.mxu1 %v25825_v8  ;;  %v25846_v6 = vld [vmem:[#allocation10 + $0xdd4] ss:$40 sps:$4 sm:$0xff]   ;;  %v25841_v8 = vld [vmem:[#allocation10 + $0x12c8] ss:$40 sps:$4 sm:$0xff]  }
 0x7fe   :  { %17726 = vmatprep.subr.bf16.mxu0 %v25828_v48  ;;  %v25844_v48 = vld [vmem:[#allocation10 + $0xdd0] ss:$40 sps:$4 sm:$0xff]  }
 0x800   :  { %17515 = vmatpush1.bf16.msra.mxu1 %v25823_v51  ;;  %v25852_v51 = vld [vmem:[#allocation10 + $0xe24] ss:$40 sps:$4 sm:$0xff]  }
 0x801   :  { %17727 = vmatpush1.bf16.msra.mxu0 %v25826_v22  ;;  %17516 = vmatprep.subr.bf16.mxu1 %v25831_v53  ;;  %v25849_v22 = vld [vmem:[#allocation10 + $0x131c] ss:$40 sps:$4 sm:$0xff]   ;;  %v25847_v53 = vld [vmem:[#allocation10 + $0x1318] ss:$40 sps:$4 sm:$0xff]  }
 0x802   :  { %17728 = vmatprep.subr.bf16.mxu0 %v25834_v36  ;;  %v25850_v36 = vld [vmem:[#allocation10 + $0xe20] ss:$40 sps:$4 sm:$0xff]  }
 0x804   :  { %17517 = vmatpush1.bf16.msra.mxu1 %v25829_v13  ;;  %v25858_v13 = vld [vmem:[#allocation10 + $0xe74] ss:$40 sps:$4 sm:$0xff]  }
 0x805   :  { %17729 = vmatpush1.bf16.msra.mxu0 %v25832_v10  ;;  %17518 = vmatprep.subr.bf16.mxu1 %v25837_v14  ;;  %v25855_v10 = vld [vmem:[#allocation10 + $0x136c] ss:$40 sps:$4 sm:$0xff]   ;;  %v25853_v14 = vld [vmem:[#allocation10 + $0x1368] ss:$40 sps:$4 sm:$0xff]  }
 0x806   :  { %17730 = vmatprep.subr.bf16.mxu0 %v25840_v35  ;;  %v25856_v35 = vld [vmem:[#allocation10 + $0xe70] ss:$40 sps:$4 sm:$0xff]  }
 0x808   :  { %17519 = vmatpush1.bf16.msra.mxu1 %v25835_v42  ;;  %v25861_v42 = vld [vmem:[#allocation10 + $0x13bc] ss:$40 sps:$4 sm:$0xff]  }
 0x809   :  { %17731 = vmatpush1.bf16.msra.mxu0 %v25838_v45  ;;  %17520 = vmatprep.subr.bf16.mxu1 %v25843_v41  ;;  %v25864_v45 = vld [vmem:[#allocation10 + $0xec4] ss:$40 sps:$4 sm:$0xff]   ;;  %v25859_v41 = vld [vmem:[#allocation10 + $0x13b8] ss:$40 sps:$4 sm:$0xff]  }
 0x80a   :  { %17732 = vmatprep.subr.bf16.mxu0 %v25846_v6  ;;  %v25862_v6 = vld [vmem:[#allocation10 + $0xec0] ss:$40 sps:$4 sm:$0xff]  }
 0x80c   :  { %17521 = vmatpush1.bf16.msra.mxu1 %v25841_v8  ;;  %v25867_v8 = vld [vmem:[#allocation10 + $0x140c] ss:$40 sps:$4 sm:$0xff]  }
 0x80d   :  { %17733 = vmatpush1.bf16.msra.mxu0 %v25844_v48  ;;  %17522 = vmatprep.subr.bf16.mxu1 %v25849_v22  ;;  %v25870_v48 = vld [vmem:[#allocation10 + $0xf14] ss:$40 sps:$4 sm:$0xff]   ;;  %v25865_v22 = vld [vmem:[#allocation10 + $0x1408] ss:$40 sps:$4 sm:$0xff]  }
 0x80e   :  { %17734 = vmatprep.subr.bf16.mxu0 %v25852_v51  ;;  %v25868_v51 = vld [vmem:[#allocation10 + $0xf10] ss:$40 sps:$4 sm:$0xff]  }
 0x810   :  { %17523 = vmatpush1.bf16.msra.mxu1 %v25847_v53  ;;  %v25873_v53 = vld [vmem:[#allocation10 + $0x145c] ss:$40 sps:$4 sm:$0xff]  }
 0x811   :  { %17735 = vmatpush1.bf16.msra.mxu0 %v25850_v36  ;;  %17524 = vmatprep.subr.bf16.mxu1 %v25855_v10  ;;  %v25876_v36 = vld [vmem:[#allocation10 + $0xf64] ss:$40 sps:$4 sm:$0xff]   ;;  %v27439_v10 = vld [vmem:[#allocation5 + $0x18] ss:$40 sps:$4 sm:$0xff]  }
 0x812   :  { %17736 = vmatprep.subr.bf16.mxu0 %v25858_v13  ;;  %v25871_v13 = vld [vmem:[#allocation10 + $0x1458] ss:$40 sps:$4 sm:$0xff]  }
 0x814   :  { %17525 = vmatpush1.bf16.msra.mxu1 %v25853_v14  ;;  %v25874_v14 = vld [vmem:[#allocation10 + $0xf60] ss:$40 sps:$4 sm:$0xff]  }
 0x815   :  { %17737 = vmatpush1.bf16.msra.mxu0 %v25856_v35  ;;  %17526 = vmatprep.subr.bf16.mxu1 %v25861_v42  ;;  %v25879_v35 = vld [vmem:[#allocation10 + $0x14ac] ss:$40 sps:$4 sm:$0xff]  }
 0x816   :  { %17738 = vmatprep.subr.bf16.mxu0 %v25864_v45  ;;  %v25882_v42 = vld [vmem:[#allocation10 + $0xfb4] ss:$40 sps:$4 sm:$0xff]  }
 0x817   :  { %v27443_v45 = vld [vmem:[#allocation5 + $0x6c] ss:$40 sps:$4 sm:$0xff]  }
 0x818   :  { %17527 = vmatpush1.bf16.msra.mxu1 %v25859_v41  ;;  %v25877_v41 = vld [vmem:[#allocation10 + $0x14a8] ss:$40 sps:$4 sm:$0xff]  }
 0x819   :  { %17739 = vmatpush1.bf16.msra.mxu0 %v25862_v6  ;;  %17549 = vmatprep.subr.bf16.mxu1 %v25867_v8  ;;  %v25880_v6 = vld [vmem:[#allocation10 + $0xfb0] ss:$40 sps:$4 sm:$0xff]   ;;  %v25888_v8 = vld [vmem:[#allocation10 + $0x1004] ss:$40 sps:$4 sm:$0xff]  }
 0x81a   :  { %17761 = vmatprep.subr.bf16.mxu0 %v25870_v48  ;;  %v27447_v48 = vld [vmem:[#allocation5 + $0x68] ss:$40 sps:$4 sm:$0xff]  }
 0x81b   :  { %17529 = vmatmul.mubr.bf16.vlgmr.msra.gmra.mrb[36].mxu1 %v27439_v10 }
 0x81c   :  { %17741 = vmatmul.mubr.bf16.vlgmr.msra.gmra.mrb[36].mxu0 %v27399_v47  ;;  %17550 = vmatpush1.bf16.msra.mxu1 %v25865_v22  ;;  %v25885_v47 = vld [vmem:[#allocation10 + $0x14fc] ss:$40 sps:$4 sm:$0xff]   ;;  %v25883_v22 = vld [vmem:[#allocation10 + $0x14f8] ss:$40 sps:$4 sm:$0xff]  }
 0x81d   :  { %17762 = vmatpush1.bf16.msra.mxu0 %v25868_v51  ;;  %17551 = vmatprep.subr.bf16.mxu1 %v25873_v53  ;;  %v25886_v51 = vld [vmem:[#allocation10 + $0x1000] ss:$40 sps:$4 sm:$0xff]   ;;  %v25894_v53 = vld [vmem:[#allocation10 + $0x1054] ss:$40 sps:$4 sm:$0xff]  }
 0x81e   :  { %17763 = vmatprep.subr.bf16.mxu0 %v25876_v36  ;;  %17538 = vmatprep.mubr.bf16.mxu1 %v27443_v45  ;;  %v27451_v36 = vld [vmem:[#allocation5 + $0x24] ss:$40 sps:$4 sm:$0xff]  }
 0x81f   :  { %17750 = vmatprep.mubr.bf16.mxu0 %v27403_v17  ;;  %v25891_v17 = vld [vmem:[#allocation10 + $0x154c] ss:$40 sps:$4 sm:$0xff]  }
 0x820   :  { %17552 = vmatpush1.bf16.msra.mxu1 %v25871_v13  ;;  %v25889_v13 = vld [vmem:[#allocation10 + $0x1548] ss:$40 sps:$4 sm:$0xff]  }
 0x821   :  { %17764 = vmatpush1.bf16.msra.mxu0 %v25874_v14  ;;  %17553 = vmatprep.subr.bf16.mxu1 %v25879_v35  ;;  %v25892_v14 = vld [vmem:[#allocation10 + $0x1050] ss:$40 sps:$4 sm:$0xff]   ;;  %v25900_v35 = vld [vmem:[#allocation10 + $0x10a4] ss:$40 sps:$4 sm:$0xff]  }
 0x822   :  { %17765 = vmatprep.subr.bf16.mxu0 %v25882_v42  ;;  %v25895_v42 = vld [vmem:[#allocation10 + $0x1598] ss:$40 sps:$4 sm:$0xff]  }
 0x823   :  { %17539 = vmatmul.mubr.bf16.gmra.mrb[40].mxu1 %v27447_v48 }
 0x824   :  { %17751 = vmatmul.mubr.bf16.gmra.mrb[40].mxu0 %v27407_v54  ;;  %17554 = vmatpush1.bf16.msra.mxu1 %v25877_v41  ;;  %v25897_v54 = vld [vmem:[#allocation10 + $0x159c] ss:$40 sps:$4 sm:$0xff]   ;;  %v25898_v41 = vld [vmem:[#allocation10 + $0x10a0] ss:$40 sps:$4 sm:$0xff]  }
 0x825   :  { %17766 = vmatpush1.bf16.msra.mxu0 %v25880_v6  ;;  %17555 = vmatprep.subr.bf16.mxu1 %v25885_v47  ;;  %v25903_v6 = vld [vmem:[#allocation10 + $0x15ec] ss:$40 sps:$4 sm:$0xff]  }
 0x826   :  { %17767 = vmatprep.subr.bf16.mxu0 %v25888_v8  ;;  %17581 = vmatprep.mubr.bf16.mxu1 %v27451_v36  ;;  %v25906_v47 = vld [vmem:[#allocation10 + $0x10f4] ss:$40 sps:$4 sm:$0xff]  }
 0x827   :  { %17793 = vmatprep.mubr.bf16.mxu0 %v27411_v38 }
 0x828   :  { %17556 = vmatpush1.bf16.msra.mxu1 %v25883_v22  ;;  %v25901_v22 = vld [vmem:[#allocation10 + $0x15e8] ss:$40 sps:$4 sm:$0xff]  }
 0x829   :  { %17768 = vmatpush1.bf16.msra.mxu0 %v25886_v51  ;;  %17557 = vmatprep.subr.bf16.mxu1 %v25891_v17  ;;  %v25904_v51 = vld [vmem:[#allocation10 + $0x10f0] ss:$40 sps:$4 sm:$0xff]  }
 0x82a   :  { %17769 = vmatprep.subr.bf16.mxu0 %v25894_v53 }
 0x82c   :  { %17558 = vmatpush1.bf16.msra.mxu1 %v25889_v13  ;;  %v25909_v13 = vld [vmem:[#allocation10 + $0x163c] ss:$40 sps:$4 sm:$0xff]  }
 0x82d   :  { %17770 = vmatpush1.bf16.msra.mxu0 %v25892_v14  ;;  %17559 = vmatprep.subr.bf16.mxu1 %v25897_v54  ;;  %v25912_v14 = vld [vmem:[#allocation10 + $0x1144] ss:$40 sps:$4 sm:$0xff]   ;;  %v25934_v54 = vld [vmem:[#allocation10 + $0x1280] ss:$40 sps:$4 sm:$0xff]  }
 0x82e   :  { %17771 = vmatprep.subr.bf16.mxu0 %v25900_v35  ;;  %v25907_v35 = vld [vmem:[#allocation10 + $0x1638] ss:$40 sps:$4 sm:$0xff]  }
 0x82f   :  { %v27455_v8 = vpop.f32.mrb[28].mxu0 }
 0x830   :  { %v27457_v5 = vpop.f32.mrb[29].mxu0  ;;  %17560 = vmatpush1.bf16.msra.mxu1 %v25895_v42  ;;  %v25915_v42 = vld [vmem:[#allocation10 + $0x168c] ss:$40 sps:$4 sm:$0xff]  }
 0x831   :  { %v27459_v38 = vpop.f32.mrb[30].mxu0  ;;  %17772 = vmatpush1.bf16.msra.mxu0 %v25898_v41  ;;  %17561 = vmatprep.subr.bf16.mxu1 %v25903_v6  ;;  %v25918_v41 = vld [vmem:[#allocation10 + $0x1194] ss:$40 sps:$4 sm:$0xff]   ;;  %v25913_v6 = vld [vmem:[#allocation10 + $0x1688] ss:$40 sps:$4 sm:$0xff]  }
 0x832   :  { %v27463_v53 = vpop.f32.mrb[31].mxu0  ;;  %17773 = vmatprep.subr.bf16.mxu0 %v25906_v47  ;;  %v25916_v47 = vld [vmem:[#allocation10 + $0x1190] ss:$40 sps:$4 sm:$0xff]  }
 0x834   :  { %17562 = vmatpush1.bf16.msra.mxu1 %v25901_v22  ;;  %v25925_v22 = vld [vmem:[#allocation10 + $0x1728] ss:$40 sps:$4 sm:$0xff]  }
 0x835   :  { %17774 = vmatpush1.bf16.msra.mxu0 %v25904_v51  ;;  %17563 = vmatprep.subr.bf16.mxu1 %v25909_v13  ;;  %v25921_v13 = vld [vmem:[#allocation10 + $0x16dc] ss:$40 sps:$4 sm:$0xff]  }
 0x836   :  { %17775 = vmatprep.subr.bf16.mxu0 %v25912_v14  ;;  %v25924_v14 = vld [vmem:[#allocation10 + $0x11e4] ss:$40 sps:$4 sm:$0xff]  }
 0x837   :  { %v27467_v25 = vpop.f32.mrb[32].mxu0 }
 0x838   :  { %27888 = vst [vmem:[#allocation47_spill] sm:$0xff] %v27467_v25  ;;  %v27469_v17 = vpop.f32.mrb[33].mxu0  ;;  %17564 = vmatpush1.bf16.msra.mxu1 %v25907_v35  ;;  %v25930_v35 = vld [vmem:[#allocation10 + $0x1234] ss:$40 sps:$4 sm:$0xff]   ;;  %v25928_v25 = vld [vmem:[#allocation10 + $0x1230] ss:$40 sps:$4 sm:$0xff]  }
 0x839   :  { %27889 = vst [vmem:[#allocation48_spill] sm:$0xff] %v27469_v17  ;;  %v27471_v56 = vpop.f32.mrb[34].mxu0  ;;  %17776 = vmatpush1.bf16.msra.mxu0 %v25910_v34  ;;  %17565 = vmatprep.subr.bf16.mxu1 %v25915_v42  ;;  %v25927_v34 = vld [vmem:[#allocation10 + $0x172c] ss:$40 sps:$4 sm:$0xff]   ;;  %v25933_v42 = vld [vmem:[#allocation10 + $0x177c] ss:$40 sps:$4 sm:$0xff]  }
 0x83a   :  { %27890 = vst [vmem:[#allocation49_spill] sm:$0xff] %v27471_v56  ;;  %v27475_v51 = vpop.f32.mrb[35].mxu0  ;;  %17777 = vmatprep.subr.bf16.mxu0 %v25918_v41  ;;  %v25936_v41 = vld [vmem:[#allocation10 + $0x1284] ss:$40 sps:$4 sm:$0xff]   ;;  %v25931_v56 = vld [vmem:[#allocation10 + $0x1778] ss:$40 sps:$4 sm:$0xff]  }
 0x83b   :  { %27891 = vst [vmem:[#allocation50_spill] sm:$0xff] %v27475_v51  ;;  %v26294_v51 = vld [vmem:[#allocation10 + $0xc50] ss:$40 sps:$4 sm:$0xff]  }
 0x83c   :  { %17566 = vmatpush1.bf16.msra.mxu1 %v25913_v6  ;;  %v25939_v6 = vld [vmem:[#allocation10 + $0x17cc] ss:$40 sps:$4 sm:$0xff]  }
 0x83d   :  { %17778 = vmatpush1.bf16.msra.mxu0 %v25916_v47  ;;  %17567 = vmatprep.subr.bf16.mxu1 %v25921_v13  ;;  %v25942_v47 = vld [vmem:[#allocation10 + $0x12d4] ss:$40 sps:$4 sm:$0xff]   ;;  %v25937_v13 = vld [vmem:[#allocation10 + $0x17c8] ss:$40 sps:$4 sm:$0xff]  }
 0x83e   :  { %17779 = vmatprep.subr.bf16.mxu0 %v25924_v14  ;;  %v25940_v14 = vld [vmem:[#allocation10 + $0x12d0] ss:$40 sps:$4 sm:$0xff]  }
 0x840   :  { %17568 = vmatpush1.bf16.msra.mxu1 %v25919_v18  ;;  %v25948_v18 = vld [vmem:[#allocation10 + $0x1324] ss:$40 sps:$4 sm:$0xff]  }
 0x841   :  { %17780 = vmatpush1.bf16.msra.mxu0 %v25922_v29  ;;  %17569 = vmatprep.subr.bf16.mxu1 %v25927_v34  ;;  %v25945_v29 = vld [vmem:[#allocation10 + $0x181c] ss:$40 sps:$4 sm:$0xff]   ;;  %v25943_v34 = vld [vmem:[#allocation10 + $0x1818] ss:$40 sps:$4 sm:$0xff]  }
 0x842   :  { %17781 = vmatprep.subr.bf16.mxu0 %v25930_v35  ;;  %v25946_v35 = vld [vmem:[#allocation10 + $0x1320] ss:$40 sps:$4 sm:$0xff]  }
 0x844   :  { %17570 = vmatpush1.bf16.msra.mxu1 %v25925_v22  ;;  %v25954_v22 = vld [vmem:[#allocation10 + $0x1374] ss:$40 sps:$4 sm:$0xff]  }
 0x845   :  { %17782 = vmatpush1.bf16.msra.mxu0 %v25928_v25  ;;  %17571 = vmatprep.subr.bf16.mxu1 %v25933_v42  ;;  %v25951_v25 = vld [vmem:[#allocation10 + $0x186c] ss:$40 sps:$4 sm:$0xff]   ;;  %v25949_v42 = vld [vmem:[#allocation10 + $0x1868] ss:$40 sps:$4 sm:$0xff]  }
 0x846   :  { %17783 = vmatprep.subr.bf16.mxu0 %v25936_v41  ;;  %v25952_v41 = vld [vmem:[#allocation10 + $0x1370] ss:$40 sps:$4 sm:$0xff]  }
 0x848   :  { %17572 = vmatpush1.bf16.msra.mxu1 %v25931_v56  ;;  %v25957_v56 = vld [vmem:[#allocation10 + $0x18bc] ss:$40 sps:$4 sm:$0xff]  }
 0x849   :  { %17784 = vmatpush1.bf16.msra.mxu0 %v25934_v54  ;;  %17573 = vmatprep.subr.bf16.mxu1 %v25939_v6  ;;  %v25960_v54 = vld [vmem:[#allocation10 + $0x13c4] ss:$40 sps:$4 sm:$0xff]   ;;  %v25955_v6 = vld [vmem:[#allocation10 + $0x18b8] ss:$40 sps:$4 sm:$0xff]  }
 0x84a   :  { %17785 = vmatprep.subr.bf16.mxu0 %v25942_v47  ;;  %v25958_v47 = vld [vmem:[#allocation10 + $0x13c0] ss:$40 sps:$4 sm:$0xff]  }
 0x84c   :  { %17574 = vmatpush1.bf16.msra.mxu1 %v25937_v13  ;;  %v25963_v13 = vld [vmem:[#allocation10 + $0x1414] ss:$40 sps:$4 sm:$0xff]  }
 0x84d   :  { %17786 = vmatpush1.bf16.msra.mxu0 %v25940_v14  ;;  %17575 = vmatprep.subr.bf16.mxu1 %v25945_v29  ;;  %v25966_v14 = vld [vmem:[#allocation10 + $0x1c] ss:$40 sps:$4 sm:$0xff]   ;;  %v25961_v29 = vld [vmem:[#allocation10 + $0x1410] ss:$40 sps:$4 sm:$0xff]  }
 0x84e   :  { %17787 = vmatprep.subr.bf16.mxu0 %v25948_v18  ;;  %v25964_v18 = vld [vmem:[#allocation10 + $0x18] ss:$40 sps:$4 sm:$0xff]  }
 0x850   :  { %17576 = vmatpush1.bf16.msra.mxu1 %v25943_v34  ;;  %v25969_v34 = vld [vmem:[#allocation10 + $0x1464] ss:$40 sps:$4 sm:$0xff]  }
 0x851   :  { %17788 = vmatpush1.bf16.msra.mxu0 %v25946_v35  ;;  %17577 = vmatprep.subr.bf16.mxu1 %v25951_v25  ;;  %v25972_v35 = vld [vmem:[#allocation10 + $0x6c] ss:$40 sps:$4 sm:$0xff]   ;;  %v27479_v25 = vld [vmem:[#allocation5 + $0x20] ss:$40 sps:$4 sm:$0xff]  }
 0x852   :  { %17789 = vmatprep.subr.bf16.mxu0 %v25954_v22  ;;  %v25967_v22 = vld [vmem:[#allocation10 + $0x1460] ss:$40 sps:$4 sm:$0xff]  }
 0x854   :  { %17578 = vmatpush1.bf16.msra.mxu1 %v25949_v42  ;;  %v25970_v42 = vld [vmem:[#allocation10 + $0x68] ss:$40 sps:$4 sm:$0xff]  }
 0x855   :  { %17790 = vmatpush1.bf16.msra.mxu0 %v25952_v41  ;;  %17579 = vmatprep.subr.bf16.mxu1 %v25957_v56  ;;  %v25975_v41 = vld [vmem:[#allocation10 + $0x14b4] ss:$40 sps:$4 sm:$0xff]  }
 0x856   :  { %17791 = vmatprep.subr.bf16.mxu0 %v25960_v54  ;;  %v25978_v56 = vld [vmem:[#allocation10 + $0xbc] ss:$40 sps:$4 sm:$0xff]  }
 0x857   :  { %v27483_v54 = vld [vmem:[#allocation5 + $0x74] ss:$40 sps:$4 sm:$0xff]  }
 0x858   :  { %17580 = vmatpush1.bf16.msra.mxu1 %v25955_v6  ;;  %v25973_v6 = vld [vmem:[#allocation10 + $0x14b0] ss:$40 sps:$4 sm:$0xff]  }
 0x859   :  { %17792 = vmatpush1.bf16.msra.mxu0 %v25958_v47  ;;  %17867 = vmatprep.subr.bf16.mxu1 %v25966_v14  ;;  %v25976_v47 = vld [vmem:[#allocation10 + $0xb8] ss:$40 sps:$4 sm:$0xff]  }
 0x85a   :  { %17814 = vmatprep.subr.bf16.mxu0 %v25963_v13  ;;  %v25984_v13 = vld [vmem:[#allocation10 + $0x10c] ss:$40 sps:$4 sm:$0xff]   ;;  %v27487_v14 = vld [vmem:[#allocation5 + $0x70] ss:$40 sps:$4 sm:$0xff]  }
 0x85b   :  { %17582 = vmatmul.mubr.bf16.vlgmr.msra.gmra.mrb[36].mxu1 %v27479_v25 }
 0x85c   :  { %17794 = vmatmul.mubr.bf16.vlgmr.msra.gmra.mrb[36].mxu0 %v27439_v10  ;;  %17868 = vmatpush1.bf16.msra.mxu1 %v25964_v18  ;;  %v25981_v10 = vld [vmem:[#allocation10 + $0x1504] ss:$40 sps:$4 sm:$0xff]   ;;  %v25982_v18 = vld [vmem:[#allocation10 + $0x108] ss:$40 sps:$4 sm:$0xff]  }
 0x85d   :  { %17815 = vmatpush1.bf16.msra.mxu0 %v25961_v29  ;;  %17869 = vmatprep.subr.bf16.mxu1 %v25972_v35  ;;  %v25979_v29 = vld [vmem:[#allocation10 + $0x1500] ss:$40 sps:$4 sm:$0xff]   ;;  %v27492_v35 = vld [vmem:[#allocation5 + $0x4] ss:$40 sps:$4 sm:$0xff]  }
 0x85e   :  { %17816 = vmatprep.subr.bf16.mxu0 %v25969_v34  ;;  %17591 = vmatprep.mubr.bf16.mxu1 %v27483_v54  ;;  %v25990_v34 = vld [vmem:[#allocation10 + $0x15c] ss:$40 sps:$4 sm:$0xff]  }
 0x85f   :  { %17803 = vmatprep.mubr.bf16.mxu0 %v27443_v45  ;;  %v25987_v45 = vld [vmem:[#allocation10 + $0x1554] ss:$40 sps:$4 sm:$0xff]  }
 0x860   :  { %17870 = vmatpush1.bf16.msra.mxu1 %v25970_v42  ;;  %v25988_v42 = vld [vmem:[#allocation10 + $0x158] ss:$40 sps:$4 sm:$0xff]  }
 0x861   :  { %17817 = vmatpush1.bf16.msra.mxu0 %v25967_v22  ;;  %17871 = vmatprep.subr.bf16.mxu1 %v25978_v56  ;;  %v25985_v22 = vld [vmem:[#allocation10 + $0x1550] ss:$40 sps:$4 sm:$0xff]   ;;  %v25991_v56 = vld [vmem:[#allocation10 + $0x15a0] ss:$40 sps:$4 sm:$0xff]  }
 0x862   :  { %17818 = vmatprep.subr.bf16.mxu0 %v25975_v41  ;;  %v25996_v41 = vld [vmem:[#allocation10 + $0x1ac] ss:$40 sps:$4 sm:$0xff]  }
 0x863   :  { %17592 = vmatmul.mubr.bf16.gmra.mrb[40].mxu1 %v27487_v14 }
 0x864   :  { %17804 = vmatmul.mubr.bf16.gmra.mrb[40].mxu0 %v27447_v48  ;;  %17872 = vmatpush1.bf16.msra.mxu1 %v25976_v47  ;;  %v25993_v48 = vld [vmem:[#allocation10 + $0x15a4] ss:$40 sps:$4 sm:$0xff]   ;;  %v25999_v47 = vld [vmem:[#allocation10 + $0x15f4] ss:$40 sps:$4 sm:$0xff]  }
 0x865   :  { %17819 = vmatpush1.bf16.msra.mxu0 %v25973_v6  ;;  %17873 = vmatprep.subr.bf16.mxu1 %v25984_v13  ;;  %v25994_v6 = vld [vmem:[#allocation10 + $0x1a8] ss:$40 sps:$4 sm:$0xff]   ;;  %v26000_v13 = vld [vmem:[#allocation10 + $0x1f8] ss:$40 sps:$4 sm:$0xff]  }
 0x866   :  { %17820 = vmatprep.subr.bf16.mxu0 %v25981_v10  ;;  %17846 = vmatprep.mubr.bf16.mxu0 %v27451_v36  ;;  %v26002_v36 = vld [vmem:[#allocation10 + $0x1fc] ss:$40 sps:$4 sm:$0xff]   ;;  %v25997_v10 = vld [vmem:[#allocation10 + $0x15f0] ss:$40 sps:$4 sm:$0xff]  }
 0x867   :  { %17899 = vmatprep.mubr.bf16.mxu1 %v27492_v35 }
 0x868   :  { %17874 = vmatpush1.bf16.msra.mxu1 %v25982_v18  ;;  %v26008_v18 = vld [vmem:[#allocation10 + $0x24c] ss:$40 sps:$4 sm:$0xff]  }
 0x869   :  { %17821 = vmatpush1.bf16.msra.mxu0 %v25979_v29  ;;  %17875 = vmatprep.subr.bf16.mxu1 %v25990_v34  ;;  %v26005_v29 = vld [vmem:[#allocation10 + $0x1644] ss:$40 sps:$4 sm:$0xff]   ;;  %v26006_v34 = vld [vmem:[#allocation10 + $0x248] ss:$40 sps:$4 sm:$0xff]  }
 0x86a   :  { %17822 = vmatprep.subr.bf16.mxu0 %v25987_v45  ;;  %v26003_v45 = vld [vmem:[#allocation10 + $0x1640] ss:$40 sps:$4 sm:$0xff]  }
 0x86c   :  { %17876 = vmatpush1.bf16.msra.mxu1 %v25988_v42  ;;  %v26014_v42 = vld [vmem:[#allocation10 + $0x29c] ss:$40 sps:$4 sm:$0xff]  }
 0x86d   :  { %17823 = vmatpush1.bf16.msra.mxu0 %v25985_v22  ;;  %17877 = vmatprep.subr.bf16.mxu1 %v25996_v41  ;;  %v26011_v22 = vld [vmem:[#allocation10 + $0x1694] ss:$40 sps:$4 sm:$0xff]   ;;  %v26012_v41 = vld [vmem:[#allocation10 + $0x298] ss:$40 sps:$4 sm:$0xff]  }
 0x86e   :  { %17824 = vmatprep.subr.bf16.mxu0 %v25993_v48  ;;  %v26009_v48 = vld [vmem:[#allocation10 + $0x1690] ss:$40 sps:$4 sm:$0xff]  }
 0x870   :  { %17878 = vmatpush1.bf16.msra.mxu1 %v25994_v6  ;;  %v26020_v6 = vld [vmem:[#allocation10 + $0x2ec] ss:$40 sps:$4 sm:$0xff]  }
 0x871   :  { %17825 = vmatpush1.bf16.msra.mxu0 %v25991_v56  ;;  %17879 = vmatprep.subr.bf16.mxu1 %v26002_v36  ;;  %v26017_v56 = vld [vmem:[#allocation10 + $0x16e4] ss:$40 sps:$4 sm:$0xff]   ;;  %v26018_v36 = vld [vmem:[#allocation10 + $0x2e8] ss:$40 sps:$4 sm:$0xff]  }
 0x872   :  { %17826 = vmatprep.subr.bf16.mxu0 %v25999_v47  ;;  %v26015_v47 = vld [vmem:[#allocation10 + $0x16e0] ss:$40 sps:$4 sm:$0xff]  }
 0x874   :  { %17880 = vmatpush1.bf16.msra.mxu1 %v26000_v13  ;;  %v26026_v13 = vld [vmem:[#allocation10 + $0x33c] ss:$40 sps:$4 sm:$0xff]  }
 0x875   :  { %17827 = vmatpush1.bf16.msra.mxu0 %v25997_v10  ;;  %17881 = vmatprep.subr.bf16.mxu1 %v26008_v18  ;;  %v26023_v10 = vld [vmem:[#allocation10 + $0x1734] ss:$40 sps:$4 sm:$0xff]   ;;  %v26024_v18 = vld [vmem:[#allocation10 + $0x338] ss:$40 sps:$4 sm:$0xff]  }
 0x876   :  { %17828 = vmatprep.subr.bf16.mxu0 %v26005_v29  ;;  %v26021_v29 = vld [vmem:[#allocation10 + $0x1730] ss:$40 sps:$4 sm:$0xff]  }
 0x878   :  { %17882 = vmatpush1.bf16.msra.mxu1 %v26006_v34  ;;  %v26032_v34 = vld [vmem:[#allocation10 + $0x38c] ss:$40 sps:$4 sm:$0xff]  }
 0x879   :  { %17829 = vmatpush1.bf16.msra.mxu0 %v26003_v45  ;;  %17883 = vmatprep.subr.bf16.mxu1 %v26014_v42  ;;  %v26029_v45 = vld [vmem:[#allocation10 + $0x1784] ss:$40 sps:$4 sm:$0xff]   ;;  %v26030_v42 = vld [vmem:[#allocation10 + $0x388] ss:$40 sps:$4 sm:$0xff]  }
 0x87a   :  { %17830 = vmatprep.subr.bf16.mxu0 %v26011_v22  ;;  %v26027_v22 = vld [vmem:[#allocation10 + $0x1780] ss:$40 sps:$4 sm:$0xff]  }
 0x87c   :  { %17884 = vmatpush1.bf16.msra.mxu1 %v26012_v41  ;;  %v26038_v41 = vld [vmem:[#allocation10 + $0x3dc] ss:$40 sps:$4 sm:$0xff]  }
 0x87d   :  { %17831 = vmatpush1.bf16.msra.mxu0 %v26009_v48  ;;  %17885 = vmatprep.subr.bf16.mxu1 %v26020_v6  ;;  %v26035_v48 = vld [vmem:[#allocation10 + $0x17d4] ss:$40 sps:$4 sm:$0xff]   ;;  %v26036_v6 = vld [vmem:[#allocation10 + $0x3d8] ss:$40 sps:$4 sm:$0xff]  }
 0x87e   :  { %17832 = vmatprep.subr.bf16.mxu0 %v26017_v56  ;;  %v26033_v56 = vld [vmem:[#allocation10 + $0x17d0] ss:$40 sps:$4 sm:$0xff]  }
 0x880   :  { %17886 = vmatpush1.bf16.msra.mxu1 %v26018_v36  ;;  %v26044_v36 = vld [vmem:[#allocation10 + $0x42c] ss:$40 sps:$4 sm:$0xff]  }
 0x881   :  { %17833 = vmatpush1.bf16.msra.mxu0 %v26015_v47  ;;  %17887 = vmatprep.subr.bf16.mxu1 %v26026_v13  ;;  %v26041_v47 = vld [vmem:[#allocation10 + $0x1824] ss:$40 sps:$4 sm:$0xff]   ;;  %v26042_v13 = vld [vmem:[#allocation10 + $0x428] ss:$40 sps:$4 sm:$0xff]  }
 0x882   :  { %17834 = vmatprep.subr.bf16.mxu0 %v26023_v10  ;;  %v26039_v10 = vld [vmem:[#allocation10 + $0x1820] ss:$40 sps:$4 sm:$0xff]  }
 0x884   :  { %17888 = vmatpush1.bf16.msra.mxu1 %v26024_v18  ;;  %v26050_v18 = vld [vmem:[#allocation10 + $0x47c] ss:$40 sps:$4 sm:$0xff]  }
 0x885   :  { %17835 = vmatpush1.bf16.msra.mxu0 %v26021_v29  ;;  %17889 = vmatprep.subr.bf16.mxu1 %v26032_v34  ;;  %v26047_v29 = vld [vmem:[#allocation10 + $0x1874] ss:$40 sps:$4 sm:$0xff]   ;;  %v26048_v34 = vld [vmem:[#allocation10 + $0x478] ss:$40 sps:$4 sm:$0xff]  }
 0x886   :  { %17836 = vmatprep.subr.bf16.mxu0 %v26029_v45  ;;  %v26045_v45 = vld [vmem:[#allocation10 + $0x1870] ss:$40 sps:$4 sm:$0xff]  }
 0x888   :  { %17890 = vmatpush1.bf16.msra.mxu1 %v26030_v42  ;;  %v26056_v42 = vld [vmem:[#allocation10 + $0x4cc] ss:$40 sps:$4 sm:$0xff]  }
 0x889   :  { %17837 = vmatpush1.bf16.msra.mxu0 %v26027_v22  ;;  %17891 = vmatprep.subr.bf16.mxu1 %v26038_v41  ;;  %v26053_v22 = vld [vmem:[#allocation10 + $0x18c4] ss:$40 sps:$4 sm:$0xff]   ;;  %v26054_v41 = vld [vmem:[#allocation10 + $0x4c8] ss:$40 sps:$4 sm:$0xff]  }
 0x88a   :  { %17838 = vmatprep.subr.bf16.mxu0 %v26035_v48  ;;  %v26051_v48 = vld [vmem:[#allocation10 + $0x18c0] ss:$40 sps:$4 sm:$0xff]  }
 0x88c   :  { %17892 = vmatpush1.bf16.msra.mxu1 %v26036_v6  ;;  %v26062_v6 = vld [vmem:[#allocation10 + $0x24] ss:$40 sps:$4 sm:$0xff]  }
 0x88d   :  { %17839 = vmatpush1.bf16.msra.mxu0 %v26033_v56  ;;  %17893 = vmatprep.subr.bf16.mxu1 %v26044_v36  ;;  %v26059_v56 = vld [vmem:[#allocation10 + $0x51c] ss:$40 sps:$4 sm:$0xff]   ;;  %v26060_v36 = vld [vmem:[#allocation10 + $0x20] ss:$40 sps:$4 sm:$0xff]  }
 0x88e   :  { %17840 = vmatprep.subr.bf16.mxu0 %v26041_v47  ;;  %v26057_v47 = vld [vmem:[#allocation10 + $0x518] ss:$40 sps:$4 sm:$0xff]  }
 0x890   :  { %17894 = vmatpush1.bf16.msra.mxu1 %v26042_v13  ;;  %v26068_v13 = vld [vmem:[#allocation10 + $0x74] ss:$40 sps:$4 sm:$0xff]  }
 0x891   :  { %17841 = vmatpush1.bf16.msra.mxu0 %v26039_v10  ;;  %17895 = vmatprep.subr.bf16.mxu1 %v26050_v18  ;;  %v26065_v10 = vld [vmem:[#allocation10 + $0x56c] ss:$40 sps:$4 sm:$0xff]   ;;  %v26063_v18 = vld [vmem:[#allocation10 + $0x568] ss:$40 sps:$4 sm:$0xff]  }
 0x892   :  { %17842 = vmatprep.subr.bf16.mxu0 %v26047_v29  ;;  %v27496_v29 = vld [vmem:[#allocation5] ss:$40 sps:$4 sm:$0xff]  }
 0x894   :  { %17896 = vmatpush1.bf16.msra.mxu1 %v26048_v34  ;;  %v26071_v34 = vld [vmem:[#allocation10 + $0x5bc] ss:$40 sps:$4 sm:$0xff]  }
 0x895   :  { %17843 = vmatpush1.bf16.msra.mxu0 %v26045_v45  ;;  %17897 = vmatprep.subr.bf16.mxu1 %v26056_v42  ;;  %v26066_v45 = vld [vmem:[#allocation10 + $0x70] ss:$40 sps:$4 sm:$0xff]   ;;  %v27500_v42 = vld [vmem:[#allocation5 + $0x54] ss:$40 sps:$4 sm:$0xff]  }
 0x896   :  { %17844 = vmatprep.subr.bf16.mxu0 %v26053_v22  ;;  %v26074_v22 = vld [vmem:[#allocation10 + $0xc4] ss:$40 sps:$4 sm:$0xff]  }
 0x898   :  { %17898 = vmatpush1.bf16.msra.mxu1 %v26054_v41  ;;  %v26077_v41 = vld [vmem:[#allocation10 + $0x60c] ss:$40 sps:$4 sm:$0xff]  }
 0x899   :  { %17845 = vmatpush1.bf16.msra.mxu0 %v26051_v48  ;;  %17920 = vmatprep.subr.bf16.mxu1 %v26059_v56  ;;  %v26072_v48 = vld [vmem:[#allocation10 + $0xc0] ss:$40 sps:$4 sm:$0xff]   ;;  %v26080_v56 = vld [vmem:[#allocation10 + $0x114] ss:$40 sps:$4 sm:$0xff]  }
 0x89a   :  { %18132 = vmatprep.subr.bf16.mxu0 %v26062_v6  ;;  %v27504_v6 = vld [vmem:[#allocation5 + $0x50] ss:$40 sps:$4 sm:$0xff]  }
 0x89b   :  { %17900 = vmatmul.mubr.bf16.vlgmr.msra.gmra.mrb[44].mxu1 %v27496_v29 }
 0x89c   :  { %17847 = vmatmul.mubr.bf16.vlgmr.msra.gmra.mrb[36].mxu0 %v27479_v25  ;;  %17921 = vmatpush1.bf16.msra.mxu1 %v26057_v47  ;;  %v26069_v25 = vld [vmem:[#allocation10 + $0x5b8] ss:$40 sps:$4 sm:$0xff]  }
 0x89d   :  { %18133 = vmatpush1.bf16.msra.mxu0 %v26060_v36  ;;  %17922 = vmatprep.subr.bf16.mxu1 %v26065_v10  ;;  %v26078_v47 = vld [vmem:[#allocation10 + $0x110] ss:$40 sps:$4 sm:$0xff]   ;;  %v26083_v36 = vld [vmem:[#allocation10 + $0x65c] ss:$40 sps:$4 sm:$0xff]  }
 0x89e   :  { %18134 = vmatprep.subr.bf16.mxu0 %v26068_v13  ;;  %17856 = vmatprep.mubr.bf16.mxu0 %v27483_v54  ;;  %v26075_v54 = vld [vmem:[#allocation10 + $0x608] ss:$40 sps:$4 sm:$0xff]   ;;  %v26086_v10 = vld [vmem:[#allocation10 + $0x164] ss:$40 sps:$4 sm:$0xff]  }
 0x89f   :  { %17909 = vmatprep.mubr.bf16.mxu1 %v27500_v42  ;;  %v27507_v13 = vld [vmem:[#allocation5 + $0xc] ss:$40 sps:$4 sm:$0xff]  }
 0x8a0   :  { %17923 = vmatpush1.bf16.msra.mxu1 %v26063_v18  ;;  %v26084_v18 = vld [vmem:[#allocation10 + $0x160] ss:$40 sps:$4 sm:$0xff]  }
 0x8a1   :  { %18135 = vmatpush1.bf16.msra.mxu0 %v26066_v45  ;;  %17924 = vmatprep.subr.bf16.mxu1 %v26071_v34  ;;  %v26089_v45 = vld [vmem:[#allocation10 + $0x6ac] ss:$40 sps:$4 sm:$0xff]  }
 0x8a2   :  { %18136 = vmatprep.subr.bf16.mxu0 %v26074_v22  ;;  %v26092_v34 = vld [vmem:[#allocation10 + $0x1b4] ss:$40 sps:$4 sm:$0xff]   ;;  %v26087_v22 = vld [vmem:[#allocation10 + $0x6a8] ss:$40 sps:$4 sm:$0xff]  }
 0x8a3   :  { %17910 = vmatmul.mubr.bf16.gmra.mrb[48].mxu1 %v27504_v6 }
 0x8a4   :  { %17857 = vmatmul.mubr.bf16.gmra.mrb[40].mxu0 %v27487_v14  ;;  %17925 = vmatpush1.bf16.msra.mxu1 %v26069_v25  ;;  %v26081_v14 = vld [vmem:[#allocation10 + $0x658] ss:$40 sps:$4 sm:$0xff]  }
 0x8a5   :  { %18137 = vmatpush1.bf16.msra.mxu0 %v26072_v48  ;;  %17926 = vmatprep.subr.bf16.mxu1 %v26077_v41  ;;  %v26090_v25 = vld [vmem:[#allocation10 + $0x1b0] ss:$40 sps:$4 sm:$0xff]   ;;  %v26095_v48 = vld [vmem:[#allocation10 + $0x6fc] ss:$40 sps:$4 sm:$0xff]  }
 0x8a6   :  { %18138 = vmatprep.subr.bf16.mxu0 %v26080_v56  ;;  %17952 = vmatprep.mubr.bf16.mxu1 %v27507_v13  ;;  %v26098_v41 = vld [vmem:[#allocation10 + $0x204] ss:$40 sps:$4 sm:$0xff]   ;;  %v26093_v56 = vld [vmem:[#allocation10 + $0x6f8] ss:$40 sps:$4 sm:$0xff]  }
 0x8a7   :  { %18164 = vmatprep.mubr.bf16.mxu0 %v27492_v35  ;;  %v26096_v35 = vld [vmem:[#allocation10 + $0x200] ss:$40 sps:$4 sm:$0xff]  }
 0x8a8   :  { %17927 = vmatpush1.bf16.msra.mxu1 %v26075_v54  ;;  %v26101_v54 = vld [vmem:[#allocation10 + $0x74c] ss:$40 sps:$4 sm:$0xff]  }
 0x8a9   :  { %18139 = vmatpush1.bf16.msra.mxu0 %v26078_v47  ;;  %17928 = vmatprep.subr.bf16.mxu1 %v26083_v36  ;;  %v26104_v47 = vld [vmem:[#allocation10 + $0x254] ss:$40 sps:$4 sm:$0xff]   ;;  %v26099_v36 = vld [vmem:[#allocation10 + $0x748] ss:$40 sps:$4 sm:$0xff]  }
 0x8aa   :  { %18140 = vmatprep.subr.bf16.mxu0 %v26086_v10  ;;  %v26102_v10 = vld [vmem:[#allocation10 + $0x250] ss:$40 sps:$4 sm:$0xff]  }
 0x8ac   :  { %17929 = vmatpush1.bf16.msra.mxu1 %v26081_v14  ;;  %v26107_v14 = vld [vmem:[#allocation10 + $0x79c] ss:$40 sps:$4 sm:$0xff]  }
 0x8ad   :  { %18141 = vmatpush1.bf16.msra.mxu0 %v26084_v18  ;;  %17930 = vmatprep.subr.bf16.mxu1 %v26089_v45  ;;  %v26110_v18 = vld [vmem:[#allocation10 + $0x2a4] ss:$40 sps:$4 sm:$0xff]   ;;  %v26105_v45 = vld [vmem:[#allocation10 + $0x798] ss:$40 sps:$4 sm:$0xff]  }
 0x8ae   :  { %18142 = vmatprep.subr.bf16.mxu0 %v26092_v34  ;;  %v26108_v34 = vld [vmem:[#allocation10 + $0x2a0] ss:$40 sps:$4 sm:$0xff]  }
 0x8b0   :  { %17931 = vmatpush1.bf16.msra.mxu1 %v26087_v22  ;;  %v26113_v22 = vld [vmem:[#allocation10 + $0x7ec] ss:$40 sps:$4 sm:$0xff]  }
 0x8b1   :  { %18143 = vmatpush1.bf16.msra.mxu0 %v26090_v25  ;;  %17932 = vmatprep.subr.bf16.mxu1 %v26095_v48  ;;  %v26116_v25 = vld [vmem:[#allocation10 + $0x2f4] ss:$40 sps:$4 sm:$0xff]   ;;  %v26111_v48 = vld [vmem:[#allocation10 + $0x7e8] ss:$40 sps:$4 sm:$0xff]  }
 0x8b2   :  { %18144 = vmatprep.subr.bf16.mxu0 %v26098_v41  ;;  %v26114_v41 = vld [vmem:[#allocation10 + $0x2f0] ss:$40 sps:$4 sm:$0xff]  }
 0x8b4   :  { %17933 = vmatpush1.bf16.msra.mxu1 %v26093_v56  ;;  %v26119_v56 = vld [vmem:[#allocation10 + $0x83c] ss:$40 sps:$4 sm:$0xff]  }
 0x8b5   :  { %18145 = vmatpush1.bf16.msra.mxu0 %v26096_v35  ;;  %17934 = vmatprep.subr.bf16.mxu1 %v26101_v54  ;;  %v26122_v35 = vld [vmem:[#allocation10 + $0x344] ss:$40 sps:$4 sm:$0xff]   ;;  %v26117_v54 = vld [vmem:[#allocation10 + $0x838] ss:$40 sps:$4 sm:$0xff]  }
 0x8b6   :  { %18146 = vmatprep.subr.bf16.mxu0 %v26104_v47  ;;  %v26120_v47 = vld [vmem:[#allocation10 + $0x340] ss:$40 sps:$4 sm:$0xff]  }
 0x8b8   :  { %17935 = vmatpush1.bf16.msra.mxu1 %v26099_v36  ;;  %v26125_v36 = vld [vmem:[#allocation10 + $0x88c] ss:$40 sps:$4 sm:$0xff]  }
 0x8b9   :  { %18147 = vmatpush1.bf16.msra.mxu0 %v26102_v10  ;;  %17936 = vmatprep.subr.bf16.mxu1 %v26107_v14  ;;  %v26128_v10 = vld [vmem:[#allocation10 + $0x394] ss:$40 sps:$4 sm:$0xff]   ;;  %v26123_v14 = vld [vmem:[#allocation10 + $0x888] ss:$40 sps:$4 sm:$0xff]  }
 0x8ba   :  { %18148 = vmatprep.subr.bf16.mxu0 %v26110_v18  ;;  %v26126_v18 = vld [vmem:[#allocation10 + $0x390] ss:$40 sps:$4 sm:$0xff]  }
 0x8bc   :  { %17937 = vmatpush1.bf16.msra.mxu1 %v26105_v45  ;;  %v26131_v45 = vld [vmem:[#allocation10 + $0x8dc] ss:$40 sps:$4 sm:$0xff]  }
 0x8bd   :  { %18149 = vmatpush1.bf16.msra.mxu0 %v26108_v34  ;;  %17938 = vmatprep.subr.bf16.mxu1 %v26113_v22  ;;  %v26134_v34 = vld [vmem:[#allocation10 + $0x3e4] ss:$40 sps:$4 sm:$0xff]   ;;  %v26129_v22 = vld [vmem:[#allocation10 + $0x8d8] ss:$40 sps:$4 sm:$0xff]  }
 0x8be   :  { %18150 = vmatprep.subr.bf16.mxu0 %v26116_v25  ;;  %v26132_v25 = vld [vmem:[#allocation10 + $0x3e0] ss:$40 sps:$4 sm:$0xff]  }
 0x8c0   :  { %17939 = vmatpush1.bf16.msra.mxu1 %v26111_v48  ;;  %v26137_v48 = vld [vmem:[#allocation10 + $0x92c] ss:$40 sps:$4 sm:$0xff]  }
 0x8c1   :  { %18151 = vmatpush1.bf16.msra.mxu0 %v26114_v41  ;;  %17940 = vmatprep.subr.bf16.mxu1 %v26119_v56  ;;  %v26140_v41 = vld [vmem:[#allocation10 + $0x434] ss:$40 sps:$4 sm:$0xff]   ;;  %v26135_v56 = vld [vmem:[#allocation10 + $0x928] ss:$40 sps:$4 sm:$0xff]  }
 0x8c2   :  { %18152 = vmatprep.subr.bf16.mxu0 %v26122_v35  ;;  %v26138_v35 = vld [vmem:[#allocation10 + $0x430] ss:$40 sps:$4 sm:$0xff]  }
 0x8c4   :  { %17941 = vmatpush1.bf16.msra.mxu1 %v26117_v54  ;;  %v26143_v54 = vld [vmem:[#allocation10 + $0x97c] ss:$40 sps:$4 sm:$0xff]  }
 0x8c5   :  { %18153 = vmatpush1.bf16.msra.mxu0 %v26120_v47  ;;  %17942 = vmatprep.subr.bf16.mxu1 %v26125_v36  ;;  %v26146_v47 = vld [vmem:[#allocation10 + $0x484] ss:$40 sps:$4 sm:$0xff]   ;;  %v26141_v36 = vld [vmem:[#allocation10 + $0x978] ss:$40 sps:$4 sm:$0xff]  }
 0x8c6   :  { %18154 = vmatprep.subr.bf16.mxu0 %v26128_v10  ;;  %v26144_v10 = vld [vmem:[#allocation10 + $0x480] ss:$40 sps:$4 sm:$0xff]  }
 0x8c8   :  { %17943 = vmatpush1.bf16.msra.mxu1 %v26123_v14  ;;  %v26149_v14 = vld [vmem:[#allocation10 + $0x9cc] ss:$40 sps:$4 sm:$0xff]  }
 0x8c9   :  { %18155 = vmatpush1.bf16.msra.mxu0 %v26126_v18  ;;  %17944 = vmatprep.subr.bf16.mxu1 %v26131_v45  ;;  %v26152_v18 = vld [vmem:[#allocation10 + $0x4d4] ss:$40 sps:$4 sm:$0xff]   ;;  %v26147_v45 = vld [vmem:[#allocation10 + $0x9c8] ss:$40 sps:$4 sm:$0xff]  }
 0x8ca   :  { %18156 = vmatprep.subr.bf16.mxu0 %v26134_v34  ;;  %v26150_v34 = vld [vmem:[#allocation10 + $0x4d0] ss:$40 sps:$4 sm:$0xff]  }
 0x8cc   :  { %17945 = vmatpush1.bf16.msra.mxu1 %v26129_v22  ;;  %v26155_v22 = vld [vmem:[#allocation10 + $0xa1c] ss:$40 sps:$4 sm:$0xff]  }
 0x8cd   :  { %18157 = vmatpush1.bf16.msra.mxu0 %v26132_v25  ;;  %17946 = vmatprep.subr.bf16.mxu1 %v26137_v48  ;;  %v26158_v25 = vld [vmem:[#allocation10 + $0x524] ss:$40 sps:$4 sm:$0xff]   ;;  %v26153_v48 = vld [vmem:[#allocation10 + $0xa18] ss:$40 sps:$4 sm:$0xff]  }
 0x8ce   :  { %18158 = vmatprep.subr.bf16.mxu0 %v26140_v41  ;;  %v26156_v41 = vld [vmem:[#allocation10 + $0x520] ss:$40 sps:$4 sm:$0xff]  }
 0x8d0   :  { %17947 = vmatpush1.bf16.msra.mxu1 %v26135_v56  ;;  %v26161_v56 = vld [vmem:[#allocation10 + $0xa6c] ss:$40 sps:$4 sm:$0xff]  }
 0x8d1   :  { %18159 = vmatpush1.bf16.msra.mxu0 %v26138_v35  ;;  %17948 = vmatprep.subr.bf16.mxu1 %v26143_v54  ;;  %v26164_v35 = vld [vmem:[#allocation10 + $0x574] ss:$40 sps:$4 sm:$0xff]   ;;  %v27511_v54 = vld [vmem:[#allocation5 + $0x8] ss:$40 sps:$4 sm:$0xff]  }
 0x8d2   :  { %18160 = vmatprep.subr.bf16.mxu0 %v26146_v47  ;;  %v26159_v47 = vld [vmem:[#allocation10 + $0xa68] ss:$40 sps:$4 sm:$0xff]  }
 0x8d4   :  { %17949 = vmatpush1.bf16.msra.mxu1 %v26141_v36  ;;  %v26162_v36 = vld [vmem:[#allocation10 + $0x570] ss:$40 sps:$4 sm:$0xff]  }
 0x8d5   :  { %18161 = vmatpush1.bf16.msra.mxu0 %v26144_v10  ;;  %17950 = vmatprep.subr.bf16.mxu1 %v26149_v14  ;;  %v26167_v10 = vld [vmem:[#allocation10 + $0xabc] ss:$40 sps:$4 sm:$0xff]  }
 0x8d6   :  { %18162 = vmatprep.subr.bf16.mxu0 %v26152_v18  ;;  %v26170_v14 = vld [vmem:[#allocation10 + $0x5c4] ss:$40 sps:$4 sm:$0xff]  }
 0x8d7   :  { %v27515_v18 = vld [vmem:[#allocation5 + $0x5c] ss:$40 sps:$4 sm:$0xff]  }
 0x8d8   :  { %17951 = vmatpush1.bf16.msra.mxu1 %v26147_v45  ;;  %v26165_v45 = vld [vmem:[#allocation10 + $0xab8] ss:$40 sps:$4 sm:$0xff]  }
 0x8d9   :  { %18163 = vmatpush1.bf16.msra.mxu0 %v26150_v34  ;;  %17973 = vmatprep.subr.bf16.mxu1 %v26155_v22  ;;  %v26168_v34 = vld [vmem:[#allocation10 + $0x5c0] ss:$40 sps:$4 sm:$0xff]   ;;  %v26176_v22 = vld [vmem:[#allocation10 + $0x614] ss:$40 sps:$4 sm:$0xff]  }
 0x8da   :  { %18185 = vmatprep.subr.bf16.mxu0 %v26158_v25  ;;  %v27519_v25 = vld [vmem:[#allocation5 + $0x58] ss:$40 sps:$4 sm:$0xff]  }
 0x8db   :  { %17953 = vmatmul.mubr.bf16.vlgmr.msra.gmra.mrb[44].mxu1 %v27511_v54 }
 0x8dc   :  { %18165 = vmatmul.mubr.bf16.vlgmr.msra.gmra.mrb[44].mxu0 %v27496_v29  ;;  %17974 = vmatpush1.bf16.msra.mxu1 %v26153_v48  ;;  %v26173_v29 = vld [vmem:[#allocation10 + $0xb0c] ss:$40 sps:$4 sm:$0xff]   ;;  %v26171_v48 = vld [vmem:[#allocation10 + $0xb08] ss:$40 sps:$4 sm:$0xff]  }
 0x8dd   :  { %18186 = vmatpush1.bf16.msra.mxu0 %v26156_v41  ;;  %17975 = vmatprep.subr.bf16.mxu1 %v26161_v56  ;;  %v26174_v41 = vld [vmem:[#allocation10 + $0x610] ss:$40 sps:$4 sm:$0xff]   ;;  %v26182_v56 = vld [vmem:[#allocation10 + $0x664] ss:$40 sps:$4 sm:$0xff]  }
 0x8de   :  { %18187 = vmatprep.subr.bf16.mxu0 %v26164_v35  ;;  %17962 = vmatprep.mubr.bf16.mxu1 %v27515_v18  ;;  %v27523_v35 = vld [vmem:[#allocation5 + $0x14] ss:$40 sps:$4 sm:$0xff]  }
 0x8df   :  { %18174 = vmatprep.mubr.bf16.mxu0 %v27500_v42  ;;  %v26179_v42 = vld [vmem:[#allocation10 + $0xb5c] ss:$40 sps:$4 sm:$0xff]  }
 0x8e0   :  { %17976 = vmatpush1.bf16.msra.mxu1 %v26159_v47  ;;  %v26177_v47 = vld [vmem:[#allocation10 + $0xb58] ss:$40 sps:$4 sm:$0xff]  }
 0x8e1   :  { %18188 = vmatpush1.bf16.msra.mxu0 %v26162_v36  ;;  %17977 = vmatprep.subr.bf16.mxu1 %v26167_v10  ;;  %v26180_v36 = vld [vmem:[#allocation10 + $0x660] ss:$40 sps:$4 sm:$0xff]   ;;  %v26188_v10 = vld [vmem:[#allocation10 + $0x6b4] ss:$40 sps:$4 sm:$0xff]  }
 0x8e2   :  { %18189 = vmatprep.subr.bf16.mxu0 %v26170_v14  ;;  %v26183_v14 = vld [vmem:[#allocation10 + $0xba8] ss:$40 sps:$4 sm:$0xff]  }
 0x8e3   :  { %17963 = vmatmul.mubr.bf16.gmra.mrb[48].mxu1 %v27519_v25 }
 0x8e4   :  { %18175 = vmatmul.mubr.bf16.gmra.mrb[48].mxu0 %v27504_v6  ;;  %17978 = vmatpush1.bf16.msra.mxu1 %v26165_v45  ;;  %v26185_v6 = vld [vmem:[#allocation10 + $0xbac] ss:$40 sps:$4 sm:$0xff]   ;;  %v26186_v45 = vld [vmem:[#allocation10 + $0x6b0] ss:$40 sps:$4 sm:$0xff]  }
 0x8e5   :  { %18190 = vmatpush1.bf16.msra.mxu0 %v26168_v34  ;;  %17979 = vmatprep.subr.bf16.mxu1 %v26173_v29  ;;  %v26191_v34 = vld [vmem:[#allocation10 + $0xbfc] ss:$40 sps:$4 sm:$0xff]  }
 0x8e6   :  { %18191 = vmatprep.subr.bf16.mxu0 %v26176_v22  ;;  %18005 = vmatprep.mubr.bf16.mxu1 %v27523_v35  ;;  %v26194_v29 = vld [vmem:[#allocation10 + $0x704] ss:$40 sps:$4 sm:$0xff]   ;;  %v26189_v22 = vld [vmem:[#allocation10 + $0xbf8] ss:$40 sps:$4 sm:$0xff]  }
 0x8e7   :  { %18217 = vmatprep.mubr.bf16.mxu0 %v27507_v13  ;;  %v26192_v13 = vld [vmem:[#allocation10 + $0x700] ss:$40 sps:$4 sm:$0xff]  }
 0x8e8   :  { %17980 = vmatpush1.bf16.msra.mxu1 %v26171_v48  ;;  %v26197_v48 = vld [vmem:[#allocation10 + $0xc4c] ss:$40 sps:$4 sm:$0xff]  }
 0x8e9   :  { %18192 = vmatpush1.bf16.msra.mxu0 %v26174_v41  ;;  %17981 = vmatprep.subr.bf16.mxu1 %v26179_v42  ;;  %v26200_v41 = vld [vmem:[#allocation10 + $0x754] ss:$40 sps:$4 sm:$0xff]   ;;  %v26195_v42 = vld [vmem:[#allocation10 + $0xc48] ss:$40 sps:$4 sm:$0xff]  }
 0x8ea   :  { %18193 = vmatprep.subr.bf16.mxu0 %v26182_v56  ;;  %v26198_v56 = vld [vmem:[#allocation10 + $0x750] ss:$40 sps:$4 sm:$0xff]  }
 0x8ec   :  { %17982 = vmatpush1.bf16.msra.mxu1 %v26177_v47  ;;  %v26203_v47 = vld [vmem:[#allocation10 + $0xc9c] ss:$40 sps:$4 sm:$0xff]  }
 0x8ed   :  { %18194 = vmatpush1.bf16.msra.mxu0 %v26180_v36  ;;  %17983 = vmatprep.subr.bf16.mxu1 %v26185_v6  ;;  %v26206_v36 = vld [vmem:[#allocation10 + $0x7a4] ss:$40 sps:$4 sm:$0xff]   ;;  %v26201_v6 = vld [vmem:[#allocation10 + $0xc98] ss:$40 sps:$4 sm:$0xff]  }
 0x8ee   :  { %18195 = vmatprep.subr.bf16.mxu0 %v26188_v10  ;;  %v26204_v10 = vld [vmem:[#allocation10 + $0x7a0] ss:$40 sps:$4 sm:$0xff]  }
 0x8f0   :  { %17984 = vmatpush1.bf16.msra.mxu1 %v26183_v14  ;;  %v26209_v14 = vld [vmem:[#allocation10 + $0xcec] ss:$40 sps:$4 sm:$0xff]  }
 0x8f1   :  { %18196 = vmatpush1.bf16.msra.mxu0 %v26186_v45  ;;  %17985 = vmatprep.subr.bf16.mxu1 %v26191_v34  ;;  %v26212_v45 = vld [vmem:[#allocation10 + $0x7f4] ss:$40 sps:$4 sm:$0xff]   ;;  %v26207_v34 = vld [vmem:[#allocation10 + $0xce8] ss:$40 sps:$4 sm:$0xff]  }
 0x8f2   :  { %18197 = vmatprep.subr.bf16.mxu0 %v26194_v29  ;;  %v26210_v29 = vld [vmem:[#allocation10 + $0x7f0] ss:$40 sps:$4 sm:$0xff]  }
 0x8f4   :  { %17986 = vmatpush1.bf16.msra.mxu1 %v26189_v22  ;;  %v26215_v22 = vld [vmem:[#allocation10 + $0xd3c] ss:$40 sps:$4 sm:$0xff]  }
 0x8f5   :  { %18198 = vmatpush1.bf16.msra.mxu0 %v26192_v13  ;;  %17987 = vmatprep.subr.bf16.mxu1 %v26197_v48  ;;  %v26218_v13 = vld [vmem:[#allocation10 + $0x844] ss:$40 sps:$4 sm:$0xff]   ;;  %v26213_v48 = vld [vmem:[#allocation10 + $0xd38] ss:$40 sps:$4 sm:$0xff]  }
 0x8f6   :  { %18199 = vmatprep.subr.bf16.mxu0 %v26200_v41  ;;  %v26216_v41 = vld [vmem:[#allocation10 + $0x840] ss:$40 sps:$4 sm:$0xff]  }
 0x8f8   :  { %17988 = vmatpush1.bf16.msra.mxu1 %v26195_v42  ;;  %v26221_v42 = vld [vmem:[#allocation10 + $0xd8c] ss:$40 sps:$4 sm:$0xff]  }
 0x8f9   :  { %18200 = vmatpush1.bf16.msra.mxu0 %v26198_v56  ;;  %17989 = vmatprep.subr.bf16.mxu1 %v26203_v47  ;;  %v26224_v56 = vld [vmem:[#allocation10 + $0x894] ss:$40 sps:$4 sm:$0xff]   ;;  %v26219_v47 = vld [vmem:[#allocation10 + $0xd88] ss:$40 sps:$4 sm:$0xff]  }
 0x8fa   :  { %18201 = vmatprep.subr.bf16.mxu0 %v26206_v36  ;;  %v26222_v36 = vld [vmem:[#allocation10 + $0x890] ss:$40 sps:$4 sm:$0xff]  }
 0x8fc   :  { %17990 = vmatpush1.bf16.msra.mxu1 %v26201_v6  ;;  %v26227_v6 = vld [vmem:[#allocation10 + $0xddc] ss:$40 sps:$4 sm:$0xff]  }
 0x8fd   :  { %18202 = vmatpush1.bf16.msra.mxu0 %v26204_v10  ;;  %17991 = vmatprep.subr.bf16.mxu1 %v26209_v14  ;;  %v26230_v10 = vld [vmem:[#allocation10 + $0x8e4] ss:$40 sps:$4 sm:$0xff]   ;;  %v26225_v14 = vld [vmem:[#allocation10 + $0xdd8] ss:$40 sps:$4 sm:$0xff]  }
 0x8fe   :  { %18203 = vmatprep.subr.bf16.mxu0 %v26212_v45  ;;  %v26228_v45 = vld [vmem:[#allocation10 + $0x8e0] ss:$40 sps:$4 sm:$0xff]  }
 0x900   :  { %17992 = vmatpush1.bf16.msra.mxu1 %v26207_v34  ;;  %v26233_v34 = vld [vmem:[#allocation10 + $0xe2c] ss:$40 sps:$4 sm:$0xff]  }
 0x901   :  { %18204 = vmatpush1.bf16.msra.mxu0 %v26210_v29  ;;  %17993 = vmatprep.subr.bf16.mxu1 %v26215_v22  ;;  %v26236_v29 = vld [vmem:[#allocation10 + $0x934] ss:$40 sps:$4 sm:$0xff]   ;;  %v26231_v22 = vld [vmem:[#allocation10 + $0xe28] ss:$40 sps:$4 sm:$0xff]  }
 0x902   :  { %18205 = vmatprep.subr.bf16.mxu0 %v26218_v13  ;;  %v26234_v13 = vld [vmem:[#allocation10 + $0x930] ss:$40 sps:$4 sm:$0xff]  }
 0x904   :  { %17994 = vmatpush1.bf16.msra.mxu1 %v26213_v48  ;;  %v26239_v48 = vld [vmem:[#allocation10 + $0xe7c] ss:$40 sps:$4 sm:$0xff]  }
 0x905   :  { %18206 = vmatpush1.bf16.msra.mxu0 %v26216_v41  ;;  %17995 = vmatprep.subr.bf16.mxu1 %v26221_v42  ;;  %v26242_v41 = vld [vmem:[#allocation10 + $0x984] ss:$40 sps:$4 sm:$0xff]   ;;  %v26237_v42 = vld [vmem:[#allocation10 + $0xe78] ss:$40 sps:$4 sm:$0xff]  }
 0x906   :  { %18207 = vmatprep.subr.bf16.mxu0 %v26224_v56  ;;  %v26240_v56 = vld [vmem:[#allocation10 + $0x980] ss:$40 sps:$4 sm:$0xff]  }
 0x908   :  { %17996 = vmatpush1.bf16.msra.mxu1 %v26219_v47  ;;  %v26245_v47 = vld [vmem:[#allocation10 + $0xecc] ss:$40 sps:$4 sm:$0xff]  }
 0x909   :  { %18208 = vmatpush1.bf16.msra.mxu0 %v26222_v36  ;;  %17997 = vmatprep.subr.bf16.mxu1 %v26227_v6  ;;  %v26248_v36 = vld [vmem:[#allocation10 + $0x9d4] ss:$40 sps:$4 sm:$0xff]   ;;  %v26243_v6 = vld [vmem:[#allocation10 + $0xec8] ss:$40 sps:$4 sm:$0xff]  }
 0x90a   :  { %18209 = vmatprep.subr.bf16.mxu0 %v26230_v10  ;;  %v26246_v10 = vld [vmem:[#allocation10 + $0x9d0] ss:$40 sps:$4 sm:$0xff]  }
 0x90c   :  { %17998 = vmatpush1.bf16.msra.mxu1 %v26225_v14  ;;  %v26251_v14 = vld [vmem:[#allocation10 + $0xf1c] ss:$40 sps:$4 sm:$0xff]  }
 0x90d   :  { %18210 = vmatpush1.bf16.msra.mxu0 %v26228_v45  ;;  %17999 = vmatprep.subr.bf16.mxu1 %v26233_v34  ;;  %v26254_v45 = vld [vmem:[#allocation10 + $0xa24] ss:$40 sps:$4 sm:$0xff]   ;;  %v26249_v34 = vld [vmem:[#allocation10 + $0xf18] ss:$40 sps:$4 sm:$0xff]  }
 0x90e   :  { %18211 = vmatprep.subr.bf16.mxu0 %v26236_v29  ;;  %v26252_v29 = vld [vmem:[#allocation10 + $0xa20] ss:$40 sps:$4 sm:$0xff]  }
 0x910   :  { %18000 = vmatpush1.bf16.msra.mxu1 %v26231_v22  ;;  %v26257_v22 = vld [vmem:[#allocation10 + $0xf6c] ss:$40 sps:$4 sm:$0xff]  }
 0x911   :  { %18212 = vmatpush1.bf16.msra.mxu0 %v26234_v13  ;;  %18001 = vmatprep.subr.bf16.mxu1 %v26239_v48  ;;  %v26260_v13 = vld [vmem:[#allocation10 + $0xa74] ss:$40 sps:$4 sm:$0xff]   ;;  %v27527_v48 = vld [vmem:[#allocation5 + $0x10] ss:$40 sps:$4 sm:$0xff]  }
 0x912   :  { %18213 = vmatprep.subr.bf16.mxu0 %v26242_v41  ;;  %v26255_v41 = vld [vmem:[#allocation10 + $0xf68] ss:$40 sps:$4 sm:$0xff]  }
 0x914   :  { %18002 = vmatpush1.bf16.msra.mxu1 %v26237_v42  ;;  %v26258_v42 = vld [vmem:[#allocation10 + $0xa70] ss:$40 sps:$4 sm:$0xff]  }
 0x915   :  { %18214 = vmatpush1.bf16.msra.mxu0 %v26240_v56  ;;  %18003 = vmatprep.subr.bf16.mxu1 %v26245_v47  ;;  %v26263_v56 = vld [vmem:[#allocation10 + $0xfbc] ss:$40 sps:$4 sm:$0xff]  }
 0x916   :  { %18215 = vmatprep.subr.bf16.mxu0 %v26248_v36  ;;  %v26266_v47 = vld [vmem:[#allocation10 + $0xac4] ss:$40 sps:$4 sm:$0xff]  }
 0x917   :  { %v27531_v36 = vld [vmem:[#allocation5 + $0x64] ss:$40 sps:$4 sm:$0xff]  }
 0x918   :  { %18004 = vmatpush1.bf16.msra.mxu1 %v26243_v6  ;;  %v26261_v6 = vld [vmem:[#allocation10 + $0xfb8] ss:$40 sps:$4 sm:$0xff]  }
 0x919   :  { %18216 = vmatpush1.bf16.msra.mxu0 %v26246_v10  ;;  %18026 = vmatprep.subr.bf16.mxu1 %v26251_v14  ;;  %v26264_v10 = vld [vmem:[#allocation10 + $0xac0] ss:$40 sps:$4 sm:$0xff]   ;;  %v26272_v14 = vld [vmem:[#allocation10 + $0xb14] ss:$40 sps:$4 sm:$0xff]  }
 0x91a   :  { %18238 = vmatprep.subr.bf16.mxu0 %v26254_v45  ;;  %v27535_v45 = vld [vmem:[#allocation5 + $0x60] ss:$40 sps:$4 sm:$0xff]  }
 0x91b   :  { %18006 = vmatmul.mubr.bf16.vlgmr.msra.gmra.mrb[44].mxu1 %v27527_v48 }
 0x91c   :  { %18218 = vmatmul.mubr.bf16.vlgmr.msra.gmra.mrb[44].mxu0 %v27511_v54  ;;  %18027 = vmatpush1.bf16.msra.mxu1 %v26249_v34  ;;  %v26269_v54 = vld [vmem:[#allocation10 + $0x100c] ss:$40 sps:$4 sm:$0xff]   ;;  %v26267_v34 = vld [vmem:[#allocation10 + $0x1008] ss:$40 sps:$4 sm:$0xff]  }
 0x91d   :  { %18239 = vmatpush1.bf16.msra.mxu0 %v26252_v29  ;;  %18028 = vmatprep.subr.bf16.mxu1 %v26257_v22  ;;  %v26270_v29 = vld [vmem:[#allocation10 + $0xb10] ss:$40 sps:$4 sm:$0xff]   ;;  %v26278_v22 = vld [vmem:[#allocation10 + $0xb64] ss:$40 sps:$4 sm:$0xff]  }
 0x91e   :  { %18240 = vmatprep.subr.bf16.mxu0 %v26260_v13  ;;  %18015 = vmatprep.mubr.bf16.mxu1 %v27531_v36  ;;  %v27539_v13 = vld [vmem:[#allocation5 + $0x1c] ss:$40 sps:$4 sm:$0xff]  }
 0x91f   :  { %18227 = vmatprep.mubr.bf16.mxu0 %v27515_v18  ;;  %v26275_v18 = vld [vmem:[#allocation10 + $0x105c] ss:$40 sps:$4 sm:$0xff]  }
 0x920   :  { %18029 = vmatpush1.bf16.msra.mxu1 %v26255_v41  ;;  %v26273_v41 = vld [vmem:[#allocation10 + $0x1058] ss:$40 sps:$4 sm:$0xff]  }
 0x921   :  { %18241 = vmatpush1.bf16.msra.mxu0 %v26258_v42  ;;  %18030 = vmatprep.subr.bf16.mxu1 %v26263_v56  ;;  %v26276_v42 = vld [vmem:[#allocation10 + $0xb60] ss:$40 sps:$4 sm:$0xff]   ;;  %v26284_v56 = vld [vmem:[#allocation10 + $0xbb4] ss:$40 sps:$4 sm:$0xff]  }
 0x922   :  { %18242 = vmatprep.subr.bf16.mxu0 %v26266_v47  ;;  %v26279_v47 = vld [vmem:[#allocation10 + $0x10a8] ss:$40 sps:$4 sm:$0xff]  }
 0x923   :  { %18016 = vmatmul.mubr.bf16.gmra.mrb[48].mxu1 %v27535_v45 }
 0x924   :  { %18228 = vmatmul.mubr.bf16.gmra.mrb[48].mxu0 %v27519_v25  ;;  %18031 = vmatpush1.bf16.msra.mxu1 %v26261_v6  ;;  %v26281_v25 = vld [vmem:[#allocation10 + $0x10ac] ss:$40 sps:$4 sm:$0xff]   ;;  %v26282_v6 = vld [vmem:[#allocation10 + $0xbb0] ss:$40 sps:$4 sm:$0xff]  }
 0x925   :  { %18243 = vmatpush1.bf16.msra.mxu0 %v26264_v10  ;;  %18032 = vmatprep.subr.bf16.mxu1 %v26269_v54  ;;  %v26287_v10 = vld [vmem:[#allocation10 + $0x10fc] ss:$40 sps:$4 sm:$0xff]  }
 0x926   :  { %18244 = vmatprep.subr.bf16.mxu0 %v26272_v14  ;;  %18058 = vmatprep.mubr.bf16.mxu1 %v27539_v13  ;;  %v26290_v54 = vld [vmem:[#allocation10 + $0xc04] ss:$40 sps:$4 sm:$0xff]  }
 0x927   :  { %18270 = vmatprep.mubr.bf16.mxu0 %v27523_v35 }
 0x928   :  { %18033 = vmatpush1.bf16.msra.mxu1 %v26267_v34  ;;  %v26285_v34 = vld [vmem:[#allocation10 + $0x10f8] ss:$40 sps:$4 sm:$0xff]  }
 0x929   :  { %18245 = vmatpush1.bf16.msra.mxu0 %v26270_v29  ;;  %18034 = vmatprep.subr.bf16.mxu1 %v26275_v18  ;;  %v26288_v29 = vld [vmem:[#allocation10 + $0xc00] ss:$40 sps:$4 sm:$0xff]  }
 0x92a   :  { %18246 = vmatprep.subr.bf16.mxu0 %v26278_v22 }
 0x92c   :  { %18035 = vmatpush1.bf16.msra.mxu1 %v26273_v41  ;;  %v26293_v41 = vld [vmem:[#allocation10 + $0x114c] ss:$40 sps:$4 sm:$0xff]  }
 0x92d   :  { %18247 = vmatpush1.bf16.msra.mxu0 %v26276_v42  ;;  %18036 = vmatprep.subr.bf16.mxu1 %v26281_v25  ;;  %v26296_v42 = vld [vmem:[#allocation10 + $0xc54] ss:$40 sps:$4 sm:$0xff]   ;;  %v26318_v25 = vld [vmem:[#allocation10 + $0xd90] ss:$40 sps:$4 sm:$0xff]  }
 0x92e   :  { %18248 = vmatprep.subr.bf16.mxu0 %v26284_v56  ;;  %v27543_v14 = vpop.f32.mrb[36].mxu1  ;;  %v26291_v56 = vld [vmem:[#allocation10 + $0x1148] ss:$40 sps:$4 sm:$0xff]  }
 0x92f   :  { %v27545_v17 = vpop.f32.mrb[37].mxu1 }
 0x930   :  { %v27547_v35 = vpop.f32.mrb[38].mxu1  ;;  %18037 = vmatpush1.bf16.msra.mxu1 %v26279_v47  ;;  %v26299_v47 = vld [vmem:[#allocation10 + $0x119c] ss:$40 sps:$4 sm:$0xff]  }
 0x931   :  { %18249 = vmatpush1.bf16.msra.mxu0 %v26282_v6  ;;  %v27551_v22 = vpop.f32.mrb[39].mxu1  ;;  %18038 = vmatprep.subr.bf16.mxu1 %v26287_v10  ;;  %v26302_v6 = vld [vmem:[#allocation10 + $0xca4] ss:$40 sps:$4 sm:$0xff]   ;;  %v26297_v10 = vld [vmem:[#allocation10 + $0x1198] ss:$40 sps:$4 sm:$0xff]  }
 0x932   :  { %18250 = vmatprep.subr.bf16.mxu0 %v26290_v54  ;;  %v26300_v54 = vld [vmem:[#allocation10 + $0xca0] ss:$40 sps:$4 sm:$0xff]  }
 0x934   :  { %18039 = vmatpush1.bf16.msra.mxu1 %v26285_v34  ;;  %v26309_v34 = vld [vmem:[#allocation10 + $0x1238] ss:$40 sps:$4 sm:$0xff]  }
 0x935   :  { %18251 = vmatpush1.bf16.msra.mxu0 %v26288_v29  ;;  %18040 = vmatprep.subr.bf16.mxu1 %v26293_v41  ;;  %v26305_v41 = vld [vmem:[#allocation10 + $0x11ec] ss:$40 sps:$4 sm:$0xff]  }
 0x936   :  { %18252 = vmatprep.subr.bf16.mxu0 %v26296_v42  ;;  %v27555_v44 = vpop.f32.mrb[40].mxu1  ;;  %v26308_v42 = vld [vmem:[#allocation10 + $0xcf4] ss:$40 sps:$4 sm:$0xff]  }
 0x937   :  { %27892 = vst [vmem:[#allocation51_spill] sm:$0xff] %v27555_v44  ;;  %v27557_v18 = vpop.f32.mrb[41].mxu1  ;;  %v26312_v44 = vld [vmem:[#allocation10 + $0xd40] ss:$40 sps:$4 sm:$0xff]  }
 0x938   :  { %27893 = vst [vmem:[#allocation52_spill] sm:$0xff] %v27557_v18  ;;  %v27559_v1 = vpop.f32.mrb[42].mxu1  ;;  %18041 = vmatpush1.bf16.msra.mxu1 %v26291_v56  ;;  %v26314_v56 = vld [vmem:[#allocation10 + $0xd44] ss:$40 sps:$4 sm:$0xff]  }
 0x939   :  { %27894 = vst [vmem:[#allocation53_spill] sm:$0xff] %v27559_v1  ;;  %18253 = vmatpush1.bf16.msra.mxu0 %v26294_v51  ;;  %v27563_v29 = vpop.f32.mrb[43].mxu1  ;;  %18042 = vmatprep.subr.bf16.mxu1 %v26299_v47  ;;  %v26311_v51 = vld [vmem:[#allocation10 + $0x123c] ss:$40 sps:$4 sm:$0xff]   ;;  %v26317_v47 = vld [vmem:[#allocation10 + $0x128c] ss:$40 sps:$4 sm:$0xff]  }
 0x93a   :  { %27895 = vst [vmem:[#allocation54_spill] sm:$0xff] %v27563_v29  ;;  %18254 = vmatprep.subr.bf16.mxu0 %v26302_v6  ;;  %v26320_v6 = vld [vmem:[#allocation10 + $0xd94] ss:$40 sps:$4 sm:$0xff]   ;;  %v26315_v1 = vld [vmem:[#allocation10 + $0x1288] ss:$40 sps:$4 sm:$0xff]  }
 0x93b   :  { %v26390_v29 = vld [vmem:[#allocation10 + $0x1150] ss:$40 sps:$4 sm:$0xff]  }
 0x93c   :  { %18043 = vmatpush1.bf16.msra.mxu1 %v26297_v10  ;;  %v26323_v10 = vld [vmem:[#allocation10 + $0x12dc] ss:$40 sps:$4 sm:$0xff]  }
 0x93d   :  { %18255 = vmatpush1.bf16.msra.mxu0 %v26300_v54  ;;  %18044 = vmatprep.subr.bf16.mxu1 %v26305_v41  ;;  %v26326_v54 = vld [vmem:[#allocation10 + $0xde4] ss:$40 sps:$4 sm:$0xff]   ;;  %v26321_v41 = vld [vmem:[#allocation10 + $0x12d8] ss:$40 sps:$4 sm:$0xff]  }
 0x93e   :  { %18256 = vmatprep.subr.bf16.mxu0 %v26308_v42  ;;  %v26324_v42 = vld [vmem:[#allocation10 + $0xde0] ss:$40 sps:$4 sm:$0xff]  }
 0x940   :  { %18045 = vmatpush1.bf16.msra.mxu1 %v26303_v0  ;;  %v26329_v0 = vld [vmem:[#allocation10 + $0x132c] ss:$40 sps:$4 sm:$0xff]  }
 0x941   :  { %18257 = vmatpush1.bf16.msra.mxu0 %v26306_v43  ;;  %18046 = vmatprep.subr.bf16.mxu1 %v26311_v51  ;;  %v26332_v43 = vld [vmem:[#allocation10 + $0xe34] ss:$40 sps:$4 sm:$0xff]   ;;  %v26327_v51 = vld [vmem:[#allocation10 + $0x1328] ss:$40 sps:$4 sm:$0xff]  }
 0x942   :  { %18258 = vmatprep.subr.bf16.mxu0 %v26314_v56  ;;  %v26330_v56 = vld [vmem:[#allocation10 + $0xe30] ss:$40 sps:$4 sm:$0xff]  }
 0x944   :  { %18047 = vmatpush1.bf16.msra.mxu1 %v26309_v34  ;;  %v26338_v34 = vld [vmem:[#allocation10 + $0xe84] ss:$40 sps:$4 sm:$0xff]  }
 0x945   :  { %18259 = vmatpush1.bf16.msra.mxu0 %v26312_v44  ;;  %18048 = vmatprep.subr.bf16.mxu1 %v26317_v47  ;;  %v26335_v44 = vld [vmem:[#allocation10 + $0x137c] ss:$40 sps:$4 sm:$0xff]   ;;  %v26333_v47 = vld [vmem:[#allocation10 + $0x1378] ss:$40 sps:$4 sm:$0xff]  }
 0x946   :  { %18260 = vmatprep.subr.bf16.mxu0 %v26320_v6  ;;  %v26336_v6 = vld [vmem:[#allocation10 + $0xe80] ss:$40 sps:$4 sm:$0xff]  }
 0x948   :  { %18049 = vmatpush1.bf16.msra.mxu1 %v26315_v1  ;;  %v26341_v1 = vld [vmem:[#allocation10 + $0x13cc] ss:$40 sps:$4 sm:$0xff]  }
 0x949   :  { %18261 = vmatpush1.bf16.msra.mxu0 %v26318_v25  ;;  %18050 = vmatprep.subr.bf16.mxu1 %v26323_v10  ;;  %v26344_v25 = vld [vmem:[#allocation10 + $0xed4] ss:$40 sps:$4 sm:$0xff]   ;;  %v26339_v10 = vld [vmem:[#allocation10 + $0x13c8] ss:$40 sps:$4 sm:$0xff]  }
 0x94a   :  { %18262 = vmatprep.subr.bf16.mxu0 %v26326_v54  ;;  %v26342_v54 = vld [vmem:[#allocation10 + $0xed0] ss:$40 sps:$4 sm:$0xff]  }
 0x94c   :  { %18051 = vmatpush1.bf16.msra.mxu1 %v26321_v41  ;;  %v26347_v41 = vld [vmem:[#allocation10 + $0x141c] ss:$40 sps:$4 sm:$0xff]  }
 0x94d   :  { %18263 = vmatpush1.bf16.msra.mxu0 %v26324_v42  ;;  %18052 = vmatprep.subr.bf16.mxu1 %v26329_v0  ;;  %v26350_v42 = vld [vmem:[#allocation10 + $0xf24] ss:$40 sps:$4 sm:$0xff]   ;;  %v26345_v0 = vld [vmem:[#allocation10 + $0x1418] ss:$40 sps:$4 sm:$0xff]  }
 0x94e   :  { %18264 = vmatprep.subr.bf16.mxu0 %v26332_v43  ;;  %v26348_v43 = vld [vmem:[#allocation10 + $0xf20] ss:$40 sps:$4 sm:$0xff]  }
 0x950   :  { %18053 = vmatpush1.bf16.msra.mxu1 %v26327_v51  ;;  %v26353_v51 = vld [vmem:[#allocation10 + $0x146c] ss:$40 sps:$4 sm:$0xff]  }
 0x951   :  { %18265 = vmatpush1.bf16.msra.mxu0 %v26330_v56  ;;  %18054 = vmatprep.subr.bf16.mxu1 %v26335_v44  ;;  %v26356_v56 = vld [vmem:[#allocation10 + $0xf74] ss:$40 sps:$4 sm:$0xff]   ;;  %v27567_v44 = vld [vmem:[#allocation5 + $0x18] ss:$40 sps:$4 sm:$0xff]  }
 0x952   :  { %18266 = vmatprep.subr.bf16.mxu0 %v26338_v34  ;;  %v26351_v34 = vld [vmem:[#allocation10 + $0x1468] ss:$40 sps:$4 sm:$0xff]  }
 0x954   :  { %18055 = vmatpush1.bf16.msra.mxu1 %v26333_v47  ;;  %v26354_v47 = vld [vmem:[#allocation10 + $0xf70] ss:$40 sps:$4 sm:$0xff]  }
 0x955   :  { %18267 = vmatpush1.bf16.msra.mxu0 %v26336_v6  ;;  %18056 = vmatprep.subr.bf16.mxu1 %v26341_v1  ;;  %v26359_v6 = vld [vmem:[#allocation10 + $0x14bc] ss:$40 sps:$4 sm:$0xff]  }
 0x956   :  { %18268 = vmatprep.subr.bf16.mxu0 %v26344_v25  ;;  %v26362_v1 = vld [vmem:[#allocation10 + $0xfc4] ss:$40 sps:$4 sm:$0xff]  }
 0x957   :  { %v27571_v25 = vld [vmem:[#allocation5 + $0x6c] ss:$40 sps:$4 sm:$0xff]  }
 0x958   :  { %18057 = vmatpush1.bf16.msra.mxu1 %v26339_v10  ;;  %v26357_v10 = vld [vmem:[#allocation10 + $0x14b8] ss:$40 sps:$4 sm:$0xff]  }
 0x959   :  { %18269 = vmatpush1.bf16.msra.mxu0 %v26342_v54  ;;  %18079 = vmatprep.subr.bf16.mxu1 %v26347_v41  ;;  %v26360_v54 = vld [vmem:[#allocation10 + $0xfc0] ss:$40 sps:$4 sm:$0xff]   ;;  %v26368_v41 = vld [vmem:[#allocation10 + $0x1014] ss:$40 sps:$4 sm:$0xff]  }
 0x95a   :  { %18291 = vmatprep.subr.bf16.mxu0 %v26350_v42  ;;  %v27575_v42 = vld [vmem:[#allocation5 + $0x68] ss:$40 sps:$4 sm:$0xff]  }
 0x95b   :  { %18059 = vmatmul.mubr.bf16.vlgmr.msra.gmra.mrb[44].mxu1 %v27567_v44 }
 0x95c   :  { %18271 = vmatmul.mubr.bf16.vlgmr.msra.gmra.mrb[44].mxu0 %v27527_v48  ;;  %18080 = vmatpush1.bf16.msra.mxu1 %v26345_v0  ;;  %v26365_v48 = vld [vmem:[#allocation10 + $0x150c] ss:$40 sps:$4 sm:$0xff]   ;;  %v26363_v0 = vld [vmem:[#allocation10 + $0x1508] ss:$40 sps:$4 sm:$0xff]  }
 0x95d   :  { %18292 = vmatpush1.bf16.msra.mxu0 %v26348_v43  ;;  %18081 = vmatprep.subr.bf16.mxu1 %v26353_v51  ;;  %v26366_v43 = vld [vmem:[#allocation10 + $0x1010] ss:$40 sps:$4 sm:$0xff]   ;;  %v26374_v51 = vld [vmem:[#allocation10 + $0x1064] ss:$40 sps:$4 sm:$0xff]  }
 0x95e   :  { %18293 = vmatprep.subr.bf16.mxu0 %v26356_v56  ;;  %18068 = vmatprep.mubr.bf16.mxu1 %v27571_v25  ;;  %v27579_v56 = vld [vmem:[#allocation5 + $0x24] ss:$40 sps:$4 sm:$0xff]  }
 0x95f   :  { %18280 = vmatprep.mubr.bf16.mxu0 %v27531_v36  ;;  %v26371_v36 = vld [vmem:[#allocation10 + $0x155c] ss:$40 sps:$4 sm:$0xff]  }
 0x960   :  { %18082 = vmatpush1.bf16.msra.mxu1 %v26351_v34  ;;  %v26369_v34 = vld [vmem:[#allocation10 + $0x1558] ss:$40 sps:$4 sm:$0xff]  }
 0x961   :  { %18294 = vmatpush1.bf16.msra.mxu0 %v26354_v47  ;;  %18083 = vmatprep.subr.bf16.mxu1 %v26359_v6  ;;  %v26372_v47 = vld [vmem:[#allocation10 + $0x1060] ss:$40 sps:$4 sm:$0xff]   ;;  %v26380_v6 = vld [vmem:[#allocation10 + $0x10b4] ss:$40 sps:$4 sm:$0xff]  }
 0x962   :  { %18295 = vmatprep.subr.bf16.mxu0 %v26362_v1  ;;  %v26375_v1 = vld [vmem:[#allocation10 + $0x15a8] ss:$40 sps:$4 sm:$0xff]  }
 0x963   :  { %18069 = vmatmul.mubr.bf16.gmra.mrb[48].mxu1 %v27575_v42 }
 0x964   :  { %18281 = vmatmul.mubr.bf16.gmra.mrb[48].mxu0 %v27535_v45  ;;  %18084 = vmatpush1.bf16.msra.mxu1 %v26357_v10  ;;  %v26377_v45 = vld [vmem:[#allocation10 + $0x15ac] ss:$40 sps:$4 sm:$0xff]   ;;  %v26378_v10 = vld [vmem:[#allocation10 + $0x10b0] ss:$40 sps:$4 sm:$0xff]  }
 0x965   :  { %18296 = vmatpush1.bf16.msra.mxu0 %v26360_v54  ;;  %18085 = vmatprep.subr.bf16.mxu1 %v26365_v48  ;;  %v26383_v54 = vld [vmem:[#allocation10 + $0x15fc] ss:$40 sps:$4 sm:$0xff]  }
 0x966   :  { %18297 = vmatprep.subr.bf16.mxu0 %v26368_v41  ;;  %18111 = vmatprep.mubr.bf16.mxu1 %v27579_v56  ;;  %v26386_v48 = vld [vmem:[#allocation10 + $0x1104] ss:$40 sps:$4 sm:$0xff]  }
 0x967   :  { %18323 = vmatprep.mubr.bf16.mxu0 %v27539_v13 }
 0x968   :  { %18086 = vmatpush1.bf16.msra.mxu1 %v26363_v0  ;;  %v26381_v0 = vld [vmem:[#allocation10 + $0x15f8] ss:$40 sps:$4 sm:$0xff]  }
 0x969   :  { %18298 = vmatpush1.bf16.msra.mxu0 %v26366_v43  ;;  %18087 = vmatprep.subr.bf16.mxu1 %v26371_v36  ;;  %v26384_v43 = vld [vmem:[#allocation10 + $0x1100] ss:$40 sps:$4 sm:$0xff]  }
 0x96a   :  { %18299 = vmatprep.subr.bf16.mxu0 %v26374_v51 }
 0x96c   :  { %18088 = vmatpush1.bf16.msra.mxu1 %v26369_v34  ;;  %v26389_v34 = vld [vmem:[#allocation10 + $0x164c] ss:$40 sps:$4 sm:$0xff]  }
 0x96d   :  { %18300 = vmatpush1.bf16.msra.mxu0 %v26372_v47  ;;  %18089 = vmatprep.subr.bf16.mxu1 %v26377_v45  ;;  %v26392_v47 = vld [vmem:[#allocation10 + $0x1154] ss:$40 sps:$4 sm:$0xff]   ;;  %v26414_v45 = vld [vmem:[#allocation10 + $0x1290] ss:$40 sps:$4 sm:$0xff]  }
 0x96e   :  { %18301 = vmatprep.subr.bf16.mxu0 %v26380_v6  ;;  %v26387_v6 = vld [vmem:[#allocation10 + $0x1648] ss:$40 sps:$4 sm:$0xff]  }
 0x96f   :  { %v27583_v41 = vpop.f32.mrb[36].mxu0 }
 0x970   :  { %v27585_v18 = vpop.f32.mrb[37].mxu0  ;;  %18090 = vmatpush1.bf16.msra.mxu1 %v26375_v1  ;;  %v26395_v1 = vld [vmem:[#allocation10 + $0x169c] ss:$40 sps:$4 sm:$0xff]  }
 0x971   :  { %v27587_v13 = vpop.f32.mrb[38].mxu0  ;;  %18302 = vmatpush1.bf16.msra.mxu0 %v26378_v10  ;;  %18091 = vmatprep.subr.bf16.mxu1 %v26383_v54  ;;  %v26398_v10 = vld [vmem:[#allocation10 + $0x11a4] ss:$40 sps:$4 sm:$0xff]   ;;  %v26393_v54 = vld [vmem:[#allocation10 + $0x1698] ss:$40 sps:$4 sm:$0xff]  }
 0x972   :  { %v27591_v51 = vpop.f32.mrb[39].mxu0  ;;  %18303 = vmatprep.subr.bf16.mxu0 %v26386_v48  ;;  %v26396_v48 = vld [vmem:[#allocation10 + $0x11a0] ss:$40 sps:$4 sm:$0xff]  }
 0x974   :  { %18092 = vmatpush1.bf16.msra.mxu1 %v26381_v0  ;;  %v26405_v0 = vld [vmem:[#allocation10 + $0x1738] ss:$40 sps:$4 sm:$0xff]  }
 0x975   :  { %18304 = vmatpush1.bf16.msra.mxu0 %v26384_v43  ;;  %18093 = vmatprep.subr.bf16.mxu1 %v26389_v34  ;;  %v26401_v34 = vld [vmem:[#allocation10 + $0x16ec] ss:$40 sps:$4 sm:$0xff]  }
 0x976   :  { %18305 = vmatprep.subr.bf16.mxu0 %v26392_v47  ;;  %v26404_v47 = vld [vmem:[#allocation10 + $0x11f4] ss:$40 sps:$4 sm:$0xff]  }
 0x977   :  { %v27595_v62 = vpop.f32.mrb[40].mxu0 }
 0x978   :  { %27896 = vst [vmem:[#allocation55_spill] sm:$0xff] %v27595_v62  ;;  %v27597_v36 = vpop.f32.mrb[41].mxu0  ;;  %18094 = vmatpush1.bf16.msra.mxu1 %v26387_v6  ;;  %v26410_v6 = vld [vmem:[#allocation10 + $0x1244] ss:$40 sps:$4 sm:$0xff]   ;;  %v26408_v62 = vld [vmem:[#allocation10 + $0x1240] ss:$40 sps:$4 sm:$0xff]  }
 0x979   :  { %v27599_v20 = vpop.f32.mrb[42].mxu0  ;;  %18306 = vmatpush1.bf16.msra.mxu0 %v26390_v29  ;;  %18095 = vmatprep.subr.bf16.mxu1 %v26395_v1  ;;  %v26407_v29 = vld [vmem:[#allocation10 + $0x173c] ss:$40 sps:$4 sm:$0xff]   ;;  %v26413_v1 = vld [vmem:[#allocation10 + $0x178c] ss:$40 sps:$4 sm:$0xff]  }
 0x97a   :  { %27897 = vst [vmem:[#allocation56_spill] sm:$0xff] %v27599_v20  ;;  %v27603_v43 = vpop.f32.mrb[43].mxu0  ;;  %18307 = vmatprep.subr.bf16.mxu0 %v26398_v10  ;;  %v26416_v10 = vld [vmem:[#allocation10 + $0x1294] ss:$40 sps:$4 sm:$0xff]   ;;  %v26411_v20 = vld [vmem:[#allocation10 + $0x1788] ss:$40 sps:$4 sm:$0xff]  }
 0x97c   :  { %18096 = vmatpush1.bf16.msra.mxu1 %v26393_v54  ;;  %v26419_v54 = vld [vmem:[#allocation10 + $0x17dc] ss:$40 sps:$4 sm:$0xff]  }
 0x97d   :  { %18308 = vmatpush1.bf16.msra.mxu0 %v26396_v48  ;;  %18097 = vmatprep.subr.bf16.mxu1 %v26401_v34  ;;  %v26422_v48 = vld [vmem:[#allocation10 + $0x12e4] ss:$40 sps:$4 sm:$0xff]   ;;  %v26417_v34 = vld [vmem:[#allocation10 + $0x17d8] ss:$40 sps:$4 sm:$0xff]  }
 0x97e   :  { %18309 = vmatprep.subr.bf16.mxu0 %v26404_v47  ;;  %v26420_v47 = vld [vmem:[#allocation10 + $0x12e0] ss:$40 sps:$4 sm:$0xff]  }
 0x980   :  { %18098 = vmatpush1.bf16.msra.mxu1 %v26399_v21  ;;  %v26428_v21 = vld [vmem:[#allocation10 + $0x1334] ss:$40 sps:$4 sm:$0xff]  }
 0x981   :  { %18310 = vmatpush1.bf16.msra.mxu0 %v26402_v46  ;;  %18099 = vmatprep.subr.bf16.mxu1 %v26407_v29  ;;  %v26425_v46 = vld [vmem:[#allocation10 + $0x182c] ss:$40 sps:$4 sm:$0xff]   ;;  %v26423_v29 = vld [vmem:[#allocation10 + $0x1828] ss:$40 sps:$4 sm:$0xff]  }
 0x982   :  { %18311 = vmatprep.subr.bf16.mxu0 %v26410_v6  ;;  %v26426_v6 = vld [vmem:[#allocation10 + $0x1330] ss:$40 sps:$4 sm:$0xff]  }
 0x984   :  { %18100 = vmatpush1.bf16.msra.mxu1 %v26405_v0  ;;  %v26434_v0 = vld [vmem:[#allocation10 + $0x1384] ss:$40 sps:$4 sm:$0xff]  }
 0x985   :  { %18312 = vmatpush1.bf16.msra.mxu0 %v26408_v62  ;;  %18101 = vmatprep.subr.bf16.mxu1 %v26413_v1  ;;  %v26431_v62 = vld [vmem:[#allocation10 + $0x187c] ss:$40 sps:$4 sm:$0xff]   ;;  %v26429_v1 = vld [vmem:[#allocation10 + $0x1878] ss:$40 sps:$4 sm:$0xff]  }
 0x986   :  { %18313 = vmatprep.subr.bf16.mxu0 %v26416_v10  ;;  %v26432_v10 = vld [vmem:[#allocation10 + $0x1380] ss:$40 sps:$4 sm:$0xff]  }
 0x988   :  { %18102 = vmatpush1.bf16.msra.mxu1 %v26411_v20  ;;  %v26437_v20 = vld [vmem:[#allocation10 + $0x18cc] ss:$40 sps:$4 sm:$0xff]  }
 0x989   :  { %18314 = vmatpush1.bf16.msra.mxu0 %v26414_v45  ;;  %18103 = vmatprep.subr.bf16.mxu1 %v26419_v54  ;;  %v26440_v45 = vld [vmem:[#allocation10 + $0x13d4] ss:$40 sps:$4 sm:$0xff]   ;;  %v26435_v54 = vld [vmem:[#allocation10 + $0x18c8] ss:$40 sps:$4 sm:$0xff]  }
 0x98a   :  { %18315 = vmatprep.subr.bf16.mxu0 %v26422_v48  ;;  %v26438_v48 = vld [vmem:[#allocation10 + $0x13d0] ss:$40 sps:$4 sm:$0xff]  }
 0x98c   :  { %18104 = vmatpush1.bf16.msra.mxu1 %v26417_v34  ;;  %v26443_v34 = vld [vmem:[#allocation10 + $0x1424] ss:$40 sps:$4 sm:$0xff]  }
 0x98d   :  { %18316 = vmatpush1.bf16.msra.mxu0 %v26420_v47  ;;  %18105 = vmatprep.subr.bf16.mxu1 %v26425_v46  ;;  %v26441_v47 = vld [vmem:[#allocation10 + $0x1420] ss:$40 sps:$4 sm:$0xff]   ;;  %v27898_v46 = vpack.c.bf16 %v27335_v55, %v27329_v15  ;;  %v27899_v55 = vpack.c.bf16 %v27331_v4, %v27327_v19  ;;  %v26458_v4 = vld [vmem:[#allocation10 + $0x15b4] ss:$40 sps:$4 sm:$0xff]  }
 0x98e   :  { %18317 = vmatprep.subr.bf16.mxu0 %v26428_v21  ;;  %v26446_v21 = vld [vmem:[#allocation10 + $0x1474] ss:$40 sps:$4 sm:$0xff]   ;;  %v26447_v15 = vld [vmem:[#allocation10 + $0x14c0] ss:$40 sps:$4 sm:$0xff]  }
 0x98f   :  { %v26453_v19 = vld [vmem:[#allocation10 + $0x1560] ss:$40 sps:$4 sm:$0xff]  }
 0x990   :  { %18106 = vmatpush1.bf16.msra.mxu1 %v26423_v29  ;;  %v27610_v29 = vld [vmem:[#allocation5 + $0x20] ss:$40 sps:$4 sm:$0xff]  }
 0x991   :  { %18318 = vmatpush1.bf16.msra.mxu0 %v26426_v6  ;;  %18107 = vmatprep.subr.bf16.mxu1 %v26431_v62  ;;  %v26444_v6 = vld [vmem:[#allocation10 + $0x1470] ss:$40 sps:$4 sm:$0xff]   ;;  %v27614_v62 = vld [vmem:[#allocation5 + $0x74] ss:$40 sps:$4 sm:$0xff]  }
 0x992   :  { %18319 = vmatprep.subr.bf16.mxu0 %v26434_v0  ;;  %v26449_v0 = vld [vmem:[#allocation10 + $0x14c4] ss:$40 sps:$4 sm:$0xff]  }
 0x994   :  { %18108 = vmatpush1.bf16.msra.mxu1 %v26429_v1  ;;  %v26452_v1 = vld [vmem:[#allocation10 + $0x1514] ss:$40 sps:$4 sm:$0xff]  }
 0x995   :  { %18320 = vmatpush1.bf16.msra.mxu0 %v26432_v10  ;;  %18109 = vmatprep.subr.bf16.mxu1 %v26437_v20  ;;  %v27624_v10 = vld [vmem:[#allocation5 + $0x70] ss:$40 sps:$4 sm:$0xff]   ;;  %v26455_v20 = vld [vmem:[#allocation10 + $0x1564] ss:$40 sps:$4 sm:$0xff]  }
 0x996   :  { %18321 = vmatprep.subr.bf16.mxu0 %v26440_v45  ;;  %v26464_v45 = vld [vmem:[#allocation10 + $0x1654] ss:$40 sps:$4 sm:$0xff]  }
 0x998   :  { %18110 = vmatpush1.bf16.msra.mxu1 %v26435_v54  ;;  %v26468_v54 = vld [vmem:[#allocation10 + $0x16f0] ss:$40 sps:$4 sm:$0xff]  }
 0x999   :  { %18322 = vmatpush1.bf16.msra.mxu0 %v26438_v48  ;;  %22348 = vmatprep.subr.bf16.mxu1 %v27898_v46  ;;  %v26471_v48 = vld [vmem:[#allocation10 + $0x1740] ss:$40 sps:$4 sm:$0xff]   ;;  %v26485_v46 = vld [vmem:[#allocation10 + $0x1884] ss:$40 sps:$4 sm:$0xff]  }
 0x99a   :  { %18344 = vmatprep.subr.bf16.mxu0 %v26443_v34  ;;  %v26479_v34 = vld [vmem:[#allocation10 + $0x17e4] ss:$40 sps:$4 sm:$0xff]  }
 0x99b   :  { %18112 = vmatmul.mubr.bf16.vlgmr.msra.gmra.mrb[44].mxu1 %v27610_v29 }
 0x99c   :  { %18324 = vmatmul.mubr.bf16.vlgmr.msra.gmra.mrb[44].mxu0 %v27567_v44  ;;  %18121 = vmatprep.mubr.bf16.mxu1 %v27614_v62  ;;  %v27900_v44 = vpack.c.bf16 %v27423_v61, %v27417_v26  ;;  %v27901_v26 = vpack.c.bf16 %v27419_v3, %v27415_v52  ;;  %v26456_v61 = vld [vmem:[#allocation10 + $0x15b0] ss:$40 sps:$4 sm:$0xff]   ;;  %v26467_v3 = vld [vmem:[#allocation10 + $0x16a4] ss:$40 sps:$4 sm:$0xff]  }
 0x99d   :  { %18345 = vmatpush1.bf16.msra.mxu0 %v26441_v47  ;;  %18333 = vmatprep.mubr.bf16.mxu0 %v27571_v25  ;;  %v26450_v25 = vld [vmem:[#allocation10 + $0x1510] ss:$40 sps:$4 sm:$0xff]  }
 0x99e   :  { %18346 = vmatprep.subr.bf16.mxu0 %v26446_v21  ;;  %v26462_v52 = vld [vmem:[#allocation10 + $0x1650] ss:$40 sps:$4 sm:$0xff]   ;;  %v26483_v21 = vld [vmem:[#allocation10 + $0x1880] ss:$40 sps:$4 sm:$0xff]  }
 0x99f   :  { %v26480_v47 = vld [vmem:[#allocation10 + $0x1830] ss:$40 sps:$4 sm:$0xff]  }
 0x9a1   :  { %18347 = vmatpush1.bf16.msra.mxu0 %v26444_v6  ;;  %22350 = vmatpush1.bf16.xpose.msra.mxu1 %v27899_v55  ;;  %v26488_v6 = vld [vmem:[#allocation10 + $0x18d4] ss:$40 sps:$4 sm:$0xff]   ;;  %v27906_v55 = vpack.c.bf16 %v27163_v11, %v27159_v50  ;;  %v27909_v50 = vpack.c.bf16 %v27295_v31, %v27289_v33  ;;  %v27910_v11 = vpack.c.bf16 %v27291_v7, %v27287_v40 }
 0x9a2   :  { %18348 = vmatprep.subr.bf16.mxu0 %v26449_v0  ;;  %22352 = vmatprep.subr.bf16.mxu1 %v27900_v44  ;;  %v26486_v0 = vld [vmem:[#allocation10 + $0x18d0] ss:$40 sps:$4 sm:$0xff]  }
 0x9a3   :  { %18122 = vmatmul.mubr.bf16.gmra.mrb[48].mxu1 %v27624_v10 }
 0x9a4   :  { %18334 = vmatmul.mubr.bf16.gmra.mrb[48].mxu0 %v27575_v42  ;;  %18671 = vmatprep.mubr.f32.mxu1 %v27065_v32  ;;  %v27902_v32 = vpack.c.bf16 %v27551_v22, %v27545_v17  ;;  %v26461_v42 = vld [vmem:[#allocation10 + $0x1604] ss:$40 sps:$4 sm:$0xff]   ;;  %v26465_v17 = vld [vmem:[#allocation10 + $0x16a0] ss:$40 sps:$4 sm:$0xff]   ;;  %v26470_v22 = vld [vmem:[#allocation10 + $0x16f4] ss:$40 sps:$4 sm:$0xff]  }
 0x9a5   :  { %18349 = vmatpush1.bf16.msra.mxu0 %v26447_v15  ;;  %18376 = vmatprep.mubr.bf16.mxu0 %v27579_v56  ;;  %v26459_v56 = vld [vmem:[#allocation10 + $0x1600] ss:$40 sps:$4 sm:$0xff]   ;;  %v27905_v15 = vpack.c.bf16 %v27167_v49, %v27161_v16  ;;  %v27908_v16 = vpack.c.bf16 %v27203_v59, %v27199_v37 }
 0x9a6   :  { %18350 = vmatprep.subr.bf16.mxu0 %v26452_v1  ;;  %v27907_v1 = vpack.c.bf16 %v27207_v57, %v27201_v9 }
 0x9a9   :  { %18351 = vmatpush1.bf16.msra.mxu0 %v26450_v25 }
 0x9aa   :  { %18352 = vmatprep.subr.bf16.mxu0 %v26455_v20 }
 0x9ab   :  { %18672 = vmatmul.mubr.f32.vlgmr.msra.gmra.mrb[52].mxu1 %v27063_v2  ;;  %v27903_v2 = vpack.c.bf16 %v27547_v35, %v27543_v14  ;;  %v26476_v14 = vld [vmem:[#allocation10 + $0x1794] ss:$40 sps:$4 sm:$0xff]   ;;  %v26474_v35 = vld [vmem:[#allocation10 + $0x1790] ss:$40 sps:$4 sm:$0xff]  }
 0x9ac   :  { %22354 = vmatpush1.bf16.xpose.msra.mxu1 %v27901_v26  ;;  %18741 = vmatprep.mubr.f32.mxu1 %v27089_v63  ;;  %v27904_v63 = vpack.c.bf16 %v27591_v51, %v27585_v18  ;;  %v26477_v18 = vld [vmem:[#allocation10 + $0x17e0] ss:$40 sps:$4 sm:$0xff]   ;;  %v26482_v51 = vld [vmem:[#allocation10 + $0x1834] ss:$40 sps:$4 sm:$0xff]  }
 0x9ad   :  { %18353 = vmatpush1.bf16.msra.mxu0 %v26453_v19  ;;  %22360 = vmatprep.subr.bf16.mxu1 %v27902_v32 }
 0x9ae   :  { %18354 = vmatprep.subr.bf16.mxu0 %v26458_v4 }
 0x9b1   :  { %18355 = vmatpush1.bf16.msra.mxu0 %v26456_v61 }
 0x9b2   :  { %18356 = vmatprep.subr.bf16.mxu0 %v26461_v42 }
 0x9b3   :  { %18742 = vmatmul.mubr.f32.vlgmr.msra.gmra.mrb[52].mxu1 %v27087_v12  ;;  %v26473_v12 = vld [vmem:[#allocation10 + $0x1744] ss:$40 sps:$4 sm:$0xff]  }
 0x9b4   :  { %22362 = vmatpush1.bf16.msra.mxu1 %v27903_v2 }
 0x9b5   :  { %18357 = vmatpush1.bf16.msra.mxu0 %v26459_v56  ;;  %22364 = vmatprep.subr.bf16.mxu1 %v27904_v63 }
 0x9b6   :  { %18358 = vmatprep.subr.bf16.mxu0 %v26464_v45 }
 0x9b9   :  { %18359 = vmatpush1.bf16.msra.mxu0 %v26462_v52 }
 0x9ba   :  { %18360 = vmatprep.subr.bf16.mxu0 %v26467_v3 }
 0x9bd   :  { %18361 = vmatpush1.bf16.msra.mxu0 %v26465_v17 }
 0x9be   :  { %18362 = vmatprep.subr.bf16.mxu0 %v26470_v22  ;;  %v26768_v22 = vmov 0.0  }
 0x9bf   :  { %18899 = vmatprep.mubr.f32.mxu1 %v26768_v22 }
 0x9c1   :  { %18363 = vmatpush1.bf16.msra.mxu0 %v26468_v54 }
 0x9c2   :  { %18364 = vmatprep.subr.bf16.mxu0 %v26473_v12 }
 0x9c5   :  { %18365 = vmatpush1.bf16.msra.mxu0 %v26471_v48 }
 0x9c6   :  { %18366 = vmatprep.subr.bf16.mxu0 %v26476_v14  ;;  %v27913_v14 = vpack.c.bf16 %v27587_v13, %v27583_v41  ;;  %v27915_v41 = vld [vmem:[#allocation20_spill] sm:$0xff]  ;;  %v27916_v13 = vld [vmem:[#allocation30_spill] sm:$0xff] }
 0x9c9   :  { %18367 = vmatpush1.bf16.msra.mxu0 %v26474_v35  ;;  %v27914_v35 = vpack.c.bf16 %v27179_v30, %v27173_v27  ;;  %v27926_v27 = vld [vmem:[#allocation22_spill] sm:$0xff] }
 0x9ca   :  { %18368 = vmatprep.subr.bf16.mxu0 %v26479_v34  ;;  %v27917_v34 = vld [vmem:[#allocation29_spill] sm:$0xff]  ;;  %v27927_v30 = vld [vmem:[#allocation38_spill] sm:$0xff] }
 0x9cd   :  { %18369 = vmatpush1.bf16.msra.mxu0 %v26477_v18  ;;  %v27918_v18 = vpack.c.bf16 %v27916_v13, %v27917_v34 }
 0x9ce   :  { %18370 = vmatprep.subr.bf16.mxu0 %v26482_v51  ;;  %v27919_v51 = vld [vmem:[#allocation34_spill] sm:$0xff] }
 0x9d1   :  { %18371 = vmatpush1.bf16.msra.mxu0 %v26480_v47  ;;  %v27920_v47 = vld [vmem:[#allocation32_spill] sm:$0xff] }
 0x9d2   :  { %18372 = vmatprep.subr.bf16.mxu0 %v26485_v46  ;;  %v27921_v46 = vpack.c.bf16 %v27919_v51, %v27920_v47 }
 0x9d5   :  { %18373 = vmatpush1.bf16.msra.mxu0 %v26483_v21  ;;  %v27922_v21 = vld [vmem:[#allocation19_spill] sm:$0xff] }
 0x9d6   :  { %18374 = vmatprep.subr.bf16.mxu0 %v26488_v6  ;;  %v27923_v6 = vld [vmem:[#allocation33_spill] sm:$0xff] }
 0x9d9   :  { %18375 = vmatpush1.bf16.msra.mxu0 %v26486_v0  ;;  %v27924_v0 = vld [vmem:[#allocation31_spill] sm:$0xff] }
 0x9da   :  { %22336 = vmatprep.subr.bf16.mxu0 %v27905_v15  ;;  %v27925_v15 = vpack.c.bf16 %v27923_v6, %v27924_v0 }
 0x9dc   :  { %18377 = vmatmul.mubr.bf16.vlgmr.msra.gmra.mrb[44].mxu0 %v27610_v29 }
 0x9dd   :  { %18386 = vmatprep.mubr.bf16.mxu0 %v27614_v62 }
 0x9e2   :  { %22338 = vmatpush1.bf16.xpose.msra.mxu0 %v27906_v55  ;;  %v27928_v55 = vld [vmem:[#allocation36_spill] sm:$0xff] }
 0x9e3   :  { %22340 = vmatprep.subr.bf16.mxu0 %v27907_v1  ;;  %v27929_v1 = vpack.c.bf16 %v27927_v30, %v27928_v55 }
 0x9e4   :  { %18387 = vmatmul.mubr.bf16.gmra.mrb[48].mxu0 %v27624_v10 }
 0x9e5   :  { %18461 = vmatprep.mubr.f32.mxu0 %v26945_v60  ;;  %v27912_v60 = vpack.c.bf16 %v27459_v38, %v27455_v8 }
 0x9ec   :  { %18462 = vmatmul.mubr.f32.vlgmr.msra.gmra.mrb[52].mxu0 %v26942_v58  ;;  %v27911_v58 = vpack.c.bf16 %v27463_v53, %v27457_v5 }
 0x9ed   :  { %22342 = vmatpush1.bf16.xpose.msra.mxu0 %v27908_v16  ;;  %18531 = vmatprep.mubr.f32.mxu0 %v26987_v24  ;;  %v27930_v16 = vld [vmem:[#allocation21_spill] sm:$0xff] }
 0x9ee   :  { %22344 = vmatprep.subr.bf16.mxu0 %v27909_v50  ;;  %v27931_v50 = vld [vmem:[#allocation37_spill] sm:$0xff] }
 0x9f4   :  { %18532 = vmatmul.mubr.f32.vlgmr.msra.gmra.mrb[52].mxu0 %v26985_v23 }
 0x9f5   :  { %22346 = vmatpush1.bf16.xpose.msra.mxu0 %v27910_v11  ;;  %18601 = vmatprep.mubr.f32.mxu0 %v27003_v28  ;;  %v27932_v11 = vld [vmem:[#allocation35_spill] sm:$0xff] }
 0x9f6   :  { %22356 = vmatprep.subr.bf16.mxu0 %v27911_v58  ;;  %v27933_v58 = vpack.c.bf16 %v27931_v50, %v27932_v11 }
 0x9fc   :  { %18602 = vmatmul.mubr.f32.vlgmr.msra.gmra.mrb[52].mxu0 %v27001_v39 }
 0x9fd   :  { %22358 = vmatpush1.bf16.msra.mxu0 %v27912_v60  ;;  %18828 = vmatprep.mubr.f32.mxu0 %v26768_v22  ;;  %v27934_v60 = vld [vmem:[#allocation24_spill] sm:$0xff] }
 0xa6e   :  { %v18113_v24 = vpop.f32.mrb[44].mxu1 }
 0xa6f   :  { %v18115_v49 = vpop.f32.mrb[45].mxu1 }
 0xa70   :  { %v18117_v37 = vpop.f32.mrb[46].mxu1 }
 0xa71   :  { %v22369_v23 = vpack.c.bf16 %v18117_v37, %v18113_v24  ;;  %v18119_v9 = vpop.f32.mrb[47].mxu1  ;;  %v27935_v24 = vld [vmem:[#allocation42_spill] sm:$0xff] }
 0xa72   :  { %v22367_v59 = vpack.c.bf16 %v18119_v9, %v18115_v49  ;;  %v27936_v49 = vld [vmem:[#allocation40_spill] sm:$0xff]  ;;  %v27939_v9 = vld [vmem:[#allocation41_spill] sm:$0xff] }
 0xa73   :  { %v27937_v37 = vpack.c.bf16 %v27935_v24, %v27936_v49  ;;  %v27962_v24 = vld [vmem:[#allocation51_spill] sm:$0xff] }
 0xa76   :  { %v27678_v57 = vpop.f32.mrb[48].mxu1 }
 0xa77   :  { %v27680_v40 = vpop.f32.mrb[49].mxu1 }
 0xa78   :  { %v27682_v28 = vpop.f32.mrb[50].mxu1 }
 0xa79   :  { %v22409_v33 = vpack.c.bf16 %v27682_v28, %v27678_v57  ;;  %v27686_v39 = vpop.f32.mrb[51].mxu1 }
 0xa7a   :  { %v22407_v7 = vpack.c.bf16 %v27686_v39, %v27680_v40 }
 0xa86   :  { %v18743_v31 = vpop.f32.mrb[52].mxu1 }
 0xa87   :  { %v18745_v5 = vpop.f32.mrb[53].mxu1 }
 0xa88   :  { %v27942_v5 = vld [vmem:[#allocation26_spill] sm:$0xff] }
 0xaaf   :  { %v18378_v8 = vpop.f32.mrb[44].mxu0 }
 0xab0   :  { %v18380_v38 = vpop.f32.mrb[45].mxu0 }
 0xab1   :  { %v18382_v53 = vpop.f32.mrb[46].mxu0 }
 0xab2   :  { %v22373_v29 = vpack.c.bf16 %v18382_v53, %v18378_v8  ;;  %v18384_v62 = vpop.f32.mrb[47].mxu0  ;;  %v27943_v8 = vld [vmem:[#allocation46_spill] sm:$0xff] }
 0xab3   :  { %v22371_v44 = vpack.c.bf16 %v18384_v62, %v18380_v38  ;;  %v27944_v38 = vld [vmem:[#allocation44_spill] sm:$0xff]  ;;  %v27947_v62 = vld [vmem:[#allocation45_spill] sm:$0xff] }
 0xab4   :  { %v27945_v53 = vpack.c.bf16 %v27943_v8, %v27944_v38 }
 0xab7   :  { %v27690_v10 = vpop.f32.mrb[48].mxu0 }
 0xab8   :  { %v27692_v25 = vpop.f32.mrb[49].mxu0 }
 0xab9   :  { %v27694_v20 = vpop.f32.mrb[50].mxu0 }
 0xaba   :  { %v22413_v19 = vpack.c.bf16 %v27694_v20, %v27690_v10  ;;  %v27698_v4 = vpop.f32.mrb[51].mxu0 }
 0xabb   :  { %v22411_v26 = vpack.c.bf16 %v27698_v4, %v27692_v25 }
 0xacf   :  { %v18603_v61 = vpop.f32.mrb[52].mxu0 }
 0xad0   :  { %v22419_v32 = vadd.f32 %v18743_v31, %v18603_v61  ;;  %v18605_v42 = vpop.f32.mrb[53].mxu0 }
 0xad1   :  { %v27951_v42 = vld [vmem:[#allocation50_spill] sm:$0xff] }
 0xad2   :  { %v18747_v56 = vmul.f32 0.02795085, %v22419_v32  ;;  %v27950_v32 = vld [vmem:[#allocation28_spill] sm:$0xff] }
 0xad4   :  { %v18749_v45 = vsel %vm18748_vm0, %v18747_v56, -inf }
 0xad5   :  { %18750 = vmax.xlane.f32.xlu0 %v18749_v45 }
 0xb62   :  { %v18751_v2 = vpop.xlane.xlu0 %18750 }
 0xb63   :  { %v18752_v52 = vsub.f32 %v18747_v56, %v18751_v2  ;;  %v27952_v56 = vld [vmem:[#allocation48_spill] sm:$0xff]  ;;  %v27954_v2 = vld [vmem:[#allocation27_spill] sm:$0xff] }
 0xb64   :  { %v27953_v45 = vpack.c.bf16 %v27951_v42, %v27952_v56 }
 0xb65   :  { %v18753_v63 = vmul.f32 1.442695, %v18752_v52  ;;  %v27955_v52 = vld [vmem:[#allocation49_spill] sm:$0xff] }
 0xb67   :  { %26489 = vpow2.f32 %v18753_v63  ;;  %v27956_v63 = vld [vmem:[#allocation47_spill] sm:$0xff] }
 0xb71   :  { %v26490_v3 = vpop.eup %26489 }
 0xb72   :  { %v18755_v17 = vsel %vm18748_vm0, %v26490_v3, 0.0 }
 0xb73   :  { %18756 = vadd.xlane.f32.xlu0 %v18755_v17  ;;  %v27958_v17 = vld [vmem:[#allocation54_spill] sm:$0xff] }
 0xc00   :  { %v18757_v54 = vpop.xlane.xlu0 %18756 }
 0xc01   :  { %26491 = vrcp.f32 %v18757_v54  ;;  %v27959_v54 = vld [vmem:[#allocation52_spill] sm:$0xff] }
 0xc0b   :  { %v26492_v12 = vpop.eup %26491 }
 0xc0c   :  { %v18759_v48 = vmul.f32 %v26492_v12, %v26490_v3  ;;  %v27957_v3 = vpack.c.bf16 %v27955_v52, %v27956_v63  ;;  %v27960_v12 = vpack.c.bf16 %v27958_v17, %v27959_v54 }
 0xc0e   :  { %18760 = vst.msk [vmem:[#allocation12] sm:$0xff] %vm18748_vm0, %v18759_v48  ;;  %22325 = vmatmul.mubr.msk.f32.vlgmr.msra.gmra.mrb[54].mxu0 %vm18748_vm0, %v18759_v48  ;;  %22326 = vmatmul.mubr.msk.f32.vlgmr.msra.gmra.mrb[54].mxu1 %vm18748_vm0, %v18759_v48 }
 0xc0f   :  { %22366 = vmatpush1.bf16.msra.mxu1 %v27913_v14  ;;  %18970 = vmatprep.mubr.f32.mxu1 %v26768_v22 }
 0xc10   :  { %22368 = vmatprep.subr.bf16.mxu1 %v22367_v59  ;;  %v27940_v59 = vld [vmem:[#allocation39_spill] sm:$0xff] }
 0xc11   :  { %v27941_v31 = vpack.c.bf16 %v27939_v9, %v27940_v59  ;;  %v27966_v9 = vld [vmem:[#allocation55_spill] sm:$0xff] }
 0xc12   :  { %22327 = vmatmul.mubr.msk.f32.vlgmr.msra.gmra.mrb[56].mxu1 %vm18748_vm0, %v18759_v48 }
 0xc13   :  { %22370 = vmatpush1.bf16.msra.mxu1 %v22369_v23  ;;  %19041 = vmatprep.mubr.f32.mxu1 %v26768_v22  ;;  %v27938_v23 = vld [vmem:[#allocation23_spill] sm:$0xff] }
 0xc14   :  { %22372 = vmatprep.subr.bf16.mxu1 %v22371_v44  ;;  %v27948_v44 = vld [vmem:[#allocation43_spill] sm:$0xff] }
 0xc15   :  { %v27949_v61 = vpack.c.bf16 %v27947_v62, %v27948_v44 }
 0xc16   :  { %22328 = vmatmul.mubr.msk.f32.vlgmr.msra.gmra.mrb[58].mxu1 %vm18748_vm0, %v18759_v48 }
 0xc17   :  { %22374 = vmatpush1.bf16.msra.mxu1 %v22373_v29  ;;  %19112 = vmatprep.mubr.f32.mxu1 %v26768_v22  ;;  %v27946_v29 = vld [vmem:[#allocation25_spill] sm:$0xff] }
 0xc18   :  { %22376 = vmatprep.subr.bf16.mxu1 %v27914_v35 }
 0xc1a   :  { %22329 = vmatmul.mubr.msk.f32.vlgmr.msra.gmra.mrb[60].mxu1 %vm18748_vm0, %v18759_v48 }
 0xc1b   :  { %19193 = vmatprep.mubr.f32.mxu1 %v27915_v41 }
 0xc20   :  { %22378 = vmatpush1.bf16.xpose.msra.mxu1 %v27918_v18 }
 0xc21   :  { %22380 = vmatprep.subr.bf16.mxu1 %v27921_v46 }
 0xc27   :  { %19194 = vmatmul.mubr.f32.vlgmr.msra.gmra.mrb[62].mxu1 %v27922_v21 }
 0xc28   :  { %22382 = vmatpush1.bf16.xpose.msra.mxu1 %v27925_v15  ;;  %19263 = vmatprep.mubr.f32.mxu1 %v27926_v27 }
 0xc29   :  { %22384 = vmatprep.subr.bf16.mxu1 %v27929_v1 }
 0xc2f   :  { %19264 = vmatmul.mubr.f32.vlgmr.msra.gmra.mrb[62].mxu1 %v27930_v16 }
 0xc30   :  { %22386 = vmatpush1.bf16.xpose.msra.mxu1 %v27933_v58  ;;  %19333 = vmatprep.mubr.f32.mxu1 %v27934_v60  ;;  %v27961_v60 = vld [vmem:[#allocation53_spill] sm:$0xff] }
 0xc31   :  { %22388 = vmatprep.subr.bf16.mxu1 %v27937_v37  ;;  %v27963_v49 = vpack.c.bf16 %v27961_v60, %v27962_v24  ;;  %v27964_v37 = vpack.c.bf16 %v27603_v43, %v27597_v36 }
 0xc37   :  { %19334 = vmatmul.mubr.f32.vlgmr.msra.gmra.mrb[62].mxu1 %v27938_v23  ;;  %v27965_v23 = vld [vmem:[#allocation56_spill] sm:$0xff] }
 0xc38   :  { %22390 = vmatpush1.bf16.xpose.msra.mxu1 %v27941_v31  ;;  %19403 = vmatprep.mubr.f32.mxu1 %v27942_v5  ;;  %v27967_v59 = vpack.c.bf16 %v27965_v23, %v27966_v9 }
 0xc39   :  { %22392 = vmatprep.subr.bf16.mxu1 %v27945_v53 }
 0xc3f   :  { %19404 = vmatmul.mubr.f32.vlgmr.msra.gmra.mrb[62].mxu1 %v27946_v29 }
 0xc40   :  { %22394 = vmatpush1.bf16.xpose.msra.mxu1 %v27949_v61  ;;  %19473 = vmatprep.mubr.f32.mxu1 %v27950_v32 }
 0xc41   :  { %22396 = vmatprep.subr.bf16.mxu1 %v27953_v45 }
 0xc47   :  { %19474 = vmatmul.mubr.f32.vlgmr.msra.gmra.mrb[62].mxu1 %v27954_v2 }
 0xc48   :  { %22398 = vmatpush1.bf16.msra.mxu1 %v27957_v3  ;;  %19559 = vmatprep.mubr.f32.mxu1 %v26768_v22 }
 0xc49   :  { %22400 = vmatprep.subr.bf16.mxu1 %v27960_v12 }
 0xce1   :  { %v18830_v48 = vpop.f32.mrb[54].mxu0  ;;  %v18901_v14 = vpop.f32.mrb[54].mxu1 }
 0xce2   :  { %19119 = vst [vmem:[#allocation11] sm:$0xff] %v18830_v48  ;;  %19121 = vst [vmem:[#allocation11 + $0x10] sm:$0xff] %v18901_v14  ;;  %v18832_v35 = vpop.f32.mrb[55].mxu0  ;;  %v18903_v41 = vpop.f32.mrb[55].mxu1 }
 0xce3   :  { %19120 = vst [vmem:[#allocation11 + $0x8] sm:$0xff] %v18832_v35  ;;  %19122 = vst [vmem:[#allocation11 + $0x18] sm:$0xff] %v18903_v41 }
 0xce5   :  { %v18972_v13 = vpop.f32.mrb[56].mxu1 }
 0xce6   :  { %19123 = vst [vmem:[#allocation11 + $0x20] sm:$0xff] %v18972_v13  ;;  %v18974_v34 = vpop.f32.mrb[57].mxu1 }
 0xce7   :  { %19124 = vst [vmem:[#allocation11 + $0x28] sm:$0xff] %v18974_v34 }
 0xce9   :  { %v19043_v18 = vpop.f32.mrb[58].mxu1 }
 0xcea   :  { %19125 = vst [vmem:[#allocation11 + $0x30] sm:$0xff] %v19043_v18  ;;  %v19045_v51 = vpop.f32.mrb[59].mxu1 }
 0xceb   :  { %19126 = vst [vmem:[#allocation11 + $0x38] sm:$0xff] %v19045_v51 }
 0xced   :  { %v19114_v47 = vpop.f32.mrb[60].mxu1 }
 0xcee   :  { %19127 = vst [vmem:[#allocation11 + $0x40] sm:$0xff] %v19114_v47  ;;  %v19116_v46 = vpop.f32.mrb[61].mxu1 }
 0xcef   :  { %19128 = vst [vmem:[#allocation11 + $0x48] sm:$0xff] %v19116_v46 }
 0xd1a   :  { %v19475_v21 = vpop.f32.mrb[62].mxu1 }
 0xd1b   :  { %v19479_v6 = vmul.f32 0.02795085, %v19475_v21  ;;  %v19477_v0 = vpop.f32.mrb[63].mxu1 }
 0xd1d   :  { %v19480_v15 = vsel %vm18748_vm0, %v19479_v6, -inf }
 0xd1e   :  { %19481 = vmax.xlane.f32.xlu1 %v19480_v15 }
 0xdab   :  { %v19482_v27 = vpop.xlane.xlu1 %19481 }
 0xdac   :  { %v19483_v30 = vsub.f32 %v19479_v6, %v19482_v27 }
 0xdae   :  { %v19484_v55 = vmul.f32 1.442695, %v19483_v30 }
 0xdb0   :  { %26493 = vpow2.f32 %v19484_v55 }
 0xdba   :  { %v26494_v1 = vpop.eup %26493 }
 0xdbb   :  { %v19486_v16 = vsel %vm18748_vm0, %v26494_v1, 0.0 }
 0xdbc   :  { %19487 = vadd.xlane.f32.xlu1 %v19486_v16 }
 0xe49   :  { %v19488_v50 = vpop.xlane.xlu1 %19487 }
 0xe4a   :  { %26495 = vrcp.f32 %v19488_v50 }
 0xe54   :  { %v26496_v11 = vpop.eup %26495 }
 0xe55   :  { %v19490_v58 = vmul.f32 %v26496_v11, %v26494_v1 }
 0xe57   :  { %19491 = vst.msk [vmem:[#allocation12 + $0x8] sm:$0xff] %vm18748_vm0, %v19490_v58  ;;  %22330 = vmatmul.mubr.msk.f32.vlgmr.msra.gmra.mrb[64].mxu1 %vm18748_vm0, %v19490_v58 }
 0xe58   :  { %22402 = vmatpush1.bf16.msra.mxu1 %v27963_v49  ;;  %19630 = vmatprep.mubr.f32.mxu1 %v26768_v22 }
 0xe59   :  { %22404 = vmatprep.subr.bf16.mxu1 %v27964_v37 }
 0xe5b   :  { %22331 = vmatmul.mubr.msk.f32.vlgmr.msra.gmra.mrb[66].mxu1 %vm18748_vm0, %v19490_v58 }
 0xe5c   :  { %22406 = vmatpush1.bf16.msra.mxu1 %v27967_v59  ;;  %19701 = vmatprep.mubr.f32.mxu1 %v26768_v22 }
 0xe5d   :  { %22408 = vmatprep.subr.bf16.mxu1 %v22407_v7 }
 0xe5f   :  { %22332 = vmatmul.mubr.msk.f32.vlgmr.msra.gmra.mrb[68].mxu1 %vm18748_vm0, %v19490_v58 }
 0xe60   :  { %22410 = vmatpush1.bf16.msra.mxu1 %v22409_v33  ;;  %19772 = vmatprep.mubr.f32.mxu1 %v26768_v22 }
 0xe61   :  { %22412 = vmatprep.subr.bf16.mxu1 %v22411_v26 }
 0xe63   :  { %22333 = vmatmul.mubr.msk.f32.vlgmr.msra.gmra.mrb[70].mxu1 %vm18748_vm0, %v19490_v58 }
 0xe64   :  { %22414 = vmatpush1.bf16.msra.mxu1 %v22413_v19  ;;  %19843 = vmatprep.mubr.f32.mxu1 %v26768_v22 }
 0xe67   :  { %22334 = vmatmul.mubr.msk.f32.vlgmr.msra.gmra.mrb[72].mxu1 %vm18748_vm0, %v19490_v58 }
 0xe68   :  { %26718 = shalt.err (!%p26715_p2)
}
 0xe69   :  { %s26719_s24 = scalar_lea.hbm %s27831_s6, 256 }
 0xe6a   :  { %p26720_p3 = scmp.ne.s32.totalorder %s27831_s6, %s26719_s24  ;;  %p26723_p4 = scmp.lt.u32.totalorder %s26719_s24, %s27831_s6 }
 0xe6c   :  { %p26725_p5 = pnand %p26723_p4, %p26720_p3 }
 0xe6e   :  { %26728 = shalt.err (!%p26725_p5)
}
 0xe6f   :  { %s26770_s16 = smov 128   ;;  %s26771_s17 = smov 8  }
 0xe70   :  { %19883 = dma.vmem_to_hbm [thread:$0]  %s19878_s9, 256, %s27831_s6, [#allocation13], %s26770_s16, %s26770_s16, %s26771_s17  }
 0xe71   :  { %s26772_s20 = smov [#allocation11]  }
 0xe72   :  { %s19865_s0 = sshll.u32 %s26772_s20, 4  ;;  %s19866_s0 = int_to_ptr.vmem [resolvable:$true] %s19865_s0 }
 0xe73   :  { %s26729_s6 = scalar_lea.vmem %s19866_s0, 2560  ;;  %p26734_p7 = scmp.lt.s32.totalorder %s19866_s0, %s19866_s0 }
 0xe74   :  { %p26730_p6 = scmp.ne.s32.totalorder %s19866_s0, %s26729_s6  ;;  %p26735_p8 = scmp.lt.s32.totalorder %s26729_s6, %s26729_s6 }
 0xe76   :  { %p26736_p9 = por %p26735_p8, %p26734_p7 }
 0xe78   :  { %p26737_p10 = pnand %p26736_p9, %p26730_p6 }
 0xf2a   :  { %v19561_v36 = vpop.f32.mrb[64].mxu1 }
 0xf2b   :  { %19850 = vst [vmem:[#allocation11 + $0x50] sm:$0xff] %v19561_v36  ;;  %v19563_v43 = vpop.f32.mrb[65].mxu1 }
 0xf2c   :  { %19851 = vst [vmem:[#allocation11 + $0x58] sm:$0xff] %v19563_v43 }
 0xf2e   :  { %v19632_v57 = vpop.f32.mrb[66].mxu1 }
 0xf2f   :  { %19852 = vst [vmem:[#allocation11 + $0x60] sm:$0xff] %v19632_v57  ;;  %v19634_v40 = vpop.f32.mrb[67].mxu1 }
 0xf30   :  { %19853 = vst [vmem:[#allocation11 + $0x68] sm:$0xff] %v19634_v40 }
 0xf32   :  { %v19703_v28 = vpop.f32.mrb[68].mxu1 }
 0xf33   :  { %19854 = vst [vmem:[#allocation11 + $0x70] sm:$0xff] %v19703_v28  ;;  %v19705_v33 = vpop.f32.mrb[69].mxu1 }
 0xf34   :  { %19855 = vst [vmem:[#allocation11 + $0x78] sm:$0xff] %v19705_v33 }
 0xf36   :  { %v19774_v39 = vpop.f32.mrb[70].mxu1 }
 0xf37   :  { %19856 = vst [vmem:[#allocation11 + $0x80] sm:$0xff] %v19774_v39  ;;  %v19776_v7 = vpop.f32.mrb[71].mxu1 }
 0xf38   :  { %19857 = vst [vmem:[#allocation11 + $0x88] sm:$0xff] %v19776_v7 }
 0xf3a   :  { %v19845_v10 = vpop.f32.mrb[72].mxu1 }
 0xf3b   :  { %19858 = vst [vmem:[#allocation11 + $0x90] sm:$0xff] %v19845_v10  ;;  %v19847_v25 = vpop.f32.mrb[73].mxu1 }
 0xf3c   :  { %19859 = vst [vmem:[#allocation11 + $0x98] sm:$0xff] %v19847_v25 }
 0xf3d   :  { %26740 = shalt.err (!%p26737_p10)
}
 0xf3e   :  { %s26741_s22 = scalar_lea.hbm %s27830_s5, 2560 }
 0xf3f   :  { %p26742_p11 = scmp.ne.s32.totalorder %s27830_s5, %s26741_s22  ;;  %p26745_p12 = scmp.lt.u32.totalorder %s26741_s22, %s27830_s5 }
 0xf41   :  { %p26747_p13 = pnand %p26745_p12, %p26742_p11 }
 0xf43   :  { %26750 = shalt.err (!%p26747_p13)
}
 0xf44   :  { %s26773_s29 = smov 1280   ;;  %s26774_s30 = smov 80  }
 0xf45   :  { %19871 = dma.vmem_to_hbm [thread:$0]  %s19866_s0, 2560, %s27830_s5, [#allocation4], %s26773_s29, %s26773_s29, %s26774_s30  }
 0xf46   :  { %26757 = dma.done.wait [#allocation4], 2560  }
 0xf47   :  { %26758 = vsyncadd [#allocation4], 4294964736 }
 0xf48   :  { %26759 = dma.done.wait [#allocation13], 256  }
 0xf49   :  { %26760 = vsyncadd [#allocation13], 4294967040 }
 0xf4a   :  { %19890 = vsyncpa [#allocation3], 1 }
 0xf4b   :  { %19891 = vsyncpa [#allocation6], 1 }
 0xf4c   :  { %19892 = vsyncpa [#allocation9], 1 }
 0xf4d   :  { %19893 = vsyncpa [#allocation4], 1 }
 0xf4e   :  { %19894 = vsyncpa [#allocation13], 1 }

</bundles_post_ra>
